<compile_context>
chip_gen: v6e
topology: v6e:2x2x1
jax: 0.10.0
libtpu: 0.0.40
codegen_flags: <defaults>
</compile_context>

<pallas_src>
import math

import jax
import jax.numpy as jnp
from jax import lax
from jax.experimental import pallas as pl
from jax.experimental.pallas import tpu as pltpu

# ----------------------- model dims (small, synthetic) -----------------------
B, L, T = 2, 16, 8            # batch, source length, target length
H, V, NH, FF = 32, 64, 4, 64  # hidden, vocab, heads, ffn dim
DH = H // NH
MAXPOS = 32
LN_EPS = 1e-5


# --------------------------- packed-parameter layout --------------------------
def _offsets(order):
    off, o = {}, 0
    for name, rows in order:
        off[name] = (o, rows)
        o += rows
    return off, o


# matrices whose last dim is H, stacked along rows (all row offsets % 8 == 0)
_W_ORDER = (
    ("word_emb", V), ("pos_emb", MAXPOS),
    ("enc_wq", H), ("enc_wk", H), ("enc_wv", H), ("enc_wo", H), ("enc_w2", FF),
    ("ds_wq", H), ("ds_wk", H), ("ds_wv", H), ("ds_wo", H),
    ("dc_wq", H), ("dc_wk", H), ("dc_wv", H), ("dc_wo", H), ("dec_w2", FF),
    ("dense_w", H),
)
_W_OFF, _W_ROWS = _offsets(_W_ORDER)

# matrices whose last dim is FF
_F_ORDER = (("enc_w1", H), ("dec_w1", H))
_F_OFF, _F_ROWS = _offsets(_F_ORDER)

# bias / LN / token-type vectors: one row each, zero-padded to width FF (>= H)
_V_ORDER = (
    ("tt", H), ("emb_g", H), ("emb_b", H),
    ("enc_bq", H), ("enc_bk", H), ("enc_bv", H), ("enc_bo", H),
    ("enc_aln_g", H), ("enc_aln_b", H),
    ("enc_b1", FF), ("enc_b2", H), ("enc_fln_g", H), ("enc_fln_b", H),
    ("ds_bq", H), ("ds_bk", H), ("ds_bv", H), ("ds_bo", H),
    ("ln1_g", H), ("ln1_b", H),
    ("dc_bq", H), ("dc_bk", H), ("dc_bv", H), ("dc_bo", H),
    ("ln2_g", H), ("ln2_b", H),
    ("dec_b1", FF), ("dec_b2", H), ("ln3_g", H), ("ln3_b", H),
    ("dense_b", H),
)
_V_ROW = {name: i for i, (name, _) in enumerate(_V_ORDER)}
_V_LEN = dict(_V_ORDER)
_V_WIDTH = FF
_V_ROWS = (len(_V_ORDER) + 7) // 8 * 8


# --------------------------- in-kernel slice helpers ---------------------------
def _w(ref, name):
    o, r = _W_OFF[name]
    return ref[o:o + r, :]


def _f(ref, name):
    o, r = _F_OFF[name]
    return ref[o:o + r, :]


def _v(ref, name):
    i = _V_ROW[name]
    return ref[i:i + 1, 0:_V_LEN[name]]


# ------------------------------ in-kernel math --------------------------------
def _ln(x, g, b):
    mu = jnp.mean(x, axis=-1, keepdims=True)
    var = jnp.mean((x - mu) ** 2, axis=-1, keepdims=True)
    return (x - mu) * lax.rsqrt(var + LN_EPS) * g + b


def _gelu_exact(x):
    # exact (erf) GELU (HF RoBERTa); erf via Abramowitz–Stegun 7.1.26
    # (max abs err ~1.5e-7, i.e. f32-exact); uses only exp/mul/add.
    z = x * 0.7071067811865476
    s = jnp.where(z >= 0.0, 1.0, -1.0)
    az = jnp.abs(z)
    t = 1.0 / (1.0 + 0.3275911 * az)
    poly = ((((1.061405429 * t - 1.453152027) * t + 1.421413741) * t
             - 0.284496736) * t + 0.254829592) * t
    erf_z = s * (1.0 - poly * jnp.exp(-az * az))
    return 0.5 * x * (1.0 + erf_z)


def _attn(q, k, v, bias, wo, bo):
    """Multi-head attention for one batch element (2-D operands).

    Per-head scores/softmax/context, then the head contexts are placed once
    into (lq, H) and projected with a single wo matmul (no per-head
    accumulating matmul chain through the MXU result FIFO)."""
    scale = 1.0 / math.sqrt(DH)
    ctxs = []
    for h in range(NH):
        sl = slice(h * DH, (h + 1) * DH)
        s = lax.dot_general(q[:, sl], k[:, sl], (((1,), (1,)), ((), ())),
                            preferred_element_type=jnp.float32) * scale + bias
        s = s - jnp.max(s, axis=-1, keepdims=True)
        e = jnp.exp(s)
        p = e * pl.reciprocal(jnp.sum(e, axis=-1, keepdims=True), approx=True)
        ctxs.append(jnp.dot(p, v[:, sl], preferred_element_type=jnp.float32))
    ctx = jnp.concatenate(ctxs, axis=-1)                      # (lq, H)
    return jnp.dot(ctx, wo, preferred_element_type=jnp.float32) + bo


# ------------------------------ fused kernel ----------------------------------
def _seq2seq_kernel(src_ref, pos_ref, amask_ref, smask_ref, tgt_ref, tmask_ref,
                    w_ref, f_ref, v_ref, out_ref):
    f32 = jnp.float32
    pf = dict(preferred_element_type=f32)

    # load every packed weight / vector once (static ref slices)
    W = {name: _w(w_ref, name) for name, _ in _W_ORDER}
    F = {name: _f(f_ref, name) for name, _ in _F_ORDER}
    VEC = {name: _v(v_ref, name) for name, _ in _V_ORDER}

    # batch-independent pieces, built from iotas (no host inputs needed)
    causal = jnp.where(
        lax.broadcasted_iota(jnp.int32, (T, T), 1)
        <= lax.broadcasted_iota(jnp.int32, (T, T), 0), 0.0, -10000.0)
    tpos_oh = (lax.broadcasted_iota(jnp.int32, (T, MAXPOS), 1)
               == lax.broadcasted_iota(jnp.int32, (T, MAXPOS), 0) + 2).astype(f32)

    loss_sum = 0.0
    denom = 0.0
    cnt = 0.0

    for b in range(B):                                   # fully unrolled (B=2)
        # -------------------------- encoder --------------------------
        ids = src_ref[b * L:(b + 1) * L, :]              # (L,1) int32
        pos = pos_ref[b * L:(b + 1) * L, :]              # (L,1) int32
        amask = amask_ref[b].astype(f32)                 # (L,L)

        w_oh = (lax.broadcasted_iota(jnp.int32, (L, V), 1) == ids).astype(f32)
        emb = jnp.dot(w_oh, W["word_emb"], **pf)         # (L,H) gather-free lookup

        # graph-guided node averaging:
        #   avg = (amask @ (token*emb)) / (amask @ token + 1e-10), on node rows
        nodes = (pos == 0).astype(f32)                   # (L,1)
        token = (pos >= 2).astype(f32)                   # (L,1)
        num = jnp.dot(amask, emb * token, **pf)
        den = jnp.dot(amask, token, **pf)
        emb = emb * (1.0 - nodes) + (num / (den + 1e-10)) * nodes

        # RoBERTa embeddings (inputs_embeds path) + LN
        p_oh = (lax.broadcasted_iota(jnp.int32, (L, MAXPOS), 1) == pos).astype(f32)
        x = emb + jnp.dot(p_oh, W["pos_emb"], **pf) + VEC["tt"]
        x = _ln(x, VEC["emb_g"], VEC["emb_b"])

        # self-attention, post-LN (separate Q/K/V dots: no lane-offset slices)
        enc_bias = (1.0 - amask) * (-10000.0)
        q = jnp.dot(x, W["enc_wq"], **pf) + VEC["enc_bq"]
        k = jnp.dot(x, W["enc_wk"], **pf) + VEC["enc_bk"]
        v = jnp.dot(x, W["enc_wv"], **pf) + VEC["enc_bv"]
        a = _attn(q, k, v, enc_bias, W["enc_wo"], VEC["enc_bo"])
        x = _ln(x + a, VEC["enc_aln_g"], VEC["enc_aln_b"])

        # FFN (exact GELU), post-LN
        h = _gelu_exact(jnp.dot(x, F["enc_w1"], **pf) + VEC["enc_b1"])
        h = jnp.dot(h, W["enc_w2"], **pf) + VEC["enc_b2"]
        enc = _ln(x + h, VEC["enc_fln_g"], VEC["enc_fln_b"])   # (L,H)

        # -------------------------- decoder --------------------------
        tids = tgt_ref[b * T:(b + 1) * T, :]             # (T,1) int32
        t_oh = (lax.broadcasted_iota(jnp.int32, (T, V), 1) == tids).astype(f32)
        y = (jnp.dot(t_oh, W["word_emb"], **pf)
             + jnp.dot(tpos_oh, W["pos_emb"], **pf) + VEC["tt"])
        y = _ln(y, VEC["emb_g"], VEC["emb_b"])

        # masked self-attention (causal bias from iotas)
        q = jnp.dot(y, W["ds_wq"], **pf) + VEC["ds_bq"]
        k = jnp.dot(y, W["ds_wk"], **pf) + VEC["ds_bk"]
        v = jnp.dot(y, W["ds_wv"], **pf) + VEC["ds_bv"]
        a = _attn(q, k, v, causal, W["ds_wo"], VEC["ds_bo"])
        y = _ln(y + a, VEC["ln1_g"], VEC["ln1_b"])

        # cross-attention over encoder memory with key-padding bias.
        # TODO(synk): PyTorch uses -inf for key_padding_mask; -1e9 keeps fully
        #             masked rows finite instead of NaN.
        cross_bias = jnp.where(smask_ref[b:b + 1, :] > 0, 0.0, -1e9)   # (1,L)
        q = jnp.dot(y, W["dc_wq"], **pf) + VEC["dc_bq"]
        k = jnp.dot(enc, W["dc_wk"], **pf) + VEC["dc_bk"]
        v = jnp.dot(enc, W["dc_wv"], **pf) + VEC["dc_bv"]
        a = _attn(q, k, v, cross_bias, W["dc_wo"], VEC["dc_bo"])
        y = _ln(y + a, VEC["ln2_g"], VEC["ln2_b"])

        # FFN (relu, nn.TransformerDecoderLayer default), post-LN
        h = jnp.maximum(jnp.dot(y, F["dec_w1"], **pf) + VEC["dec_b1"], 0.0)
        h = jnp.dot(h, W["dec_w2"], **pf) + VEC["dec_b2"]
        y = _ln(y + h, VEC["ln3_g"], VEC["ln3_b"])       # (T,H)

        # ---------------- head + tied lm_head + shifted masked CE ----------------
        hid = jnp.tanh(jnp.dot(y, W["dense_w"], **pf) + VEC["dense_b"])
        # tied lm_head: contract hidden[:,H] against word_emb[:,H] (trans_b
        # inside the kernel — logits never leave VMEM).
        logits = lax.dot_general(hid, W["word_emb"], (((1,), (1,)), ((), ())),
                                 preferred_element_type=f32)          # (T,V)
        lg = logits[0:T - 1, :]                          # shift_logits
        lbl = tids[1:T, :]                               # shift_labels
        tmask = tmask_ref[b * T:(b + 1) * T, :]
        act = (tmask[1:T, :] != 0).astype(f32)           # active_loss

        col = lax.broadcasted_iota(jnp.int32, (T - 1, V), 1)
        onehot = (col == lbl).astype(f32)
        m = jnp.max(lg, axis=-1, keepdims=True)
        lse = jnp.log(jnp.sum(jnp.exp(lg - m), axis=-1, keepdims=True)) + m
        picked = jnp.sum(lg * onehot, axis=-1, keepdims=True)
        valid = act * (lbl != -1).astype(f32)            # ignore_index=-1

        loss_sum = loss_sum + jnp.sum((lse - picked) * valid)
        denom = denom + jnp.sum(valid)
        cnt = cnt + jnp.sum(act)

    # torch gives NaN when nothing is active; guard with max(., 1) instead
    loss = loss_sum / jnp.maximum(denom, 1.0)
    out_ref[...] = jnp.concatenate(
        [loss.reshape(1, 1), (loss * cnt).reshape(1, 1), cnt.reshape(1, 1)], axis=1)


# ------------------------------ forward wrapper -------------------------------
def _full_spec(shape):
    nd = len(shape)
    return pl.BlockSpec(shape, lambda i, _nd=nd: (0,) * _nd)


def seq2seq_forward(packed, source_ids, source_mask, position_idx, attn_mask,
                    target_ids, target_mask):
    # Only per-step host glue: four tiny int32 reshapes. Weights are packed once
    # at init; masks are passed as int and converted in-kernel; positions /
    # causal mask / one-hots are built from iotas in-kernel.
    inputs = [
        source_ids.reshape(B * L, 1),
        position_idx.reshape(B * L, 1),
        attn_mask,
        source_mask,
        target_ids.reshape(B * T, 1),
        target_mask.reshape(B * T, 1),
        packed["wpack"], packed["fpack"], packed["vpack"],
    ]
    out = pl.pallas_call(
        _seq2seq_kernel,
        out_shape=jax.ShapeDtypeStruct((1, 3), jnp.float32),
        grid=(1,),
        in_specs=[_full_spec(x.shape) for x in inputs],
        out_specs=_full_spec((1, 3)),
        # single launch; one core is right at these toy dims.
        # TODO(synk): at real GraphCodeBERT dims add a 'parallel' batch/row grid
        #             axis (v7x second TensorCore), gather embeddings via scalar
        #             prefetch, and tile the vocab-sized lm_head/CE with a
        #             running (max, sum-exp) accumulator + explicit vmem limit.
        compiler_params=pltpu.CompilerParams(dimension_semantics=("arbitrary",)),
    )(*inputs)
    return out[0, 0], out[0, 1], out[0, 2]


# ------------------------------ parameter init -------------------------------
def init_params(key):
    keys = jax.random.split(key, 64)
    it = iter(keys)

    def w(shape, s=0.02):
        return jax.random.normal(next(it), shape, jnp.float32) * s

    def attn():
        return {"wq": w((H, H)), "bq": jnp.zeros((H,), jnp.float32),
                "wk": w((H, H)), "bk": jnp.zeros((H,), jnp.float32),
                "wv": w((H, H)), "bv": jnp.zeros((H,), jnp.float32),
                "wo": w((H, H)), "bo": jnp.zeros((H,), jnp.float32)}

    ones = lambda: jnp.ones((H,), jnp.float32)
    zeros = lambda: jnp.zeros((H,), jnp.float32)
    return {
        "word_emb": w((V, H)), "pos_emb": w((MAXPOS, H)), "tt_emb": w((2, H)),
        "emb_ln_g": ones(), "emb_ln_b": zeros(),
        "enc_attn": attn(), "enc_attn_ln_g": ones(), "enc_attn_ln_b": zeros(),
        "enc_ffn_w1": w((H, FF)), "enc_ffn_b1": jnp.zeros((FF,), jnp.float32),
        "enc_ffn_w2": w((FF, H)), "enc_ffn_b2": zeros(),
        "enc_ffn_ln_g": ones(), "enc_ffn_ln_b": zeros(),
        "dec_self": attn(), "dec_ln1_g": ones(), "dec_ln1_b": zeros(),
        "dec_cross": attn(), "dec_ln2_g": ones(), "dec_ln2_b": zeros(),
        "dec_ffn_w1": w((H, FF)), "dec_ffn_b1": jnp.zeros((FF,), jnp.float32),
        "dec_ffn_w2": w((FF, H)), "dec_ffn_b2": zeros(),
        "dec_ln3_g": ones(), "dec_ln3_b": zeros(),
        "dense_w": w((H, H)), "dense_b": zeros(),
    }


def pack_params(p):
    """One-time packing of all weights into three DMA-friendly buffers."""
    ea, ds, dc = p["enc_attn"], p["dec_self"], p["dec_cross"]
    wmats = {
        "word_emb": p["word_emb"], "pos_emb": p["pos_emb"],
        "enc_wq": ea["wq"], "enc_wk": ea["wk"], "enc_wv": ea["wv"], "enc_wo": ea["wo"],
        "enc_w2": p["enc_ffn_w2"],
        "ds_wq": ds["wq"], "ds_wk": ds["wk"], "ds_wv": ds["wv"], "ds_wo": ds["wo"],
        "dc_wq": dc["wq"], "dc_wk": dc["wk"], "dc_wv": dc["wv"], "dc_wo": dc["wo"],
        "dec_w2": p["dec_ffn_w2"], "dense_w": p["dense_w"],
    }
    fmats = {"enc_w1": p["enc_ffn_w1"], "dec_w1": p["dec_ffn_w1"]}
    vecs = {
        "tt": p["tt_emb"][0], "emb_g": p["emb_ln_g"], "emb_b": p["emb_ln_b"],
        "enc_bq": ea["bq"], "enc_bk": ea["bk"], "enc_bv": ea["bv"], "enc_bo": ea["bo"],
        "enc_aln_g": p["enc_attn_ln_g"], "enc_aln_b": p["enc_attn_ln_b"],
        "enc_b1": p["enc_ffn_b1"], "enc_b2": p["enc_ffn_b2"],
        "enc_fln_g": p["enc_ffn_ln_g"], "enc_fln_b": p["enc_ffn_ln_b"],
        "ds_bq": ds["bq"], "ds_bk": ds["bk"], "ds_bv": ds["bv"], "ds_bo": ds["bo"],
        "ln1_g": p["dec_ln1_g"], "ln1_b": p["dec_ln1_b"],
        "dc_bq": dc["bq"], "dc_bk": dc["bk"], "dc_bv": dc["bv"], "dc_bo": dc["bo"],
        "ln2_g": p["dec_ln2_g"], "ln2_b": p["dec_ln2_b"],
        "dec_b1": p["dec_ffn_b1"], "dec_b2": p["dec_ffn_b2"],
        "ln3_g": p["dec_ln3_g"], "ln3_b": p["dec_ln3_b"],
        "dense_b": p["dense_b"],
    }
    wpack = jnp.concatenate([wmats[n] for n, _ in _W_ORDER], axis=0)
    fpack = jnp.concatenate([fmats[n] for n, _ in _F_ORDER], axis=0)
    rows = [jnp.pad(vecs[n], (0, _V_WIDTH - ln)).reshape(1, _V_WIDTH)
            for n, ln in _V_ORDER]
    pad_rows = _V_ROWS - len(_V_ORDER)
    if pad_rows:
        rows.append(jnp.zeros((pad_rows, _V_WIDTH), jnp.float32))
    vpack = jnp.concatenate(rows, axis=0)
    return {"wpack": wpack, "fpack": fpack, "vpack": vpack}


# ------------------------------------ main ------------------------------------
if __name__ == "__main__":
    key = jax.random.PRNGKey(0)
    kp, k1, k2, k3 = jax.random.split(key, 4)
    params = pack_params(init_params(kp))   # packed once, outside the forward

    source_ids = jax.random.randint(k1, (B, L), 0, V, dtype=jnp.int32)
    # first 4 positions are graph "nodes" (pos 0), rest are code tokens (pos >= 2)
    position_idx = jnp.broadcast_to(
        jnp.concatenate([jnp.zeros((4,), jnp.int32),
                         jnp.arange(2, 2 + (L - 4), dtype=jnp.int32)]), (B, L))
    attn_mask = (jax.random.uniform(k2, (B, L, L)) > 0.2).astype(jnp.int32)
    source_mask = jnp.concatenate(
        [jnp.ones((B, L - 3), jnp.int32), jnp.zeros((B, 3), jnp.int32)], axis=1)
    target_ids = jax.random.randint(k3, (B, T), 0, V, dtype=jnp.int32)
    target_mask = jnp.concatenate(
        [jnp.ones((B, T - 2), jnp.int32), jnp.zeros((B, 2), jnp.int32)], axis=1)

    fwd = jax.jit(seq2seq_forward)
    loss, loss_x_count, count = fwd(params, source_ids, source_mask, position_idx,
                                    attn_mask, target_ids, target_mask)
    jax.block_until_ready((loss, loss_x_count, count))
    print("KERNEL_OK")
</pallas_src>

<mosaic_0001>
module attributes {stable_mosaic.version = 11 : i64} {
  func.func @_seq2seq_kernel(%arg0: i32, %arg1: memref<32x1xi32, #tpu.memory_space<vmem>>, %arg2: memref<32x1xi32, #tpu.memory_space<vmem>>, %arg3: memref<2x16x16xi32, #tpu.memory_space<vmem>>, %arg4: memref<2x16xi32, #tpu.memory_space<vmem>>, %arg5: memref<16x1xi32, #tpu.memory_space<vmem>>, %arg6: memref<16x1xi32, #tpu.memory_space<vmem>>, %arg7: memref<640x32xf32, #tpu.memory_space<vmem>>, %arg8: memref<64x64xf32, #tpu.memory_space<vmem>>, %arg9: memref<32x64xf32, #tpu.memory_space<vmem>>, %arg10: memref<1x3xf32, #tpu.memory_space<vmem>>) attributes {dimension_semantics = [#tpu.dimension_semantics<arbitrary>], iteration_bounds = array<i64: 1>, scalar_prefetch = 0 : i64, scratch_operands = 0 : i64, tpu.core_type = #tpu.core_type<tc>, window_params = [{pipeline_mode = #tpu.pipeline_mode<synchronous>, transform_indices = @transform_0, window_bounds = array<i64: 32, 1>}, {pipeline_mode = #tpu.pipeline_mode<synchronous>, transform_indices = @transform_1, window_bounds = array<i64: 32, 1>}, {pipeline_mode = #tpu.pipeline_mode<synchronous>, transform_indices = @transform_2, window_bounds = array<i64: 2, 16, 16>}, {pipeline_mode = #tpu.pipeline_mode<synchronous>, transform_indices = @transform_3, window_bounds = array<i64: 2, 16>}, {pipeline_mode = #tpu.pipeline_mode<synchronous>, transform_indices = @transform_4, window_bounds = array<i64: 16, 1>}, {pipeline_mode = #tpu.pipeline_mode<synchronous>, transform_indices = @transform_5, window_bounds = array<i64: 16, 1>}, {pipeline_mode = #tpu.pipeline_mode<synchronous>, transform_indices = @transform_6, window_bounds = array<i64: 640, 32>}, {pipeline_mode = #tpu.pipeline_mode<synchronous>, transform_indices = @transform_7, window_bounds = array<i64: 64, 64>}, {pipeline_mode = #tpu.pipeline_mode<synchronous>, transform_indices = @transform_8, window_bounds = array<i64: 32, 64>}, {pipeline_mode = #tpu.pipeline_mode<synchronous>, transform_indices = @transform_9, window_bounds = array<i64: 1, 3>}]} {
    %c0 = arith.constant 0 : index
    %c0_0 = arith.constant 0 : index
    %0 = vector.load %arg7[%c0, %c0_0] : memref<640x32xf32, #tpu.memory_space<vmem>>, vector<64x32xf32>
    %c64 = arith.constant 64 : index
    %c0_1 = arith.constant 0 : index
    %1 = vector.load %arg7[%c64, %c0_1] : memref<640x32xf32, #tpu.memory_space<vmem>>, vector<32x32xf32>
    %c96 = arith.constant 96 : index
    %c0_2 = arith.constant 0 : index
    %2 = vector.load %arg7[%c96, %c0_2] : memref<640x32xf32, #tpu.memory_space<vmem>>, vector<32x32xf32>
    %c128 = arith.constant 128 : index
    %c0_3 = arith.constant 0 : index
    %3 = vector.load %arg7[%c128, %c0_3] : memref<640x32xf32, #tpu.memory_space<vmem>>, vector<32x32xf32>
    %c160 = arith.constant 160 : index
    %c0_4 = arith.constant 0 : index
    %4 = vector.load %arg7[%c160, %c0_4] : memref<640x32xf32, #tpu.memory_space<vmem>>, vector<32x32xf32>
    %c192 = arith.constant 192 : index
    %c0_5 = arith.constant 0 : index
    %5 = vector.load %arg7[%c192, %c0_5] : memref<640x32xf32, #tpu.memory_space<vmem>>, vector<32x32xf32>
    %c224 = arith.constant 224 : index
    %c0_6 = arith.constant 0 : index
    %6 = vector.load %arg7[%c224, %c0_6] : memref<640x32xf32, #tpu.memory_space<vmem>>, vector<64x32xf32>
    %c288 = arith.constant 288 : index
    %c0_7 = arith.constant 0 : index
    %7 = vector.load %arg7[%c288, %c0_7] : memref<640x32xf32, #tpu.memory_space<vmem>>, vector<32x32xf32>
    %c320 = arith.constant 320 : index
    %c0_8 = arith.constant 0 : index
    %8 = vector.load %arg7[%c320, %c0_8] : memref<640x32xf32, #tpu.memory_space<vmem>>, vector<32x32xf32>
    %c352 = arith.constant 352 : index
    %c0_9 = arith.constant 0 : index
    %9 = vector.load %arg7[%c352, %c0_9] : memref<640x32xf32, #tpu.memory_space<vmem>>, vector<32x32xf32>
    %c384 = arith.constant 384 : index
    %c0_10 = arith.constant 0 : index
    %10 = vector.load %arg7[%c384, %c0_10] : memref<640x32xf32, #tpu.memory_space<vmem>>, vector<32x32xf32>
    %c416 = arith.constant 416 : index
    %c0_11 = arith.constant 0 : index
    %11 = vector.load %arg7[%c416, %c0_11] : memref<640x32xf32, #tpu.memory_space<vmem>>, vector<32x32xf32>
    %c448 = arith.constant 448 : index
    %c0_12 = arith.constant 0 : index
    %12 = vector.load %arg7[%c448, %c0_12] : memref<640x32xf32, #tpu.memory_space<vmem>>, vector<32x32xf32>
    %c480 = arith.constant 480 : index
    %c0_13 = arith.constant 0 : index
    %13 = vector.load %arg7[%c480, %c0_13] : memref<640x32xf32, #tpu.memory_space<vmem>>, vector<32x32xf32>
    %c512 = arith.constant 512 : index
    %c0_14 = arith.constant 0 : index
    %14 = vector.load %arg7[%c512, %c0_14] : memref<640x32xf32, #tpu.memory_space<vmem>>, vector<32x32xf32>
    %c544 = arith.constant 544 : index
    %c0_15 = arith.constant 0 : index
    %15 = vector.load %arg7[%c544, %c0_15] : memref<640x32xf32, #tpu.memory_space<vmem>>, vector<64x32xf32>
    %c608 = arith.constant 608 : index
    %c0_16 = arith.constant 0 : index
    %16 = vector.load %arg7[%c608, %c0_16] : memref<640x32xf32, #tpu.memory_space<vmem>>, vector<32x32xf32>
    %c0_17 = arith.constant 0 : index
    %c0_18 = arith.constant 0 : index
    %17 = vector.load %arg8[%c0_17, %c0_18] : memref<64x64xf32, #tpu.memory_space<vmem>>, vector<32x64xf32>
    %c32 = arith.constant 32 : index
    %c0_19 = arith.constant 0 : index
    %18 = vector.load %arg8[%c32, %c0_19] : memref<64x64xf32, #tpu.memory_space<vmem>>, vector<32x64xf32>
    %c0_20 = arith.constant 0 : index
    %c0_21 = arith.constant 0 : index
    %19 = vector.load %arg9[%c0_20, %c0_21] : memref<32x64xf32, #tpu.memory_space<vmem>>, vector<1x32xf32>
    %c1 = arith.constant 1 : index
    %c0_22 = arith.constant 0 : index
    %20 = vector.load %arg9[%c1, %c0_22] : memref<32x64xf32, #tpu.memory_space<vmem>>, vector<1x32xf32>
    %c2 = arith.constant 2 : index
    %c0_23 = arith.constant 0 : index
    %21 = vector.load %arg9[%c2, %c0_23] : memref<32x64xf32, #tpu.memory_space<vmem>>, vector<1x32xf32>
    %c3 = arith.constant 3 : index
    %c0_24 = arith.constant 0 : index
    %22 = vector.load %arg9[%c3, %c0_24] : memref<32x64xf32, #tpu.memory_space<vmem>>, vector<1x32xf32>
    %c4 = arith.constant 4 : index
    %c0_25 = arith.constant 0 : index
    %23 = vector.load %arg9[%c4, %c0_25] : memref<32x64xf32, #tpu.memory_space<vmem>>, vector<1x32xf32>
    %c5 = arith.constant 5 : index
    %c0_26 = arith.constant 0 : index
    %24 = vector.load %arg9[%c5, %c0_26] : memref<32x64xf32, #tpu.memory_space<vmem>>, vector<1x32xf32>
    %c6 = arith.constant 6 : index
    %c0_27 = arith.constant 0 : index
    %25 = vector.load %arg9[%c6, %c0_27] : memref<32x64xf32, #tpu.memory_space<vmem>>, vector<1x32xf32>
    %c7 = arith.constant 7 : index
    %c0_28 = arith.constant 0 : index
    %26 = vector.load %arg9[%c7, %c0_28] : memref<32x64xf32, #tpu.memory_space<vmem>>, vector<1x32xf32>
    %c8 = arith.constant 8 : index
    %c0_29 = arith.constant 0 : index
    %27 = vector.load %arg9[%c8, %c0_29] : memref<32x64xf32, #tpu.memory_space<vmem>>, vector<1x32xf32>
    %c9 = arith.constant 9 : index
    %c0_30 = arith.constant 0 : index
    %28 = vector.load %arg9[%c9, %c0_30] : memref<32x64xf32, #tpu.memory_space<vmem>>, vector<1x64xf32>
    %c10 = arith.constant 10 : index
    %c0_31 = arith.constant 0 : index
    %29 = vector.load %arg9[%c10, %c0_31] : memref<32x64xf32, #tpu.memory_space<vmem>>, vector<1x32xf32>
    %c11 = arith.constant 11 : index
    %c0_32 = arith.constant 0 : index
    %30 = vector.load %arg9[%c11, %c0_32] : memref<32x64xf32, #tpu.memory_space<vmem>>, vector<1x32xf32>
    %c12 = arith.constant 12 : index
    %c0_33 = arith.constant 0 : index
    %31 = vector.load %arg9[%c12, %c0_33] : memref<32x64xf32, #tpu.memory_space<vmem>>, vector<1x32xf32>
    %c13 = arith.constant 13 : index
    %c0_34 = arith.constant 0 : index
    %32 = vector.load %arg9[%c13, %c0_34] : memref<32x64xf32, #tpu.memory_space<vmem>>, vector<1x32xf32>
    %c14 = arith.constant 14 : index
    %c0_35 = arith.constant 0 : index
    %33 = vector.load %arg9[%c14, %c0_35] : memref<32x64xf32, #tpu.memory_space<vmem>>, vector<1x32xf32>
    %c15 = arith.constant 15 : index
    %c0_36 = arith.constant 0 : index
    %34 = vector.load %arg9[%c15, %c0_36] : memref<32x64xf32, #tpu.memory_space<vmem>>, vector<1x32xf32>
    %c16 = arith.constant 16 : index
    %c0_37 = arith.constant 0 : index
    %35 = vector.load %arg9[%c16, %c0_37] : memref<32x64xf32, #tpu.memory_space<vmem>>, vector<1x32xf32>
    %c17 = arith.constant 17 : index
    %c0_38 = arith.constant 0 : index
    %36 = vector.load %arg9[%c17, %c0_38] : memref<32x64xf32, #tpu.memory_space<vmem>>, vector<1x32xf32>
    %c18 = arith.constant 18 : index
    %c0_39 = arith.constant 0 : index
    %37 = vector.load %arg9[%c18, %c0_39] : memref<32x64xf32, #tpu.memory_space<vmem>>, vector<1x32xf32>
    %c19 = arith.constant 19 : index
    %c0_40 = arith.constant 0 : index
    %38 = vector.load %arg9[%c19, %c0_40] : memref<32x64xf32, #tpu.memory_space<vmem>>, vector<1x32xf32>
    %c20 = arith.constant 20 : index
    %c0_41 = arith.constant 0 : index
    %39 = vector.load %arg9[%c20, %c0_41] : memref<32x64xf32, #tpu.memory_space<vmem>>, vector<1x32xf32>
    %c21 = arith.constant 21 : index
    %c0_42 = arith.constant 0 : index
    %40 = vector.load %arg9[%c21, %c0_42] : memref<32x64xf32, #tpu.memory_space<vmem>>, vector<1x32xf32>
    %c22 = arith.constant 22 : index
    %c0_43 = arith.constant 0 : index
    %41 = vector.load %arg9[%c22, %c0_43] : memref<32x64xf32, #tpu.memory_space<vmem>>, vector<1x32xf32>
    %c23 = arith.constant 23 : index
    %c0_44 = arith.constant 0 : index
    %42 = vector.load %arg9[%c23, %c0_44] : memref<32x64xf32, #tpu.memory_space<vmem>>, vector<1x32xf32>
    %c24 = arith.constant 24 : index
    %c0_45 = arith.constant 0 : index
    %43 = vector.load %arg9[%c24, %c0_45] : memref<32x64xf32, #tpu.memory_space<vmem>>, vector<1x32xf32>
    %c25 = arith.constant 25 : index
    %c0_46 = arith.constant 0 : index
    %44 = vector.load %arg9[%c25, %c0_46] : memref<32x64xf32, #tpu.memory_space<vmem>>, vector<1x64xf32>
    %c26 = arith.constant 26 : index
    %c0_47 = arith.constant 0 : index
    %45 = vector.load %arg9[%c26, %c0_47] : memref<32x64xf32, #tpu.memory_space<vmem>>, vector<1x32xf32>
    %c27 = arith.constant 27 : index
    %c0_48 = arith.constant 0 : index
    %46 = vector.load %arg9[%c27, %c0_48] : memref<32x64xf32, #tpu.memory_space<vmem>>, vector<1x32xf32>
    %c28 = arith.constant 28 : index
    %c0_49 = arith.constant 0 : index
    %47 = vector.load %arg9[%c28, %c0_49] : memref<32x64xf32, #tpu.memory_space<vmem>>, vector<1x32xf32>
    %c29 = arith.constant 29 : index
    %c0_50 = arith.constant 0 : index
    %48 = vector.load %arg9[%c29, %c0_50] : memref<32x64xf32, #tpu.memory_space<vmem>>, vector<1x32xf32>
    %49 = tpu.iota {dimensions = array<i32: 1>} : vector<8x8xi32>
    %50 = tpu.iota {dimensions = array<i32: 0>} : vector<8x8xi32>
    %51 = arith.cmpi sle, %49, %50 : vector<8x8xi32>
    %cst = arith.constant 0.000000e+00 : f32
    %cst_51 = arith.constant -1.000000e+04 : f32
    %52 = vector.broadcast %cst : f32 to vector<8x8xf32>
    %53 = vector.broadcast %cst_51 : f32 to vector<8x8xf32>
    %54 = arith.select %51, %52, %53 : vector<8x8xi1>, vector<8x8xf32>
    %55 = tpu.iota {dimensions = array<i32: 1>} : vector<8x32xi32>
    %56 = tpu.iota {dimensions = array<i32: 0>} : vector<8x32xi32>
    %c2_i32 = arith.constant 2 : i32
    %57 = vector.broadcast %c2_i32 : i32 to vector<8x32xi32>
    %58 = arith.addi %56, %57 : vector<8x32xi32>
    %59 = arith.cmpi eq, %55, %58 : vector<8x32xi32>
    %60 = arith.extui %59 : vector<8x32xi1> to vector<8x32xi32>
    %61 = arith.sitofp %60 : vector<8x32xi32> to vector<8x32xf32>
    %c0_52 = arith.constant 0 : index
    %c0_53 = arith.constant 0 : index
    %62 = vector.load %arg1[%c0_52, %c0_53] : memref<32x1xi32, #tpu.memory_space<vmem>>, vector<16x1xi32>
    %c0_54 = arith.constant 0 : index
    %c0_55 = arith.constant 0 : index
    %63 = vector.load %arg2[%c0_54, %c0_55] : memref<32x1xi32, #tpu.memory_space<vmem>>, vector<16x1xi32>
    %c0_56 = arith.constant 0 : index
    %c0_57 = arith.constant 0 : index
    %c0_58 = arith.constant 0 : index
    %64 = vector.load %arg3[%c0_56, %c0_57, %c0_58] : memref<2x16x16xi32, #tpu.memory_space<vmem>>, vector<1x16x16xi32>
    %65 = vector.shape_cast %64 : vector<1x16x16xi32> to vector<16x16xi32>
    %66 = arith.sitofp %65 : vector<16x16xi32> to vector<16x16xf32>
    %67 = tpu.iota {dimensions = array<i32: 1>} : vector<16x64xi32>
    %68 = vector.broadcast %62 : vector<16x1xi32> to vector<16x64xi32>
    %69 = arith.cmpi eq, %67, %68 : vector<16x64xi32>
    %70 = arith.extui %69 : vector<16x64xi1> to vector<16x64xi32>
    %71 = arith.sitofp %70 : vector<16x64xi32> to vector<16x64xf32>
    %cst_59 = arith.constant dense<0.000000e+00> : vector<16x32xf32>
    %72 = tpu.matmul %71, %0, %cst_59 {dimension_numbers = #tpu.dot_dimension_numbers<[1], [0], [0], [1], [0, 0, 1, 1], [], []>} : vector<16x64xf32>, vector<64x32xf32>, vector<16x32xf32> -> vector<16x32xf32>
    %c0_i32 = arith.constant 0 : i32
    %73 = vector.broadcast %c0_i32 : i32 to vector<16x1xi32>
    %74 = arith.cmpi eq, %63, %73 : vector<16x1xi32>
    %75 = arith.extui %74 : vector<16x1xi1> to vector<16x1xi32>
    %76 = arith.sitofp %75 : vector<16x1xi32> to vector<16x1xf32>
    %c2_i32_60 = arith.constant 2 : i32
    %77 = vector.broadcast %c2_i32_60 : i32 to vector<16x1xi32>
    %78 = arith.cmpi sge, %63, %77 : vector<16x1xi32>
    %79 = arith.extui %78 : vector<16x1xi1> to vector<16x1xi32>
    %80 = arith.sitofp %79 : vector<16x1xi32> to vector<16x1xf32>
    %81 = vector.broadcast %80 : vector<16x1xf32> to vector<16x32xf32>
    %82 = arith.mulf %72, %81 : vector<16x32xf32>
    %cst_61 = arith.constant dense<0.000000e+00> : vector<16x32xf32>
    %83 = tpu.matmul %66, %82, %cst_61 {dimension_numbers = #tpu.dot_dimension_numbers<[1], [0], [0], [1], [0, 0, 1, 1], [], []>} : vector<16x16xf32>, vector<16x32xf32>, vector<16x32xf32> -> vector<16x32xf32>
    %cst_62 = arith.constant dense<0.000000e+00> : vector<16x1xf32>
    %84 = tpu.matmul %66, %80, %cst_62 {dimension_numbers = #tpu.dot_dimension_numbers<[1], [0], [0], [1], [0, 0, 1, 1], [], []>} : vector<16x16xf32>, vector<16x1xf32>, vector<16x1xf32> -> vector<16x1xf32>
    %cst_63 = arith.constant 1.000000e+00 : f32
    %85 = vector.broadcast %cst_63 : f32 to vector<16x1xf32>
    %86 = arith.subf %85, %76 : vector<16x1xf32>
    %87 = vector.broadcast %86 : vector<16x1xf32> to vector<16x32xf32>
    %88 = arith.mulf %72, %87 : vector<16x32xf32>
    %cst_64 = arith.constant 1.000000e-10 : f32
    %89 = vector.broadcast %cst_64 : f32 to vector<16x1xf32>
    %90 = arith.addf %84, %89 : vector<16x1xf32>
    %91 = vector.broadcast %90 : vector<16x1xf32> to vector<16x32xf32>
    %92 = arith.divf %83, %91 : vector<16x32xf32>
    %93 = vector.broadcast %76 : vector<16x1xf32> to vector<16x32xf32>
    %94 = arith.mulf %92, %93 : vector<16x32xf32>
    %95 = arith.addf %88, %94 : vector<16x32xf32>
    %96 = tpu.iota {dimensions = array<i32: 1>} : vector<16x32xi32>
    %97 = vector.broadcast %63 : vector<16x1xi32> to vector<16x32xi32>
    %98 = arith.cmpi eq, %96, %97 : vector<16x32xi32>
    %99 = arith.extui %98 : vector<16x32xi1> to vector<16x32xi32>
    %100 = arith.sitofp %99 : vector<16x32xi32> to vector<16x32xf32>
    %cst_65 = arith.constant dense<0.000000e+00> : vector<16x32xf32>
    %101 = tpu.matmul %100, %1, %cst_65 {dimension_numbers = #tpu.dot_dimension_numbers<[1], [0], [0], [1], [0, 0, 1, 1], [], []>} : vector<16x32xf32>, vector<32x32xf32>, vector<16x32xf32> -> vector<16x32xf32>
    %102 = arith.addf %95, %101 : vector<16x32xf32>
    %103 = vector.broadcast %19 : vector<1x32xf32> to vector<16x32xf32>
    %104 = arith.addf %102, %103 : vector<16x32xf32>
    %cst_66 = arith.constant dense<0.000000e+00> : vector<16xf32>
    %105 = vector.multi_reduction <add>, %104, %cst_66 [1] : vector<16x32xf32> to vector<16xf32>
    %106 = vector.shape_cast %105 : vector<16xf32> to vector<16x1xf32>
    %cst_67 = arith.constant 3.200000e+01 : f32
    %107 = vector.broadcast %cst_67 : f32 to vector<16x1xf32>
    %108 = arith.divf %106, %107 : vector<16x1xf32>
    %109 = vector.broadcast %108 : vector<16x1xf32> to vector<16x32xf32>
    %110 = arith.subf %104, %109 : vector<16x32xf32>
    %111 = arith.mulf %110, %110 : vector<16x32xf32>
    %cst_68 = arith.constant dense<0.000000e+00> : vector<16xf32>
    %112 = vector.multi_reduction <add>, %111, %cst_68 [1] : vector<16x32xf32> to vector<16xf32>
    %113 = vector.shape_cast %112 : vector<16xf32> to vector<16x1xf32>
    %cst_69 = arith.constant 3.200000e+01 : f32
    %114 = vector.broadcast %cst_69 : f32 to vector<16x1xf32>
    %115 = arith.divf %113, %114 : vector<16x1xf32>
    %116 = vector.broadcast %108 : vector<16x1xf32> to vector<16x32xf32>
    %117 = arith.subf %104, %116 : vector<16x32xf32>
    %cst_70 = arith.constant 9.99999974E-6 : f32
    %118 = vector.broadcast %cst_70 : f32 to vector<16x1xf32>
    %119 = arith.addf %115, %118 : vector<16x1xf32>
    %120 = math.rsqrt %119 : vector<16x1xf32>
    %121 = vector.broadcast %120 : vector<16x1xf32> to vector<16x32xf32>
    %122 = arith.mulf %117, %121 : vector<16x32xf32>
    %123 = vector.broadcast %20 : vector<1x32xf32> to vector<16x32xf32>
    %124 = arith.mulf %122, %123 : vector<16x32xf32>
    %125 = vector.broadcast %21 : vector<1x32xf32> to vector<16x32xf32>
    %126 = arith.addf %124, %125 : vector<16x32xf32>
    %cst_71 = arith.constant 1.000000e+00 : f32
    %127 = vector.broadcast %cst_71 : f32 to vector<16x16xf32>
    %128 = arith.subf %127, %66 : vector<16x16xf32>
    %cst_72 = arith.constant -1.000000e+04 : f32
    %129 = vector.broadcast %cst_72 : f32 to vector<16x16xf32>
    %130 = arith.mulf %128, %129 : vector<16x16xf32>
    %cst_73 = arith.constant dense<0.000000e+00> : vector<16x32xf32>
    %131 = tpu.matmul %126, %2, %cst_73 {dimension_numbers = #tpu.dot_dimension_numbers<[1], [0], [0], [1], [0, 0, 1, 1], [], []>} : vector<16x32xf32>, vector<32x32xf32>, vector<16x32xf32> -> vector<16x32xf32>
    %132 = vector.broadcast %22 : vector<1x32xf32> to vector<16x32xf32>
    %133 = arith.addf %131, %132 : vector<16x32xf32>
    %cst_74 = arith.constant dense<0.000000e+00> : vector<16x32xf32>
    %134 = tpu.matmul %126, %3, %cst_74 {dimension_numbers = #tpu.dot_dimension_numbers<[1], [0], [0], [1], [0, 0, 1, 1], [], []>} : vector<16x32xf32>, vector<32x32xf32>, vector<16x32xf32> -> vector<16x32xf32>
    %135 = vector.broadcast %23 : vector<1x32xf32> to vector<16x32xf32>
    %136 = arith.addf %134, %135 : vector<16x32xf32>
    %cst_75 = arith.constant dense<0.000000e+00> : vector<16x32xf32>
    %137 = tpu.matmul %126, %4, %cst_75 {dimension_numbers = #tpu.dot_dimension_numbers<[1], [0], [0], [1], [0, 0, 1, 1], [], []>} : vector<16x32xf32>, vector<32x32xf32>, vector<16x32xf32> -> vector<16x32xf32>
    %138 = vector.broadcast %24 : vector<1x32xf32> to vector<16x32xf32>
    %139 = arith.addf %137, %138 : vector<16x32xf32>
    %140 = vector.extract_strided_slice %133 {offsets = [0, 0], sizes = [16, 8], strides = [1, 1]} : vector<16x32xf32> to vector<16x8xf32>
    %141 = vector.extract_strided_slice %136 {offsets = [0, 0], sizes = [16, 8], strides = [1, 1]} : vector<16x32xf32> to vector<16x8xf32>
    %cst_76 = arith.constant dense<0.000000e+00> : vector<16x16xf32>
    %142 = tpu.matmul %140, %141, %cst_76 {dimension_numbers = #tpu.dot_dimension_numbers<[1], [1], [0], [0], [0, 0, 1, 0], [], []>} : vector<16x8xf32>, vector<16x8xf32>, vector<16x16xf32> -> vector<16x16xf32>
    %cst_77 = arith.constant 0.353553385 : f32
    %143 = vector.broadcast %cst_77 : f32 to vector<16x16xf32>
    %144 = arith.mulf %142, %143 : vector<16x16xf32>
    %145 = arith.addf %144, %130 : vector<16x16xf32>
    %cst_78 = arith.constant dense<0xFF800000> : vector<16xf32>
    %146 = vector.multi_reduction <maximumf>, %145, %cst_78 [1] : vector<16x16xf32> to vector<16xf32>
    %147 = vector.shape_cast %146 : vector<16xf32> to vector<16x1xf32>
    %148 = vector.broadcast %147 : vector<16x1xf32> to vector<16x16xf32>
    %149 = arith.subf %145, %148 : vector<16x16xf32>
    %150 = math.exp %149 : vector<16x16xf32>
    %cst_79 = arith.constant dense<0.000000e+00> : vector<16xf32>
    %151 = vector.multi_reduction <add>, %150, %cst_79 [1] : vector<16x16xf32> to vector<16xf32>
    %152 = vector.shape_cast %151 : vector<16xf32> to vector<16x1xf32>
    %153 = tpu.reciprocal %152 {approx = true} : vector<16x1xf32> -> vector<16x1xf32>
    %154 = vector.broadcast %153 : vector<16x1xf32> to vector<16x16xf32>
    %155 = arith.mulf %150, %154 : vector<16x16xf32>
    %156 = vector.extract_strided_slice %139 {offsets = [0, 0], sizes = [16, 8], strides = [1, 1]} : vector<16x32xf32> to vector<16x8xf32>
    %cst_80 = arith.constant dense<0.000000e+00> : vector<16x8xf32>
    %157 = tpu.matmul %155, %156, %cst_80 {dimension_numbers = #tpu.dot_dimension_numbers<[1], [0], [0], [1], [0, 0, 1, 1], [], []>} : vector<16x16xf32>, vector<16x8xf32>, vector<16x8xf32> -> vector<16x8xf32>
    %158 = vector.extract_strided_slice %133 {offsets = [0, 8], sizes = [16, 8], strides = [1, 1]} : vector<16x32xf32> to vector<16x8xf32>
    %159 = vector.extract_strided_slice %136 {offsets = [0, 8], sizes = [16, 8], strides = [1, 1]} : vector<16x32xf32> to vector<16x8xf32>
    %cst_81 = arith.constant dense<0.000000e+00> : vector<16x16xf32>
    %160 = tpu.matmul %158, %159, %cst_81 {dimension_numbers = #tpu.dot_dimension_numbers<[1], [1], [0], [0], [0, 0, 1, 0], [], []>} : vector<16x8xf32>, vector<16x8xf32>, vector<16x16xf32> -> vector<16x16xf32>
    %cst_82 = arith.constant 0.353553385 : f32
    %161 = vector.broadcast %cst_82 : f32 to vector<16x16xf32>
    %162 = arith.mulf %160, %161 : vector<16x16xf32>
    %163 = arith.addf %162, %130 : vector<16x16xf32>
    %cst_83 = arith.constant dense<0xFF800000> : vector<16xf32>
    %164 = vector.multi_reduction <maximumf>, %163, %cst_83 [1] : vector<16x16xf32> to vector<16xf32>
    %165 = vector.shape_cast %164 : vector<16xf32> to vector<16x1xf32>
    %166 = vector.broadcast %165 : vector<16x1xf32> to vector<16x16xf32>
    %167 = arith.subf %163, %166 : vector<16x16xf32>
    %168 = math.exp %167 : vector<16x16xf32>
    %cst_84 = arith.constant dense<0.000000e+00> : vector<16xf32>
    %169 = vector.multi_reduction <add>, %168, %cst_84 [1] : vector<16x16xf32> to vector<16xf32>
    %170 = vector.shape_cast %169 : vector<16xf32> to vector<16x1xf32>
    %171 = tpu.reciprocal %170 {approx = true} : vector<16x1xf32> -> vector<16x1xf32>
    %172 = vector.broadcast %171 : vector<16x1xf32> to vector<16x16xf32>
    %173 = arith.mulf %168, %172 : vector<16x16xf32>
    %174 = vector.extract_strided_slice %139 {offsets = [0, 8], sizes = [16, 8], strides = [1, 1]} : vector<16x32xf32> to vector<16x8xf32>
    %cst_85 = arith.constant dense<0.000000e+00> : vector<16x8xf32>
    %175 = tpu.matmul %173, %174, %cst_85 {dimension_numbers = #tpu.dot_dimension_numbers<[1], [0], [0], [1], [0, 0, 1, 1], [], []>} : vector<16x16xf32>, vector<16x8xf32>, vector<16x8xf32> -> vector<16x8xf32>
    %176 = vector.extract_strided_slice %133 {offsets = [0, 16], sizes = [16, 8], strides = [1, 1]} : vector<16x32xf32> to vector<16x8xf32>
    %177 = vector.extract_strided_slice %136 {offsets = [0, 16], sizes = [16, 8], strides = [1, 1]} : vector<16x32xf32> to vector<16x8xf32>
    %cst_86 = arith.constant dense<0.000000e+00> : vector<16x16xf32>
    %178 = tpu.matmul %176, %177, %cst_86 {dimension_numbers = #tpu.dot_dimension_numbers<[1], [1], [0], [0], [0, 0, 1, 0], [], []>} : vector<16x8xf32>, vector<16x8xf32>, vector<16x16xf32> -> vector<16x16xf32>
    %cst_87 = arith.constant 0.353553385 : f32
    %179 = vector.broadcast %cst_87 : f32 to vector<16x16xf32>
    %180 = arith.mulf %178, %179 : vector<16x16xf32>
    %181 = arith.addf %180, %130 : vector<16x16xf32>
    %cst_88 = arith.constant dense<0xFF800000> : vector<16xf32>
    %182 = vector.multi_reduction <maximumf>, %181, %cst_88 [1] : vector<16x16xf32> to vector<16xf32>
    %183 = vector.shape_cast %182 : vector<16xf32> to vector<16x1xf32>
    %184 = vector.broadcast %183 : vector<16x1xf32> to vector<16x16xf32>
    %185 = arith.subf %181, %184 : vector<16x16xf32>
    %186 = math.exp %185 : vector<16x16xf32>
    %cst_89 = arith.constant dense<0.000000e+00> : vector<16xf32>
    %187 = vector.multi_reduction <add>, %186, %cst_89 [1] : vector<16x16xf32> to vector<16xf32>
    %188 = vector.shape_cast %187 : vector<16xf32> to vector<16x1xf32>
    %189 = tpu.reciprocal %188 {approx = true} : vector<16x1xf32> -> vector<16x1xf32>
    %190 = vector.broadcast %189 : vector<16x1xf32> to vector<16x16xf32>
    %191 = arith.mulf %186, %190 : vector<16x16xf32>
    %192 = vector.extract_strided_slice %139 {offsets = [0, 16], sizes = [16, 8], strides = [1, 1]} : vector<16x32xf32> to vector<16x8xf32>
    %cst_90 = arith.constant dense<0.000000e+00> : vector<16x8xf32>
    %193 = tpu.matmul %191, %192, %cst_90 {dimension_numbers = #tpu.dot_dimension_numbers<[1], [0], [0], [1], [0, 0, 1, 1], [], []>} : vector<16x16xf32>, vector<16x8xf32>, vector<16x8xf32> -> vector<16x8xf32>
    %194 = vector.extract_strided_slice %133 {offsets = [0, 24], sizes = [16, 8], strides = [1, 1]} : vector<16x32xf32> to vector<16x8xf32>
    %195 = vector.extract_strided_slice %136 {offsets = [0, 24], sizes = [16, 8], strides = [1, 1]} : vector<16x32xf32> to vector<16x8xf32>
    %cst_91 = arith.constant dense<0.000000e+00> : vector<16x16xf32>
    %196 = tpu.matmul %194, %195, %cst_91 {dimension_numbers = #tpu.dot_dimension_numbers<[1], [1], [0], [0], [0, 0, 1, 0], [], []>} : vector<16x8xf32>, vector<16x8xf32>, vector<16x16xf32> -> vector<16x16xf32>
    %cst_92 = arith.constant 0.353553385 : f32
    %197 = vector.broadcast %cst_92 : f32 to vector<16x16xf32>
    %198 = arith.mulf %196, %197 : vector<16x16xf32>
    %199 = arith.addf %198, %130 : vector<16x16xf32>
    %cst_93 = arith.constant dense<0xFF800000> : vector<16xf32>
    %200 = vector.multi_reduction <maximumf>, %199, %cst_93 [1] : vector<16x16xf32> to vector<16xf32>
    %201 = vector.shape_cast %200 : vector<16xf32> to vector<16x1xf32>
    %202 = vector.broadcast %201 : vector<16x1xf32> to vector<16x16xf32>
    %203 = arith.subf %199, %202 : vector<16x16xf32>
    %204 = math.exp %203 : vector<16x16xf32>
    %cst_94 = arith.constant dense<0.000000e+00> : vector<16xf32>
    %205 = vector.multi_reduction <add>, %204, %cst_94 [1] : vector<16x16xf32> to vector<16xf32>
    %206 = vector.shape_cast %205 : vector<16xf32> to vector<16x1xf32>
    %207 = tpu.reciprocal %206 {approx = true} : vector<16x1xf32> -> vector<16x1xf32>
    %208 = vector.broadcast %207 : vector<16x1xf32> to vector<16x16xf32>
    %209 = arith.mulf %204, %208 : vector<16x16xf32>
    %210 = vector.extract_strided_slice %139 {offsets = [0, 24], sizes = [16, 8], strides = [1, 1]} : vector<16x32xf32> to vector<16x8xf32>
    %cst_95 = arith.constant dense<0.000000e+00> : vector<16x8xf32>
    %211 = tpu.matmul %209, %210, %cst_95 {dimension_numbers = #tpu.dot_dimension_numbers<[1], [0], [0], [1], [0, 0, 1, 1], [], []>} : vector<16x16xf32>, vector<16x8xf32>, vector<16x8xf32> -> vector<16x8xf32>
    %212 = tpu.concatenate %157, %175, %193, %211 in 1 : vector<16x8xf32>, vector<16x8xf32>, vector<16x8xf32>, vector<16x8xf32> -> vector<16x32xf32>
    %cst_96 = arith.constant dense<0.000000e+00> : vector<16x32xf32>
    %213 = tpu.matmul %212, %5, %cst_96 {dimension_numbers = #tpu.dot_dimension_numbers<[1], [0], [0], [1], [0, 0, 1, 1], [], []>} : vector<16x32xf32>, vector<32x32xf32>, vector<16x32xf32> -> vector<16x32xf32>
    %214 = vector.broadcast %25 : vector<1x32xf32> to vector<16x32xf32>
    %215 = arith.addf %213, %214 : vector<16x32xf32>
    %216 = arith.addf %126, %215 : vector<16x32xf32>
    %cst_97 = arith.constant dense<0.000000e+00> : vector<16xf32>
    %217 = vector.multi_reduction <add>, %216, %cst_97 [1] : vector<16x32xf32> to vector<16xf32>
    %218 = vector.shape_cast %217 : vector<16xf32> to vector<16x1xf32>
    %cst_98 = arith.constant 3.200000e+01 : f32
    %219 = vector.broadcast %cst_98 : f32 to vector<16x1xf32>
    %220 = arith.divf %218, %219 : vector<16x1xf32>
    %221 = vector.broadcast %220 : vector<16x1xf32> to vector<16x32xf32>
    %222 = arith.subf %216, %221 : vector<16x32xf32>
    %223 = arith.mulf %222, %222 : vector<16x32xf32>
    %cst_99 = arith.constant dense<0.000000e+00> : vector<16xf32>
    %224 = vector.multi_reduction <add>, %223, %cst_99 [1] : vector<16x32xf32> to vector<16xf32>
    %225 = vector.shape_cast %224 : vector<16xf32> to vector<16x1xf32>
    %cst_100 = arith.constant 3.200000e+01 : f32
    %226 = vector.broadcast %cst_100 : f32 to vector<16x1xf32>
    %227 = arith.divf %225, %226 : vector<16x1xf32>
    %228 = vector.broadcast %220 : vector<16x1xf32> to vector<16x32xf32>
    %229 = arith.subf %216, %228 : vector<16x32xf32>
    %cst_101 = arith.constant 9.99999974E-6 : f32
    %230 = vector.broadcast %cst_101 : f32 to vector<16x1xf32>
    %231 = arith.addf %227, %230 : vector<16x1xf32>
    %232 = math.rsqrt %231 : vector<16x1xf32>
    %233 = vector.broadcast %232 : vector<16x1xf32> to vector<16x32xf32>
    %234 = arith.mulf %229, %233 : vector<16x32xf32>
    %235 = vector.broadcast %26 : vector<1x32xf32> to vector<16x32xf32>
    %236 = arith.mulf %234, %235 : vector<16x32xf32>
    %237 = vector.broadcast %27 : vector<1x32xf32> to vector<16x32xf32>
    %238 = arith.addf %236, %237 : vector<16x32xf32>
    %cst_102 = arith.constant dense<0.000000e+00> : vector<16x64xf32>
    %239 = tpu.matmul %238, %17, %cst_102 {dimension_numbers = #tpu.dot_dimension_numbers<[1], [0], [0], [1], [0, 0, 1, 1], [], []>} : vector<16x32xf32>, vector<32x64xf32>, vector<16x64xf32> -> vector<16x64xf32>
    %240 = vector.broadcast %28 : vector<1x64xf32> to vector<16x64xf32>
    %241 = arith.addf %239, %240 : vector<16x64xf32>
    %cst_103 = arith.constant 0.707106769 : f32
    %242 = vector.broadcast %cst_103 : f32 to vector<16x64xf32>
    %243 = arith.mulf %241, %242 : vector<16x64xf32>
    %cst_104 = arith.constant 0.000000e+00 : f32
    %244 = vector.broadcast %cst_104 : f32 to vector<16x64xf32>
    %245 = arith.cmpf oge, %243, %244 : vector<16x64xf32>
    %cst_105 = arith.constant 1.000000e+00 : f32
    %cst_106 = arith.constant -1.000000e+00 : f32
    %246 = vector.broadcast %cst_105 : f32 to vector<16x64xf32>
    %247 = vector.broadcast %cst_106 : f32 to vector<16x64xf32>
    %248 = arith.select %245, %246, %247 : vector<16x64xi1>, vector<16x64xf32>
    %249 = math.absf %243 : vector<16x64xf32>
    %cst_107 = arith.constant 0.327591091 : f32
    %250 = vector.broadcast %cst_107 : f32 to vector<16x64xf32>
    %251 = arith.mulf %250, %249 : vector<16x64xf32>
    %cst_108 = arith.constant 1.000000e+00 : f32
    %252 = vector.broadcast %cst_108 : f32 to vector<16x64xf32>
    %253 = arith.addf %252, %251 : vector<16x64xf32>
    %cst_109 = arith.constant 1.000000e+00 : f32
    %254 = vector.broadcast %cst_109 : f32 to vector<16x64xf32>
    %255 = arith.divf %254, %253 : vector<16x64xf32>
    %cst_110 = arith.constant 1.06140542 : f32
    %256 = vector.broadcast %cst_110 : f32 to vector<16x64xf32>
    %257 = arith.mulf %256, %255 : vector<16x64xf32>
    %cst_111 = arith.constant 1.45315206 : f32
    %258 = vector.broadcast %cst_111 : f32 to vector<16x64xf32>
    %259 = arith.subf %257, %258 : vector<16x64xf32>
    %260 = arith.mulf %259, %255 : vector<16x64xf32>
    %cst_112 = arith.constant 1.42141378 : f32
    %261 = vector.broadcast %cst_112 : f32 to vector<16x64xf32>
    %262 = arith.addf %260, %261 : vector<16x64xf32>
    %263 = arith.mulf %262, %255 : vector<16x64xf32>
    %cst_113 = arith.constant 0.284496725 : f32
    %264 = vector.broadcast %cst_113 : f32 to vector<16x64xf32>
    %265 = arith.subf %263, %264 : vector<16x64xf32>
    %266 = arith.mulf %265, %255 : vector<16x64xf32>
    %cst_114 = arith.constant 0.254829586 : f32
    %267 = vector.broadcast %cst_114 : f32 to vector<16x64xf32>
    %268 = arith.addf %266, %267 : vector<16x64xf32>
    %269 = arith.mulf %268, %255 : vector<16x64xf32>
    %cst_115 = arith.constant 0.000000e+00 : f32
    %270 = vector.broadcast %cst_115 : f32 to vector<16x64xf32>
    %271 = arith.subf %270, %249 : vector<16x64xf32>
    %272 = arith.mulf %271, %249 : vector<16x64xf32>
    %273 = math.exp %272 : vector<16x64xf32>
    %274 = arith.mulf %269, %273 : vector<16x64xf32>
    %cst_116 = arith.constant 1.000000e+00 : f32
    %275 = vector.broadcast %cst_116 : f32 to vector<16x64xf32>
    %276 = arith.subf %275, %274 : vector<16x64xf32>
    %277 = arith.mulf %248, %276 : vector<16x64xf32>
    %cst_117 = arith.constant 5.000000e-01 : f32
    %278 = vector.broadcast %cst_117 : f32 to vector<16x64xf32>
    %279 = arith.mulf %278, %241 : vector<16x64xf32>
    %cst_118 = arith.constant 1.000000e+00 : f32
    %280 = vector.broadcast %cst_118 : f32 to vector<16x64xf32>
    %281 = arith.addf %280, %277 : vector<16x64xf32>
    %282 = arith.mulf %279, %281 : vector<16x64xf32>
    %cst_119 = arith.constant dense<0.000000e+00> : vector<16x32xf32>
    %283 = tpu.matmul %282, %6, %cst_119 {dimension_numbers = #tpu.dot_dimension_numbers<[1], [0], [0], [1], [0, 0, 1, 1], [], []>} : vector<16x64xf32>, vector<64x32xf32>, vector<16x32xf32> -> vector<16x32xf32>
    %284 = vector.broadcast %29 : vector<1x32xf32> to vector<16x32xf32>
    %285 = arith.addf %283, %284 : vector<16x32xf32>
    %286 = arith.addf %238, %285 : vector<16x32xf32>
    %cst_120 = arith.constant dense<0.000000e+00> : vector<16xf32>
    %287 = vector.multi_reduction <add>, %286, %cst_120 [1] : vector<16x32xf32> to vector<16xf32>
    %288 = vector.shape_cast %287 : vector<16xf32> to vector<16x1xf32>
    %cst_121 = arith.constant 3.200000e+01 : f32
    %289 = vector.broadcast %cst_121 : f32 to vector<16x1xf32>
    %290 = arith.divf %288, %289 : vector<16x1xf32>
    %291 = vector.broadcast %290 : vector<16x1xf32> to vector<16x32xf32>
    %292 = arith.subf %286, %291 : vector<16x32xf32>
    %293 = arith.mulf %292, %292 : vector<16x32xf32>
    %cst_122 = arith.constant dense<0.000000e+00> : vector<16xf32>
    %294 = vector.multi_reduction <add>, %293, %cst_122 [1] : vector<16x32xf32> to vector<16xf32>
    %295 = vector.shape_cast %294 : vector<16xf32> to vector<16x1xf32>
    %cst_123 = arith.constant 3.200000e+01 : f32
    %296 = vector.broadcast %cst_123 : f32 to vector<16x1xf32>
    %297 = arith.divf %295, %296 : vector<16x1xf32>
    %298 = vector.broadcast %290 : vector<16x1xf32> to vector<16x32xf32>
    %299 = arith.subf %286, %298 : vector<16x32xf32>
    %cst_124 = arith.constant 9.99999974E-6 : f32
    %300 = vector.broadcast %cst_124 : f32 to vector<16x1xf32>
    %301 = arith.addf %297, %300 : vector<16x1xf32>
    %302 = math.rsqrt %301 : vector<16x1xf32>
    %303 = vector.broadcast %302 : vector<16x1xf32> to vector<16x32xf32>
    %304 = arith.mulf %299, %303 : vector<16x32xf32>
    %305 = vector.broadcast %30 : vector<1x32xf32> to vector<16x32xf32>
    %306 = arith.mulf %304, %305 : vector<16x32xf32>
    %307 = vector.broadcast %31 : vector<1x32xf32> to vector<16x32xf32>
    %308 = arith.addf %306, %307 : vector<16x32xf32>
    %c0_125 = arith.constant 0 : index
    %c0_126 = arith.constant 0 : index
    %309 = vector.load %arg5[%c0_125, %c0_126] : memref<16x1xi32, #tpu.memory_space<vmem>>, vector<8x1xi32>
    %310 = tpu.iota {dimensions = array<i32: 1>} : vector<8x64xi32>
    %311 = vector.broadcast %309 : vector<8x1xi32> to vector<8x64xi32>
    %312 = arith.cmpi eq, %310, %311 : vector<8x64xi32>
    %313 = arith.extui %312 : vector<8x64xi1> to vector<8x64xi32>
    %314 = arith.sitofp %313 : vector<8x64xi32> to vector<8x64xf32>
    %cst_127 = arith.constant dense<0.000000e+00> : vector<8x32xf32>
    %315 = tpu.matmul %314, %0, %cst_127 {dimension_numbers = #tpu.dot_dimension_numbers<[1], [0], [0], [1], [0, 0, 1, 1], [], []>} : vector<8x64xf32>, vector<64x32xf32>, vector<8x32xf32> -> vector<8x32xf32>
    %cst_128 = arith.constant dense<0.000000e+00> : vector<8x32xf32>
    %316 = tpu.matmul %61, %1, %cst_128 {dimension_numbers = #tpu.dot_dimension_numbers<[1], [0], [0], [1], [0, 0, 1, 1], [], []>} : vector<8x32xf32>, vector<32x32xf32>, vector<8x32xf32> -> vector<8x32xf32>
    %317 = arith.addf %315, %316 : vector<8x32xf32>
    %318 = vector.broadcast %19 : vector<1x32xf32> to vector<8x32xf32>
    %319 = arith.addf %317, %318 : vector<8x32xf32>
    %cst_129 = arith.constant dense<0.000000e+00> : vector<8xf32>
    %320 = vector.multi_reduction <add>, %319, %cst_129 [1] : vector<8x32xf32> to vector<8xf32>
    %321 = vector.shape_cast %320 : vector<8xf32> to vector<8x1xf32>
    %cst_130 = arith.constant 3.200000e+01 : f32
    %322 = vector.broadcast %cst_130 : f32 to vector<8x1xf32>
    %323 = arith.divf %321, %322 : vector<8x1xf32>
    %324 = vector.broadcast %323 : vector<8x1xf32> to vector<8x32xf32>
    %325 = arith.subf %319, %324 : vector<8x32xf32>
    %326 = arith.mulf %325, %325 : vector<8x32xf32>
    %cst_131 = arith.constant dense<0.000000e+00> : vector<8xf32>
    %327 = vector.multi_reduction <add>, %326, %cst_131 [1] : vector<8x32xf32> to vector<8xf32>
    %328 = vector.shape_cast %327 : vector<8xf32> to vector<8x1xf32>
    %cst_132 = arith.constant 3.200000e+01 : f32
    %329 = vector.broadcast %cst_132 : f32 to vector<8x1xf32>
    %330 = arith.divf %328, %329 : vector<8x1xf32>
    %331 = vector.broadcast %323 : vector<8x1xf32> to vector<8x32xf32>
    %332 = arith.subf %319, %331 : vector<8x32xf32>
    %cst_133 = arith.constant 9.99999974E-6 : f32
    %333 = vector.broadcast %cst_133 : f32 to vector<8x1xf32>
    %334 = arith.addf %330, %333 : vector<8x1xf32>
    %335 = math.rsqrt %334 : vector<8x1xf32>
    %336 = vector.broadcast %335 : vector<8x1xf32> to vector<8x32xf32>
    %337 = arith.mulf %332, %336 : vector<8x32xf32>
    %338 = vector.broadcast %20 : vector<1x32xf32> to vector<8x32xf32>
    %339 = arith.mulf %337, %338 : vector<8x32xf32>
    %340 = vector.broadcast %21 : vector<1x32xf32> to vector<8x32xf32>
    %341 = arith.addf %339, %340 : vector<8x32xf32>
    %cst_134 = arith.constant dense<0.000000e+00> : vector<8x32xf32>
    %342 = tpu.matmul %341, %7, %cst_134 {dimension_numbers = #tpu.dot_dimension_numbers<[1], [0], [0], [1], [0, 0, 1, 1], [], []>} : vector<8x32xf32>, vector<32x32xf32>, vector<8x32xf32> -> vector<8x32xf32>
    %343 = vector.broadcast %32 : vector<1x32xf32> to vector<8x32xf32>
    %344 = arith.addf %342, %343 : vector<8x32xf32>
    %cst_135 = arith.constant dense<0.000000e+00> : vector<8x32xf32>
    %345 = tpu.matmul %341, %8, %cst_135 {dimension_numbers = #tpu.dot_dimension_numbers<[1], [0], [0], [1], [0, 0, 1, 1], [], []>} : vector<8x32xf32>, vector<32x32xf32>, vector<8x32xf32> -> vector<8x32xf32>
    %346 = vector.broadcast %33 : vector<1x32xf32> to vector<8x32xf32>
    %347 = arith.addf %345, %346 : vector<8x32xf32>
    %cst_136 = arith.constant dense<0.000000e+00> : vector<8x32xf32>
    %348 = tpu.matmul %341, %9, %cst_136 {dimension_numbers = #tpu.dot_dimension_numbers<[1], [0], [0], [1], [0, 0, 1, 1], [], []>} : vector<8x32xf32>, vector<32x32xf32>, vector<8x32xf32> -> vector<8x32xf32>
    %349 = vector.broadcast %34 : vector<1x32xf32> to vector<8x32xf32>
    %350 = arith.addf %348, %349 : vector<8x32xf32>
    %351 = vector.extract_strided_slice %344 {offsets = [0, 0], sizes = [8, 8], strides = [1, 1]} : vector<8x32xf32> to vector<8x8xf32>
    %352 = vector.extract_strided_slice %347 {offsets = [0, 0], sizes = [8, 8], strides = [1, 1]} : vector<8x32xf32> to vector<8x8xf32>
    %cst_137 = arith.constant dense<0.000000e+00> : vector<8x8xf32>
    %353 = tpu.matmul %351, %352, %cst_137 {dimension_numbers = #tpu.dot_dimension_numbers<[1], [1], [0], [0], [0, 0, 1, 0], [], []>} : vector<8x8xf32>, vector<8x8xf32>, vector<8x8xf32> -> vector<8x8xf32>
    %cst_138 = arith.constant 0.353553385 : f32
    %354 = vector.broadcast %cst_138 : f32 to vector<8x8xf32>
    %355 = arith.mulf %353, %354 : vector<8x8xf32>
    %356 = arith.addf %355, %54 : vector<8x8xf32>
    %cst_139 = arith.constant dense<0xFF800000> : vector<8xf32>
    %357 = vector.multi_reduction <maximumf>, %356, %cst_139 [1] : vector<8x8xf32> to vector<8xf32>
    %358 = vector.shape_cast %357 : vector<8xf32> to vector<8x1xf32>
    %359 = vector.broadcast %358 : vector<8x1xf32> to vector<8x8xf32>
    %360 = arith.subf %356, %359 : vector<8x8xf32>
    %361 = math.exp %360 : vector<8x8xf32>
    %cst_140 = arith.constant dense<0.000000e+00> : vector<8xf32>
    %362 = vector.multi_reduction <add>, %361, %cst_140 [1] : vector<8x8xf32> to vector<8xf32>
    %363 = vector.shape_cast %362 : vector<8xf32> to vector<8x1xf32>
    %364 = tpu.reciprocal %363 {approx = true} : vector<8x1xf32> -> vector<8x1xf32>
    %365 = vector.broadcast %364 : vector<8x1xf32> to vector<8x8xf32>
    %366 = arith.mulf %361, %365 : vector<8x8xf32>
    %367 = vector.extract_strided_slice %350 {offsets = [0, 0], sizes = [8, 8], strides = [1, 1]} : vector<8x32xf32> to vector<8x8xf32>
    %cst_141 = arith.constant dense<0.000000e+00> : vector<8x8xf32>
    %368 = tpu.matmul %366, %367, %cst_141 {dimension_numbers = #tpu.dot_dimension_numbers<[1], [0], [0], [1], [0, 0, 1, 1], [], []>} : vector<8x8xf32>, vector<8x8xf32>, vector<8x8xf32> -> vector<8x8xf32>
    %369 = vector.extract_strided_slice %344 {offsets = [0, 8], sizes = [8, 8], strides = [1, 1]} : vector<8x32xf32> to vector<8x8xf32>
    %370 = vector.extract_strided_slice %347 {offsets = [0, 8], sizes = [8, 8], strides = [1, 1]} : vector<8x32xf32> to vector<8x8xf32>
    %cst_142 = arith.constant dense<0.000000e+00> : vector<8x8xf32>
    %371 = tpu.matmul %369, %370, %cst_142 {dimension_numbers = #tpu.dot_dimension_numbers<[1], [1], [0], [0], [0, 0, 1, 0], [], []>} : vector<8x8xf32>, vector<8x8xf32>, vector<8x8xf32> -> vector<8x8xf32>
    %cst_143 = arith.constant 0.353553385 : f32
    %372 = vector.broadcast %cst_143 : f32 to vector<8x8xf32>
    %373 = arith.mulf %371, %372 : vector<8x8xf32>
    %374 = arith.addf %373, %54 : vector<8x8xf32>
    %cst_144 = arith.constant dense<0xFF800000> : vector<8xf32>
    %375 = vector.multi_reduction <maximumf>, %374, %cst_144 [1] : vector<8x8xf32> to vector<8xf32>
    %376 = vector.shape_cast %375 : vector<8xf32> to vector<8x1xf32>
    %377 = vector.broadcast %376 : vector<8x1xf32> to vector<8x8xf32>
    %378 = arith.subf %374, %377 : vector<8x8xf32>
    %379 = math.exp %378 : vector<8x8xf32>
    %cst_145 = arith.constant dense<0.000000e+00> : vector<8xf32>
    %380 = vector.multi_reduction <add>, %379, %cst_145 [1] : vector<8x8xf32> to vector<8xf32>
    %381 = vector.shape_cast %380 : vector<8xf32> to vector<8x1xf32>
    %382 = tpu.reciprocal %381 {approx = true} : vector<8x1xf32> -> vector<8x1xf32>
    %383 = vector.broadcast %382 : vector<8x1xf32> to vector<8x8xf32>
    %384 = arith.mulf %379, %383 : vector<8x8xf32>
    %385 = vector.extract_strided_slice %350 {offsets = [0, 8], sizes = [8, 8], strides = [1, 1]} : vector<8x32xf32> to vector<8x8xf32>
    %cst_146 = arith.constant dense<0.000000e+00> : vector<8x8xf32>
    %386 = tpu.matmul %384, %385, %cst_146 {dimension_numbers = #tpu.dot_dimension_numbers<[1], [0], [0], [1], [0, 0, 1, 1], [], []>} : vector<8x8xf32>, vector<8x8xf32>, vector<8x8xf32> -> vector<8x8xf32>
    %387 = vector.extract_strided_slice %344 {offsets = [0, 16], sizes = [8, 8], strides = [1, 1]} : vector<8x32xf32> to vector<8x8xf32>
    %388 = vector.extract_strided_slice %347 {offsets = [0, 16], sizes = [8, 8], strides = [1, 1]} : vector<8x32xf32> to vector<8x8xf32>
    %cst_147 = arith.constant dense<0.000000e+00> : vector<8x8xf32>
    %389 = tpu.matmul %387, %388, %cst_147 {dimension_numbers = #tpu.dot_dimension_numbers<[1], [1], [0], [0], [0, 0, 1, 0], [], []>} : vector<8x8xf32>, vector<8x8xf32>, vector<8x8xf32> -> vector<8x8xf32>
    %cst_148 = arith.constant 0.353553385 : f32
    %390 = vector.broadcast %cst_148 : f32 to vector<8x8xf32>
    %391 = arith.mulf %389, %390 : vector<8x8xf32>
    %392 = arith.addf %391, %54 : vector<8x8xf32>
    %cst_149 = arith.constant dense<0xFF800000> : vector<8xf32>
    %393 = vector.multi_reduction <maximumf>, %392, %cst_149 [1] : vector<8x8xf32> to vector<8xf32>
    %394 = vector.shape_cast %393 : vector<8xf32> to vector<8x1xf32>
    %395 = vector.broadcast %394 : vector<8x1xf32> to vector<8x8xf32>
    %396 = arith.subf %392, %395 : vector<8x8xf32>
    %397 = math.exp %396 : vector<8x8xf32>
    %cst_150 = arith.constant dense<0.000000e+00> : vector<8xf32>
    %398 = vector.multi_reduction <add>, %397, %cst_150 [1] : vector<8x8xf32> to vector<8xf32>
    %399 = vector.shape_cast %398 : vector<8xf32> to vector<8x1xf32>
    %400 = tpu.reciprocal %399 {approx = true} : vector<8x1xf32> -> vector<8x1xf32>
    %401 = vector.broadcast %400 : vector<8x1xf32> to vector<8x8xf32>
    %402 = arith.mulf %397, %401 : vector<8x8xf32>
    %403 = vector.extract_strided_slice %350 {offsets = [0, 16], sizes = [8, 8], strides = [1, 1]} : vector<8x32xf32> to vector<8x8xf32>
    %cst_151 = arith.constant dense<0.000000e+00> : vector<8x8xf32>
    %404 = tpu.matmul %402, %403, %cst_151 {dimension_numbers = #tpu.dot_dimension_numbers<[1], [0], [0], [1], [0, 0, 1, 1], [], []>} : vector<8x8xf32>, vector<8x8xf32>, vector<8x8xf32> -> vector<8x8xf32>
    %405 = vector.extract_strided_slice %344 {offsets = [0, 24], sizes = [8, 8], strides = [1, 1]} : vector<8x32xf32> to vector<8x8xf32>
    %406 = vector.extract_strided_slice %347 {offsets = [0, 24], sizes = [8, 8], strides = [1, 1]} : vector<8x32xf32> to vector<8x8xf32>
    %cst_152 = arith.constant dense<0.000000e+00> : vector<8x8xf32>
    %407 = tpu.matmul %405, %406, %cst_152 {dimension_numbers = #tpu.dot_dimension_numbers<[1], [1], [0], [0], [0, 0, 1, 0], [], []>} : vector<8x8xf32>, vector<8x8xf32>, vector<8x8xf32> -> vector<8x8xf32>
    %cst_153 = arith.constant 0.353553385 : f32
    %408 = vector.broadcast %cst_153 : f32 to vector<8x8xf32>
    %409 = arith.mulf %407, %408 : vector<8x8xf32>
    %410 = arith.addf %409, %54 : vector<8x8xf32>
    %cst_154 = arith.constant dense<0xFF800000> : vector<8xf32>
    %411 = vector.multi_reduction <maximumf>, %410, %cst_154 [1] : vector<8x8xf32> to vector<8xf32>
    %412 = vector.shape_cast %411 : vector<8xf32> to vector<8x1xf32>
    %413 = vector.broadcast %412 : vector<8x1xf32> to vector<8x8xf32>
    %414 = arith.subf %410, %413 : vector<8x8xf32>
    %415 = math.exp %414 : vector<8x8xf32>
    %cst_155 = arith.constant dense<0.000000e+00> : vector<8xf32>
    %416 = vector.multi_reduction <add>, %415, %cst_155 [1] : vector<8x8xf32> to vector<8xf32>
    %417 = vector.shape_cast %416 : vector<8xf32> to vector<8x1xf32>
    %418 = tpu.reciprocal %417 {approx = true} : vector<8x1xf32> -> vector<8x1xf32>
    %419 = vector.broadcast %418 : vector<8x1xf32> to vector<8x8xf32>
    %420 = arith.mulf %415, %419 : vector<8x8xf32>
    %421 = vector.extract_strided_slice %350 {offsets = [0, 24], sizes = [8, 8], strides = [1, 1]} : vector<8x32xf32> to vector<8x8xf32>
    %cst_156 = arith.constant dense<0.000000e+00> : vector<8x8xf32>
    %422 = tpu.matmul %420, %421, %cst_156 {dimension_numbers = #tpu.dot_dimension_numbers<[1], [0], [0], [1], [0, 0, 1, 1], [], []>} : vector<8x8xf32>, vector<8x8xf32>, vector<8x8xf32> -> vector<8x8xf32>
    %423 = tpu.concatenate %368, %386, %404, %422 in 1 : vector<8x8xf32>, vector<8x8xf32>, vector<8x8xf32>, vector<8x8xf32> -> vector<8x32xf32>
    %cst_157 = arith.constant dense<0.000000e+00> : vector<8x32xf32>
    %424 = tpu.matmul %423, %10, %cst_157 {dimension_numbers = #tpu.dot_dimension_numbers<[1], [0], [0], [1], [0, 0, 1, 1], [], []>} : vector<8x32xf32>, vector<32x32xf32>, vector<8x32xf32> -> vector<8x32xf32>
    %425 = vector.broadcast %35 : vector<1x32xf32> to vector<8x32xf32>
    %426 = arith.addf %424, %425 : vector<8x32xf32>
    %427 = arith.addf %341, %426 : vector<8x32xf32>
    %cst_158 = arith.constant dense<0.000000e+00> : vector<8xf32>
    %428 = vector.multi_reduction <add>, %427, %cst_158 [1] : vector<8x32xf32> to vector<8xf32>
    %429 = vector.shape_cast %428 : vector<8xf32> to vector<8x1xf32>
    %cst_159 = arith.constant 3.200000e+01 : f32
    %430 = vector.broadcast %cst_159 : f32 to vector<8x1xf32>
    %431 = arith.divf %429, %430 : vector<8x1xf32>
    %432 = vector.broadcast %431 : vector<8x1xf32> to vector<8x32xf32>
    %433 = arith.subf %427, %432 : vector<8x32xf32>
    %434 = arith.mulf %433, %433 : vector<8x32xf32>
    %cst_160 = arith.constant dense<0.000000e+00> : vector<8xf32>
    %435 = vector.multi_reduction <add>, %434, %cst_160 [1] : vector<8x32xf32> to vector<8xf32>
    %436 = vector.shape_cast %435 : vector<8xf32> to vector<8x1xf32>
    %cst_161 = arith.constant 3.200000e+01 : f32
    %437 = vector.broadcast %cst_161 : f32 to vector<8x1xf32>
    %438 = arith.divf %436, %437 : vector<8x1xf32>
    %439 = vector.broadcast %431 : vector<8x1xf32> to vector<8x32xf32>
    %440 = arith.subf %427, %439 : vector<8x32xf32>
    %cst_162 = arith.constant 9.99999974E-6 : f32
    %441 = vector.broadcast %cst_162 : f32 to vector<8x1xf32>
    %442 = arith.addf %438, %441 : vector<8x1xf32>
    %443 = math.rsqrt %442 : vector<8x1xf32>
    %444 = vector.broadcast %443 : vector<8x1xf32> to vector<8x32xf32>
    %445 = arith.mulf %440, %444 : vector<8x32xf32>
    %446 = vector.broadcast %36 : vector<1x32xf32> to vector<8x32xf32>
    %447 = arith.mulf %445, %446 : vector<8x32xf32>
    %448 = vector.broadcast %37 : vector<1x32xf32> to vector<8x32xf32>
    %449 = arith.addf %447, %448 : vector<8x32xf32>
    %c0_163 = arith.constant 0 : index
    %c0_164 = arith.constant 0 : index
    %450 = vector.load %arg4[%c0_163, %c0_164] : memref<2x16xi32, #tpu.memory_space<vmem>>, vector<1x16xi32>
    %c0_i32_165 = arith.constant 0 : i32
    %451 = vector.broadcast %c0_i32_165 : i32 to vector<1x16xi32>
    %452 = arith.cmpi sgt, %450, %451 : vector<1x16xi32>
    %cst_166 = arith.constant 0.000000e+00 : f32
    %cst_167 = arith.constant -1.000000e+09 : f32
    %453 = vector.broadcast %cst_166 : f32 to vector<1x16xf32>
    %454 = vector.broadcast %cst_167 : f32 to vector<1x16xf32>
    %455 = arith.select %452, %453, %454 : vector<1x16xi1>, vector<1x16xf32>
    %cst_168 = arith.constant dense<0.000000e+00> : vector<8x32xf32>
    %456 = tpu.matmul %449, %11, %cst_168 {dimension_numbers = #tpu.dot_dimension_numbers<[1], [0], [0], [1], [0, 0, 1, 1], [], []>} : vector<8x32xf32>, vector<32x32xf32>, vector<8x32xf32> -> vector<8x32xf32>
    %457 = vector.broadcast %38 : vector<1x32xf32> to vector<8x32xf32>
    %458 = arith.addf %456, %457 : vector<8x32xf32>
    %cst_169 = arith.constant dense<0.000000e+00> : vector<16x32xf32>
    %459 = tpu.matmul %308, %12, %cst_169 {dimension_numbers = #tpu.dot_dimension_numbers<[1], [0], [0], [1], [0, 0, 1, 1], [], []>} : vector<16x32xf32>, vector<32x32xf32>, vector<16x32xf32> -> vector<16x32xf32>
    %460 = vector.broadcast %39 : vector<1x32xf32> to vector<16x32xf32>
    %461 = arith.addf %459, %460 : vector<16x32xf32>
    %cst_170 = arith.constant dense<0.000000e+00> : vector<16x32xf32>
    %462 = tpu.matmul %308, %13, %cst_170 {dimension_numbers = #tpu.dot_dimension_numbers<[1], [0], [0], [1], [0, 0, 1, 1], [], []>} : vector<16x32xf32>, vector<32x32xf32>, vector<16x32xf32> -> vector<16x32xf32>
    %463 = vector.broadcast %40 : vector<1x32xf32> to vector<16x32xf32>
    %464 = arith.addf %462, %463 : vector<16x32xf32>
    %465 = vector.extract_strided_slice %458 {offsets = [0, 0], sizes = [8, 8], strides = [1, 1]} : vector<8x32xf32> to vector<8x8xf32>
    %466 = vector.extract_strided_slice %461 {offsets = [0, 0], sizes = [16, 8], strides = [1, 1]} : vector<16x32xf32> to vector<16x8xf32>
    %cst_171 = arith.constant dense<0.000000e+00> : vector<8x16xf32>
    %467 = tpu.matmul %465, %466, %cst_171 {dimension_numbers = #tpu.dot_dimension_numbers<[1], [1], [0], [0], [0, 0, 1, 0], [], []>} : vector<8x8xf32>, vector<16x8xf32>, vector<8x16xf32> -> vector<8x16xf32>
    %cst_172 = arith.constant 0.353553385 : f32
    %468 = vector.broadcast %cst_172 : f32 to vector<8x16xf32>
    %469 = arith.mulf %467, %468 : vector<8x16xf32>
    %470 = vector.broadcast %455 : vector<1x16xf32> to vector<8x16xf32>
    %471 = arith.addf %469, %470 : vector<8x16xf32>
    %cst_173 = arith.constant dense<0xFF800000> : vector<8xf32>
    %472 = vector.multi_reduction <maximumf>, %471, %cst_173 [1] : vector<8x16xf32> to vector<8xf32>
    %473 = vector.shape_cast %472 : vector<8xf32> to vector<8x1xf32>
    %474 = vector.broadcast %473 : vector<8x1xf32> to vector<8x16xf32>
    %475 = arith.subf %471, %474 : vector<8x16xf32>
    %476 = math.exp %475 : vector<8x16xf32>
    %cst_174 = arith.constant dense<0.000000e+00> : vector<8xf32>
    %477 = vector.multi_reduction <add>, %476, %cst_174 [1] : vector<8x16xf32> to vector<8xf32>
    %478 = vector.shape_cast %477 : vector<8xf32> to vector<8x1xf32>
    %479 = tpu.reciprocal %478 {approx = true} : vector<8x1xf32> -> vector<8x1xf32>
    %480 = vector.broadcast %479 : vector<8x1xf32> to vector<8x16xf32>
    %481 = arith.mulf %476, %480 : vector<8x16xf32>
    %482 = vector.extract_strided_slice %464 {offsets = [0, 0], sizes = [16, 8], strides = [1, 1]} : vector<16x32xf32> to vector<16x8xf32>
    %cst_175 = arith.constant dense<0.000000e+00> : vector<8x8xf32>
    %483 = tpu.matmul %481, %482, %cst_175 {dimension_numbers = #tpu.dot_dimension_numbers<[1], [0], [0], [1], [0, 0, 1, 1], [], []>} : vector<8x16xf32>, vector<16x8xf32>, vector<8x8xf32> -> vector<8x8xf32>
    %484 = vector.extract_strided_slice %458 {offsets = [0, 8], sizes = [8, 8], strides = [1, 1]} : vector<8x32xf32> to vector<8x8xf32>
    %485 = vector.extract_strided_slice %461 {offsets = [0, 8], sizes = [16, 8], strides = [1, 1]} : vector<16x32xf32> to vector<16x8xf32>
    %cst_176 = arith.constant dense<0.000000e+00> : vector<8x16xf32>
    %486 = tpu.matmul %484, %485, %cst_176 {dimension_numbers = #tpu.dot_dimension_numbers<[1], [1], [0], [0], [0, 0, 1, 0], [], []>} : vector<8x8xf32>, vector<16x8xf32>, vector<8x16xf32> -> vector<8x16xf32>
    %cst_177 = arith.constant 0.353553385 : f32
    %487 = vector.broadcast %cst_177 : f32 to vector<8x16xf32>
    %488 = arith.mulf %486, %487 : vector<8x16xf32>
    %489 = vector.broadcast %455 : vector<1x16xf32> to vector<8x16xf32>
    %490 = arith.addf %488, %489 : vector<8x16xf32>
    %cst_178 = arith.constant dense<0xFF800000> : vector<8xf32>
    %491 = vector.multi_reduction <maximumf>, %490, %cst_178 [1] : vector<8x16xf32> to vector<8xf32>
    %492 = vector.shape_cast %491 : vector<8xf32> to vector<8x1xf32>
    %493 = vector.broadcast %492 : vector<8x1xf32> to vector<8x16xf32>
    %494 = arith.subf %490, %493 : vector<8x16xf32>
    %495 = math.exp %494 : vector<8x16xf32>
    %cst_179 = arith.constant dense<0.000000e+00> : vector<8xf32>
    %496 = vector.multi_reduction <add>, %495, %cst_179 [1] : vector<8x16xf32> to vector<8xf32>
    %497 = vector.shape_cast %496 : vector<8xf32> to vector<8x1xf32>
    %498 = tpu.reciprocal %497 {approx = true} : vector<8x1xf32> -> vector<8x1xf32>
    %499 = vector.broadcast %498 : vector<8x1xf32> to vector<8x16xf32>
    %500 = arith.mulf %495, %499 : vector<8x16xf32>
    %501 = vector.extract_strided_slice %464 {offsets = [0, 8], sizes = [16, 8], strides = [1, 1]} : vector<16x32xf32> to vector<16x8xf32>
    %cst_180 = arith.constant dense<0.000000e+00> : vector<8x8xf32>
    %502 = tpu.matmul %500, %501, %cst_180 {dimension_numbers = #tpu.dot_dimension_numbers<[1], [0], [0], [1], [0, 0, 1, 1], [], []>} : vector<8x16xf32>, vector<16x8xf32>, vector<8x8xf32> -> vector<8x8xf32>
    %503 = vector.extract_strided_slice %458 {offsets = [0, 16], sizes = [8, 8], strides = [1, 1]} : vector<8x32xf32> to vector<8x8xf32>
    %504 = vector.extract_strided_slice %461 {offsets = [0, 16], sizes = [16, 8], strides = [1, 1]} : vector<16x32xf32> to vector<16x8xf32>
    %cst_181 = arith.constant dense<0.000000e+00> : vector<8x16xf32>
    %505 = tpu.matmul %503, %504, %cst_181 {dimension_numbers = #tpu.dot_dimension_numbers<[1], [1], [0], [0], [0, 0, 1, 0], [], []>} : vector<8x8xf32>, vector<16x8xf32>, vector<8x16xf32> -> vector<8x16xf32>
    %cst_182 = arith.constant 0.353553385 : f32
    %506 = vector.broadcast %cst_182 : f32 to vector<8x16xf32>
    %507 = arith.mulf %505, %506 : vector<8x16xf32>
    %508 = vector.broadcast %455 : vector<1x16xf32> to vector<8x16xf32>
    %509 = arith.addf %507, %508 : vector<8x16xf32>
    %cst_183 = arith.constant dense<0xFF800000> : vector<8xf32>
    %510 = vector.multi_reduction <maximumf>, %509, %cst_183 [1] : vector<8x16xf32> to vector<8xf32>
    %511 = vector.shape_cast %510 : vector<8xf32> to vector<8x1xf32>
    %512 = vector.broadcast %511 : vector<8x1xf32> to vector<8x16xf32>
    %513 = arith.subf %509, %512 : vector<8x16xf32>
    %514 = math.exp %513 : vector<8x16xf32>
    %cst_184 = arith.constant dense<0.000000e+00> : vector<8xf32>
    %515 = vector.multi_reduction <add>, %514, %cst_184 [1] : vector<8x16xf32> to vector<8xf32>
    %516 = vector.shape_cast %515 : vector<8xf32> to vector<8x1xf32>
    %517 = tpu.reciprocal %516 {approx = true} : vector<8x1xf32> -> vector<8x1xf32>
    %518 = vector.broadcast %517 : vector<8x1xf32> to vector<8x16xf32>
    %519 = arith.mulf %514, %518 : vector<8x16xf32>
    %520 = vector.extract_strided_slice %464 {offsets = [0, 16], sizes = [16, 8], strides = [1, 1]} : vector<16x32xf32> to vector<16x8xf32>
    %cst_185 = arith.constant dense<0.000000e+00> : vector<8x8xf32>
    %521 = tpu.matmul %519, %520, %cst_185 {dimension_numbers = #tpu.dot_dimension_numbers<[1], [0], [0], [1], [0, 0, 1, 1], [], []>} : vector<8x16xf32>, vector<16x8xf32>, vector<8x8xf32> -> vector<8x8xf32>
    %522 = vector.extract_strided_slice %458 {offsets = [0, 24], sizes = [8, 8], strides = [1, 1]} : vector<8x32xf32> to vector<8x8xf32>
    %523 = vector.extract_strided_slice %461 {offsets = [0, 24], sizes = [16, 8], strides = [1, 1]} : vector<16x32xf32> to vector<16x8xf32>
    %cst_186 = arith.constant dense<0.000000e+00> : vector<8x16xf32>
    %524 = tpu.matmul %522, %523, %cst_186 {dimension_numbers = #tpu.dot_dimension_numbers<[1], [1], [0], [0], [0, 0, 1, 0], [], []>} : vector<8x8xf32>, vector<16x8xf32>, vector<8x16xf32> -> vector<8x16xf32>
    %cst_187 = arith.constant 0.353553385 : f32
    %525 = vector.broadcast %cst_187 : f32 to vector<8x16xf32>
    %526 = arith.mulf %524, %525 : vector<8x16xf32>
    %527 = vector.broadcast %455 : vector<1x16xf32> to vector<8x16xf32>
    %528 = arith.addf %526, %527 : vector<8x16xf32>
    %cst_188 = arith.constant dense<0xFF800000> : vector<8xf32>
    %529 = vector.multi_reduction <maximumf>, %528, %cst_188 [1] : vector<8x16xf32> to vector<8xf32>
    %530 = vector.shape_cast %529 : vector<8xf32> to vector<8x1xf32>
    %531 = vector.broadcast %530 : vector<8x1xf32> to vector<8x16xf32>
    %532 = arith.subf %528, %531 : vector<8x16xf32>
    %533 = math.exp %532 : vector<8x16xf32>
    %cst_189 = arith.constant dense<0.000000e+00> : vector<8xf32>
    %534 = vector.multi_reduction <add>, %533, %cst_189 [1] : vector<8x16xf32> to vector<8xf32>
    %535 = vector.shape_cast %534 : vector<8xf32> to vector<8x1xf32>
    %536 = tpu.reciprocal %535 {approx = true} : vector<8x1xf32> -> vector<8x1xf32>
    %537 = vector.broadcast %536 : vector<8x1xf32> to vector<8x16xf32>
    %538 = arith.mulf %533, %537 : vector<8x16xf32>
    %539 = vector.extract_strided_slice %464 {offsets = [0, 24], sizes = [16, 8], strides = [1, 1]} : vector<16x32xf32> to vector<16x8xf32>
    %cst_190 = arith.constant dense<0.000000e+00> : vector<8x8xf32>
    %540 = tpu.matmul %538, %539, %cst_190 {dimension_numbers = #tpu.dot_dimension_numbers<[1], [0], [0], [1], [0, 0, 1, 1], [], []>} : vector<8x16xf32>, vector<16x8xf32>, vector<8x8xf32> -> vector<8x8xf32>
    %541 = tpu.concatenate %483, %502, %521, %540 in 1 : vector<8x8xf32>, vector<8x8xf32>, vector<8x8xf32>, vector<8x8xf32> -> vector<8x32xf32>
    %cst_191 = arith.constant dense<0.000000e+00> : vector<8x32xf32>
    %542 = tpu.matmul %541, %14, %cst_191 {dimension_numbers = #tpu.dot_dimension_numbers<[1], [0], [0], [1], [0, 0, 1, 1], [], []>} : vector<8x32xf32>, vector<32x32xf32>, vector<8x32xf32> -> vector<8x32xf32>
    %543 = vector.broadcast %41 : vector<1x32xf32> to vector<8x32xf32>
    %544 = arith.addf %542, %543 : vector<8x32xf32>
    %545 = arith.addf %449, %544 : vector<8x32xf32>
    %cst_192 = arith.constant dense<0.000000e+00> : vector<8xf32>
    %546 = vector.multi_reduction <add>, %545, %cst_192 [1] : vector<8x32xf32> to vector<8xf32>
    %547 = vector.shape_cast %546 : vector<8xf32> to vector<8x1xf32>
    %cst_193 = arith.constant 3.200000e+01 : f32
    %548 = vector.broadcast %cst_193 : f32 to vector<8x1xf32>
    %549 = arith.divf %547, %548 : vector<8x1xf32>
    %550 = vector.broadcast %549 : vector<8x1xf32> to vector<8x32xf32>
    %551 = arith.subf %545, %550 : vector<8x32xf32>
    %552 = arith.mulf %551, %551 : vector<8x32xf32>
    %cst_194 = arith.constant dense<0.000000e+00> : vector<8xf32>
    %553 = vector.multi_reduction <add>, %552, %cst_194 [1] : vector<8x32xf32> to vector<8xf32>
    %554 = vector.shape_cast %553 : vector<8xf32> to vector<8x1xf32>
    %cst_195 = arith.constant 3.200000e+01 : f32
    %555 = vector.broadcast %cst_195 : f32 to vector<8x1xf32>
    %556 = arith.divf %554, %555 : vector<8x1xf32>
    %557 = vector.broadcast %549 : vector<8x1xf32> to vector<8x32xf32>
    %558 = arith.subf %545, %557 : vector<8x32xf32>
    %cst_196 = arith.constant 9.99999974E-6 : f32
    %559 = vector.broadcast %cst_196 : f32 to vector<8x1xf32>
    %560 = arith.addf %556, %559 : vector<8x1xf32>
    %561 = math.rsqrt %560 : vector<8x1xf32>
    %562 = vector.broadcast %561 : vector<8x1xf32> to vector<8x32xf32>
    %563 = arith.mulf %558, %562 : vector<8x32xf32>
    %564 = vector.broadcast %42 : vector<1x32xf32> to vector<8x32xf32>
    %565 = arith.mulf %563, %564 : vector<8x32xf32>
    %566 = vector.broadcast %43 : vector<1x32xf32> to vector<8x32xf32>
    %567 = arith.addf %565, %566 : vector<8x32xf32>
    %cst_197 = arith.constant dense<0.000000e+00> : vector<8x64xf32>
    %568 = tpu.matmul %567, %18, %cst_197 {dimension_numbers = #tpu.dot_dimension_numbers<[1], [0], [0], [1], [0, 0, 1, 1], [], []>} : vector<8x32xf32>, vector<32x64xf32>, vector<8x64xf32> -> vector<8x64xf32>
    %569 = vector.broadcast %44 : vector<1x64xf32> to vector<8x64xf32>
    %570 = arith.addf %568, %569 : vector<8x64xf32>
    %cst_198 = arith.constant 0.000000e+00 : f32
    %571 = vector.broadcast %cst_198 : f32 to vector<8x64xf32>
    %572 = arith.maximumf %570, %571 : vector<8x64xf32>
    %cst_199 = arith.constant dense<0.000000e+00> : vector<8x32xf32>
    %573 = tpu.matmul %572, %15, %cst_199 {dimension_numbers = #tpu.dot_dimension_numbers<[1], [0], [0], [1], [0, 0, 1, 1], [], []>} : vector<8x64xf32>, vector<64x32xf32>, vector<8x32xf32> -> vector<8x32xf32>
    %574 = vector.broadcast %45 : vector<1x32xf32> to vector<8x32xf32>
    %575 = arith.addf %573, %574 : vector<8x32xf32>
    %576 = arith.addf %567, %575 : vector<8x32xf32>
    %cst_200 = arith.constant dense<0.000000e+00> : vector<8xf32>
    %577 = vector.multi_reduction <add>, %576, %cst_200 [1] : vector<8x32xf32> to vector<8xf32>
    %578 = vector.shape_cast %577 : vector<8xf32> to vector<8x1xf32>
    %cst_201 = arith.constant 3.200000e+01 : f32
    %579 = vector.broadcast %cst_201 : f32 to vector<8x1xf32>
    %580 = arith.divf %578, %579 : vector<8x1xf32>
    %581 = vector.broadcast %580 : vector<8x1xf32> to vector<8x32xf32>
    %582 = arith.subf %576, %581 : vector<8x32xf32>
    %583 = arith.mulf %582, %582 : vector<8x32xf32>
    %cst_202 = arith.constant dense<0.000000e+00> : vector<8xf32>
    %584 = vector.multi_reduction <add>, %583, %cst_202 [1] : vector<8x32xf32> to vector<8xf32>
    %585 = vector.shape_cast %584 : vector<8xf32> to vector<8x1xf32>
    %cst_203 = arith.constant 3.200000e+01 : f32
    %586 = vector.broadcast %cst_203 : f32 to vector<8x1xf32>
    %587 = arith.divf %585, %586 : vector<8x1xf32>
    %588 = vector.broadcast %580 : vector<8x1xf32> to vector<8x32xf32>
    %589 = arith.subf %576, %588 : vector<8x32xf32>
    %cst_204 = arith.constant 9.99999974E-6 : f32
    %590 = vector.broadcast %cst_204 : f32 to vector<8x1xf32>
    %591 = arith.addf %587, %590 : vector<8x1xf32>
    %592 = math.rsqrt %591 : vector<8x1xf32>
    %593 = vector.broadcast %592 : vector<8x1xf32> to vector<8x32xf32>
    %594 = arith.mulf %589, %593 : vector<8x32xf32>
    %595 = vector.broadcast %46 : vector<1x32xf32> to vector<8x32xf32>
    %596 = arith.mulf %594, %595 : vector<8x32xf32>
    %597 = vector.broadcast %47 : vector<1x32xf32> to vector<8x32xf32>
    %598 = arith.addf %596, %597 : vector<8x32xf32>
    %cst_205 = arith.constant dense<0.000000e+00> : vector<8x32xf32>
    %599 = tpu.matmul %598, %16, %cst_205 {dimension_numbers = #tpu.dot_dimension_numbers<[1], [0], [0], [1], [0, 0, 1, 1], [], []>} : vector<8x32xf32>, vector<32x32xf32>, vector<8x32xf32> -> vector<8x32xf32>
    %600 = vector.broadcast %48 : vector<1x32xf32> to vector<8x32xf32>
    %601 = arith.addf %599, %600 : vector<8x32xf32>
    %602 = math.tanh %601 : vector<8x32xf32>
    %cst_206 = arith.constant dense<0.000000e+00> : vector<8x64xf32>
    %603 = tpu.matmul %602, %0, %cst_206 {dimension_numbers = #tpu.dot_dimension_numbers<[1], [1], [0], [0], [0, 0, 1, 0], [], []>} : vector<8x32xf32>, vector<64x32xf32>, vector<8x64xf32> -> vector<8x64xf32>
    %604 = vector.extract_strided_slice %603 {offsets = [0, 0], sizes = [7, 64], strides = [1, 1]} : vector<8x64xf32> to vector<7x64xf32>
    %605 = vector.extract_strided_slice %309 {offsets = [1, 0], sizes = [7, 1], strides = [1, 1]} : vector<8x1xi32> to vector<7x1xi32>
    %c0_207 = arith.constant 0 : index
    %c0_208 = arith.constant 0 : index
    %606 = vector.load %arg6[%c0_207, %c0_208] : memref<16x1xi32, #tpu.memory_space<vmem>>, vector<8x1xi32>
    %607 = vector.extract_strided_slice %606 {offsets = [1, 0], sizes = [7, 1], strides = [1, 1]} : vector<8x1xi32> to vector<7x1xi32>
    %c0_i32_209 = arith.constant 0 : i32
    %608 = vector.broadcast %c0_i32_209 : i32 to vector<7x1xi32>
    %609 = arith.cmpi ne, %607, %608 : vector<7x1xi32>
    %610 = arith.extui %609 : vector<7x1xi1> to vector<7x1xi32>
    %611 = arith.sitofp %610 : vector<7x1xi32> to vector<7x1xf32>
    %612 = tpu.iota {dimensions = array<i32: 1>} : vector<7x64xi32>
    %613 = vector.broadcast %605 : vector<7x1xi32> to vector<7x64xi32>
    %614 = arith.cmpi eq, %612, %613 : vector<7x64xi32>
    %615 = arith.extui %614 : vector<7x64xi1> to vector<7x64xi32>
    %616 = arith.sitofp %615 : vector<7x64xi32> to vector<7x64xf32>
    %cst_210 = arith.constant dense<0xFF800000> : vector<7xf32>
    %617 = vector.multi_reduction <maximumf>, %604, %cst_210 [1] : vector<7x64xf32> to vector<7xf32>
    %618 = vector.shape_cast %617 : vector<7xf32> to vector<7x1xf32>
    %619 = vector.broadcast %618 : vector<7x1xf32> to vector<7x64xf32>
    %620 = arith.subf %604, %619 : vector<7x64xf32>
    %621 = math.exp %620 : vector<7x64xf32>
    %cst_211 = arith.constant dense<0.000000e+00> : vector<7xf32>
    %622 = vector.multi_reduction <add>, %621, %cst_211 [1] : vector<7x64xf32> to vector<7xf32>
    %623 = vector.shape_cast %622 : vector<7xf32> to vector<7x1xf32>
    %624 = math.log %623 : vector<7x1xf32>
    %625 = arith.addf %624, %618 : vector<7x1xf32>
    %626 = arith.mulf %604, %616 : vector<7x64xf32>
    %cst_212 = arith.constant dense<0.000000e+00> : vector<7xf32>
    %627 = vector.multi_reduction <add>, %626, %cst_212 [1] : vector<7x64xf32> to vector<7xf32>
    %628 = vector.shape_cast %627 : vector<7xf32> to vector<7x1xf32>
    %c-1_i32 = arith.constant -1 : i32
    %629 = vector.broadcast %c-1_i32 : i32 to vector<7x1xi32>
    %630 = arith.cmpi ne, %605, %629 : vector<7x1xi32>
    %631 = arith.extui %630 : vector<7x1xi1> to vector<7x1xi32>
    %632 = arith.sitofp %631 : vector<7x1xi32> to vector<7x1xf32>
    %633 = arith.mulf %611, %632 : vector<7x1xf32>
    %634 = arith.subf %625, %628 : vector<7x1xf32>
    %635 = arith.mulf %634, %633 : vector<7x1xf32>
    %636 = vector.shape_cast %635 : vector<7x1xf32> to vector<1x7x1xf32>
    %cst_213 = arith.constant dense<0.000000e+00> : vector<1xf32>
    %637 = vector.multi_reduction <add>, %636, %cst_213 [1, 2] : vector<1x7x1xf32> to vector<1xf32>
    %638 = vector.shape_cast %637 : vector<1xf32> to vector<1x1x1xf32>
    %639 = vector.extract %638[0, 0, 0] : f32 from vector<1x1x1xf32>
    %cst_214 = arith.constant 0.000000e+00 : f32
    %640 = arith.addf %cst_214, %639 : f32
    %641 = vector.shape_cast %633 : vector<7x1xf32> to vector<1x7x1xf32>
    %cst_215 = arith.constant dense<0.000000e+00> : vector<1xf32>
    %642 = vector.multi_reduction <add>, %641, %cst_215 [1, 2] : vector<1x7x1xf32> to vector<1xf32>
    %643 = vector.shape_cast %642 : vector<1xf32> to vector<1x1x1xf32>
    %644 = vector.extract %643[0, 0, 0] : f32 from vector<1x1x1xf32>
    %cst_216 = arith.constant 0.000000e+00 : f32
    %645 = arith.addf %cst_216, %644 : f32
    %646 = vector.shape_cast %611 : vector<7x1xf32> to vector<1x7x1xf32>
    %cst_217 = arith.constant dense<0.000000e+00> : vector<1xf32>
    %647 = vector.multi_reduction <add>, %646, %cst_217 [1, 2] : vector<1x7x1xf32> to vector<1xf32>
    %648 = vector.shape_cast %647 : vector<1xf32> to vector<1x1x1xf32>
    %649 = vector.extract %648[0, 0, 0] : f32 from vector<1x1x1xf32>
    %cst_218 = arith.constant 0.000000e+00 : f32
    %650 = arith.addf %cst_218, %649 : f32
    %c16_219 = arith.constant 16 : index
    %c0_220 = arith.constant 0 : index
    %651 = vector.load %arg1[%c16_219, %c0_220] : memref<32x1xi32, #tpu.memory_space<vmem>>, vector<16x1xi32>
    %c16_221 = arith.constant 16 : index
    %c0_222 = arith.constant 0 : index
    %652 = vector.load %arg2[%c16_221, %c0_222] : memref<32x1xi32, #tpu.memory_space<vmem>>, vector<16x1xi32>
    %c1_223 = arith.constant 1 : index
    %c0_224 = arith.constant 0 : index
    %c0_225 = arith.constant 0 : index
    %653 = vector.load %arg3[%c1_223, %c0_224, %c0_225] : memref<2x16x16xi32, #tpu.memory_space<vmem>>, vector<1x16x16xi32>
    %654 = vector.shape_cast %653 : vector<1x16x16xi32> to vector<16x16xi32>
    %655 = arith.sitofp %654 : vector<16x16xi32> to vector<16x16xf32>
    %656 = tpu.iota {dimensions = array<i32: 1>} : vector<16x64xi32>
    %657 = vector.broadcast %651 : vector<16x1xi32> to vector<16x64xi32>
    %658 = arith.cmpi eq, %656, %657 : vector<16x64xi32>
    %659 = arith.extui %658 : vector<16x64xi1> to vector<16x64xi32>
    %660 = arith.sitofp %659 : vector<16x64xi32> to vector<16x64xf32>
    %cst_226 = arith.constant dense<0.000000e+00> : vector<16x32xf32>
    %661 = tpu.matmul %660, %0, %cst_226 {dimension_numbers = #tpu.dot_dimension_numbers<[1], [0], [0], [1], [0, 0, 1, 1], [], []>} : vector<16x64xf32>, vector<64x32xf32>, vector<16x32xf32> -> vector<16x32xf32>
    %c0_i32_227 = arith.constant 0 : i32
    %662 = vector.broadcast %c0_i32_227 : i32 to vector<16x1xi32>
    %663 = arith.cmpi eq, %652, %662 : vector<16x1xi32>
    %664 = arith.extui %663 : vector<16x1xi1> to vector<16x1xi32>
    %665 = arith.sitofp %664 : vector<16x1xi32> to vector<16x1xf32>
    %c2_i32_228 = arith.constant 2 : i32
    %666 = vector.broadcast %c2_i32_228 : i32 to vector<16x1xi32>
    %667 = arith.cmpi sge, %652, %666 : vector<16x1xi32>
    %668 = arith.extui %667 : vector<16x1xi1> to vector<16x1xi32>
    %669 = arith.sitofp %668 : vector<16x1xi32> to vector<16x1xf32>
    %670 = vector.broadcast %669 : vector<16x1xf32> to vector<16x32xf32>
    %671 = arith.mulf %661, %670 : vector<16x32xf32>
    %cst_229 = arith.constant dense<0.000000e+00> : vector<16x32xf32>
    %672 = tpu.matmul %655, %671, %cst_229 {dimension_numbers = #tpu.dot_dimension_numbers<[1], [0], [0], [1], [0, 0, 1, 1], [], []>} : vector<16x16xf32>, vector<16x32xf32>, vector<16x32xf32> -> vector<16x32xf32>
    %cst_230 = arith.constant dense<0.000000e+00> : vector<16x1xf32>
    %673 = tpu.matmul %655, %669, %cst_230 {dimension_numbers = #tpu.dot_dimension_numbers<[1], [0], [0], [1], [0, 0, 1, 1], [], []>} : vector<16x16xf32>, vector<16x1xf32>, vector<16x1xf32> -> vector<16x1xf32>
    %cst_231 = arith.constant 1.000000e+00 : f32
    %674 = vector.broadcast %cst_231 : f32 to vector<16x1xf32>
    %675 = arith.subf %674, %665 : vector<16x1xf32>
    %676 = vector.broadcast %675 : vector<16x1xf32> to vector<16x32xf32>
    %677 = arith.mulf %661, %676 : vector<16x32xf32>
    %cst_232 = arith.constant 1.000000e-10 : f32
    %678 = vector.broadcast %cst_232 : f32 to vector<16x1xf32>
    %679 = arith.addf %673, %678 : vector<16x1xf32>
    %680 = vector.broadcast %679 : vector<16x1xf32> to vector<16x32xf32>
    %681 = arith.divf %672, %680 : vector<16x32xf32>
    %682 = vector.broadcast %665 : vector<16x1xf32> to vector<16x32xf32>
    %683 = arith.mulf %681, %682 : vector<16x32xf32>
    %684 = arith.addf %677, %683 : vector<16x32xf32>
    %685 = tpu.iota {dimensions = array<i32: 1>} : vector<16x32xi32>
    %686 = vector.broadcast %652 : vector<16x1xi32> to vector<16x32xi32>
    %687 = arith.cmpi eq, %685, %686 : vector<16x32xi32>
    %688 = arith.extui %687 : vector<16x32xi1> to vector<16x32xi32>
    %689 = arith.sitofp %688 : vector<16x32xi32> to vector<16x32xf32>
    %cst_233 = arith.constant dense<0.000000e+00> : vector<16x32xf32>
    %690 = tpu.matmul %689, %1, %cst_233 {dimension_numbers = #tpu.dot_dimension_numbers<[1], [0], [0], [1], [0, 0, 1, 1], [], []>} : vector<16x32xf32>, vector<32x32xf32>, vector<16x32xf32> -> vector<16x32xf32>
    %691 = arith.addf %684, %690 : vector<16x32xf32>
    %692 = vector.broadcast %19 : vector<1x32xf32> to vector<16x32xf32>
    %693 = arith.addf %691, %692 : vector<16x32xf32>
    %cst_234 = arith.constant dense<0.000000e+00> : vector<16xf32>
    %694 = vector.multi_reduction <add>, %693, %cst_234 [1] : vector<16x32xf32> to vector<16xf32>
    %695 = vector.shape_cast %694 : vector<16xf32> to vector<16x1xf32>
    %cst_235 = arith.constant 3.200000e+01 : f32
    %696 = vector.broadcast %cst_235 : f32 to vector<16x1xf32>
    %697 = arith.divf %695, %696 : vector<16x1xf32>
    %698 = vector.broadcast %697 : vector<16x1xf32> to vector<16x32xf32>
    %699 = arith.subf %693, %698 : vector<16x32xf32>
    %700 = arith.mulf %699, %699 : vector<16x32xf32>
    %cst_236 = arith.constant dense<0.000000e+00> : vector<16xf32>
    %701 = vector.multi_reduction <add>, %700, %cst_236 [1] : vector<16x32xf32> to vector<16xf32>
    %702 = vector.shape_cast %701 : vector<16xf32> to vector<16x1xf32>
    %cst_237 = arith.constant 3.200000e+01 : f32
    %703 = vector.broadcast %cst_237 : f32 to vector<16x1xf32>
    %704 = arith.divf %702, %703 : vector<16x1xf32>
    %705 = vector.broadcast %697 : vector<16x1xf32> to vector<16x32xf32>
    %706 = arith.subf %693, %705 : vector<16x32xf32>
    %cst_238 = arith.constant 9.99999974E-6 : f32
    %707 = vector.broadcast %cst_238 : f32 to vector<16x1xf32>
    %708 = arith.addf %704, %707 : vector<16x1xf32>
    %709 = math.rsqrt %708 : vector<16x1xf32>
    %710 = vector.broadcast %709 : vector<16x1xf32> to vector<16x32xf32>
    %711 = arith.mulf %706, %710 : vector<16x32xf32>
    %712 = vector.broadcast %20 : vector<1x32xf32> to vector<16x32xf32>
    %713 = arith.mulf %711, %712 : vector<16x32xf32>
    %714 = vector.broadcast %21 : vector<1x32xf32> to vector<16x32xf32>
    %715 = arith.addf %713, %714 : vector<16x32xf32>
    %cst_239 = arith.constant 1.000000e+00 : f32
    %716 = vector.broadcast %cst_239 : f32 to vector<16x16xf32>
    %717 = arith.subf %716, %655 : vector<16x16xf32>
    %cst_240 = arith.constant -1.000000e+04 : f32
    %718 = vector.broadcast %cst_240 : f32 to vector<16x16xf32>
    %719 = arith.mulf %717, %718 : vector<16x16xf32>
    %cst_241 = arith.constant dense<0.000000e+00> : vector<16x32xf32>
    %720 = tpu.matmul %715, %2, %cst_241 {dimension_numbers = #tpu.dot_dimension_numbers<[1], [0], [0], [1], [0, 0, 1, 1], [], []>} : vector<16x32xf32>, vector<32x32xf32>, vector<16x32xf32> -> vector<16x32xf32>
    %721 = vector.broadcast %22 : vector<1x32xf32> to vector<16x32xf32>
    %722 = arith.addf %720, %721 : vector<16x32xf32>
    %cst_242 = arith.constant dense<0.000000e+00> : vector<16x32xf32>
    %723 = tpu.matmul %715, %3, %cst_242 {dimension_numbers = #tpu.dot_dimension_numbers<[1], [0], [0], [1], [0, 0, 1, 1], [], []>} : vector<16x32xf32>, vector<32x32xf32>, vector<16x32xf32> -> vector<16x32xf32>
    %724 = vector.broadcast %23 : vector<1x32xf32> to vector<16x32xf32>
    %725 = arith.addf %723, %724 : vector<16x32xf32>
    %cst_243 = arith.constant dense<0.000000e+00> : vector<16x32xf32>
    %726 = tpu.matmul %715, %4, %cst_243 {dimension_numbers = #tpu.dot_dimension_numbers<[1], [0], [0], [1], [0, 0, 1, 1], [], []>} : vector<16x32xf32>, vector<32x32xf32>, vector<16x32xf32> -> vector<16x32xf32>
    %727 = vector.broadcast %24 : vector<1x32xf32> to vector<16x32xf32>
    %728 = arith.addf %726, %727 : vector<16x32xf32>
    %729 = vector.extract_strided_slice %722 {offsets = [0, 0], sizes = [16, 8], strides = [1, 1]} : vector<16x32xf32> to vector<16x8xf32>
    %730 = vector.extract_strided_slice %725 {offsets = [0, 0], sizes = [16, 8], strides = [1, 1]} : vector<16x32xf32> to vector<16x8xf32>
    %cst_244 = arith.constant dense<0.000000e+00> : vector<16x16xf32>
    %731 = tpu.matmul %729, %730, %cst_244 {dimension_numbers = #tpu.dot_dimension_numbers<[1], [1], [0], [0], [0, 0, 1, 0], [], []>} : vector<16x8xf32>, vector<16x8xf32>, vector<16x16xf32> -> vector<16x16xf32>
    %cst_245 = arith.constant 0.353553385 : f32
    %732 = vector.broadcast %cst_245 : f32 to vector<16x16xf32>
    %733 = arith.mulf %731, %732 : vector<16x16xf32>
    %734 = arith.addf %733, %719 : vector<16x16xf32>
    %cst_246 = arith.constant dense<0xFF800000> : vector<16xf32>
    %735 = vector.multi_reduction <maximumf>, %734, %cst_246 [1] : vector<16x16xf32> to vector<16xf32>
    %736 = vector.shape_cast %735 : vector<16xf32> to vector<16x1xf32>
    %737 = vector.broadcast %736 : vector<16x1xf32> to vector<16x16xf32>
    %738 = arith.subf %734, %737 : vector<16x16xf32>
    %739 = math.exp %738 : vector<16x16xf32>
    %cst_247 = arith.constant dense<0.000000e+00> : vector<16xf32>
    %740 = vector.multi_reduction <add>, %739, %cst_247 [1] : vector<16x16xf32> to vector<16xf32>
    %741 = vector.shape_cast %740 : vector<16xf32> to vector<16x1xf32>
    %742 = tpu.reciprocal %741 {approx = true} : vector<16x1xf32> -> vector<16x1xf32>
    %743 = vector.broadcast %742 : vector<16x1xf32> to vector<16x16xf32>
    %744 = arith.mulf %739, %743 : vector<16x16xf32>
    %745 = vector.extract_strided_slice %728 {offsets = [0, 0], sizes = [16, 8], strides = [1, 1]} : vector<16x32xf32> to vector<16x8xf32>
    %cst_248 = arith.constant dense<0.000000e+00> : vector<16x8xf32>
    %746 = tpu.matmul %744, %745, %cst_248 {dimension_numbers = #tpu.dot_dimension_numbers<[1], [0], [0], [1], [0, 0, 1, 1], [], []>} : vector<16x16xf32>, vector<16x8xf32>, vector<16x8xf32> -> vector<16x8xf32>
    %747 = vector.extract_strided_slice %722 {offsets = [0, 8], sizes = [16, 8], strides = [1, 1]} : vector<16x32xf32> to vector<16x8xf32>
    %748 = vector.extract_strided_slice %725 {offsets = [0, 8], sizes = [16, 8], strides = [1, 1]} : vector<16x32xf32> to vector<16x8xf32>
    %cst_249 = arith.constant dense<0.000000e+00> : vector<16x16xf32>
    %749 = tpu.matmul %747, %748, %cst_249 {dimension_numbers = #tpu.dot_dimension_numbers<[1], [1], [0], [0], [0, 0, 1, 0], [], []>} : vector<16x8xf32>, vector<16x8xf32>, vector<16x16xf32> -> vector<16x16xf32>
    %cst_250 = arith.constant 0.353553385 : f32
    %750 = vector.broadcast %cst_250 : f32 to vector<16x16xf32>
    %751 = arith.mulf %749, %750 : vector<16x16xf32>
    %752 = arith.addf %751, %719 : vector<16x16xf32>
    %cst_251 = arith.constant dense<0xFF800000> : vector<16xf32>
    %753 = vector.multi_reduction <maximumf>, %752, %cst_251 [1] : vector<16x16xf32> to vector<16xf32>
    %754 = vector.shape_cast %753 : vector<16xf32> to vector<16x1xf32>
    %755 = vector.broadcast %754 : vector<16x1xf32> to vector<16x16xf32>
    %756 = arith.subf %752, %755 : vector<16x16xf32>
    %757 = math.exp %756 : vector<16x16xf32>
    %cst_252 = arith.constant dense<0.000000e+00> : vector<16xf32>
    %758 = vector.multi_reduction <add>, %757, %cst_252 [1] : vector<16x16xf32> to vector<16xf32>
    %759 = vector.shape_cast %758 : vector<16xf32> to vector<16x1xf32>
    %760 = tpu.reciprocal %759 {approx = true} : vector<16x1xf32> -> vector<16x1xf32>
    %761 = vector.broadcast %760 : vector<16x1xf32> to vector<16x16xf32>
    %762 = arith.mulf %757, %761 : vector<16x16xf32>
    %763 = vector.extract_strided_slice %728 {offsets = [0, 8], sizes = [16, 8], strides = [1, 1]} : vector<16x32xf32> to vector<16x8xf32>
    %cst_253 = arith.constant dense<0.000000e+00> : vector<16x8xf32>
    %764 = tpu.matmul %762, %763, %cst_253 {dimension_numbers = #tpu.dot_dimension_numbers<[1], [0], [0], [1], [0, 0, 1, 1], [], []>} : vector<16x16xf32>, vector<16x8xf32>, vector<16x8xf32> -> vector<16x8xf32>
    %765 = vector.extract_strided_slice %722 {offsets = [0, 16], sizes = [16, 8], strides = [1, 1]} : vector<16x32xf32> to vector<16x8xf32>
    %766 = vector.extract_strided_slice %725 {offsets = [0, 16], sizes = [16, 8], strides = [1, 1]} : vector<16x32xf32> to vector<16x8xf32>
    %cst_254 = arith.constant dense<0.000000e+00> : vector<16x16xf32>
    %767 = tpu.matmul %765, %766, %cst_254 {dimension_numbers = #tpu.dot_dimension_numbers<[1], [1], [0], [0], [0, 0, 1, 0], [], []>} : vector<16x8xf32>, vector<16x8xf32>, vector<16x16xf32> -> vector<16x16xf32>
    %cst_255 = arith.constant 0.353553385 : f32
    %768 = vector.broadcast %cst_255 : f32 to vector<16x16xf32>
    %769 = arith.mulf %767, %768 : vector<16x16xf32>
    %770 = arith.addf %769, %719 : vector<16x16xf32>
    %cst_256 = arith.constant dense<0xFF800000> : vector<16xf32>
    %771 = vector.multi_reduction <maximumf>, %770, %cst_256 [1] : vector<16x16xf32> to vector<16xf32>
    %772 = vector.shape_cast %771 : vector<16xf32> to vector<16x1xf32>
    %773 = vector.broadcast %772 : vector<16x1xf32> to vector<16x16xf32>
    %774 = arith.subf %770, %773 : vector<16x16xf32>
    %775 = math.exp %774 : vector<16x16xf32>
    %cst_257 = arith.constant dense<0.000000e+00> : vector<16xf32>
    %776 = vector.multi_reduction <add>, %775, %cst_257 [1] : vector<16x16xf32> to vector<16xf32>
    %777 = vector.shape_cast %776 : vector<16xf32> to vector<16x1xf32>
    %778 = tpu.reciprocal %777 {approx = true} : vector<16x1xf32> -> vector<16x1xf32>
    %779 = vector.broadcast %778 : vector<16x1xf32> to vector<16x16xf32>
    %780 = arith.mulf %775, %779 : vector<16x16xf32>
    %781 = vector.extract_strided_slice %728 {offsets = [0, 16], sizes = [16, 8], strides = [1, 1]} : vector<16x32xf32> to vector<16x8xf32>
    %cst_258 = arith.constant dense<0.000000e+00> : vector<16x8xf32>
    %782 = tpu.matmul %780, %781, %cst_258 {dimension_numbers = #tpu.dot_dimension_numbers<[1], [0], [0], [1], [0, 0, 1, 1], [], []>} : vector<16x16xf32>, vector<16x8xf32>, vector<16x8xf32> -> vector<16x8xf32>
    %783 = vector.extract_strided_slice %722 {offsets = [0, 24], sizes = [16, 8], strides = [1, 1]} : vector<16x32xf32> to vector<16x8xf32>
    %784 = vector.extract_strided_slice %725 {offsets = [0, 24], sizes = [16, 8], strides = [1, 1]} : vector<16x32xf32> to vector<16x8xf32>
    %cst_259 = arith.constant dense<0.000000e+00> : vector<16x16xf32>
    %785 = tpu.matmul %783, %784, %cst_259 {dimension_numbers = #tpu.dot_dimension_numbers<[1], [1], [0], [0], [0, 0, 1, 0], [], []>} : vector<16x8xf32>, vector<16x8xf32>, vector<16x16xf32> -> vector<16x16xf32>
    %cst_260 = arith.constant 0.353553385 : f32
    %786 = vector.broadcast %cst_260 : f32 to vector<16x16xf32>
    %787 = arith.mulf %785, %786 : vector<16x16xf32>
    %788 = arith.addf %787, %719 : vector<16x16xf32>
    %cst_261 = arith.constant dense<0xFF800000> : vector<16xf32>
    %789 = vector.multi_reduction <maximumf>, %788, %cst_261 [1] : vector<16x16xf32> to vector<16xf32>
    %790 = vector.shape_cast %789 : vector<16xf32> to vector<16x1xf32>
    %791 = vector.broadcast %790 : vector<16x1xf32> to vector<16x16xf32>
    %792 = arith.subf %788, %791 : vector<16x16xf32>
    %793 = math.exp %792 : vector<16x16xf32>
    %cst_262 = arith.constant dense<0.000000e+00> : vector<16xf32>
    %794 = vector.multi_reduction <add>, %793, %cst_262 [1] : vector<16x16xf32> to vector<16xf32>
    %795 = vector.shape_cast %794 : vector<16xf32> to vector<16x1xf32>
    %796 = tpu.reciprocal %795 {approx = true} : vector<16x1xf32> -> vector<16x1xf32>
    %797 = vector.broadcast %796 : vector<16x1xf32> to vector<16x16xf32>
    %798 = arith.mulf %793, %797 : vector<16x16xf32>
    %799 = vector.extract_strided_slice %728 {offsets = [0, 24], sizes = [16, 8], strides = [1, 1]} : vector<16x32xf32> to vector<16x8xf32>
    %cst_263 = arith.constant dense<0.000000e+00> : vector<16x8xf32>
    %800 = tpu.matmul %798, %799, %cst_263 {dimension_numbers = #tpu.dot_dimension_numbers<[1], [0], [0], [1], [0, 0, 1, 1], [], []>} : vector<16x16xf32>, vector<16x8xf32>, vector<16x8xf32> -> vector<16x8xf32>
    %801 = tpu.concatenate %746, %764, %782, %800 in 1 : vector<16x8xf32>, vector<16x8xf32>, vector<16x8xf32>, vector<16x8xf32> -> vector<16x32xf32>
    %cst_264 = arith.constant dense<0.000000e+00> : vector<16x32xf32>
    %802 = tpu.matmul %801, %5, %cst_264 {dimension_numbers = #tpu.dot_dimension_numbers<[1], [0], [0], [1], [0, 0, 1, 1], [], []>} : vector<16x32xf32>, vector<32x32xf32>, vector<16x32xf32> -> vector<16x32xf32>
    %803 = vector.broadcast %25 : vector<1x32xf32> to vector<16x32xf32>
    %804 = arith.addf %802, %803 : vector<16x32xf32>
    %805 = arith.addf %715, %804 : vector<16x32xf32>
    %cst_265 = arith.constant dense<0.000000e+00> : vector<16xf32>
    %806 = vector.multi_reduction <add>, %805, %cst_265 [1] : vector<16x32xf32> to vector<16xf32>
    %807 = vector.shape_cast %806 : vector<16xf32> to vector<16x1xf32>
    %cst_266 = arith.constant 3.200000e+01 : f32
    %808 = vector.broadcast %cst_266 : f32 to vector<16x1xf32>
    %809 = arith.divf %807, %808 : vector<16x1xf32>
    %810 = vector.broadcast %809 : vector<16x1xf32> to vector<16x32xf32>
    %811 = arith.subf %805, %810 : vector<16x32xf32>
    %812 = arith.mulf %811, %811 : vector<16x32xf32>
    %cst_267 = arith.constant dense<0.000000e+00> : vector<16xf32>
    %813 = vector.multi_reduction <add>, %812, %cst_267 [1] : vector<16x32xf32> to vector<16xf32>
    %814 = vector.shape_cast %813 : vector<16xf32> to vector<16x1xf32>
    %cst_268 = arith.constant 3.200000e+01 : f32
    %815 = vector.broadcast %cst_268 : f32 to vector<16x1xf32>
    %816 = arith.divf %814, %815 : vector<16x1xf32>
    %817 = vector.broadcast %809 : vector<16x1xf32> to vector<16x32xf32>
    %818 = arith.subf %805, %817 : vector<16x32xf32>
    %cst_269 = arith.constant 9.99999974E-6 : f32
    %819 = vector.broadcast %cst_269 : f32 to vector<16x1xf32>
    %820 = arith.addf %816, %819 : vector<16x1xf32>
    %821 = math.rsqrt %820 : vector<16x1xf32>
    %822 = vector.broadcast %821 : vector<16x1xf32> to vector<16x32xf32>
    %823 = arith.mulf %818, %822 : vector<16x32xf32>
    %824 = vector.broadcast %26 : vector<1x32xf32> to vector<16x32xf32>
    %825 = arith.mulf %823, %824 : vector<16x32xf32>
    %826 = vector.broadcast %27 : vector<1x32xf32> to vector<16x32xf32>
    %827 = arith.addf %825, %826 : vector<16x32xf32>
    %cst_270 = arith.constant dense<0.000000e+00> : vector<16x64xf32>
    %828 = tpu.matmul %827, %17, %cst_270 {dimension_numbers = #tpu.dot_dimension_numbers<[1], [0], [0], [1], [0, 0, 1, 1], [], []>} : vector<16x32xf32>, vector<32x64xf32>, vector<16x64xf32> -> vector<16x64xf32>
    %829 = vector.broadcast %28 : vector<1x64xf32> to vector<16x64xf32>
    %830 = arith.addf %828, %829 : vector<16x64xf32>
    %cst_271 = arith.constant 0.707106769 : f32
    %831 = vector.broadcast %cst_271 : f32 to vector<16x64xf32>
    %832 = arith.mulf %830, %831 : vector<16x64xf32>
    %cst_272 = arith.constant 0.000000e+00 : f32
    %833 = vector.broadcast %cst_272 : f32 to vector<16x64xf32>
    %834 = arith.cmpf oge, %832, %833 : vector<16x64xf32>
    %cst_273 = arith.constant 1.000000e+00 : f32
    %cst_274 = arith.constant -1.000000e+00 : f32
    %835 = vector.broadcast %cst_273 : f32 to vector<16x64xf32>
    %836 = vector.broadcast %cst_274 : f32 to vector<16x64xf32>
    %837 = arith.select %834, %835, %836 : vector<16x64xi1>, vector<16x64xf32>
    %838 = math.absf %832 : vector<16x64xf32>
    %cst_275 = arith.constant 0.327591091 : f32
    %839 = vector.broadcast %cst_275 : f32 to vector<16x64xf32>
    %840 = arith.mulf %839, %838 : vector<16x64xf32>
    %cst_276 = arith.constant 1.000000e+00 : f32
    %841 = vector.broadcast %cst_276 : f32 to vector<16x64xf32>
    %842 = arith.addf %841, %840 : vector<16x64xf32>
    %cst_277 = arith.constant 1.000000e+00 : f32
    %843 = vector.broadcast %cst_277 : f32 to vector<16x64xf32>
    %844 = arith.divf %843, %842 : vector<16x64xf32>
    %cst_278 = arith.constant 1.06140542 : f32
    %845 = vector.broadcast %cst_278 : f32 to vector<16x64xf32>
    %846 = arith.mulf %845, %844 : vector<16x64xf32>
    %cst_279 = arith.constant 1.45315206 : f32
    %847 = vector.broadcast %cst_279 : f32 to vector<16x64xf32>
    %848 = arith.subf %846, %847 : vector<16x64xf32>
    %849 = arith.mulf %848, %844 : vector<16x64xf32>
    %cst_280 = arith.constant 1.42141378 : f32
    %850 = vector.broadcast %cst_280 : f32 to vector<16x64xf32>
    %851 = arith.addf %849, %850 : vector<16x64xf32>
    %852 = arith.mulf %851, %844 : vector<16x64xf32>
    %cst_281 = arith.constant 0.284496725 : f32
    %853 = vector.broadcast %cst_281 : f32 to vector<16x64xf32>
    %854 = arith.subf %852, %853 : vector<16x64xf32>
    %855 = arith.mulf %854, %844 : vector<16x64xf32>
    %cst_282 = arith.constant 0.254829586 : f32
    %856 = vector.broadcast %cst_282 : f32 to vector<16x64xf32>
    %857 = arith.addf %855, %856 : vector<16x64xf32>
    %858 = arith.mulf %857, %844 : vector<16x64xf32>
    %cst_283 = arith.constant 0.000000e+00 : f32
    %859 = vector.broadcast %cst_283 : f32 to vector<16x64xf32>
    %860 = arith.subf %859, %838 : vector<16x64xf32>
    %861 = arith.mulf %860, %838 : vector<16x64xf32>
    %862 = math.exp %861 : vector<16x64xf32>
    %863 = arith.mulf %858, %862 : vector<16x64xf32>
    %cst_284 = arith.constant 1.000000e+00 : f32
    %864 = vector.broadcast %cst_284 : f32 to vector<16x64xf32>
    %865 = arith.subf %864, %863 : vector<16x64xf32>
    %866 = arith.mulf %837, %865 : vector<16x64xf32>
    %cst_285 = arith.constant 5.000000e-01 : f32
    %867 = vector.broadcast %cst_285 : f32 to vector<16x64xf32>
    %868 = arith.mulf %867, %830 : vector<16x64xf32>
    %cst_286 = arith.constant 1.000000e+00 : f32
    %869 = vector.broadcast %cst_286 : f32 to vector<16x64xf32>
    %870 = arith.addf %869, %866 : vector<16x64xf32>
    %871 = arith.mulf %868, %870 : vector<16x64xf32>
    %cst_287 = arith.constant dense<0.000000e+00> : vector<16x32xf32>
    %872 = tpu.matmul %871, %6, %cst_287 {dimension_numbers = #tpu.dot_dimension_numbers<[1], [0], [0], [1], [0, 0, 1, 1], [], []>} : vector<16x64xf32>, vector<64x32xf32>, vector<16x32xf32> -> vector<16x32xf32>
    %873 = vector.broadcast %29 : vector<1x32xf32> to vector<16x32xf32>
    %874 = arith.addf %872, %873 : vector<16x32xf32>
    %875 = arith.addf %827, %874 : vector<16x32xf32>
    %cst_288 = arith.constant dense<0.000000e+00> : vector<16xf32>
    %876 = vector.multi_reduction <add>, %875, %cst_288 [1] : vector<16x32xf32> to vector<16xf32>
    %877 = vector.shape_cast %876 : vector<16xf32> to vector<16x1xf32>
    %cst_289 = arith.constant 3.200000e+01 : f32
    %878 = vector.broadcast %cst_289 : f32 to vector<16x1xf32>
    %879 = arith.divf %877, %878 : vector<16x1xf32>
    %880 = vector.broadcast %879 : vector<16x1xf32> to vector<16x32xf32>
    %881 = arith.subf %875, %880 : vector<16x32xf32>
    %882 = arith.mulf %881, %881 : vector<16x32xf32>
    %cst_290 = arith.constant dense<0.000000e+00> : vector<16xf32>
    %883 = vector.multi_reduction <add>, %882, %cst_290 [1] : vector<16x32xf32> to vector<16xf32>
    %884 = vector.shape_cast %883 : vector<16xf32> to vector<16x1xf32>
    %cst_291 = arith.constant 3.200000e+01 : f32
    %885 = vector.broadcast %cst_291 : f32 to vector<16x1xf32>
    %886 = arith.divf %884, %885 : vector<16x1xf32>
    %887 = vector.broadcast %879 : vector<16x1xf32> to vector<16x32xf32>
    %888 = arith.subf %875, %887 : vector<16x32xf32>
    %cst_292 = arith.constant 9.99999974E-6 : f32
    %889 = vector.broadcast %cst_292 : f32 to vector<16x1xf32>
    %890 = arith.addf %886, %889 : vector<16x1xf32>
    %891 = math.rsqrt %890 : vector<16x1xf32>
    %892 = vector.broadcast %891 : vector<16x1xf32> to vector<16x32xf32>
    %893 = arith.mulf %888, %892 : vector<16x32xf32>
    %894 = vector.broadcast %30 : vector<1x32xf32> to vector<16x32xf32>
    %895 = arith.mulf %893, %894 : vector<16x32xf32>
    %896 = vector.broadcast %31 : vector<1x32xf32> to vector<16x32xf32>
    %897 = arith.addf %895, %896 : vector<16x32xf32>
    %c8_293 = arith.constant 8 : index
    %c0_294 = arith.constant 0 : index
    %898 = vector.load %arg5[%c8_293, %c0_294] : memref<16x1xi32, #tpu.memory_space<vmem>>, vector<8x1xi32>
    %899 = tpu.iota {dimensions = array<i32: 1>} : vector<8x64xi32>
    %900 = vector.broadcast %898 : vector<8x1xi32> to vector<8x64xi32>
    %901 = arith.cmpi eq, %899, %900 : vector<8x64xi32>
    %902 = arith.extui %901 : vector<8x64xi1> to vector<8x64xi32>
    %903 = arith.sitofp %902 : vector<8x64xi32> to vector<8x64xf32>
    %cst_295 = arith.constant dense<0.000000e+00> : vector<8x32xf32>
    %904 = tpu.matmul %903, %0, %cst_295 {dimension_numbers = #tpu.dot_dimension_numbers<[1], [0], [0], [1], [0, 0, 1, 1], [], []>} : vector<8x64xf32>, vector<64x32xf32>, vector<8x32xf32> -> vector<8x32xf32>
    %cst_296 = arith.constant dense<0.000000e+00> : vector<8x32xf32>
    %905 = tpu.matmul %61, %1, %cst_296 {dimension_numbers = #tpu.dot_dimension_numbers<[1], [0], [0], [1], [0, 0, 1, 1], [], []>} : vector<8x32xf32>, vector<32x32xf32>, vector<8x32xf32> -> vector<8x32xf32>
    %906 = arith.addf %904, %905 : vector<8x32xf32>
    %907 = vector.broadcast %19 : vector<1x32xf32> to vector<8x32xf32>
    %908 = arith.addf %906, %907 : vector<8x32xf32>
    %cst_297 = arith.constant dense<0.000000e+00> : vector<8xf32>
    %909 = vector.multi_reduction <add>, %908, %cst_297 [1] : vector<8x32xf32> to vector<8xf32>
    %910 = vector.shape_cast %909 : vector<8xf32> to vector<8x1xf32>
    %cst_298 = arith.constant 3.200000e+01 : f32
    %911 = vector.broadcast %cst_298 : f32 to vector<8x1xf32>
    %912 = arith.divf %910, %911 : vector<8x1xf32>
    %913 = vector.broadcast %912 : vector<8x1xf32> to vector<8x32xf32>
    %914 = arith.subf %908, %913 : vector<8x32xf32>
    %915 = arith.mulf %914, %914 : vector<8x32xf32>
    %cst_299 = arith.constant dense<0.000000e+00> : vector<8xf32>
    %916 = vector.multi_reduction <add>, %915, %cst_299 [1] : vector<8x32xf32> to vector<8xf32>
    %917 = vector.shape_cast %916 : vector<8xf32> to vector<8x1xf32>
    %cst_300 = arith.constant 3.200000e+01 : f32
    %918 = vector.broadcast %cst_300 : f32 to vector<8x1xf32>
    %919 = arith.divf %917, %918 : vector<8x1xf32>
    %920 = vector.broadcast %912 : vector<8x1xf32> to vector<8x32xf32>
    %921 = arith.subf %908, %920 : vector<8x32xf32>
    %cst_301 = arith.constant 9.99999974E-6 : f32
    %922 = vector.broadcast %cst_301 : f32 to vector<8x1xf32>
    %923 = arith.addf %919, %922 : vector<8x1xf32>
    %924 = math.rsqrt %923 : vector<8x1xf32>
    %925 = vector.broadcast %924 : vector<8x1xf32> to vector<8x32xf32>
    %926 = arith.mulf %921, %925 : vector<8x32xf32>
    %927 = vector.broadcast %20 : vector<1x32xf32> to vector<8x32xf32>
    %928 = arith.mulf %926, %927 : vector<8x32xf32>
    %929 = vector.broadcast %21 : vector<1x32xf32> to vector<8x32xf32>
    %930 = arith.addf %928, %929 : vector<8x32xf32>
    %cst_302 = arith.constant dense<0.000000e+00> : vector<8x32xf32>
    %931 = tpu.matmul %930, %7, %cst_302 {dimension_numbers = #tpu.dot_dimension_numbers<[1], [0], [0], [1], [0, 0, 1, 1], [], []>} : vector<8x32xf32>, vector<32x32xf32>, vector<8x32xf32> -> vector<8x32xf32>
    %932 = vector.broadcast %32 : vector<1x32xf32> to vector<8x32xf32>
    %933 = arith.addf %931, %932 : vector<8x32xf32>
    %cst_303 = arith.constant dense<0.000000e+00> : vector<8x32xf32>
    %934 = tpu.matmul %930, %8, %cst_303 {dimension_numbers = #tpu.dot_dimension_numbers<[1], [0], [0], [1], [0, 0, 1, 1], [], []>} : vector<8x32xf32>, vector<32x32xf32>, vector<8x32xf32> -> vector<8x32xf32>
    %935 = vector.broadcast %33 : vector<1x32xf32> to vector<8x32xf32>
    %936 = arith.addf %934, %935 : vector<8x32xf32>
    %cst_304 = arith.constant dense<0.000000e+00> : vector<8x32xf32>
    %937 = tpu.matmul %930, %9, %cst_304 {dimension_numbers = #tpu.dot_dimension_numbers<[1], [0], [0], [1], [0, 0, 1, 1], [], []>} : vector<8x32xf32>, vector<32x32xf32>, vector<8x32xf32> -> vector<8x32xf32>
    %938 = vector.broadcast %34 : vector<1x32xf32> to vector<8x32xf32>
    %939 = arith.addf %937, %938 : vector<8x32xf32>
    %940 = vector.extract_strided_slice %933 {offsets = [0, 0], sizes = [8, 8], strides = [1, 1]} : vector<8x32xf32> to vector<8x8xf32>
    %941 = vector.extract_strided_slice %936 {offsets = [0, 0], sizes = [8, 8], strides = [1, 1]} : vector<8x32xf32> to vector<8x8xf32>
    %cst_305 = arith.constant dense<0.000000e+00> : vector<8x8xf32>
    %942 = tpu.matmul %940, %941, %cst_305 {dimension_numbers = #tpu.dot_dimension_numbers<[1], [1], [0], [0], [0, 0, 1, 0], [], []>} : vector<8x8xf32>, vector<8x8xf32>, vector<8x8xf32> -> vector<8x8xf32>
    %cst_306 = arith.constant 0.353553385 : f32
    %943 = vector.broadcast %cst_306 : f32 to vector<8x8xf32>
    %944 = arith.mulf %942, %943 : vector<8x8xf32>
    %945 = arith.addf %944, %54 : vector<8x8xf32>
    %cst_307 = arith.constant dense<0xFF800000> : vector<8xf32>
    %946 = vector.multi_reduction <maximumf>, %945, %cst_307 [1] : vector<8x8xf32> to vector<8xf32>
    %947 = vector.shape_cast %946 : vector<8xf32> to vector<8x1xf32>
    %948 = vector.broadcast %947 : vector<8x1xf32> to vector<8x8xf32>
    %949 = arith.subf %945, %948 : vector<8x8xf32>
    %950 = math.exp %949 : vector<8x8xf32>
    %cst_308 = arith.constant dense<0.000000e+00> : vector<8xf32>
    %951 = vector.multi_reduction <add>, %950, %cst_308 [1] : vector<8x8xf32> to vector<8xf32>
    %952 = vector.shape_cast %951 : vector<8xf32> to vector<8x1xf32>
    %953 = tpu.reciprocal %952 {approx = true} : vector<8x1xf32> -> vector<8x1xf32>
    %954 = vector.broadcast %953 : vector<8x1xf32> to vector<8x8xf32>
    %955 = arith.mulf %950, %954 : vector<8x8xf32>
    %956 = vector.extract_strided_slice %939 {offsets = [0, 0], sizes = [8, 8], strides = [1, 1]} : vector<8x32xf32> to vector<8x8xf32>
    %cst_309 = arith.constant dense<0.000000e+00> : vector<8x8xf32>
    %957 = tpu.matmul %955, %956, %cst_309 {dimension_numbers = #tpu.dot_dimension_numbers<[1], [0], [0], [1], [0, 0, 1, 1], [], []>} : vector<8x8xf32>, vector<8x8xf32>, vector<8x8xf32> -> vector<8x8xf32>
    %958 = vector.extract_strided_slice %933 {offsets = [0, 8], sizes = [8, 8], strides = [1, 1]} : vector<8x32xf32> to vector<8x8xf32>
    %959 = vector.extract_strided_slice %936 {offsets = [0, 8], sizes = [8, 8], strides = [1, 1]} : vector<8x32xf32> to vector<8x8xf32>
    %cst_310 = arith.constant dense<0.000000e+00> : vector<8x8xf32>
    %960 = tpu.matmul %958, %959, %cst_310 {dimension_numbers = #tpu.dot_dimension_numbers<[1], [1], [0], [0], [0, 0, 1, 0], [], []>} : vector<8x8xf32>, vector<8x8xf32>, vector<8x8xf32> -> vector<8x8xf32>
    %cst_311 = arith.constant 0.353553385 : f32
    %961 = vector.broadcast %cst_311 : f32 to vector<8x8xf32>
    %962 = arith.mulf %960, %961 : vector<8x8xf32>
    %963 = arith.addf %962, %54 : vector<8x8xf32>
    %cst_312 = arith.constant dense<0xFF800000> : vector<8xf32>
    %964 = vector.multi_reduction <maximumf>, %963, %cst_312 [1] : vector<8x8xf32> to vector<8xf32>
    %965 = vector.shape_cast %964 : vector<8xf32> to vector<8x1xf32>
    %966 = vector.broadcast %965 : vector<8x1xf32> to vector<8x8xf32>
    %967 = arith.subf %963, %966 : vector<8x8xf32>
    %968 = math.exp %967 : vector<8x8xf32>
    %cst_313 = arith.constant dense<0.000000e+00> : vector<8xf32>
    %969 = vector.multi_reduction <add>, %968, %cst_313 [1] : vector<8x8xf32> to vector<8xf32>
    %970 = vector.shape_cast %969 : vector<8xf32> to vector<8x1xf32>
    %971 = tpu.reciprocal %970 {approx = true} : vector<8x1xf32> -> vector<8x1xf32>
    %972 = vector.broadcast %971 : vector<8x1xf32> to vector<8x8xf32>
    %973 = arith.mulf %968, %972 : vector<8x8xf32>
    %974 = vector.extract_strided_slice %939 {offsets = [0, 8], sizes = [8, 8], strides = [1, 1]} : vector<8x32xf32> to vector<8x8xf32>
    %cst_314 = arith.constant dense<0.000000e+00> : vector<8x8xf32>
    %975 = tpu.matmul %973, %974, %cst_314 {dimension_numbers = #tpu.dot_dimension_numbers<[1], [0], [0], [1], [0, 0, 1, 1], [], []>} : vector<8x8xf32>, vector<8x8xf32>, vector<8x8xf32> -> vector<8x8xf32>
    %976 = vector.extract_strided_slice %933 {offsets = [0, 16], sizes = [8, 8], strides = [1, 1]} : vector<8x32xf32> to vector<8x8xf32>
    %977 = vector.extract_strided_slice %936 {offsets = [0, 16], sizes = [8, 8], strides = [1, 1]} : vector<8x32xf32> to vector<8x8xf32>
    %cst_315 = arith.constant dense<0.000000e+00> : vector<8x8xf32>
    %978 = tpu.matmul %976, %977, %cst_315 {dimension_numbers = #tpu.dot_dimension_numbers<[1], [1], [0], [0], [0, 0, 1, 0], [], []>} : vector<8x8xf32>, vector<8x8xf32>, vector<8x8xf32> -> vector<8x8xf32>
    %cst_316 = arith.constant 0.353553385 : f32
    %979 = vector.broadcast %cst_316 : f32 to vector<8x8xf32>
    %980 = arith.mulf %978, %979 : vector<8x8xf32>
    %981 = arith.addf %980, %54 : vector<8x8xf32>
    %cst_317 = arith.constant dense<0xFF800000> : vector<8xf32>
    %982 = vector.multi_reduction <maximumf>, %981, %cst_317 [1] : vector<8x8xf32> to vector<8xf32>
    %983 = vector.shape_cast %982 : vector<8xf32> to vector<8x1xf32>
    %984 = vector.broadcast %983 : vector<8x1xf32> to vector<8x8xf32>
    %985 = arith.subf %981, %984 : vector<8x8xf32>
    %986 = math.exp %985 : vector<8x8xf32>
    %cst_318 = arith.constant dense<0.000000e+00> : vector<8xf32>
    %987 = vector.multi_reduction <add>, %986, %cst_318 [1] : vector<8x8xf32> to vector<8xf32>
    %988 = vector.shape_cast %987 : vector<8xf32> to vector<8x1xf32>
    %989 = tpu.reciprocal %988 {approx = true} : vector<8x1xf32> -> vector<8x1xf32>
    %990 = vector.broadcast %989 : vector<8x1xf32> to vector<8x8xf32>
    %991 = arith.mulf %986, %990 : vector<8x8xf32>
    %992 = vector.extract_strided_slice %939 {offsets = [0, 16], sizes = [8, 8], strides = [1, 1]} : vector<8x32xf32> to vector<8x8xf32>
    %cst_319 = arith.constant dense<0.000000e+00> : vector<8x8xf32>
    %993 = tpu.matmul %991, %992, %cst_319 {dimension_numbers = #tpu.dot_dimension_numbers<[1], [0], [0], [1], [0, 0, 1, 1], [], []>} : vector<8x8xf32>, vector<8x8xf32>, vector<8x8xf32> -> vector<8x8xf32>
    %994 = vector.extract_strided_slice %933 {offsets = [0, 24], sizes = [8, 8], strides = [1, 1]} : vector<8x32xf32> to vector<8x8xf32>
    %995 = vector.extract_strided_slice %936 {offsets = [0, 24], sizes = [8, 8], strides = [1, 1]} : vector<8x32xf32> to vector<8x8xf32>
    %cst_320 = arith.constant dense<0.000000e+00> : vector<8x8xf32>
    %996 = tpu.matmul %994, %995, %cst_320 {dimension_numbers = #tpu.dot_dimension_numbers<[1], [1], [0], [0], [0, 0, 1, 0], [], []>} : vector<8x8xf32>, vector<8x8xf32>, vector<8x8xf32> -> vector<8x8xf32>
    %cst_321 = arith.constant 0.353553385 : f32
    %997 = vector.broadcast %cst_321 : f32 to vector<8x8xf32>
    %998 = arith.mulf %996, %997 : vector<8x8xf32>
    %999 = arith.addf %998, %54 : vector<8x8xf32>
    %cst_322 = arith.constant dense<0xFF800000> : vector<8xf32>
    %1000 = vector.multi_reduction <maximumf>, %999, %cst_322 [1] : vector<8x8xf32> to vector<8xf32>
    %1001 = vector.shape_cast %1000 : vector<8xf32> to vector<8x1xf32>
    %1002 = vector.broadcast %1001 : vector<8x1xf32> to vector<8x8xf32>
    %1003 = arith.subf %999, %1002 : vector<8x8xf32>
    %1004 = math.exp %1003 : vector<8x8xf32>
    %cst_323 = arith.constant dense<0.000000e+00> : vector<8xf32>
    %1005 = vector.multi_reduction <add>, %1004, %cst_323 [1] : vector<8x8xf32> to vector<8xf32>
    %1006 = vector.shape_cast %1005 : vector<8xf32> to vector<8x1xf32>
    %1007 = tpu.reciprocal %1006 {approx = true} : vector<8x1xf32> -> vector<8x1xf32>
    %1008 = vector.broadcast %1007 : vector<8x1xf32> to vector<8x8xf32>
    %1009 = arith.mulf %1004, %1008 : vector<8x8xf32>
    %1010 = vector.extract_strided_slice %939 {offsets = [0, 24], sizes = [8, 8], strides = [1, 1]} : vector<8x32xf32> to vector<8x8xf32>
    %cst_324 = arith.constant dense<0.000000e+00> : vector<8x8xf32>
    %1011 = tpu.matmul %1009, %1010, %cst_324 {dimension_numbers = #tpu.dot_dimension_numbers<[1], [0], [0], [1], [0, 0, 1, 1], [], []>} : vector<8x8xf32>, vector<8x8xf32>, vector<8x8xf32> -> vector<8x8xf32>
    %1012 = tpu.concatenate %957, %975, %993, %1011 in 1 : vector<8x8xf32>, vector<8x8xf32>, vector<8x8xf32>, vector<8x8xf32> -> vector<8x32xf32>
    %cst_325 = arith.constant dense<0.000000e+00> : vector<8x32xf32>
    %1013 = tpu.matmul %1012, %10, %cst_325 {dimension_numbers = #tpu.dot_dimension_numbers<[1], [0], [0], [1], [0, 0, 1, 1], [], []>} : vector<8x32xf32>, vector<32x32xf32>, vector<8x32xf32> -> vector<8x32xf32>
    %1014 = vector.broadcast %35 : vector<1x32xf32> to vector<8x32xf32>
    %1015 = arith.addf %1013, %1014 : vector<8x32xf32>
    %1016 = arith.addf %930, %1015 : vector<8x32xf32>
    %cst_326 = arith.constant dense<0.000000e+00> : vector<8xf32>
    %1017 = vector.multi_reduction <add>, %1016, %cst_326 [1] : vector<8x32xf32> to vector<8xf32>
    %1018 = vector.shape_cast %1017 : vector<8xf32> to vector<8x1xf32>
    %cst_327 = arith.constant 3.200000e+01 : f32
    %1019 = vector.broadcast %cst_327 : f32 to vector<8x1xf32>
    %1020 = arith.divf %1018, %1019 : vector<8x1xf32>
    %1021 = vector.broadcast %1020 : vector<8x1xf32> to vector<8x32xf32>
    %1022 = arith.subf %1016, %1021 : vector<8x32xf32>
    %1023 = arith.mulf %1022, %1022 : vector<8x32xf32>
    %cst_328 = arith.constant dense<0.000000e+00> : vector<8xf32>
    %1024 = vector.multi_reduction <add>, %1023, %cst_328 [1] : vector<8x32xf32> to vector<8xf32>
    %1025 = vector.shape_cast %1024 : vector<8xf32> to vector<8x1xf32>
    %cst_329 = arith.constant 3.200000e+01 : f32
    %1026 = vector.broadcast %cst_329 : f32 to vector<8x1xf32>
    %1027 = arith.divf %1025, %1026 : vector<8x1xf32>
    %1028 = vector.broadcast %1020 : vector<8x1xf32> to vector<8x32xf32>
    %1029 = arith.subf %1016, %1028 : vector<8x32xf32>
    %cst_330 = arith.constant 9.99999974E-6 : f32
    %1030 = vector.broadcast %cst_330 : f32 to vector<8x1xf32>
    %1031 = arith.addf %1027, %1030 : vector<8x1xf32>
    %1032 = math.rsqrt %1031 : vector<8x1xf32>
    %1033 = vector.broadcast %1032 : vector<8x1xf32> to vector<8x32xf32>
    %1034 = arith.mulf %1029, %1033 : vector<8x32xf32>
    %1035 = vector.broadcast %36 : vector<1x32xf32> to vector<8x32xf32>
    %1036 = arith.mulf %1034, %1035 : vector<8x32xf32>
    %1037 = vector.broadcast %37 : vector<1x32xf32> to vector<8x32xf32>
    %1038 = arith.addf %1036, %1037 : vector<8x32xf32>
    %c1_331 = arith.constant 1 : index
    %c0_332 = arith.constant 0 : index
    %1039 = vector.load %arg4[%c1_331, %c0_332] : memref<2x16xi32, #tpu.memory_space<vmem>>, vector<1x16xi32>
    %c0_i32_333 = arith.constant 0 : i32
    %1040 = vector.broadcast %c0_i32_333 : i32 to vector<1x16xi32>
    %1041 = arith.cmpi sgt, %1039, %1040 : vector<1x16xi32>
    %cst_334 = arith.constant 0.000000e+00 : f32
    %cst_335 = arith.constant -1.000000e+09 : f32
    %1042 = vector.broadcast %cst_334 : f32 to vector<1x16xf32>
    %1043 = vector.broadcast %cst_335 : f32 to vector<1x16xf32>
    %1044 = arith.select %1041, %1042, %1043 : vector<1x16xi1>, vector<1x16xf32>
    %cst_336 = arith.constant dense<0.000000e+00> : vector<8x32xf32>
    %1045 = tpu.matmul %1038, %11, %cst_336 {dimension_numbers = #tpu.dot_dimension_numbers<[1], [0], [0], [1], [0, 0, 1, 1], [], []>} : vector<8x32xf32>, vector<32x32xf32>, vector<8x32xf32> -> vector<8x32xf32>
    %1046 = vector.broadcast %38 : vector<1x32xf32> to vector<8x32xf32>
    %1047 = arith.addf %1045, %1046 : vector<8x32xf32>
    %cst_337 = arith.constant dense<0.000000e+00> : vector<16x32xf32>
    %1048 = tpu.matmul %897, %12, %cst_337 {dimension_numbers = #tpu.dot_dimension_numbers<[1], [0], [0], [1], [0, 0, 1, 1], [], []>} : vector<16x32xf32>, vector<32x32xf32>, vector<16x32xf32> -> vector<16x32xf32>
    %1049 = vector.broadcast %39 : vector<1x32xf32> to vector<16x32xf32>
    %1050 = arith.addf %1048, %1049 : vector<16x32xf32>
    %cst_338 = arith.constant dense<0.000000e+00> : vector<16x32xf32>
    %1051 = tpu.matmul %897, %13, %cst_338 {dimension_numbers = #tpu.dot_dimension_numbers<[1], [0], [0], [1], [0, 0, 1, 1], [], []>} : vector<16x32xf32>, vector<32x32xf32>, vector<16x32xf32> -> vector<16x32xf32>
    %1052 = vector.broadcast %40 : vector<1x32xf32> to vector<16x32xf32>
    %1053 = arith.addf %1051, %1052 : vector<16x32xf32>
    %1054 = vector.extract_strided_slice %1047 {offsets = [0, 0], sizes = [8, 8], strides = [1, 1]} : vector<8x32xf32> to vector<8x8xf32>
    %1055 = vector.extract_strided_slice %1050 {offsets = [0, 0], sizes = [16, 8], strides = [1, 1]} : vector<16x32xf32> to vector<16x8xf32>
    %cst_339 = arith.constant dense<0.000000e+00> : vector<8x16xf32>
    %1056 = tpu.matmul %1054, %1055, %cst_339 {dimension_numbers = #tpu.dot_dimension_numbers<[1], [1], [0], [0], [0, 0, 1, 0], [], []>} : vector<8x8xf32>, vector<16x8xf32>, vector<8x16xf32> -> vector<8x16xf32>
    %cst_340 = arith.constant 0.353553385 : f32
    %1057 = vector.broadcast %cst_340 : f32 to vector<8x16xf32>
    %1058 = arith.mulf %1056, %1057 : vector<8x16xf32>
    %1059 = vector.broadcast %1044 : vector<1x16xf32> to vector<8x16xf32>
    %1060 = arith.addf %1058, %1059 : vector<8x16xf32>
    %cst_341 = arith.constant dense<0xFF800000> : vector<8xf32>
    %1061 = vector.multi_reduction <maximumf>, %1060, %cst_341 [1] : vector<8x16xf32> to vector<8xf32>
    %1062 = vector.shape_cast %1061 : vector<8xf32> to vector<8x1xf32>
    %1063 = vector.broadcast %1062 : vector<8x1xf32> to vector<8x16xf32>
    %1064 = arith.subf %1060, %1063 : vector<8x16xf32>
    %1065 = math.exp %1064 : vector<8x16xf32>
    %cst_342 = arith.constant dense<0.000000e+00> : vector<8xf32>
    %1066 = vector.multi_reduction <add>, %1065, %cst_342 [1] : vector<8x16xf32> to vector<8xf32>
    %1067 = vector.shape_cast %1066 : vector<8xf32> to vector<8x1xf32>
    %1068 = tpu.reciprocal %1067 {approx = true} : vector<8x1xf32> -> vector<8x1xf32>
    %1069 = vector.broadcast %1068 : vector<8x1xf32> to vector<8x16xf32>
    %1070 = arith.mulf %1065, %1069 : vector<8x16xf32>
    %1071 = vector.extract_strided_slice %1053 {offsets = [0, 0], sizes = [16, 8], strides = [1, 1]} : vector<16x32xf32> to vector<16x8xf32>
    %cst_343 = arith.constant dense<0.000000e+00> : vector<8x8xf32>
    %1072 = tpu.matmul %1070, %1071, %cst_343 {dimension_numbers = #tpu.dot_dimension_numbers<[1], [0], [0], [1], [0, 0, 1, 1], [], []>} : vector<8x16xf32>, vector<16x8xf32>, vector<8x8xf32> -> vector<8x8xf32>
    %1073 = vector.extract_strided_slice %1047 {offsets = [0, 8], sizes = [8, 8], strides = [1, 1]} : vector<8x32xf32> to vector<8x8xf32>
    %1074 = vector.extract_strided_slice %1050 {offsets = [0, 8], sizes = [16, 8], strides = [1, 1]} : vector<16x32xf32> to vector<16x8xf32>
    %cst_344 = arith.constant dense<0.000000e+00> : vector<8x16xf32>
    %1075 = tpu.matmul %1073, %1074, %cst_344 {dimension_numbers = #tpu.dot_dimension_numbers<[1], [1], [0], [0], [0, 0, 1, 0], [], []>} : vector<8x8xf32>, vector<16x8xf32>, vector<8x16xf32> -> vector<8x16xf32>
    %cst_345 = arith.constant 0.353553385 : f32
    %1076 = vector.broadcast %cst_345 : f32 to vector<8x16xf32>
    %1077 = arith.mulf %1075, %1076 : vector<8x16xf32>
    %1078 = vector.broadcast %1044 : vector<1x16xf32> to vector<8x16xf32>
    %1079 = arith.addf %1077, %1078 : vector<8x16xf32>
    %cst_346 = arith.constant dense<0xFF800000> : vector<8xf32>
    %1080 = vector.multi_reduction <maximumf>, %1079, %cst_346 [1] : vector<8x16xf32> to vector<8xf32>
    %1081 = vector.shape_cast %1080 : vector<8xf32> to vector<8x1xf32>
    %1082 = vector.broadcast %1081 : vector<8x1xf32> to vector<8x16xf32>
    %1083 = arith.subf %1079, %1082 : vector<8x16xf32>
    %1084 = math.exp %1083 : vector<8x16xf32>
    %cst_347 = arith.constant dense<0.000000e+00> : vector<8xf32>
    %1085 = vector.multi_reduction <add>, %1084, %cst_347 [1] : vector<8x16xf32> to vector<8xf32>
    %1086 = vector.shape_cast %1085 : vector<8xf32> to vector<8x1xf32>
    %1087 = tpu.reciprocal %1086 {approx = true} : vector<8x1xf32> -> vector<8x1xf32>
    %1088 = vector.broadcast %1087 : vector<8x1xf32> to vector<8x16xf32>
    %1089 = arith.mulf %1084, %1088 : vector<8x16xf32>
    %1090 = vector.extract_strided_slice %1053 {offsets = [0, 8], sizes = [16, 8], strides = [1, 1]} : vector<16x32xf32> to vector<16x8xf32>
    %cst_348 = arith.constant dense<0.000000e+00> : vector<8x8xf32>
    %1091 = tpu.matmul %1089, %1090, %cst_348 {dimension_numbers = #tpu.dot_dimension_numbers<[1], [0], [0], [1], [0, 0, 1, 1], [], []>} : vector<8x16xf32>, vector<16x8xf32>, vector<8x8xf32> -> vector<8x8xf32>
    %1092 = vector.extract_strided_slice %1047 {offsets = [0, 16], sizes = [8, 8], strides = [1, 1]} : vector<8x32xf32> to vector<8x8xf32>
    %1093 = vector.extract_strided_slice %1050 {offsets = [0, 16], sizes = [16, 8], strides = [1, 1]} : vector<16x32xf32> to vector<16x8xf32>
    %cst_349 = arith.constant dense<0.000000e+00> : vector<8x16xf32>
    %1094 = tpu.matmul %1092, %1093, %cst_349 {dimension_numbers = #tpu.dot_dimension_numbers<[1], [1], [0], [0], [0, 0, 1, 0], [], []>} : vector<8x8xf32>, vector<16x8xf32>, vector<8x16xf32> -> vector<8x16xf32>
    %cst_350 = arith.constant 0.353553385 : f32
    %1095 = vector.broadcast %cst_350 : f32 to vector<8x16xf32>
    %1096 = arith.mulf %1094, %1095 : vector<8x16xf32>
    %1097 = vector.broadcast %1044 : vector<1x16xf32> to vector<8x16xf32>
    %1098 = arith.addf %1096, %1097 : vector<8x16xf32>
    %cst_351 = arith.constant dense<0xFF800000> : vector<8xf32>
    %1099 = vector.multi_reduction <maximumf>, %1098, %cst_351 [1] : vector<8x16xf32> to vector<8xf32>
    %1100 = vector.shape_cast %1099 : vector<8xf32> to vector<8x1xf32>
    %1101 = vector.broadcast %1100 : vector<8x1xf32> to vector<8x16xf32>
    %1102 = arith.subf %1098, %1101 : vector<8x16xf32>
    %1103 = math.exp %1102 : vector<8x16xf32>
    %cst_352 = arith.constant dense<0.000000e+00> : vector<8xf32>
    %1104 = vector.multi_reduction <add>, %1103, %cst_352 [1] : vector<8x16xf32> to vector<8xf32>
    %1105 = vector.shape_cast %1104 : vector<8xf32> to vector<8x1xf32>
    %1106 = tpu.reciprocal %1105 {approx = true} : vector<8x1xf32> -> vector<8x1xf32>
    %1107 = vector.broadcast %1106 : vector<8x1xf32> to vector<8x16xf32>
    %1108 = arith.mulf %1103, %1107 : vector<8x16xf32>
    %1109 = vector.extract_strided_slice %1053 {offsets = [0, 16], sizes = [16, 8], strides = [1, 1]} : vector<16x32xf32> to vector<16x8xf32>
    %cst_353 = arith.constant dense<0.000000e+00> : vector<8x8xf32>
    %1110 = tpu.matmul %1108, %1109, %cst_353 {dimension_numbers = #tpu.dot_dimension_numbers<[1], [0], [0], [1], [0, 0, 1, 1], [], []>} : vector<8x16xf32>, vector<16x8xf32>, vector<8x8xf32> -> vector<8x8xf32>
    %1111 = vector.extract_strided_slice %1047 {offsets = [0, 24], sizes = [8, 8], strides = [1, 1]} : vector<8x32xf32> to vector<8x8xf32>
    %1112 = vector.extract_strided_slice %1050 {offsets = [0, 24], sizes = [16, 8], strides = [1, 1]} : vector<16x32xf32> to vector<16x8xf32>
    %cst_354 = arith.constant dense<0.000000e+00> : vector<8x16xf32>
    %1113 = tpu.matmul %1111, %1112, %cst_354 {dimension_numbers = #tpu.dot_dimension_numbers<[1], [1], [0], [0], [0, 0, 1, 0], [], []>} : vector<8x8xf32>, vector<16x8xf32>, vector<8x16xf32> -> vector<8x16xf32>
    %cst_355 = arith.constant 0.353553385 : f32
    %1114 = vector.broadcast %cst_355 : f32 to vector<8x16xf32>
    %1115 = arith.mulf %1113, %1114 : vector<8x16xf32>
    %1116 = vector.broadcast %1044 : vector<1x16xf32> to vector<8x16xf32>
    %1117 = arith.addf %1115, %1116 : vector<8x16xf32>
    %cst_356 = arith.constant dense<0xFF800000> : vector<8xf32>
    %1118 = vector.multi_reduction <maximumf>, %1117, %cst_356 [1] : vector<8x16xf32> to vector<8xf32>
    %1119 = vector.shape_cast %1118 : vector<8xf32> to vector<8x1xf32>
    %1120 = vector.broadcast %1119 : vector<8x1xf32> to vector<8x16xf32>
    %1121 = arith.subf %1117, %1120 : vector<8x16xf32>
    %1122 = math.exp %1121 : vector<8x16xf32>
    %cst_357 = arith.constant dense<0.000000e+00> : vector<8xf32>
    %1123 = vector.multi_reduction <add>, %1122, %cst_357 [1] : vector<8x16xf32> to vector<8xf32>
    %1124 = vector.shape_cast %1123 : vector<8xf32> to vector<8x1xf32>
    %1125 = tpu.reciprocal %1124 {approx = true} : vector<8x1xf32> -> vector<8x1xf32>
    %1126 = vector.broadcast %1125 : vector<8x1xf32> to vector<8x16xf32>
    %1127 = arith.mulf %1122, %1126 : vector<8x16xf32>
    %1128 = vector.extract_strided_slice %1053 {offsets = [0, 24], sizes = [16, 8], strides = [1, 1]} : vector<16x32xf32> to vector<16x8xf32>
    %cst_358 = arith.constant dense<0.000000e+00> : vector<8x8xf32>
    %1129 = tpu.matmul %1127, %1128, %cst_358 {dimension_numbers = #tpu.dot_dimension_numbers<[1], [0], [0], [1], [0, 0, 1, 1], [], []>} : vector<8x16xf32>, vector<16x8xf32>, vector<8x8xf32> -> vector<8x8xf32>
    %1130 = tpu.concatenate %1072, %1091, %1110, %1129 in 1 : vector<8x8xf32>, vector<8x8xf32>, vector<8x8xf32>, vector<8x8xf32> -> vector<8x32xf32>
    %cst_359 = arith.constant dense<0.000000e+00> : vector<8x32xf32>
    %1131 = tpu.matmul %1130, %14, %cst_359 {dimension_numbers = #tpu.dot_dimension_numbers<[1], [0], [0], [1], [0, 0, 1, 1], [], []>} : vector<8x32xf32>, vector<32x32xf32>, vector<8x32xf32> -> vector<8x32xf32>
    %1132 = vector.broadcast %41 : vector<1x32xf32> to vector<8x32xf32>
    %1133 = arith.addf %1131, %1132 : vector<8x32xf32>
    %1134 = arith.addf %1038, %1133 : vector<8x32xf32>
    %cst_360 = arith.constant dense<0.000000e+00> : vector<8xf32>
    %1135 = vector.multi_reduction <add>, %1134, %cst_360 [1] : vector<8x32xf32> to vector<8xf32>
    %1136 = vector.shape_cast %1135 : vector<8xf32> to vector<8x1xf32>
    %cst_361 = arith.constant 3.200000e+01 : f32
    %1137 = vector.broadcast %cst_361 : f32 to vector<8x1xf32>
    %1138 = arith.divf %1136, %1137 : vector<8x1xf32>
    %1139 = vector.broadcast %1138 : vector<8x1xf32> to vector<8x32xf32>
    %1140 = arith.subf %1134, %1139 : vector<8x32xf32>
    %1141 = arith.mulf %1140, %1140 : vector<8x32xf32>
    %cst_362 = arith.constant dense<0.000000e+00> : vector<8xf32>
    %1142 = vector.multi_reduction <add>, %1141, %cst_362 [1] : vector<8x32xf32> to vector<8xf32>
    %1143 = vector.shape_cast %1142 : vector<8xf32> to vector<8x1xf32>
    %cst_363 = arith.constant 3.200000e+01 : f32
    %1144 = vector.broadcast %cst_363 : f32 to vector<8x1xf32>
    %1145 = arith.divf %1143, %1144 : vector<8x1xf32>
    %1146 = vector.broadcast %1138 : vector<8x1xf32> to vector<8x32xf32>
    %1147 = arith.subf %1134, %1146 : vector<8x32xf32>
    %cst_364 = arith.constant 9.99999974E-6 : f32
    %1148 = vector.broadcast %cst_364 : f32 to vector<8x1xf32>
    %1149 = arith.addf %1145, %1148 : vector<8x1xf32>
    %1150 = math.rsqrt %1149 : vector<8x1xf32>
    %1151 = vector.broadcast %1150 : vector<8x1xf32> to vector<8x32xf32>
    %1152 = arith.mulf %1147, %1151 : vector<8x32xf32>
    %1153 = vector.broadcast %42 : vector<1x32xf32> to vector<8x32xf32>
    %1154 = arith.mulf %1152, %1153 : vector<8x32xf32>
    %1155 = vector.broadcast %43 : vector<1x32xf32> to vector<8x32xf32>
    %1156 = arith.addf %1154, %1155 : vector<8x32xf32>
    %cst_365 = arith.constant dense<0.000000e+00> : vector<8x64xf32>
    %1157 = tpu.matmul %1156, %18, %cst_365 {dimension_numbers = #tpu.dot_dimension_numbers<[1], [0], [0], [1], [0, 0, 1, 1], [], []>} : vector<8x32xf32>, vector<32x64xf32>, vector<8x64xf32> -> vector<8x64xf32>
    %1158 = vector.broadcast %44 : vector<1x64xf32> to vector<8x64xf32>
    %1159 = arith.addf %1157, %1158 : vector<8x64xf32>
    %cst_366 = arith.constant 0.000000e+00 : f32
    %1160 = vector.broadcast %cst_366 : f32 to vector<8x64xf32>
    %1161 = arith.maximumf %1159, %1160 : vector<8x64xf32>
    %cst_367 = arith.constant dense<0.000000e+00> : vector<8x32xf32>
    %1162 = tpu.matmul %1161, %15, %cst_367 {dimension_numbers = #tpu.dot_dimension_numbers<[1], [0], [0], [1], [0, 0, 1, 1], [], []>} : vector<8x64xf32>, vector<64x32xf32>, vector<8x32xf32> -> vector<8x32xf32>
    %1163 = vector.broadcast %45 : vector<1x32xf32> to vector<8x32xf32>
    %1164 = arith.addf %1162, %1163 : vector<8x32xf32>
    %1165 = arith.addf %1156, %1164 : vector<8x32xf32>
    %cst_368 = arith.constant dense<0.000000e+00> : vector<8xf32>
    %1166 = vector.multi_reduction <add>, %1165, %cst_368 [1] : vector<8x32xf32> to vector<8xf32>
    %1167 = vector.shape_cast %1166 : vector<8xf32> to vector<8x1xf32>
    %cst_369 = arith.constant 3.200000e+01 : f32
    %1168 = vector.broadcast %cst_369 : f32 to vector<8x1xf32>
    %1169 = arith.divf %1167, %1168 : vector<8x1xf32>
    %1170 = vector.broadcast %1169 : vector<8x1xf32> to vector<8x32xf32>
    %1171 = arith.subf %1165, %1170 : vector<8x32xf32>
    %1172 = arith.mulf %1171, %1171 : vector<8x32xf32>
    %cst_370 = arith.constant dense<0.000000e+00> : vector<8xf32>
    %1173 = vector.multi_reduction <add>, %1172, %cst_370 [1] : vector<8x32xf32> to vector<8xf32>
    %1174 = vector.shape_cast %1173 : vector<8xf32> to vector<8x1xf32>
    %cst_371 = arith.constant 3.200000e+01 : f32
    %1175 = vector.broadcast %cst_371 : f32 to vector<8x1xf32>
    %1176 = arith.divf %1174, %1175 : vector<8x1xf32>
    %1177 = vector.broadcast %1169 : vector<8x1xf32> to vector<8x32xf32>
    %1178 = arith.subf %1165, %1177 : vector<8x32xf32>
    %cst_372 = arith.constant 9.99999974E-6 : f32
    %1179 = vector.broadcast %cst_372 : f32 to vector<8x1xf32>
    %1180 = arith.addf %1176, %1179 : vector<8x1xf32>
    %1181 = math.rsqrt %1180 : vector<8x1xf32>
    %1182 = vector.broadcast %1181 : vector<8x1xf32> to vector<8x32xf32>
    %1183 = arith.mulf %1178, %1182 : vector<8x32xf32>
    %1184 = vector.broadcast %46 : vector<1x32xf32> to vector<8x32xf32>
    %1185 = arith.mulf %1183, %1184 : vector<8x32xf32>
    %1186 = vector.broadcast %47 : vector<1x32xf32> to vector<8x32xf32>
    %1187 = arith.addf %1185, %1186 : vector<8x32xf32>
    %cst_373 = arith.constant dense<0.000000e+00> : vector<8x32xf32>
    %1188 = tpu.matmul %1187, %16, %cst_373 {dimension_numbers = #tpu.dot_dimension_numbers<[1], [0], [0], [1], [0, 0, 1, 1], [], []>} : vector<8x32xf32>, vector<32x32xf32>, vector<8x32xf32> -> vector<8x32xf32>
    %1189 = vector.broadcast %48 : vector<1x32xf32> to vector<8x32xf32>
    %1190 = arith.addf %1188, %1189 : vector<8x32xf32>
    %1191 = math.tanh %1190 : vector<8x32xf32>
    %cst_374 = arith.constant dense<0.000000e+00> : vector<8x64xf32>
    %1192 = tpu.matmul %1191, %0, %cst_374 {dimension_numbers = #tpu.dot_dimension_numbers<[1], [1], [0], [0], [0, 0, 1, 0], [], []>} : vector<8x32xf32>, vector<64x32xf32>, vector<8x64xf32> -> vector<8x64xf32>
    %1193 = vector.extract_strided_slice %1192 {offsets = [0, 0], sizes = [7, 64], strides = [1, 1]} : vector<8x64xf32> to vector<7x64xf32>
    %1194 = vector.extract_strided_slice %898 {offsets = [1, 0], sizes = [7, 1], strides = [1, 1]} : vector<8x1xi32> to vector<7x1xi32>
    %c8_375 = arith.constant 8 : index
    %c0_376 = arith.constant 0 : index
    %1195 = vector.load %arg6[%c8_375, %c0_376] : memref<16x1xi32, #tpu.memory_space<vmem>>, vector<8x1xi32>
    %1196 = vector.extract_strided_slice %1195 {offsets = [1, 0], sizes = [7, 1], strides = [1, 1]} : vector<8x1xi32> to vector<7x1xi32>
    %c0_i32_377 = arith.constant 0 : i32
    %1197 = vector.broadcast %c0_i32_377 : i32 to vector<7x1xi32>
    %1198 = arith.cmpi ne, %1196, %1197 : vector<7x1xi32>
    %1199 = arith.extui %1198 : vector<7x1xi1> to vector<7x1xi32>
    %1200 = arith.sitofp %1199 : vector<7x1xi32> to vector<7x1xf32>
    %1201 = tpu.iota {dimensions = array<i32: 1>} : vector<7x64xi32>
    %1202 = vector.broadcast %1194 : vector<7x1xi32> to vector<7x64xi32>
    %1203 = arith.cmpi eq, %1201, %1202 : vector<7x64xi32>
    %1204 = arith.extui %1203 : vector<7x64xi1> to vector<7x64xi32>
    %1205 = arith.sitofp %1204 : vector<7x64xi32> to vector<7x64xf32>
    %cst_378 = arith.constant dense<0xFF800000> : vector<7xf32>
    %1206 = vector.multi_reduction <maximumf>, %1193, %cst_378 [1] : vector<7x64xf32> to vector<7xf32>
    %1207 = vector.shape_cast %1206 : vector<7xf32> to vector<7x1xf32>
    %1208 = vector.broadcast %1207 : vector<7x1xf32> to vector<7x64xf32>
    %1209 = arith.subf %1193, %1208 : vector<7x64xf32>
    %1210 = math.exp %1209 : vector<7x64xf32>
    %cst_379 = arith.constant dense<0.000000e+00> : vector<7xf32>
    %1211 = vector.multi_reduction <add>, %1210, %cst_379 [1] : vector<7x64xf32> to vector<7xf32>
    %1212 = vector.shape_cast %1211 : vector<7xf32> to vector<7x1xf32>
    %1213 = math.log %1212 : vector<7x1xf32>
    %1214 = arith.addf %1213, %1207 : vector<7x1xf32>
    %1215 = arith.mulf %1193, %1205 : vector<7x64xf32>
    %cst_380 = arith.constant dense<0.000000e+00> : vector<7xf32>
    %1216 = vector.multi_reduction <add>, %1215, %cst_380 [1] : vector<7x64xf32> to vector<7xf32>
    %1217 = vector.shape_cast %1216 : vector<7xf32> to vector<7x1xf32>
    %c-1_i32_381 = arith.constant -1 : i32
    %1218 = vector.broadcast %c-1_i32_381 : i32 to vector<7x1xi32>
    %1219 = arith.cmpi ne, %1194, %1218 : vector<7x1xi32>
    %1220 = arith.extui %1219 : vector<7x1xi1> to vector<7x1xi32>
    %1221 = arith.sitofp %1220 : vector<7x1xi32> to vector<7x1xf32>
    %1222 = arith.mulf %1200, %1221 : vector<7x1xf32>
    %1223 = arith.subf %1214, %1217 : vector<7x1xf32>
    %1224 = arith.mulf %1223, %1222 : vector<7x1xf32>
    %1225 = vector.shape_cast %1224 : vector<7x1xf32> to vector<1x7x1xf32>
    %cst_382 = arith.constant dense<0.000000e+00> : vector<1xf32>
    %1226 = vector.multi_reduction <add>, %1225, %cst_382 [1, 2] : vector<1x7x1xf32> to vector<1xf32>
    %1227 = vector.shape_cast %1226 : vector<1xf32> to vector<1x1x1xf32>
    %1228 = vector.extract %1227[0, 0, 0] : f32 from vector<1x1x1xf32>
    %1229 = arith.addf %640, %1228 : f32
    %1230 = vector.shape_cast %1222 : vector<7x1xf32> to vector<1x7x1xf32>
    %cst_383 = arith.constant dense<0.000000e+00> : vector<1xf32>
    %1231 = vector.multi_reduction <add>, %1230, %cst_383 [1, 2] : vector<1x7x1xf32> to vector<1xf32>
    %1232 = vector.shape_cast %1231 : vector<1xf32> to vector<1x1x1xf32>
    %1233 = vector.extract %1232[0, 0, 0] : f32 from vector<1x1x1xf32>
    %1234 = arith.addf %645, %1233 : f32
    %1235 = vector.shape_cast %1200 : vector<7x1xf32> to vector<1x7x1xf32>
    %cst_384 = arith.constant dense<0.000000e+00> : vector<1xf32>
    %1236 = vector.multi_reduction <add>, %1235, %cst_384 [1, 2] : vector<1x7x1xf32> to vector<1xf32>
    %1237 = vector.shape_cast %1236 : vector<1xf32> to vector<1x1x1xf32>
    %1238 = vector.extract %1237[0, 0, 0] : f32 from vector<1x1x1xf32>
    %1239 = arith.addf %650, %1238 : f32
    %cst_385 = arith.constant 1.000000e+00 : f32
    %1240 = arith.maximumf %1234, %cst_385 : f32
    %1241 = arith.divf %1229, %1240 : f32
    %1242 = vector.broadcast %1241 : f32 to vector<1x1xf32>
    %1243 = arith.mulf %1241, %1239 : f32
    %1244 = vector.broadcast %1243 : f32 to vector<1x1xf32>
    %1245 = vector.broadcast %1239 : f32 to vector<1x1xf32>
    %1246 = tpu.concatenate %1242, %1244, %1245 in 1 : vector<1x1xf32>, vector<1x1xf32>, vector<1x1xf32> -> vector<1x3xf32>
    %c0_386 = arith.constant 0 : index
    %c0_387 = arith.constant 0 : index
    %1247 = vector.load %arg10[%c0_386, %c0_387] : memref<1x3xf32, #tpu.memory_space<vmem>>, vector<1x3xf32>
    tpu.vector_store %arg10[%c0_386, %c0_387], %1246 {strides = array<i32>} : memref<1x3xf32, #tpu.memory_space<vmem>>, vector<1x3xf32>,
    return
  }
  func.func @transform_0(%arg0: i32) -> (i32, i32) {
    %c0_i32 = arith.constant 0 : i32
    %c0_i32_0 = arith.constant 0 : i32
    %c0_i32_1 = arith.constant 0 : i32
    return %c0_i32, %c0_i32_0 : i32, i32
  }
  func.func @transform_1(%arg0: i32) -> (i32, i32) {
    %c0_i32 = arith.constant 0 : i32
    %c0_i32_0 = arith.constant 0 : i32
    %c0_i32_1 = arith.constant 0 : i32
    return %c0_i32, %c0_i32_0 : i32, i32
  }
  func.func @transform_2(%arg0: i32) -> (i32, i32, i32) {
    %c0_i32 = arith.constant 0 : i32
    %c0_i32_0 = arith.constant 0 : i32
    %c0_i32_1 = arith.constant 0 : i32
    %c0_i32_2 = arith.constant 0 : i32
    return %c0_i32, %c0_i32_0, %c0_i32_1 : i32, i32, i32
  }
  func.func @transform_3(%arg0: i32) -> (i32, i32) {
    %c0_i32 = arith.constant 0 : i32
    %c0_i32_0 = arith.constant 0 : i32
    %c0_i32_1 = arith.constant 0 : i32
    return %c0_i32, %c0_i32_0 : i32, i32
  }
  func.func @transform_4(%arg0: i32) -> (i32, i32) {
    %c0_i32 = arith.constant 0 : i32
    %c0_i32_0 = arith.constant 0 : i32
    %c0_i32_1 = arith.constant 0 : i32
    return %c0_i32, %c0_i32_0 : i32, i32
  }
  func.func @transform_5(%arg0: i32) -> (i32, i32) {
    %c0_i32 = arith.constant 0 : i32
    %c0_i32_0 = arith.constant 0 : i32
    %c0_i32_1 = arith.constant 0 : i32
    return %c0_i32, %c0_i32_0 : i32, i32
  }
  func.func @transform_6(%arg0: i32) -> (i32, i32) {
    %c0_i32 = arith.constant 0 : i32
    %c0_i32_0 = arith.constant 0 : i32
    %c0_i32_1 = arith.constant 0 : i32
    return %c0_i32, %c0_i32_0 : i32, i32
  }
  func.func @transform_7(%arg0: i32) -> (i32, i32) {
    %c0_i32 = arith.constant 0 : i32
    %c0_i32_0 = arith.constant 0 : i32
    %c0_i32_1 = arith.constant 0 : i32
    return %c0_i32, %c0_i32_0 : i32, i32
  }
  func.func @transform_8(%arg0: i32) -> (i32, i32) {
    %c0_i32 = arith.constant 0 : i32
    %c0_i32_0 = arith.constant 0 : i32
    %c0_i32_1 = arith.constant 0 : i32
    return %c0_i32, %c0_i32_0 : i32, i32
  }
  func.func @transform_9(%arg0: i32) -> (i32, i32) {
    %c0_i32 = arith.constant 0 : i32
    %c0_i32_0 = arith.constant 0 : i32
    %c0_i32_1 = arith.constant 0 : i32
    return %c0_i32, %c0_i32_0 : i32, i32
  }
}

</mosaic_0001>

<bundles_post_ra>
// kernel: seq2seq_forward.1
= control target key start
LH: loop header
LB: loop body
LE: loop exit
PB: predicated region body
PF: predicated region fallthrough
CT: control target
= control target key end

     0   :  { %v11110_v0 = vmov 0   ;;  %vm286_vm2 = vcmask 130048   ;;  %v11111_v6 = vmov 1.0   ;;  %v11112_v13 = vmov 0.0   ;;  %s11113_s16 = smov 120   ;;  %s11114_s19 = smov 112   ;;  %s13308_s0 = inlined_call_operand.vmem [shape: s32[32,1], index: 0, kind: input, shape index: {}]   ;;  %s13309_s1 = inlined_call_operand.vmem [shape: s32[32,1], index: 1, kind: input, shape index: {}]   ;;  %s13310_s2 = inlined_call_operand.vmem [shape: s32[2,16,16], index: 2, kind: input, shape index: {}]   ;;  %s13311_s6 = inlined_call_operand.vmem [shape: f32[640,32], index: 6, kind: input, shape index: {}]   ;;  %s13312_s8 = inlined_call_operand.vmem [shape: f32[32,64], index: 8, kind: input, shape index: {}]   ;;  %s13313_s4 = inlined_call_operand.vmem [shape: s32[16,1], index: 4, kind: input, shape index: {}]   ;;  %s13314_s7 = inlined_call_operand.vmem [shape: f32[64,64], index: 7, kind: input, shape index: {}]   ;;  %s13315_s3 = inlined_call_operand.vmem [shape: s32[2,16], index: 3, kind: input, shape index: {}]   ;;  %s13316_s5 = inlined_call_operand.vmem [shape: s32[16,1], index: 5, kind: input, shape index: {}]   ;;  %s13317_s9 = inlined_call_operand.vmem [shape: f32[1,3], index: 9, kind: output, shape index: {}]  }
   0x1   :  { %10745 = vset.pattern.permute.xlu0 %v11110_v0  ;;  %v160_v1 = vld [vmem:[%s13308_s0] sm:$0xff]  ;;  %v11180_v2 = vld [vmem:[%s13309_s1 + $0x8] sm:$0xff]  ;;  %10746 = vset.pattern.permute.xlu1 %v11110_v0  ;;  %v39_v10 = vld [vmem:[%s13311_s6 + $0x38] sm:$0xff]  ;;  %v150_v21 = vlaneseq  ;;  %vm180_vm3 = vcmask 523264   ;;  %vm497_vm9 = vcmask 261120   ;;  %vm873_vm11 = vcmask 64512  }
   0x2   :  { %v11185_v3 = vld [vmem:[%s13309_s1] sm:$0xff]  ;;  %169 = vperm.xlu0 %10745, %v160_v1   ;;  %vm269_vm0 = vcmp.ge.s32.totalorder %v11180_v2, 2  ;;  %v165_v5 = vld [vmem:[%s13310_s2 + $0x8] sm:$0xff]  ;;  %9832 = vmatprep.subr.mxu0 %v39_v10  ;;  %v38_v11 = vld [vmem:[%s13311_s6 + $0x30] sm:$0xff]  ;;  %vm263_vm7 = vcmp.eq.s32.totalorder %v11180_v2, 0  ;;  %s11115_s20 = smov 104  }
   0x3   :  { %vm268_vm1 = vcmp.ge.s32.totalorder %v11185_v3, 2  ;;  %v164_v4 = vld [vmem:[%s13310_s2] sm:$0xff]  ;;  %9858 = vmatprep.subr.msk.mxu1 %vm269_vm0, %v11111_v6  ;;  %v161_v8 = vld [vmem:[%s13308_s0 + $0x8] sm:$0xff]  ;;  %v11203_v9 = vcvt.s32.f32 %v165_v5  ;;  %9833 = vmatpush3.msra.mxu0 %v39_v10  ;;  %v9147_v14 = vsel %vm269_vm0, 1.0, %v11112_v13  ;;  %v35_v17 = vld [vmem:[%s13311_s6 + $0x18] sm:$0xff]  ;;  %v11251_v22 = vand.u32 127, %v150_v21 }
   0x4   :  { %v11198_v7 = vcvt.s32.f32 %v164_v4  ;;  %9859 = vmatpush3.msk.msra.mxu1 %vm269_vm0, %v11111_v6  ;;  %v37_v12 = vld [vmem:[%s13311_s6 + $0x28] sm:$0xff]  ;;  %9834 = vmatprep.subr.mxu0 %v38_v11  ;;  %v36_v15 = vld [vmem:[%s13311_s6 + $0x20] sm:$0xff]  ;;  %v9146_v16 = vsel %vm268_vm1, 1.0, %v11112_v13  ;;  %v34_v18 = vld [vmem:[%s13311_s6 + $0x10] sm:$0xff]  ;;  %vm262_vm6 = vcmp.eq.s32.totalorder %v11185_v3, 0  ;;  %v9145_v29 = vsel %vm263_vm7, 1.0, %v11112_v13 }
   0x5   :  { %9860 = vmatprep.subr.msk.mxu1 %vm268_vm1, %v11111_v6  ;;  %281 = vperm.xlu1 %10746, %v9147_v14   ;;  %v33_v19 = vld [vmem:[%s13311_s6 + $0x8] sm:$0xff]  ;;  %v32_v20 = vld [vmem:[%s13311_s6] sm:$0xff]  ;;  %v9144_v28 = vsel %vm262_vm6, 1.0, %v11112_v13  ;;  %v369_v35 = vsub.f32 1.0, %v9145_v29  ;;  %v11269_v43 = vld [vmem:[%s13311_s6 + $0x58] sm:$0xff]  ;;  %s11116_s21 = smov 8  }
   0x6   :  { %9862 = vmatprep.mubr.msk.f32.mxu1 %vm286_vm2, %v11198_v7  ;;  %9861 = vmatpush3.msk.msra.mxu1 %vm268_vm1, %v11111_v6  ;;  %v10747_v33 = vpack.i.bf16 %v9145_v29, %v9144_v28  ;;  %v368_v34 = vsub.f32 1.0, %v9144_v28  ;;  %v11274_v44 = vld [vmem:[%s13311_s6 + $0x50] sm:$0xff]  ;;  %v11285_v47 = vld [vmem:[%s13311_s6 + $0x48] sm:$0xff]  ;;  %v11292_v48 = vld [vmem:[%s13311_s6 + $0x40] sm:$0xff]  ;;  %s11117_s22 = smov 16   ;;  %s11118_s10 = smov 24  }
   0x7   :  { %172 = vperm.xlu0 %10745, %v161_v8   ;;  %9863 = vmatmul.mubr.msk.f32.vlgmr.msra.gmra.mxu1 %vm286_vm2, %v11203_v9  ;;  %v9158_v5 = vld [vmem:[%s13312_s8] ss:$0 sm:$0xff]  ;;  %vm1710_vm12 = vcmask 195584   ;;  %vm11119_vm13 = vmmov 0   ;;  %s11123_s18 = smov 1.0  }
   0x8   :  { %9835 = vmatpush3.msra.mxu0 %v38_v11 }
   0x9   :  { %9836 = vmatprep.subr.mxu0 %v37_v12  ;;  %276 = vperm.xlu1 %10746, %v9146_v16  }
   0xa   :  { %9837 = vmatpush3.msra.mxu0 %v37_v12 }
   0xb   :  { %486 = vperm.xlu0 %10745, %v11185_v3   ;;  %9838 = vmatprep.subr.mxu0 %v36_v15 }
   0xc   :  { %9839 = vmatpush3.msra.mxu0 %v36_v15 }
   0xd   :  { %9840 = vmatprep.subr.mxu0 %v35_v17  ;;  %489 = vperm.xlu1 %10746, %v11180_v2  }
   0xe   :  { %9841 = vmatpush3.msra.mxu0 %v35_v17 }
   0xf   :  { %9842 = vmatprep.subr.mxu0 %v34_v18 }
  0x10   :  { %9843 = vmatpush3.msra.mxu0 %v34_v18 }
  0x11   :  { %9844 = vmatprep.subr.mxu0 %v33_v19 }
  0x12   :  { %9845 = vmatpush3.msra.mxu0 %v33_v19 }
  0x13   :  { %9846 = vmatprep.subr.mxu0 %v32_v20 }
  0x14   :  { %9847 = vmatpush3.msra.mxu0 %v32_v20 }
  0x7d   :  { %v170_v23 = vpop.permute.xlu0 %169 }
  0x7e   :  { %vm174_vm4 = vcmp.eq.s32.totalorder %v11251_v22, %v170_v23 }
  0x7f   :  { %v9140_v24 = vsel %vm174_vm4, 1.0, %v11112_v13 }
  0x80   :  { %9848 = vmatprep.mubr.msk.f32.mxu0 %vm180_vm3, %v9140_v24  ;;  %v282_v36 = vpop.permute.xlu1 %281 }
  0x82   :  { %v173_v25 = vpop.permute.xlu0 %172 }
  0x83   :  { %vm175_vm5 = vcmp.eq.s32.totalorder %v11251_v22, %v173_v25 }
  0x84   :  { %v9141_v26 = vsel %vm175_vm5, 1.0, %v11112_v13  ;;  %v277_v40 = vpop.permute.xlu1 %276 }
  0x85   :  { %9849 = vmatmul.mubr.msk.f32.vlgmr.msra.gmra.mxu0 %vm180_vm3, %v9141_v26 }
  0x86   :  { %9855 = vmatprep.mubr.msk.f32.mxu0 %vm286_vm2, %v11198_v7  ;;  %v487_v38 = vpop.permute.xlu0 %486 }
  0x87   :  { %vm491_vm8 = vcmp.eq.s32.totalorder %v11251_v22, %v487_v38  ;;  %v55_v38 = vld [vmem:[%s13311_s6 + $0xb8] sm:$0xff] }
  0x88   :  { %v9154_v45 = vsel %vm491_vm8, 1.0, %v11112_v13  ;;  %v490_v46 = vpop.permute.xlu1 %489 }
  0x89   :  { %vm492_vm10 = vcmp.eq.s32.totalorder %v11251_v22, %v490_v46 }
  0x8a   :  { %v9155_v49 = vsel %vm492_vm10, 1.0, %v11112_v13 }
  0xc7   :  { %v9864_v27 = vpop.f32.mrf.mxu1 }
  0xc8   :  { %v454_v30 = vadd.f32 1e-10, %v9864_v27 }
  0xc9   :  { %v448_v31 = vpop.f32.mrf.mxu1 }
  0xca   :  { %v449_v32 = vadd.f32 1e-10, %v448_v31  ;;  %464 = vperm.xlu1 %10746, %v454_v30   ;;  %v47_v30 = vld [vmem:[%s13311_s6 + $0x78] sm:$0xff] }
  0xcb   :  { %v51_v31 = vld [vmem:[%s13311_s6 + $0x98] sm:$0xff] }
  0xcc   :  { %459 = vperm.xlu0 %10745, %v449_v32   ;;  %v46_v32 = vld [vmem:[%s13311_s6 + $0x70] sm:$0xff]  ;;  %9887 = vmatprep.subr.mxu1 %v51_v31 }
  0xcd   :  { %9888 = vmatpush3.msra.mxu1 %v51_v31 }
  0xce   :  { %10748 = vperm.xlu1 %10746, %v10747_v33   ;;  %v50_v33 = vld [vmem:[%s13311_s6 + $0x90] sm:$0xff] }
  0xcf   :  { %9889 = vmatprep.subr.mxu1 %v50_v33 }
  0xd0   :  { %372 = vperm.xlu0 %10745, %v368_v34   ;;  %v45_v34 = vld [vmem:[%s13311_s6 + $0x68] sm:$0xff]  ;;  %9890 = vmatpush3.msra.mxu1 %v50_v33 }
  0xd4   :  { %377 = vperm.xlu0 %10745, %v369_v35   ;;  %v49_v35 = vld [vmem:[%s13311_s6 + $0x88] sm:$0xff] }
  0xd5   :  { %9891 = vmatprep.subr.mxu1 %v49_v35 }
  0xd6   :  { %9892 = vmatpush3.msra.mxu1 %v49_v35 }
 0x145   :  { %v9850_v37 = vpop.f32.mrf.mxu0  ;;  %v465_v50 = vpop.permute.xlu1 %464 }
 0x146   :  { %v285_v39 = vmul.f32 %v9850_v37, %v282_v36  ;;  %10757 = vrcp.f32 %v465_v50  ;;  %v44_v36 = vld [vmem:[%s13311_s6 + $0x60] sm:$0xff] }
 0x147   :  { %v253_v41 = vpop.f32.mrf.mxu0  ;;  %v460_v51 = vpop.permute.xlu0 %459  ;;  %v9159_v50 = vld [vmem:[%s13312_s8 + $0x1] ss:$0 sm:$0xff] }
 0x148   :  { %v284_v42 = vmul.f32 %v277_v40, %v253_v41  ;;  %9851 = vmatprep.subr.mxu0 %v285_v39  ;;  %10759 = vrcp.f32 %v460_v51 }
 0x149   :  { %9852 = vmatpush3.msra.mxu0 %v285_v39  ;;  %v10749_v53 = vpop.permute.xlu1 %10748 }
 0x14a   :  { %9853 = vmatprep.subr.mxu0 %v284_v42  ;;  %v10751_v56 = vunpack.i.h.bf16 %v10749_v53  ;;  %v10750_v61 = vunpack.i.l.bf16 %v10749_v53 }
 0x14b   :  { %9854 = vmatpush3.msra.mxu0 %v284_v42  ;;  %v373_v52 = vpop.permute.xlu0 %372 }
 0x14c   :  { %9856 = vmatmul.mubr.msk.f32.vlgmr.msra.gmra.mxu0 %vm286_vm2, %v11203_v9  ;;  %9865 = vmatprep.subr.mxu0 %v11269_v43  ;;  %v380_v2 = vmul.f32 %v373_v52, %v253_v41 }
 0x14d   :  { %9866 = vmatpush3.msra.mxu0 %v11269_v43  ;;  %9873 = vmatprep.mubr.msk.f32.mxu0 %vm497_vm9, %v9154_v45 }
 0x14e   :  { %9867 = vmatprep.subr.mxu0 %v11274_v44 }
 0x14f   :  { %9868 = vmatpush3.msra.mxu0 %v11274_v44  ;;  %v378_v59 = vpop.permute.xlu0 %377 }
 0x150   :  { %9869 = vmatprep.subr.mxu0 %v11285_v47  ;;  %v381_v0 = vmul.f32 %v9850_v37, %v378_v59  ;;  %v48_v37 = vld [vmem:[%s13311_s6 + $0x80] sm:$0xff]  ;;  %v54_v59 = vld [vmem:[%s13311_s6 + $0xb0] sm:$0xff] }
 0x151   :  { %9870 = vmatpush3.msra.mxu0 %v11285_v47  ;;  %9893 = vmatprep.subr.mxu1 %v48_v37 }
 0x152   :  { %9871 = vmatprep.subr.mxu0 %v11292_v48  ;;  %9894 = vmatpush3.msra.mxu1 %v48_v37 }
 0x153   :  { %9872 = vmatpush3.msra.mxu0 %v11292_v48  ;;  %v10758_v54 = vpop.eup %10757 }
 0x154   :  { %9874 = vmatmul.mubr.msk.f32.vlgmr.msra.gmra.mxu0 %vm497_vm9, %v9155_v49  ;;  %9876 = vmatprep.subr.mxu0 %v47_v30 }
 0x155   :  { %v10760_v58 = vpop.eup %10759  ;;  %9877 = vmatpush3.msra.mxu0 %v47_v30 }
 0x156   :  { %9878 = vmatprep.subr.mxu0 %v46_v32 }
 0x157   :  { %9879 = vmatpush3.msra.mxu0 %v46_v32 }
 0x158   :  { %9880 = vmatprep.subr.mxu0 %v45_v34 }
 0x159   :  { %9881 = vmatpush3.msra.mxu0 %v45_v34 }
 0x15a   :  { %9882 = vmatprep.subr.mxu0 %v44_v36 }
 0x15b   :  { %9883 = vmatpush3.msra.mxu0 %v44_v36 }
 0x15c   :  { %9898 = vmatprep.subr.mxu0 %v55_v38 }
 0x20c   :  { %v9857_v55 = vpop.f32.mrf.mxu0 }
 0x20d   :  { %v470_v57 = vmul.f32 %v10758_v54, %v9857_v55  ;;  %v9160_v55 = vld [vmem:[%s13312_s8 + $0x2] ss:$0 sm:$0xff] }
 0x20e   :  { %v359_v60 = vpop.f32.mrf.mxu0 }
 0x20f   :  { %v482_v62 = vmul.f32 %v10751_v56, %v470_v57  ;;  %v468_v63 = vmul.f32 %v10760_v58, %v359_v60  ;;  %v53_v60 = vld [vmem:[%s13311_s6 + $0xa8] sm:$0xff] }
 0x211   :  { %v481_v1 = vmul.f32 %v10750_v61, %v468_v63  ;;  %v484_v3 = vadd.f32 %v482_v62, %v381_v0  ;;  %v52_v61 = vld [vmem:[%s13311_s6 + $0xa0] sm:$0xff] }
 0x212   :  { %v9164_v62 = vld [vmem:[%s13312_s8 + $0x4] ss:$0 sm:$0xff] }
 0x213   :  { %v483_v10 = vadd.f32 %v481_v1, %v380_v2  ;;  %v9161_v2 = vld [vmem:[%s13312_s8 + $0x3] ss:$0 sm:$0xff] }
 0x214   :  { %v9875_v4 = vpop.f32.mrf.mxu0 }
 0x215   :  { %v580_v8 = vadd.f32 %v9875_v4, %v484_v3 }
 0x216   :  { %v570_v11 = vpop.f32.mrf.mxu0 }
 0x217   :  { %v579_v12 = vadd.f32 %v570_v11, %v483_v10  ;;  %v586_v14 = vadd.f32 %v9158_v5, %v580_v8  ;;  %v9167_v11 = vld [vmem:[%s13312_s8 + $0x5] ss:$0 sm:$0xff] }
 0x219   :  { %v590_v15 = vsel %vm497_vm9, %v586_v14, 0.0  ;;  %v585_v16 = vadd.f32 %v9158_v5, %v579_v12 }
 0x21a   :  { %591 = vadd.xlane.f32.xlu0 %v590_v15 }
 0x21b   :  { %v587_v17 = vsel %vm497_vm9, %v585_v16, 0.0 }
 0x21c   :  { %588 = vadd.xlane.f32.xlu1 %v587_v17 }
 0x2a3   :  { %v592_v18 = vpop.xlane.xlu0 %591 }
 0x2a4   :  { %v595_v19 = vmul.f32 0.03125, %v592_v18 }
 0x2a5   :  { %v589_v20 = vpop.xlane.xlu1 %588 }
 0x2a6   :  { %v597_v23 = vsub.f32 %v586_v14, %v595_v19  ;;  %v594_v24 = vmul.f32 0.03125, %v589_v20 }
 0x2a8   :  { %v596_v25 = vsub.f32 %v585_v16, %v594_v24  ;;  %v599_v26 = vmul.f32 %v597_v23, %v597_v23  ;;  %v626_v24 = vsub.f32 1.0, %v11198_v7 }
 0x2aa   :  { %v603_v27 = vsel %vm497_vm9, %v599_v26, 0.0  ;;  %v598_v28 = vmul.f32 %v596_v25, %v596_v25 }
 0x2ab   :  { %604 = vadd.xlane.f32.xlu1 %v603_v27  ;;  %v11421_v27 = vmul.f32 -10000.0, %v626_v24 }
 0x2ac   :  { %v600_v29 = vsel %vm497_vm9, %v598_v28, 0.0 }
 0x2ad   :  { %601 = vadd.xlane.f32.xlu0 %v600_v29 }
 0x334   :  { %v605_v39 = vpop.xlane.xlu1 %604 }
 0x335   :  { %v607_v40 = vmul.f32 0.03125, %v605_v39 }
 0x336   :  { %v602_v41 = vpop.xlane.xlu0 %601 }
 0x337   :  { %v609_v42 = vadd.f32 1e-05, %v607_v40  ;;  %v606_v45 = vmul.f32 0.03125, %v602_v41 }
 0x339   :  { %10761 = vrsqrt.f32 %v609_v42  ;;  %v608_v46 = vadd.f32 1e-05, %v606_v45 }
 0x33b   :  { %10763 = vrsqrt.f32 %v608_v46 }
 0x346   :  { %v10762_v49 = vpop.eup %10761 }
 0x347   :  { %v613_v51 = vmul.f32 %v10762_v49, %v597_v23  ;;  %v627_v23 = vsub.f32 1.0, %v11203_v9 }
 0x348   :  { %v10764_v52 = vpop.eup %10763 }
 0x349   :  { %v612_v53 = vmul.f32 %v10764_v52, %v596_v25  ;;  %v619_v54 = vmul.f32 %v9159_v50, %v613_v51  ;;  %v11419_v25 = vmul.f32 -10000.0, %v627_v23 }
 0x34b   :  { %v618_v56 = vmul.f32 %v9159_v50, %v612_v53  ;;  %v11343_v58 = vadd.f32 %v9160_v55, %v619_v54 }
 0x34d   :  { %v11341_v57 = vadd.f32 %v9160_v55, %v618_v56 }
 0x34f   :  { %9884 = vmatprep.mubr.msk.f32.mxu0 %vm497_vm9, %v11341_v57  ;;  %9895 = vmatprep.mubr.msk.f32.mxu1 %vm497_vm9, %v11341_v57 }
 0x350   :  { %9885 = vmatmul.mubr.msk.f32.vlgmr.msra.gmra.mxu0 %vm497_vm9, %v11343_v58  ;;  %9896 = vmatmul.mubr.msk.f32.vlgmr.msra.gmra.mxu1 %vm497_vm9, %v11343_v58 }
 0x351   :  { %9899 = vmatpush3.msra.mxu0 %v55_v38  ;;  %9906 = vmatprep.mubr.msk.f32.mxu0 %vm497_vm9, %v11341_v57 }
 0x352   :  { %9900 = vmatprep.subr.mxu0 %v54_v59 }
 0x353   :  { %9901 = vmatpush3.msra.mxu0 %v54_v59 }
 0x354   :  { %9902 = vmatprep.subr.mxu0 %v53_v60 }
 0x355   :  { %9903 = vmatpush3.msra.mxu0 %v53_v60 }
 0x356   :  { %9904 = vmatprep.subr.mxu0 %v52_v61 }
 0x357   :  { %9905 = vmatpush3.msra.mxu0 %v52_v61 }
 0x358   :  { %9907 = vmatmul.mubr.msk.f32.vlgmr.msra.gmra.mxu0 %vm497_vm9, %v11343_v58 }
 0x410   :  { %v9886_v63 = vpop.f32.mrf.mxu0  ;;  %v9897_v0 = vpop.f32.mrf.mxu1 }
 0x411   :  { %v11369_v1 = vadd.f32 %v9897_v0, %v9164_v62  ;;  %v11384_v10 = vadd.f32 %v9886_v63, %v9161_v2 }
 0x412   :  { %v706_v3 = vpop.f32.mrf.mxu0  ;;  %v785_v4 = vpop.f32.mrf.mxu1 }
 0x413   :  { %v11374_v5 = vadd.f32 %v9161_v2, %v706_v3  ;;  %v11376_v8 = vadd.f32 %v9164_v62, %v785_v4  ;;  %1074 = vrot.lane.b32.xlu0 %v11369_v1, %s11113_s16  ;;  %9909 = vmatprep.subr.msk.mxu1 %vm873_vm11, %v11369_v1 }
 0x414   :  { %9910 = vmatpush3.xpose.msk.msra.mxu1 %vm873_vm11, %v11369_v1 }
 0x415   :  { %1072 = vrot.lane.b32.xlu1 %v11376_v8, %s11113_s16  ;;  %9911 = vmatprep.subr.msk.mxu1 %vm873_vm11, %v11376_v8 }
 0x416   :  { %9913 = vmatprep.mubr.msk.f32.mxu1 %vm873_vm11, %v11374_v5 }
 0x417   :  { %1070 = vrot.lane.b32.xlu0 %v11384_v10, %s11113_s16 }
 0x418   :  { %v9908_v12 = vpop.f32.mrf.mxu0  ;;  %9912 = vmatpush3.xpose.msk.msra.mxu1 %vm873_vm11, %v11376_v8 }
 0x419   :  { %v11399_v14 = vadd.f32 %v9908_v12, %v9167_v11  ;;  %1068 = vrot.lane.b32.xlu1 %v11374_v5, %s11113_s16 }
 0x41a   :  { %v864_v15 = vpop.f32.mrf.mxu0 }
 0x41b   :  { %v11403_v16 = vadd.f32 %v9167_v11, %v864_v15  ;;  %9916 = vmatprep.subr.mxu0 %v11399_v14  ;;  %9914 = vmatmul.mubr.msk.f32.vlgmr.msra.gmra.mxu1 %vm873_vm11, %v11384_v10 }
 0x41c   :  { %9917 = vmatpush3.msra.mxu0 %v11399_v14 }
 0x41d   :  { %9918 = vmatprep.subr.mxu0 %v11403_v16 }
 0x41e   :  { %9919 = vmatpush3.msra.mxu0 %v11403_v16 }
 0x485   :  { %v1075_v17 = vpop.permute.xlu0 %1074 }
 0x486   :  { %9923 = vmatprep.subr.msk.mxu1 %vm873_vm11, %v1075_v17 }
 0x487   :  { %v1073_v18 = vpop.permute.xlu1 %1072  ;;  %9924 = vmatpush3.xpose.msk.msra.mxu1 %vm873_vm11, %v1075_v17 }
 0x488   :  { %9925 = vmatprep.subr.msk.mxu1 %vm873_vm11, %v1073_v18 }
 0x489   :  { %v1071_v20 = vpop.permute.xlu0 %1070 }
 0x48b   :  { %v1069_v19 = vpop.permute.xlu1 %1068  ;;  %9926 = vmatpush3.xpose.msk.msra.mxu1 %vm873_vm11, %v1073_v18 }
 0x48c   :  { %9927 = vmatprep.mubr.msk.f32.mxu1 %vm873_vm11, %v1069_v19 }
 0x48e   :  { %9928 = vmatmul.mubr.msk.f32.vlgmr.msra.gmra.mxu1 %vm873_vm11, %v1071_v20 }
 0x4db   :  { %v9915_v26 = vpop.f32.mrf.mxu1 }
 0x4dc   :  { %v962_v28 = vmul.f32 0.35355338, %v9915_v26 }
 0x4dd   :  { %v952_v29 = vpop.f32.mrf.mxu1 }
 0x4de   :  { %v961_v30 = vmul.f32 0.35355338, %v952_v29  ;;  %v964_v31 = vadd.f32 %v962_v28, %v11419_v25 }
 0x4e0   :  { %v968_v32 = vsel %vm286_vm2, %v964_v31, -inf  ;;  %v963_v33 = vadd.f32 %v961_v30, %v11421_v27 }
 0x4e1   :  { %969 = vmax.xlane.f32.xlu0 %v968_v32 }
 0x4e2   :  { %v965_v34 = vsel %vm286_vm2, %v963_v33, -inf }
 0x4e3   :  { %966 = vmax.xlane.f32.xlu1 %v965_v34 }
 0x54e   :  { %v9929_v9 = vpop.f32.mrf.mxu1 }
 0x54f   :  { %v1160_v7 = vmul.f32 0.35355338, %v9929_v9 }
 0x550   :  { %v1150_v35 = vpop.f32.mrf.mxu1 }
 0x551   :  { %v1159_v36 = vmul.f32 0.35355338, %v1150_v35  ;;  %v1162_v37 = vadd.f32 %v1160_v7, %v11419_v25 }
 0x553   :  { %v1166_v38 = vsel %vm286_vm2, %v1162_v37, -inf  ;;  %v1161_v39 = vadd.f32 %v1159_v36, %v11421_v27 }
 0x554   :  { %1167 = vmax.xlane.f32.xlu1 %v1166_v38 }
 0x555   :  { %v1163_v40 = vsel %vm286_vm2, %v1161_v39, -inf }
 0x556   :  { %1164 = vmax.xlane.f32.xlu0 %v1163_v40 }
 0x56a   :  { %v970_v41 = vpop.xlane.xlu0 %969 }
 0x56b   :  { %v972_v42 = vsub.f32 %v964_v31, %v970_v41 }
 0x56c   :  { %v967_v45 = vpop.xlane.xlu1 %966 }
 0x56d   :  { %v975_v46 = vmul.f32 1.442695, %v972_v42  ;;  %v971_v49 = vsub.f32 %v963_v33, %v967_v45 }
 0x56f   :  { %10765 = vpow2.f32 %v975_v46  ;;  %v973_v50 = vmul.f32 1.442695, %v971_v49 }
 0x571   :  { %10767 = vpow2.f32 %v973_v50 }
 0x57c   :  { %v10766_v51 = vpop.eup %10765 }
 0x57d   :  { %v980_v52 = vsel %vm286_vm2, %v10766_v51, 0.0 }
 0x57e   :  { %v10768_v53 = vpop.eup %10767  ;;  %981 = vadd.xlane.f32.xlu1 %v980_v52 }
 0x57f   :  { %v977_v54 = vsel %vm286_vm2, %v10768_v53, 0.0 }
 0x580   :  { %978 = vadd.xlane.f32.xlu0 %v977_v54 }
 0x5dd   :  { %v1168_v55 = vpop.xlane.xlu1 %1167 }
 0x5de   :  { %v1170_v56 = vsub.f32 %v1162_v37, %v1168_v55 }
 0x5df   :  { %v1165_v59 = vpop.xlane.xlu0 %1164 }
 0x5e0   :  { %v1173_v60 = vmul.f32 1.442695, %v1170_v56  ;;  %v1169_v61 = vsub.f32 %v1161_v39, %v1165_v59 }
 0x5e2   :  { %10769 = vpow2.f32 %v1173_v60  ;;  %v1171_v62 = vmul.f32 1.442695, %v1169_v61 }
 0x5e4   :  { %10771 = vpow2.f32 %v1171_v62 }
 0x5ef   :  { %v10770_v63 = vpop.eup %10769 }
 0x5f0   :  { %v1178_v0 = vsel %vm286_vm2, %v10770_v63, 0.0 }
 0x5f1   :  { %v10772_v2 = vpop.eup %10771  ;;  %1179 = vadd.xlane.f32.xlu1 %v1178_v0 }
 0x5f2   :  { %v1175_v3 = vsel %vm286_vm2, %v10772_v2, 0.0 }
 0x5f3   :  { %1176 = vadd.xlane.f32.xlu0 %v1175_v3 }
 0x602   :  { %1187 = vrot.lane.b32.xlu1 %v11403_v16, %s11113_s16 }
 0x606   :  { %1280 = vrot.lane.b32.xlu1 %v11369_v1, %s11114_s19 }
 0x607   :  { %v982_v4 = vpop.xlane.xlu1 %981 }
 0x608   :  { %10773 = vrcp.f32 %v982_v4 }
 0x609   :  { %1189 = vrot.lane.b32.xlu0 %v11399_v14, %s11113_s16  ;;  %v979_v11 = vpop.xlane.xlu0 %978 }
 0x60a   :  { %10775 = vrcp.f32 %v979_v11  ;;  %1274 = vrot.lane.b32.xlu1 %v11374_v5, %s11114_s19 }
 0x60d   :  { %1278 = vrot.lane.b32.xlu0 %v11376_v8, %s11114_s19 }
 0x611   :  { %1276 = vrot.lane.b32.xlu0 %v11384_v10, %s11114_s19 }
 0x615   :  { %v10774_v12 = vpop.eup %10773 }
 0x616   :  { %v986_v18 = vmul.f32 %v10774_v12, %v10766_v51 }
 0x617   :  { %v10776_v15 = vpop.eup %10775 }
 0x618   :  { %v985_v17 = vmul.f32 %v10776_v15, %v10768_v53 }
 0x61a   :  { %9920 = vmatprep.mubr.msk.f32.mxu0 %vm286_vm2, %v985_v17 }
 0x61b   :  { %9921 = vmatmul.mubr.msk.f32.vlgmr.msra.gmra.mxu0 %vm286_vm2, %v986_v18 }
 0x67a   :  { %v1180_v19 = vpop.xlane.xlu1 %1179 }
 0x67b   :  { %10777 = vrcp.f32 %v1180_v19 }
 0x67c   :  { %v1177_v20 = vpop.xlane.xlu0 %1176 }
 0x67d   :  { %10779 = vrcp.f32 %v1177_v20 }
 0x67e   :  { %v1188_v23 = vpop.permute.xlu1 %1187 }
 0x680   :  { %v1190_v24 = vpop.permute.xlu0 %1189 }
 0x681   :  { %9930 = vmatprep.subr.mxu0 %v1190_v24 }
 0x682   :  { %9931 = vmatpush3.msra.mxu0 %v1190_v24  ;;  %v1281_v26 = vpop.permute.xlu1 %1280 }
 0x683   :  { %9932 = vmatprep.subr.mxu0 %v1188_v23 }
 0x684   :  { %9933 = vmatpush3.msra.mxu0 %v1188_v23  ;;  %v1279_v33 = vpop.permute.xlu0 %1278 }
 0x685   :  { %9937 = vmatprep.subr.msk.mxu0 %vm873_vm11, %v1281_v26 }
 0x686   :  { %v1275_v32 = vpop.permute.xlu1 %1274 }
 0x688   :  { %v10778_v28 = vpop.eup %10777  ;;  %v1277_v34 = vpop.permute.xlu0 %1276 }
 0x689   :  { %v1184_v31 = vmul.f32 %v10778_v28, %v10770_v63 }
 0x68a   :  { %v10780_v29 = vpop.eup %10779 }
 0x68b   :  { %v1183_v30 = vmul.f32 %v10780_v29, %v10772_v2 }
 0x68d   :  { %9934 = vmatprep.mubr.msk.f32.mxu0 %vm286_vm2, %v1183_v30 }
 0x68e   :  { %9935 = vmatmul.mubr.msk.f32.vlgmr.msra.gmra.mxu0 %vm286_vm2, %v1184_v31 }
 0x68f   :  { %9938 = vmatpush3.xpose.msk.msra.mxu0 %vm873_vm11, %v1281_v26  ;;  %9941 = vmatprep.mubr.msk.f32.mxu0 %vm873_vm11, %v1275_v32 }
 0x690   :  { %9939 = vmatprep.subr.msk.mxu0 %vm873_vm11, %v1279_v33 }
 0x693   :  { %9940 = vmatpush3.xpose.msk.msra.mxu0 %vm873_vm11, %v1279_v33 }
 0x696   :  { %9942 = vmatmul.mubr.msk.f32.vlgmr.msra.gmra.mxu0 %vm873_vm11, %v1277_v34 }
 0x6db   :  { %v11457_v9 = vpop.f32.mrf.mxu0 }
 0x6dd   :  { %v11459_v7 = vpop.f32.mrf.mxu0 }
 0x74e   :  { %v11461_v35 = vpop.f32.mrf.mxu0 }
 0x750   :  { %v11463_v36 = vpop.f32.mrf.mxu0 }
 0x756   :  { %v9943_v37 = vpop.f32.mrf.mxu0 }
 0x757   :  { %v1366_v38 = vmul.f32 0.35355338, %v9943_v37 }
 0x758   :  { %v1356_v39 = vpop.f32.mrf.mxu0 }
 0x759   :  { %v1365_v40 = vmul.f32 0.35355338, %v1356_v39  ;;  %v1368_v41 = vadd.f32 %v1366_v38, %v11419_v25 }
 0x75b   :  { %v1372_v42 = vsel %vm286_vm2, %v1368_v41, -inf  ;;  %v1367_v45 = vadd.f32 %v1365_v40, %v11421_v27 }
 0x75c   :  { %1373 = vmax.xlane.f32.xlu0 %v1372_v42 }
 0x75d   :  { %v1369_v46 = vsel %vm286_vm2, %v1367_v45, -inf }
 0x75e   :  { %1370 = vmax.xlane.f32.xlu1 %v1369_v46  ;;  %v58_v46 = vld [vmem:[%s13311_s6 + $0xd0] sm:$0xff] }
 0x7e5   :  { %v1374_v49 = vpop.xlane.xlu0 %1373 }
 0x7e6   :  { %v1376_v50 = vsub.f32 %v1368_v41, %v1374_v49  ;;  %v57_v49 = vld [vmem:[%s13311_s6 + $0xc8] sm:$0xff] }
 0x7e7   :  { %v1371_v51 = vpop.xlane.xlu1 %1370 }
 0x7e8   :  { %v1379_v52 = vmul.f32 1.442695, %v1376_v50  ;;  %v1375_v53 = vsub.f32 %v1367_v45, %v1371_v51  ;;  %v56_v50 = vld [vmem:[%s13311_s6 + $0xc0] sm:$0xff] }
 0x7ea   :  { %10781 = vpow2.f32 %v1379_v52  ;;  %v1377_v54 = vmul.f32 1.442695, %v1375_v53 }
 0x7ec   :  { %10783 = vpow2.f32 %v1377_v54 }
 0x7f7   :  { %v10782_v55 = vpop.eup %10781 }
 0x7f8   :  { %v1384_v56 = vsel %vm286_vm2, %v10782_v55, 0.0 }
 0x7f9   :  { %v10784_v59 = vpop.eup %10783  ;;  %1385 = vadd.xlane.f32.xlu1 %v1384_v56 }
 0x7fa   :  { %v1381_v60 = vsel %vm286_vm2, %v10784_v59, 0.0 }
 0x7fb   :  { %1382 = vadd.xlane.f32.xlu0 %v1381_v60 }
 0x80a   :  { %1391 = vrot.lane.b32.xlu1 %v11403_v16, %s11114_s19 }
 0x80e   :  { %1484 = vrot.lane.b32.xlu1 %v11369_v1, %s11115_s20 }
 0x811   :  { %1393 = vrot.lane.b32.xlu0 %v11399_v14, %s11114_s19 }
 0x812   :  { %1478 = vrot.lane.b32.xlu1 %v11374_v5, %s11115_s20 }
 0x815   :  { %1482 = vrot.lane.b32.xlu0 %v11376_v8, %s11115_s20 }
 0x819   :  { %1480 = vrot.lane.b32.xlu0 %v11384_v10, %s11115_s20 }
 0x882   :  { %v1386_v61 = vpop.xlane.xlu1 %1385 }
 0x883   :  { %10785 = vrcp.f32 %v1386_v61 }
 0x884   :  { %v1383_v62 = vpop.xlane.xlu0 %1382 }
 0x885   :  { %10787 = vrcp.f32 %v1383_v62 }
 0x886   :  { %v1392_v63 = vpop.permute.xlu1 %1391 }
 0x888   :  { %v1394_v0 = vpop.permute.xlu0 %1393 }
 0x889   :  { %9944 = vmatprep.subr.mxu1 %v1394_v0 }
 0x88a   :  { %9945 = vmatpush3.msra.mxu1 %v1394_v0  ;;  %v1485_v1 = vpop.permute.xlu1 %1484 }
 0x88b   :  { %9946 = vmatprep.subr.mxu1 %v1392_v63 }
 0x88c   :  { %9947 = vmatpush3.msra.mxu1 %v1392_v63  ;;  %v1483_v4 = vpop.permute.xlu0 %1482 }
 0x88d   :  { %9951 = vmatprep.subr.msk.mxu1 %vm873_vm11, %v1485_v1 }
 0x88e   :  { %v1479_v10 = vpop.permute.xlu1 %1478 }
 0x890   :  { %v10786_v5 = vpop.eup %10785  ;;  %v1481_v11 = vpop.permute.xlu0 %1480 }
 0x891   :  { %v1390_v8 = vmul.f32 %v10786_v5, %v10782_v55 }
 0x892   :  { %v10788_v2 = vpop.eup %10787 }
 0x893   :  { %v1389_v3 = vmul.f32 %v10788_v2, %v10784_v59 }
 0x895   :  { %9948 = vmatprep.mubr.msk.f32.mxu1 %vm286_vm2, %v1389_v3 }
 0x896   :  { %9949 = vmatmul.mubr.msk.f32.vlgmr.msra.gmra.mxu1 %vm286_vm2, %v1390_v8 }
 0x897   :  { %9952 = vmatpush3.xpose.msk.msra.mxu1 %vm873_vm11, %v1485_v1  ;;  %9955 = vmatprep.mubr.msk.f32.mxu1 %vm873_vm11, %v1479_v10 }
 0x898   :  { %9953 = vmatprep.subr.msk.mxu1 %vm873_vm11, %v1483_v4 }
 0x89b   :  { %9954 = vmatpush3.xpose.msk.msra.mxu1 %vm873_vm11, %v1483_v4 }
 0x89e   :  { %9956 = vmatmul.mubr.msk.f32.vlgmr.msra.gmra.mxu1 %vm873_vm11, %v1481_v11 }
 0x956   :  { %v9950_v12 = vpop.f32.mrf.mxu1 }
 0x958   :  { %v1469_v15 = vpop.f32.mrf.mxu1 }
 0x95e   :  { %v9957_v17 = vpop.f32.mrf.mxu1 }
 0x95f   :  { %v1570_v18 = vmul.f32 0.35355338, %v9957_v17 }
 0x960   :  { %v1560_v19 = vpop.f32.mrf.mxu1 }
 0x961   :  { %v1569_v20 = vmul.f32 0.35355338, %v1560_v19  ;;  %v1572_v23 = vadd.f32 %v1570_v18, %v11419_v25 }
 0x963   :  { %v1576_v24 = vsel %vm286_vm2, %v1572_v23, -inf  ;;  %v1571_v26 = vadd.f32 %v1569_v20, %v11421_v27 }
 0x964   :  { %1577 = vmax.xlane.f32.xlu0 %v1576_v24 }
 0x965   :  { %v1573_v28 = vsel %vm286_vm2, %v1571_v26, -inf }
 0x966   :  { %1574 = vmax.xlane.f32.xlu1 %v1573_v28 }
 0x9ed   :  { %v1578_v29 = vpop.xlane.xlu0 %1577 }
 0x9ee   :  { %v1580_v30 = vsub.f32 %v1572_v23, %v1578_v29  ;;  %v115_v29 = vld [vmem:[%s13314_s7 + $0x18] sm:$0xff] }
 0x9ef   :  { %v1575_v31 = vpop.xlane.xlu1 %1574  ;;  %9976 = vmatprep.subr.mxu1 %v115_v29 }
 0x9f0   :  { %v1583_v32 = vmul.f32 1.442695, %v1580_v30  ;;  %v1579_v33 = vsub.f32 %v1571_v26, %v1575_v31  ;;  %v114_v30 = vld [vmem:[%s13314_s7 + $0x10] sm:$0xff]  ;;  %9977 = vmatpush3.msra.mxu1 %v115_v29  ;;  %v113_v31 = vld [vmem:[%s13314_s7 + $0x8] sm:$0xff] }
 0x9f1   :  { %9978 = vmatprep.subr.mxu1 %v114_v30 }
 0x9f2   :  { %10789 = vpow2.f32 %v1583_v32  ;;  %v1581_v34 = vmul.f32 1.442695, %v1579_v33  ;;  %9979 = vmatpush3.msra.mxu1 %v114_v30  ;;  %v112_v32 = vld [vmem:[%s13314_s7] sm:$0xff] }
 0x9f3   :  { %9980 = vmatprep.subr.mxu1 %v113_v31 }
 0x9f4   :  { %10791 = vpow2.f32 %v1581_v34  ;;  %9981 = vmatpush3.msra.mxu1 %v113_v31 }
 0x9f5   :  { %9982 = vmatprep.subr.mxu1 %v112_v32 }
 0x9f6   :  { %9983 = vmatpush3.msra.mxu1 %v112_v32 }
 0x9f7   :  { %10006 = vmatprep.subr.mxu1 %v11112_v13 }
 0x9ff   :  { %v10790_v37 = vpop.eup %10789 }
 0xa00   :  { %v1588_v38 = vsel %vm286_vm2, %v10790_v37, 0.0 }
 0xa01   :  { %v10792_v25 = vpop.eup %10791  ;;  %1589 = vadd.xlane.f32.xlu1 %v1588_v38 }
 0xa02   :  { %v1585_v39 = vsel %vm286_vm2, %v10792_v25, 0.0 }
 0xa03   :  { %1586 = vadd.xlane.f32.xlu0 %v1585_v39 }
 0xa12   :  { %1595 = vrot.lane.b32.xlu1 %v11403_v16, %s11115_s20 }
 0xa16   :  { %1684 = vrot.lane.b32.xlu1 %v11463_v36, %s11116_s21 }
 0xa19   :  { %1597 = vrot.lane.b32.xlu0 %v11399_v14, %s11115_s20 }
 0xa1a   :  { %1692 = vrot.lane.b32.xlu1 %v1469_v15, %s11117_s22 }
 0xa1d   :  { %1686 = vrot.lane.b32.xlu0 %v11461_v35, %s11116_s21  ;;  %v59_v35 = vld [vmem:[%s13311_s6 + $0xd8] sm:$0xff] }
 0xa21   :  { %1694 = vrot.lane.b32.xlu0 %v9950_v12, %s11117_s22 }
 0xa8a   :  { %v1590_v27 = vpop.xlane.xlu1 %1589 }
 0xa8b   :  { %10793 = vrcp.f32 %v1590_v27 }
 0xa8c   :  { %v1587_v40 = vpop.xlane.xlu0 %1586 }
 0xa8d   :  { %10795 = vrcp.f32 %v1587_v40  ;;  %v9197_v40 = vld [vmem:[%s13312_s8 + $0x7] ss:$0 sm:$0xff] }
 0xa8e   :  { %v1596_v41 = vpop.permute.xlu1 %1595 }
 0xa90   :  { %v1598_v16 = vpop.permute.xlu0 %1597 }
 0xa91   :  { %9958 = vmatprep.subr.mxu0 %v1598_v16 }
 0xa92   :  { %9959 = vmatpush3.msra.mxu0 %v1598_v16  ;;  %v1685_v54 = vpop.permute.xlu1 %1684 }
 0xa93   :  { %9960 = vmatprep.subr.mxu0 %v1596_v41  ;;  %v1706_v59 = vsel %vm873_vm11, %v11459_v7, %v1685_v54  ;;  %v9194_v7 = vld [vmem:[%s13312_s8 + $0x6] ss:$0 sm:$0xff]  ;;  %v10969_v54 = vld [vmem:[%s13311_s6 + $0x8] sm:$0xff] }
 0xa94   :  { %9961 = vmatpush3.msra.mxu0 %v1596_v41  ;;  %v1687_v53 = vpop.permute.xlu0 %1686 }
 0xa95   :  { %9965 = vmatprep.subr.mxu0 %v59_v35  ;;  %v1707_v61 = vsel %vm873_vm11, %v11457_v9, %v1687_v53  ;;  %v10968_v53 = vld [vmem:[%s13311_s6 + $0x10] sm:$0xff] }
 0xa96   :  { %v1693_v56 = vpop.permute.xlu1 %1692 }
 0xa97   :  { %v1708_v62 = vsel %vm286_vm2, %v1706_v59, %v1693_v56  ;;  %v10970_v56 = vld [vmem:[%s13311_s6] sm:$0xff]  ;;  %v67_v59 = vld [vmem:[%s13311_s6 + $0x118] sm:$0xff] }
 0xa98   :  { %v10794_v36 = vpop.eup %10793  ;;  %v1695_v55 = vpop.permute.xlu0 %1694 }
 0xa99   :  { %v1594_v45 = vmul.f32 %v10794_v36, %v10790_v37  ;;  %v1709_v0 = vsel %vm286_vm2, %v1707_v61, %v1695_v55  ;;  %v65_v61 = vld [vmem:[%s13311_s6 + $0x108] sm:$0xff] }
 0xa9a   :  { %v10796_v14 = vpop.eup %10795 }
 0xa9b   :  { %v1593_v42 = vmul.f32 %v10796_v14, %v10792_v25 }
 0xa9d   :  { %9962 = vmatprep.mubr.msk.f32.mxu0 %vm286_vm2, %v1593_v42  ;;  %v11562_v42 = vshrl.u32 %v150_v21, 7 }
 0xa9e   :  { %9963 = vmatmul.mubr.msk.f32.vlgmr.msra.gmra.mxu0 %vm286_vm2, %v1594_v45  ;;  %v9198_v45 = vld [vmem:[%s13312_s8 + $0x8] ss:$0 sm:$0xff] }
 0xa9f   :  { %9966 = vmatpush3.msra.mxu0 %v59_v35  ;;  %vm154_vm4 = vcmp.le.s32.totalorder %v11251_v22, %v11562_v42 }
 0xaa0   :  { %9967 = vmatprep.subr.mxu0 %v58_v46 }
 0xaa1   :  { %9968 = vmatpush3.msra.mxu0 %v58_v46 }
 0xaa2   :  { %9969 = vmatprep.subr.mxu0 %v57_v49 }
 0xaa3   :  { %9970 = vmatpush3.msra.mxu0 %v57_v49 }
 0xaa4   :  { %9971 = vmatprep.subr.mxu0 %v56_v50 }
 0xaa5   :  { %9972 = vmatpush3.msra.mxu0 %v56_v50  ;;  %v156_v50 = vadd.s32 2, %v11562_v42 }
 0xaa6   :  { %9987 = vmatprep.subr.mxu0 %v67_v59 }
 0xaa7   :  { %vm157_vm14 = vcmp.eq.s32.totalorder %v11251_v22, %v156_v50 }
 0xaa8   :  { %v9139_v21 = vsel %vm157_vm14, 1.0, %v11112_v13 }
 0xb5e   :  { %v9964_v51 = vpop.f32.mrf.mxu0 }
 0xb5f   :  { %1702 = vrot.lane.b32.xlu0 %v9964_v51, %s11118_s10 }
 0xb60   :  { %v1673_v52 = vpop.f32.mrf.mxu0 }
 0xb61   :  { %1700 = vrot.lane.b32.xlu1 %v1673_v52, %s11118_s10  ;;  %v10967_v52 = vld [vmem:[%s13311_s6 + $0x18] sm:$0xff] }
 0xbd1   :  { %v1703_v60 = vpop.permute.xlu0 %1702 }
 0xbd2   :  { %v1712_v5 = vsel %vm1710_vm12, %v1709_v0, %v1703_v60  ;;  %v66_v60 = vld [vmem:[%s13311_s6 + $0x110] sm:$0xff] }
 0xbd3   :  { %v1701_v63 = vpop.permute.xlu1 %1700  ;;  %v62_v0 = vld [vmem:[%s13311_s6 + $0xf0] sm:$0xff] }
 0xbd4   :  { %v1711_v1 = vsel %vm1710_vm12, %v1708_v62, %v1701_v63  ;;  %v64_v62 = vld [vmem:[%s13311_s6 + $0x100] sm:$0xff]  ;;  %v63_v63 = vld [vmem:[%s13311_s6 + $0xf8] sm:$0xff] }
 0xbd5   :  { %9973 = vmatprep.mubr.msk.f32.mxu0 %vm497_vm9, %v1711_v1  ;;  %v61_v1 = vld [vmem:[%s13311_s6 + $0xe8] sm:$0xff] }
 0xbd6   :  { %9974 = vmatmul.mubr.msk.f32.vlgmr.msra.gmra.mxu0 %vm497_vm9, %v1712_v5  ;;  %v60_v5 = vld [vmem:[%s13311_s6 + $0xe0] sm:$0xff] }
 0xbd7   :  { %9988 = vmatpush3.msra.mxu0 %v67_v59 }
 0xbd8   :  { %9989 = vmatprep.subr.mxu0 %v66_v60 }
 0xbd9   :  { %9990 = vmatpush3.msra.mxu0 %v66_v60 }
 0xbda   :  { %9991 = vmatprep.subr.mxu0 %v65_v61 }
 0xbdb   :  { %9992 = vmatpush3.msra.mxu0 %v65_v61  ;;  %v11120_v61 = vmov -1.0  }
 0xbdc   :  { %9993 = vmatprep.subr.mxu0 %v64_v62 }
 0xbdd   :  { %9994 = vmatpush3.msra.mxu0 %v64_v62 }
 0xbde   :  { %9995 = vmatprep.subr.mxu0 %v63_v63 }
 0xbdf   :  { %9996 = vmatpush3.msra.mxu0 %v63_v63 }
 0xbe0   :  { %9997 = vmatprep.subr.mxu0 %v62_v0 }
 0xbe1   :  { %9998 = vmatpush3.msra.mxu0 %v62_v0 }
 0xbe2   :  { %9999 = vmatprep.subr.mxu0 %v61_v1 }
 0xbe3   :  { %10000 = vmatpush3.msra.mxu0 %v61_v1 }
 0xbe4   :  { %10001 = vmatprep.subr.mxu0 %v60_v5 }
 0xbe5   :  { %10002 = vmatpush3.msra.mxu0 %v60_v5 }
 0xbe6   :  { %10036 = vmatprep.subr.mxu0 %v11112_v13 }
 0xc96   :  { %v9975_v2 = vpop.f32.mrf.mxu0 }
 0xc97   :  { %v1795_v3 = vadd.f32 %v9975_v2, %v9194_v7 }
 0xc98   :  { %v1789_v9 = vpop.f32.mrf.mxu0 }
 0xc99   :  { %v1790_v8 = vadd.f32 %v9194_v7, %v1789_v9  ;;  %v1799_v10 = vadd.f32 %v1795_v3, %v11343_v58  ;;  %v9199_v7 = vld [vmem:[%s13312_s8 + $0x9] ss:$0 sm:$0xff] }
 0xc9b   :  { %v1803_v4 = vsel %vm497_vm9, %v1799_v10, 0.0  ;;  %v1798_v11 = vadd.f32 %v1790_v8, %v11341_v57  ;;  %v2102_v57 = vld [vmem:[%s13313_s4] sm:$0xff] }
 0xc9c   :  { %1804 = vadd.xlane.f32.xlu0 %v1803_v4 }
 0xc9d   :  { %v1800_v12 = vsel %vm497_vm9, %v1798_v11, 0.0 }
 0xc9e   :  { %1801 = vadd.xlane.f32.xlu1 %v1800_v12 }
 0xd25   :  { %v1805_v15 = vpop.xlane.xlu0 %1804 }
 0xd26   :  { %v1807_v17 = vmul.f32 0.03125, %v1805_v15 }
 0xd27   :  { %v1802_v18 = vpop.xlane.xlu1 %1801 }
 0xd28   :  { %v1809_v19 = vsub.f32 %v1799_v10, %v1807_v17  ;;  %v1806_v20 = vmul.f32 0.03125, %v1802_v18 }
 0xd2a   :  { %v1808_v23 = vsub.f32 %v1798_v11, %v1806_v20  ;;  %v1811_v24 = vmul.f32 %v1809_v19, %v1809_v19 }
 0xd2c   :  { %v1815_v26 = vsel %vm497_vm9, %v1811_v24, 0.0  ;;  %v1810_v28 = vmul.f32 %v1808_v23, %v1808_v23 }
 0xd2d   :  { %1816 = vadd.xlane.f32.xlu1 %v1815_v26 }
 0xd2e   :  { %v1812_v58 = vsel %vm497_vm9, %v1810_v28, 0.0 }
 0xd2f   :  { %1813 = vadd.xlane.f32.xlu0 %v1812_v58 }
 0xd45   :  { %2104 = vperm.xlu0 %10745, %v2102_v57  }
 0xdb6   :  { %v1817_v33 = vpop.xlane.xlu1 %1816 }
 0xdb7   :  { %v1819_v34 = vmul.f32 0.03125, %v1817_v33 }
 0xdb8   :  { %v1814_v37 = vpop.xlane.xlu0 %1813 }
 0xdb9   :  { %v1821_v38 = vadd.f32 1e-05, %v1819_v34  ;;  %v1818_v25 = vmul.f32 0.03125, %v1814_v37 }
 0xdbb   :  { %10797 = vrsqrt.f32 %v1821_v38  ;;  %v1820_v39 = vadd.f32 1e-05, %v1818_v25  ;;  %v10971_v38 = vld [vmem:[%s13312_s8] ss:$0 sm:$0xff] }
 0xdbd   :  { %10799 = vrsqrt.f32 %v1820_v39 }
 0xdc0   :  { %v2105_v51 = vpop.permute.xlu0 %2104 }
 0xdc1   :  { %vm2106_vm15 = vcmp.eq.s32.totalorder %v11251_v22, %v2105_v51 }
 0xdc2   :  { %v11621_v55 = vsel %vm2106_vm15, 1.0, %v11112_v13 }
 0xdc8   :  { %v10798_v27 = vpop.eup %10797 }
 0xdc9   :  { %v1825_v16 = vmul.f32 %v10798_v27, %v1809_v19 }
 0xdca   :  { %v10800_v41 = vpop.eup %10799 }
 0xdcb   :  { %v1824_v36 = vmul.f32 %v10800_v41, %v1808_v23  ;;  %v1831_v14 = vmul.f32 %v9197_v40, %v1825_v16 }
 0xdcd   :  { %v1830_v35 = vmul.f32 %v9197_v40, %v1824_v36  ;;  %v11569_v49 = vadd.f32 %v9198_v45, %v1831_v14 }
 0xdcf   :  { %v11567_v46 = vadd.f32 %v9198_v45, %v1830_v35 }
 0xdd1   :  { %9984 = vmatprep.mubr.msk.f32.mxu1 %vm497_vm9, %v11567_v46 }
 0xdd2   :  { %9985 = vmatmul.mubr.msk.f32.vlgmr.msra.gmra.mxu1 %vm497_vm9, %v11569_v49 }
 0xdd3   :  { %10007 = vmatpush3.msra.mxu1 %v11269_v43  ;;  %10014 = vmatprep.mubr.msk.f32.mxu1 %vm11119_vm13, %v11112_v13  ;;  %v10963_v43 = vld [vmem:[%s13311_s6 + $0x38] sm:$0xff] }
 0xdd4   :  { %10008 = vmatprep.subr.mxu1 %v11112_v13 }
 0xdd5   :  { %10009 = vmatpush3.msra.mxu1 %v11274_v44  ;;  %v10964_v44 = vld [vmem:[%s13311_s6 + $0x30] sm:$0xff] }
 0xdd6   :  { %10010 = vmatprep.subr.mxu1 %v11112_v13 }
 0xdd7   :  { %10011 = vmatpush3.msra.mxu1 %v11285_v47  ;;  %v10965_v47 = vld [vmem:[%s13311_s6 + $0x28] sm:$0xff] }
 0xdd8   :  { %10012 = vmatprep.subr.mxu1 %v11112_v13 }
 0xdd9   :  { %10013 = vmatpush3.msra.mxu1 %v11292_v48  ;;  %v10966_v48 = vld [vmem:[%s13311_s6 + $0x20] sm:$0xff] }
 0xdda   :  { %10015 = vmatmul.mubr.msk.f32.vlgmr.msra.gmra.mxu1 %vm497_vm9, %v9139_v21  ;;  %10017 = vmatprep.subr.mxu1 %v11112_v13 }
 0xddb   :  { %10018 = vmatpush3.msra.mxu1 %v10963_v43  ;;  %10033 = vmatprep.mubr.msk.f32.mxu1 %vm11119_vm13, %v11112_v13 }
 0xddc   :  { %10019 = vmatprep.subr.mxu1 %v11112_v13 }
 0xddd   :  { %10020 = vmatpush3.msra.mxu1 %v10964_v44 }
 0xdde   :  { %10021 = vmatprep.subr.mxu1 %v11112_v13 }
 0xddf   :  { %10022 = vmatpush3.msra.mxu1 %v10965_v47 }
 0xde0   :  { %10023 = vmatprep.subr.mxu1 %v11112_v13 }
 0xde1   :  { %10024 = vmatpush3.msra.mxu1 %v10966_v48 }
 0xde2   :  { %10025 = vmatprep.subr.mxu1 %v11112_v13 }
 0xde3   :  { %10026 = vmatpush3.msra.mxu1 %v10967_v52 }
 0xde4   :  { %10027 = vmatprep.subr.mxu1 %v11112_v13 }
 0xde5   :  { %10028 = vmatpush3.msra.mxu1 %v10968_v53 }
 0xde6   :  { %10029 = vmatprep.subr.mxu1 %v11112_v13 }
 0xde7   :  { %10030 = vmatpush3.msra.mxu1 %v10969_v54 }
 0xde8   :  { %10031 = vmatprep.subr.mxu1 %v11112_v13 }
 0xde9   :  { %10032 = vmatpush3.msra.mxu1 %v10970_v56 }
 0xdea   :  { %10034 = vmatmul.mubr.msk.f32.vlgmr.msra.gmra.mxu1 %vm180_vm3, %v11621_v55  ;;  %10058 = vmatprep.subr.mxu1 %v11112_v13 }
 0xdeb   :  { %10066 = vmatprep.mubr.msk.f32.mxu1 %vm11119_vm13, %v11112_v13 }
 0xe92   :  { %v9986_v2 = vpop.f32.mrf.mxu1 }
 0xe93   :  { %v11659_v3 = vadd.f32 %v9986_v2, %v9199_v7 }
 0xe94   :  { %v1914_v9 = vpop.f32.mrf.mxu1 }
 0xe95   :  { %v1924_v8 = vmul.f32 0.70710677, %v11659_v3  ;;  %v1915_v10 = vadd.f32 %v9199_v7, %v1914_v9 }
 0xe97   :  { %v1930_v4 = vand.u32 2147483647, %v1924_v8  ;;  %v1923_v11 = vmul.f32 0.70710677, %v1915_v10  ;;  %vm1926_vm0 = vcmp.ge.f32.partialorder %v1924_v8, 0.0  ;;  %v1971_v9 = vmul.f32 0.5, %v1915_v10 }
 0xe98   :  { %v1928_v62 = vsel %vm1926_vm0, 1.0, %v11120_v61  ;;  %v79_v10 = vld [vmem:[%s13311_s6 + $0x178] sm:$0xff] }
 0xe99   :  { %v1932_v12 = vmul.f32 0.3275911, %v1930_v4  ;;  %v1929_v15 = vand.u32 2147483647, %v1923_v11  ;;  %v1958_v24 = vsub.f32 0.0, %v1930_v4  ;;  %vm1925_vm1 = vcmp.ge.f32.partialorder %v1923_v11, 0.0  ;;  %10059 = vmatpush3.msra.mxu1 %v79_v10 }
 0xe9a   :  { %v11662_v17 = vpop.f32.mrf.mxu1  ;;  %v1927_v5 = vsel %vm1925_vm1, 1.0, %v11120_v61  ;;  %10060 = vmatprep.subr.mxu1 %v11112_v13 }
 0xe9b   :  { %v1934_v18 = vadd.f32 1.0, %v1932_v12  ;;  %v1931_v19 = vmul.f32 0.3275911, %v1929_v15  ;;  %v1957_v26 = vsub.f32 0.0, %v1929_v15  ;;  %v1960_v28 = vmul.f32 %v1958_v24, %v1930_v4  ;;  %v70_v24 = vld [vmem:[%s13311_s6 + $0x130] sm:$0xff] }
 0xe9c   :  { %v10016_v20 = vpop.f32.mrf.mxu1  ;;  %v1972_v12 = vmul.f32 0.5, %v11659_v3  ;;  %v71_v3 = vld [vmem:[%s13311_s6 + $0x138] sm:$0xff] }
 0xe9d   :  { %10801 = vrcp.f32 %v1934_v18  ;;  %v1933_v23 = vadd.f32 1.0, %v1931_v19  ;;  %v1959_v57 = vmul.f32 %v1957_v26, %v1929_v15  ;;  %v1963_v31 = vmul.f32 1.442695, %v1960_v28  ;;  %v78_v26 = vld [vmem:[%s13311_s6 + $0x170] sm:$0xff]  ;;  %v69_v28 = vld [vmem:[%s13311_s6 + $0x128] sm:$0xff] }
 0xe9e   :  { %10061 = vmatpush3.msra.mxu1 %v78_v26 }
 0xe9f   :  { %10803 = vrcp.f32 %v1933_v23  ;;  %v1961_v27 = vmul.f32 1.442695, %v1959_v57  ;;  %10062 = vmatprep.subr.mxu1 %v11112_v13  ;;  %v68_v57 = vld [vmem:[%s13311_s6 + $0x120] sm:$0xff] }
 0xea0   :  { %10805 = vpow2.f32 %v1963_v31 }
 0xea1   :  { %10807 = vpow2.f32 %v1961_v27  ;;  %v75_v27 = vld [vmem:[%s13311_s6 + $0x158] sm:$0xff] }
 0xeaa   :  { %v10802_v58 = vpop.eup %10801  ;;  %v2251_v29 = vpop.f32.mrf.mxu1 }
 0xeab   :  { %v1940_v30 = vmul.f32 1.0614054, %v10802_v58  ;;  %v2252_v32 = vadd.f32 %v2251_v29, %v11662_v17  ;;  %v76_v29 = vld [vmem:[%s13311_s6 + $0x160] sm:$0xff] }
 0xeac   :  { %v10035_v33 = vpop.f32.mrf.mxu1  ;;  %v10804_v34 = vpop.eup %10803 }
 0xead   :  { %v9203_v37 = vadd.f32 -1.4531521, %v1940_v30  ;;  %v2255_v25 = vadd.f32 %v10971_v38, %v2252_v32  ;;  %v1939_v39 = vmul.f32 1.0614054, %v10804_v34  ;;  %v10806_v52 = vpop.eup %10805 }
 0xeae   :  { %v10808_v59 = vpop.eup %10807 }
 0xeaf   :  { %v1944_v40 = vmul.f32 %v10802_v58, %v9203_v37  ;;  %v2256_v16 = vsel %vm497_vm9, %v2255_v25, 0.0  ;;  %v9202_v41 = vadd.f32 -1.4531521, %v1939_v39  ;;  %v10972_v37 = vld [vmem:[%s13312_s8 + $0x1] ss:$0 sm:$0xff] }
 0xeb0   :  { %2257 = vadd.xlane.f32.xlu1 %v2256_v16  ;;  %v73_v16 = vld [vmem:[%s13311_s6 + $0x148] sm:$0xff] }
 0xeb1   :  { %v1946_v36 = vadd.f32 1.4214138, %v1944_v40  ;;  %v1943_v14 = vmul.f32 %v10804_v34, %v9202_v41  ;;  %v74_v40 = vld [vmem:[%s13311_s6 + $0x150] sm:$0xff]  ;;  %v72_v41 = vld [vmem:[%s13311_s6 + $0x140] sm:$0xff] }
 0xeb3   :  { %v1948_v45 = vmul.f32 %v10802_v58, %v1946_v36  ;;  %v1945_v35 = vadd.f32 1.4214138, %v1943_v14 }
 0xeb5   :  { %v9205_v50 = vadd.f32 -0.28449672, %v1948_v45  ;;  %v1947_v21 = vmul.f32 %v10804_v34, %v1945_v35  ;;  %v9214_v45 = vld [vmem:[%s13312_s8 + $0xd] ss:$0 sm:$0xff]  ;;  %v9218_v35 = vld [vmem:[%s13312_s8 + $0xf] ss:$0 sm:$0xff] }
 0xeb7   :  { %v1952_v43 = vmul.f32 %v10802_v58, %v9205_v50  ;;  %v9204_v44 = vadd.f32 -0.28449672, %v1947_v21 }
 0xeb9   :  { %v1954_v47 = vadd.f32 0.2548296, %v1952_v43  ;;  %v1951_v48 = vmul.f32 %v10804_v34, %v9204_v44 }
 0xebb   :  { %v1956_v51 = vmul.f32 %v10802_v58, %v1954_v47  ;;  %v1953_v53 = vadd.f32 0.2548296, %v1951_v48  ;;  %v77_v58 = vld [vmem:[%s13311_s6 + $0x168] sm:$0xff] }
 0xebc   :  { %10063 = vmatpush3.msra.mxu1 %v77_v58 }
 0xebd   :  { %v1966_v54 = vmul.f32 %v10806_v52, %v1956_v51  ;;  %v1955_v56 = vmul.f32 %v10804_v34, %v1953_v53  ;;  %10064 = vmatprep.subr.mxu1 %v11112_v13  ;;  %v9216_v51 = vld [vmem:[%s13312_s8 + $0xe] ss:$0 sm:$0xff] }
 0xebe   :  { %10065 = vmatpush3.msra.mxu1 %v76_v29 }
 0xebf   :  { %v1968_v60 = vsub.f32 1.0, %v1966_v54  ;;  %v1965_v63 = vmul.f32 %v10808_v59, %v1955_v56  ;;  %10074 = vmatprep.subr.mxu1 %v11112_v13 }
 0xec1   :  { %v1970_v0 = vmul.f32 %v1968_v60, %v1928_v62  ;;  %v1967_v1 = vsub.f32 1.0, %v1965_v63 }
 0xec3   :  { %v1969_v7 = vmul.f32 %v1967_v1, %v1927_v5  ;;  %v1974_v2 = vadd.f32 1.0, %v1970_v0  ;;  %v11121_v5 = vmov -10000.0  }
 0xec5   :  { %v1973_v4 = vadd.f32 1.0, %v1969_v7  ;;  %v1976_v15 = vmul.f32 %v1974_v2, %v1972_v12  ;;  %v11790_v7 = vsel %vm154_vm4, 0.0, %v11121_v5 }
 0xec7   :  { %v1975_v8 = vmul.f32 %v1973_v4, %v1971_v9 }
 0xec9   :  { %10003 = vmatprep.mubr.msk.f32.mxu0 %vm180_vm3, %v1975_v8 }
 0xeca   :  { %10004 = vmatmul.mubr.msk.f32.vlgmr.msra.gmra.mxu0 %vm180_vm3, %v1976_v15 }
 0xecb   :  { %10044 = vmatprep.mubr.msk.f32.mxu0 %vm11119_vm13, %v11112_v13  ;;  %10037 = vmatpush3.msra.mxu0 %v71_v3 }
 0xecc   :  { %10038 = vmatprep.subr.mxu0 %v11112_v13 }
 0xecd   :  { %10039 = vmatpush3.msra.mxu0 %v70_v24 }
 0xece   :  { %10040 = vmatprep.subr.mxu0 %v11112_v13 }
 0xecf   :  { %10041 = vmatpush3.msra.mxu0 %v69_v28 }
 0xed0   :  { %10042 = vmatprep.subr.mxu0 %v11112_v13 }
 0xed1   :  { %10043 = vmatpush3.msra.mxu0 %v68_v57 }
 0xed2   :  { %10047 = vmatprep.subr.mxu0 %v11112_v13 }
 0xf39   :  { %v2258_v11 = vpop.xlane.xlu1 %2257 }
 0xf3a   :  { %v2259_v18 = vmul.f32 0.03125, %v2258_v11 }
 0xf3c   :  { %v2260_v19 = vsub.f32 %v2255_v25, %v2259_v18  ;;  %v10973_v25 = vld [vmem:[%s13312_s8 + $0x2] ss:$0 sm:$0xff] }
 0xf3e   :  { %v2261_v20 = vmul.f32 %v2260_v19, %v2260_v19 }
 0xf40   :  { %v2262_v23 = vsel %vm497_vm9, %v2261_v20, 0.0 }
 0xf41   :  { %2263 = vadd.xlane.f32.xlu1 %v2262_v23 }
 0xf8a   :  { %v11745_v36 = vpop.f32.mrf.mxu0 }
 0xf8c   :  { %v11747_v14 = vpop.f32.mrf.mxu0 }
 0xfca   :  { %v2264_v30 = vpop.xlane.xlu1 %2263 }
 0xfcb   :  { %v2265_v31 = vmul.f32 0.03125, %v2264_v30 }
 0xfcd   :  { %v2266_v32 = vadd.f32 1e-05, %v2265_v31 }
 0xfcf   :  { %10809 = vrsqrt.f32 %v2266_v32 }
 0xfdc   :  { %v10810_v33 = vpop.eup %10809 }
 0xfdd   :  { %v2268_v34 = vmul.f32 %v10810_v33, %v2260_v19 }
 0xfdf   :  { %v2269_v38 = vmul.f32 %v10972_v37, %v2268_v34 }
 0xfe1   :  { %v11715_v39 = vadd.f32 %v10973_v25, %v2269_v38 }
 0xfe3   :  { %10045 = vmatmul.mubr.msk.f32.vlgmr.msra.gmra.mxu0 %vm497_vm9, %v11715_v39  ;;  %10067 = vmatmul.mubr.msk.f32.vlgmr.msra.gmra.mxu1 %vm497_vm9, %v11715_v39 }
 0xfe4   :  { %10048 = vmatpush3.msra.mxu0 %v75_v27  ;;  %10055 = vmatprep.mubr.msk.f32.mxu0 %vm11119_vm13, %v11112_v13 }
 0xfe5   :  { %10049 = vmatprep.subr.mxu0 %v11112_v13  ;;  %10076 = vmatprep.mubr.msk.f32.mxu1 %vm11119_vm13, %v11112_v13 }
 0xfe6   :  { %10050 = vmatpush3.msra.mxu0 %v74_v40 }
 0xfe7   :  { %10051 = vmatprep.subr.mxu0 %v11112_v13 }
 0xfe8   :  { %10052 = vmatpush3.msra.mxu0 %v73_v16 }
 0xfe9   :  { %10053 = vmatprep.subr.mxu0 %v11112_v13 }
 0xfea   :  { %10054 = vmatpush3.msra.mxu0 %v72_v41 }
 0xfeb   :  { %10056 = vmatmul.mubr.msk.f32.vlgmr.msra.gmra.mxu0 %vm497_vm9, %v11715_v39  ;;  %10069 = vmatprep.subr.mxu0 %v11112_v13 }
 0xfec   :  { %10071 = vmatprep.mubr.msk.f32.mxu0 %vm11119_vm13, %v11112_v13 }
0x10a3   :  { %v2344_v50 = vpop.f32.mrf.mxu0  ;;  %v2492_v21 = vpop.f32.mrf.mxu1 }
0x10a4   :  { %v2345_v43 = vadd.f32 %v9214_v45, %v2344_v50  ;;  %v11755_v44 = vadd.f32 %v9218_v35, %v2492_v21 }
0x10a5   :  { %v10046_v47 = vpop.f32.mrf.mxu0  ;;  %v10068_v48 = vpop.f32.mrf.mxu1 }
0x10a6   :  { %10075 = vmatpush3.msra.mxu1 %v11755_v44  ;;  %2658 = vrot.lane.b32.xlu0 %v2345_v43, %s11113_s16 }
0x10a7   :  { %10084 = vmatprep.subr.mxu1 %v11112_v13 }
0x10ab   :  { %v2418_v52 = vpop.f32.mrf.mxu0 }
0x10ac   :  { %v2419_v53 = vadd.f32 %v9216_v51, %v2418_v52 }
0x10ad   :  { %v10057_v54 = vpop.f32.mrf.mxu0 }
0x10ae   :  { %2828 = vrot.lane.b32.xlu0 %v2419_v53, %s11114_s19  ;;  %2660 = vrot.lane.b32.xlu1 %v2419_v53, %s11113_s16 }
0x10af   :  { %10070 = vmatpush3.xpose.msk.msra.mxu0 %vm873_vm11, %v2419_v53 }
0x10b0   :  { %10079 = vmatprep.subr.mxu0 %v11112_v13 }
0x10b2   :  { %10072 = vmatmul.mubr.msk.f32.vlgmr.msra.gmra.mxu0 %vm873_vm11, %v2345_v43  ;;  %2995 = vrot.lane.b32.xlu0 %v2419_v53, %s11115_s20 }
0x10b3   :  { %2826 = vrot.lane.b32.xlu1 %v2345_v43, %s11114_s19  ;;  %10081 = vmatprep.mubr.msk.f32.mxu0 %vm11119_vm13, %v11112_v13 }
0x10b7   :  { %2993 = vrot.lane.b32.xlu1 %v2345_v43, %s11115_s20 }
0x1118   :  { %v2659_v56 = vpop.permute.xlu0 %2658 }
0x1120   :  { %v2661_v59 = vpop.permute.xlu1 %2660  ;;  %v2829_v60 = vpop.permute.xlu0 %2828 }
0x1121   :  { %10080 = vmatpush3.xpose.msk.msra.mxu0 %vm873_vm11, %v2661_v59 }
0x1122   :  { %10089 = vmatprep.subr.mxu0 %v11112_v13 }
0x1124   :  { %10082 = vmatmul.mubr.msk.f32.vlgmr.msra.gmra.mxu0 %vm873_vm11, %v2659_v56  ;;  %v2996_v63 = vpop.permute.xlu0 %2995 }
0x1125   :  { %v2827_v62 = vpop.permute.xlu1 %2826  ;;  %10090 = vmatpush3.xpose.msk.msra.mxu0 %vm873_vm11, %v2829_v60  ;;  %10091 = vmatprep.mubr.msk.f32.mxu0 %vm11119_vm13, %v11112_v13 }
0x1126   :  { %10099 = vmatprep.subr.mxu0 %v11112_v13 }
0x1128   :  { %10092 = vmatmul.mubr.msk.f32.vlgmr.msra.gmra.mxu0 %vm873_vm11, %v2827_v62 }
0x1129   :  { %10100 = vmatpush3.xpose.msk.msra.mxu0 %vm873_vm11, %v2996_v63  ;;  %10101 = vmatprep.mubr.msk.f32.mxu0 %vm11119_vm13, %v11112_v13  ;;  %v2994_v0 = vpop.permute.xlu1 %2993 }
0x112a   :  { %10109 = vmatprep.subr.mxu0 %v11112_v13 }
0x112c   :  { %10102 = vmatmul.mubr.msk.f32.vlgmr.msra.gmra.mxu0 %vm873_vm11, %v2994_v0 }
0x112d   :  { %10117 = vmatprep.mubr.msk.f32.mxu0 %vm11119_vm13, %v11112_v13 }
0x1172   :  { %v2568_v1 = vpop.f32.mrf.mxu0 }
0x1173   :  { %v2572_v2 = vmul.f32 0.35355338, %v2568_v1 }
0x1174   :  { %v10073_v9 = vpop.f32.mrf.mxu0 }
0x1175   :  { %v2573_v4 = vadd.f32 %v2572_v2, %v11790_v7 }
0x1177   :  { %v2574_v12 = vsel %vm873_vm11, %v2573_v4, -inf }
0x1178   :  { %2575 = vmax.xlane.f32.xlu0 %v2574_v12 }
0x11e4   :  { %v2732_v8 = vpop.f32.mrf.mxu0 }
0x11e5   :  { %v2736_v15 = vmul.f32 0.35355338, %v2732_v8 }
0x11e6   :  { %v10083_v11 = vpop.f32.mrf.mxu0 }
0x11e7   :  { %v2737_v18 = vadd.f32 %v2736_v15, %v11790_v7  ;;  %v83_v15 = vld [vmem:[%s13311_s6 + $0x198] sm:$0xff]  ;;  %v82_v11 = vld [vmem:[%s13311_s6 + $0x190] sm:$0xff] }
0x11e8   :  { %v2900_v19 = vpop.f32.mrf.mxu0  ;;  %10110 = vmatpush3.msra.mxu0 %v83_v15  ;;  %v9209_v15 = vld [vmem:[%s13312_s8 + $0xb] ss:$0 sm:$0xff] }
0x11e9   :  { %v2904_v20 = vmul.f32 0.35355338, %v2900_v19  ;;  %v2738_v23 = vsel %vm873_vm11, %v2737_v18, -inf  ;;  %10111 = vmatprep.subr.mxu0 %v11112_v13  ;;  %v80_v19 = vld [vmem:[%s13311_s6 + $0x180] sm:$0xff] }
0x11ea   :  { %2739 = vmax.xlane.f32.xlu1 %v2738_v23  ;;  %v10093_v3 = vpop.f32.mrf.mxu0  ;;  %10112 = vmatpush3.msra.mxu0 %v82_v11 }
0x11eb   :  { %v2905_v10 = vadd.f32 %v2904_v20, %v11790_v7  ;;  %10113 = vmatprep.subr.mxu0 %v11112_v13 }
0x11ec   :  { %v3067_v24 = vpop.f32.mrf.mxu0 }
0x11ed   :  { %v3071_v26 = vmul.f32 0.35355338, %v3067_v24  ;;  %v2906_v28 = vsel %vm873_vm11, %v2905_v10, -inf }
0x11ee   :  { %2907 = vmax.xlane.f32.xlu0 %v2906_v28  ;;  %v10103_v58 = vpop.f32.mrf.mxu0  ;;  %v9206_v28 = vld [vmem:[%s13312_s8 + $0xa] ss:$0 sm:$0xff] }
0x11ef   :  { %v3072_v57 = vadd.f32 %v3071_v26, %v11790_v7  ;;  %v2054_v58 = vadd.f32 %v9206_v28, %v11747_v14 }
0x11f1   :  { %v3073_v29 = vsel %vm873_vm11, %v3072_v57, -inf }
0x11f2   :  { %3074 = vmax.xlane.f32.xlu0 %v3073_v29 }
0x11fb   :  { %2750 = vrot.lane.b32.xlu1 %v11755_v44, %s11113_s16 }
0x1201   :  { %v2576_v30 = vpop.xlane.xlu0 %2575 }
0x1202   :  { %v2577_v31 = vsub.f32 %v2573_v4, %v2576_v30  ;;  %v2059_v30 = vadd.f32 %v11745_v36, %v9206_v28 }
0x1204   :  { %v2578_v32 = vmul.f32 1.442695, %v2577_v31  ;;  %v2063_v31 = vadd.f32 %v2059_v30, %v11569_v49 }
0x1206   :  { %10811 = vpow2.f32 %v2578_v32  ;;  %v2067_v32 = vsel %vm497_vm9, %v2063_v31, 0.0 }
0x1213   :  { %v10812_v33 = vpop.eup %10811 }
0x1214   :  { %v2580_v34 = vsel %vm873_vm11, %v10812_v33, 0.0 }
0x121f   :  { %2581 = vadd.xlane.f32.xlu1 %v2580_v34 }
0x1273   :  { %v2740_v37 = vpop.xlane.xlu1 %2739 }
0x1274   :  { %v2741_v38 = vsub.f32 %v2737_v18, %v2740_v37  ;;  %v81_v18 = vld [vmem:[%s13311_s6 + $0x188] sm:$0xff] }
0x1275   :  { %10114 = vmatpush3.msra.mxu0 %v81_v18  ;;  %v87_v18 = vld [vmem:[%s13311_s6 + $0x1b8] sm:$0xff] }
0x1276   :  { %v2742_v25 = vmul.f32 1.442695, %v2741_v38  ;;  %10115 = vmatprep.subr.mxu0 %v11112_v13 }
0x1277   :  { %v2908_v27 = vpop.xlane.xlu0 %2907  ;;  %v2751_v52 = vpop.permute.xlu1 %2750  ;;  %10116 = vmatpush3.msra.mxu0 %v80_v19  ;;  %v86_v19 = vld [vmem:[%s13311_s6 + $0x1b0] sm:$0xff] }
0x1278   :  { %10813 = vpow2.f32 %v2742_v25  ;;  %v2909_v40 = vsub.f32 %v2905_v10, %v2908_v27 }
0x127a   :  { %v2910_v16 = vmul.f32 1.442695, %v2909_v40 }
0x127b   :  { %v3075_v41 = vpop.xlane.xlu0 %3074 }
0x127c   :  { %10815 = vpow2.f32 %v2910_v16  ;;  %v3076_v45 = vsub.f32 %v3072_v57, %v3075_v41  ;;  %v2062_v57 = vadd.f32 %v2054_v58, %v11567_v46  ;;  %v95_v58 = vld [vmem:[%s13311_s6 + $0x1f8] sm:$0xff] }
0x127e   :  { %v3077_v35 = vmul.f32 1.442695, %v3076_v45  ;;  %v2064_v29 = vsel %vm497_vm9, %v2062_v57, 0.0  ;;  %v9232_v45 = vld [vmem:[%s13312_s8 + $0x10] ss:$0 sm:$0xff] }
0x1280   :  { %10817 = vpow2.f32 %v3077_v35 }
0x1285   :  { %v10814_v50 = vpop.eup %10813 }
0x1286   :  { %v2744_v21 = vsel %vm873_vm11, %v10814_v50, 0.0 }
0x1287   :  { %2745 = vadd.xlane.f32.xlu0 %v2744_v21 }
0x1289   :  { %v10816_v43 = vpop.eup %10815 }
0x128a   :  { %v2912_v47 = vsel %vm873_vm11, %v10816_v43, 0.0 }
0x128b   :  { %2913 = vadd.xlane.f32.xlu1 %v2912_v47 }
0x128d   :  { %v10818_v48 = vpop.eup %10817 }
0x128e   :  { %v3079_v51 = vsel %vm873_vm11, %v10818_v48, 0.0 }
0x128f   :  { %3080 = vadd.xlane.f32.xlu0 %v3079_v51 }
0x129c   :  { %3084 = vrot.lane.b32.xlu1 %v11755_v44, %s11115_s20 }
0x12a5   :  { %2917 = vrot.lane.b32.xlu0 %v11755_v44, %s11114_s19 }
0x12a8   :  { %v2582_v53 = vpop.xlane.xlu1 %2581 }
0x12a9   :  { %10819 = vrcp.f32 %v2582_v53  ;;  %v91_v53 = vld [vmem:[%s13311_s6 + $0x1d8] sm:$0xff] }
0x12aa   :  { %10131 = vmatprep.subr.mxu0 %v91_v53 }
0x12b6   :  { %v10820_v54 = vpop.eup %10819 }
0x12b7   :  { %v2584_v56 = vmul.f32 %v10820_v54, %v10812_v33  ;;  %v90_v54 = vld [vmem:[%s13311_s6 + $0x1d0] sm:$0xff] }
0x12b9   :  { %10077 = vmatmul.mubr.msk.f32.vlgmr.msra.gmra.mxu1 %vm873_vm11, %v2584_v56  ;;  %v88_v56 = vld [vmem:[%s13311_s6 + $0x1c0] sm:$0xff] }
0x12ba   :  { %10085 = vmatpush3.msra.mxu1 %v2751_v52  ;;  %10086 = vmatprep.mubr.msk.f32.mxu1 %vm11119_vm13, %v11112_v13 }
0x12bb   :  { %10094 = vmatprep.subr.mxu1 %v11112_v13 }
0x1310   :  { %v2746_v59 = vpop.xlane.xlu0 %2745 }
0x1311   :  { %10821 = vrcp.f32 %v2746_v59 }
0x1314   :  { %v2914_v60 = vpop.xlane.xlu1 %2913 }
0x1315   :  { %10823 = vrcp.f32 %v2914_v60 }
0x1318   :  { %v3081_v62 = vpop.xlane.xlu0 %3080  ;;  %v3085_v2 = vpop.permute.xlu1 %3084 }
0x1319   :  { %10825 = vrcp.f32 %v3081_v62 }
0x131c   :  { %v2918_v0 = vpop.permute.xlu0 %2917 }
0x131e   :  { %v10822_v63 = vpop.eup %10821 }
0x131f   :  { %v2748_v44 = vmul.f32 %v10822_v63, %v10814_v50 }
0x1321   :  { %10087 = vmatmul.mubr.msk.f32.vlgmr.msra.gmra.mxu1 %vm873_vm11, %v2748_v44 }
0x1322   :  { %v10824_v1 = vpop.eup %10823  ;;  %10095 = vmatpush3.msra.mxu1 %v2918_v0  ;;  %10096 = vmatprep.mubr.msk.f32.mxu1 %vm11119_vm13, %v11112_v13 }
0x1323   :  { %10104 = vmatprep.subr.mxu1 %v11112_v13  ;;  %v2916_v5 = vmul.f32 %v10824_v1, %v10816_v43 }
0x1325   :  { %10097 = vmatmul.mubr.msk.f32.vlgmr.msra.gmra.mxu1 %vm873_vm11, %v2916_v5 }
0x1326   :  { %v10826_v9 = vpop.eup %10825  ;;  %10105 = vmatpush3.msra.mxu1 %v3085_v2  ;;  %10106 = vmatprep.mubr.msk.f32.mxu1 %vm11119_vm13, %v11112_v13 }
0x1327   :  { %v3083_v4 = vmul.f32 %v10826_v9, %v10818_v48  ;;  %10120 = vmatprep.subr.mxu1 %v11112_v13 }
0x1329   :  { %10107 = vmatmul.mubr.msk.f32.vlgmr.msra.gmra.mxu1 %vm873_vm11, %v3083_v4 }
0x132a   :  { %10128 = vmatprep.mubr.msk.f32.mxu1 %vm11119_vm13, %v11112_v13  ;;  %10121 = vmatpush3.msra.mxu1 %v87_v18 }
0x132b   :  { %10122 = vmatprep.subr.mxu1 %v11112_v13 }
0x132c   :  { %10123 = vmatpush3.msra.mxu1 %v86_v19 }
0x132d   :  { %10124 = vmatprep.subr.mxu1 %v11112_v13 }
0x1379   :  { %v2654_v12 = vpop.f32.mrf.mxu1 }
0x137b   :  { %v10078_v8 = vpop.f32.mrf.mxu1 }
0x13e1   :  { %v2822_v20 = vpop.f32.mrf.mxu1 }
0x13e2   :  { %3161 = vrot.lane.b32.xlu1 %v2822_v20, %s11116_s21 }
0x13e3   :  { %v10088_v23 = vpop.f32.mrf.mxu1 }
0x13e5   :  { %v2989_v3 = vpop.f32.mrf.mxu1 }
0x13e6   :  { %3165 = vrot.lane.b32.xlu0 %v2989_v3, %s11117_s22  ;;  %v85_v3 = vld [vmem:[%s13311_s6 + $0x1a8] sm:$0xff] }
0x13e7   :  { %v10098_v10 = vpop.f32.mrf.mxu1  ;;  %10125 = vmatpush3.msra.mxu1 %v85_v3 }
0x13e8   :  { %v9210_v10 = vld [vmem:[%s13312_s8 + $0xc] ss:$0 sm:$0xff]  ;;  %10126 = vmatprep.subr.mxu1 %v11112_v13 }
0x13e9   :  { %v3156_v24 = vpop.f32.mrf.mxu1 }
0x13ea   :  { %3169 = vrot.lane.b32.xlu1 %v3156_v24, %s11118_s10 }
0x13eb   :  { %v10108_v26 = vpop.f32.mrf.mxu1 }
0x13ec   :  { %v84_v26 = vld [vmem:[%s13311_s6 + $0x1a0] sm:$0xff] }
0x13ed   :  { %10127 = vmatpush3.msra.mxu1 %v84_v26 }
0x13ee   :  { %10142 = vmatprep.subr.mxu1 %v95_v58 }
0x1405   :  { %2065 = vadd.xlane.f32.xlu0 %v2064_v29 }
0x140e   :  { %2068 = vadd.xlane.f32.xlu1 %v2067_v32 }
0x1454   :  { %v3162_v33 = vpop.permute.xlu1 %3161 }
0x1455   :  { %v3172_v37 = vsel %vm873_vm11, %v2654_v12, %v3162_v33  ;;  %v9234_v33 = vld [vmem:[%s13312_s8 + $0x11] ss:$0 sm:$0xff] }
0x1458   :  { %v3166_v34 = vpop.permute.xlu0 %3165 }
0x1459   :  { %v3173_v38 = vsel %vm286_vm2, %v3172_v37, %v3166_v34  ;;  %v9235_v37 = vld [vmem:[%s13312_s8 + $0x12] ss:$0 sm:$0xff] }
0x145c   :  { %v3170_v25 = vpop.permute.xlu1 %3169 }
0x145d   :  { %v3174_v14 = vsel %vm1710_vm12, %v3173_v38, %v3170_v25 }
0x145e   :  { %10118 = vmatmul.mubr.msk.f32.vlgmr.msra.gmra.mxu0 %vm497_vm9, %v3174_v14  ;;  %v94_v14 = vld [vmem:[%s13311_s6 + $0x1f0] sm:$0xff] }
0x145f   :  { %10132 = vmatpush3.msra.mxu0 %v91_v53  ;;  %v3276_v53 = vld [vmem:[%s13315_s3] sm:$0x1] }
0x1460   :  { %10133 = vmatprep.subr.mxu0 %v90_v54  ;;  %vm3277_vm5 = vcmp.gt.s32.totalorder %v3276_v53, 0 }
0x1461   :  { %10134 = vmatpush3.msra.mxu0 %v90_v54  ;;  %v3602_v54 = vsub.s32 0, %v11562_v42 }
0x148e   :  { %v2066_v16 = vpop.xlane.xlu0 %2065 }
0x148f   :  { %v2070_v41 = vmul.f32 0.03125, %v2066_v16 }
0x1491   :  { %v2072_v50 = vsub.f32 %v2062_v57, %v2070_v41 }
0x1493   :  { %v2074_v51 = vmul.f32 %v2072_v50, %v2072_v50 }
0x1495   :  { %v2076_v52 = vsel %vm497_vm9, %v2074_v51, 0.0 }
0x1497   :  { %v2069_v46 = vpop.xlane.xlu1 %2068 }
0x1498   :  { %v2071_v27 = vmul.f32 0.03125, %v2069_v46  ;;  %v93_v46 = vld [vmem:[%s13311_s6 + $0x1e8] sm:$0xff] }
0x149a   :  { %v2073_v36 = vsub.f32 %v2063_v31, %v2071_v27  ;;  %v92_v27 = vld [vmem:[%s13311_s6 + $0x1e0] sm:$0xff] }
0x149c   :  { %v2075_v40 = vmul.f32 %v2073_v36, %v2073_v36 }
0x149e   :  { %v2079_v49 = vsel %vm497_vm9, %v2075_v40, 0.0 }
0x149f   :  { %2080 = vadd.xlane.f32.xlu1 %v2079_v49 }
0x151e   :  { %v3248_v35 = vpop.f32.mrf.mxu0 }
0x151f   :  { %v3249_v21 = vadd.f32 %v9232_v45, %v3248_v35  ;;  %v9236_v45 = vld [vmem:[%s13312_s8 + $0x13] ss:$0 sm:$0xff] }
0x1520   :  { %v10119_v43 = vpop.f32.mrf.mxu0 }
0x1521   :  { %v3252_v47 = vadd.f32 %v3249_v21, %v11715_v39  ;;  %v89_v39 = vld [vmem:[%s13311_s6 + $0x1c8] sm:$0xff]  ;;  %v9241_v43 = vld [vmem:[%s13312_s8 + $0x15] ss:$0 sm:$0xff] }
0x1522   :  { %10135 = vmatprep.subr.mxu0 %v89_v39 }
0x1523   :  { %v3253_v48 = vsel %vm497_vm9, %v3252_v47, 0.0  ;;  %10136 = vmatpush3.msra.mxu0 %v89_v39  ;;  %v11122_v39 = vmov -1e+09  }
0x1524   :  { %3254 = vadd.xlane.f32.xlu0 %v3253_v48  ;;  %10137 = vmatprep.subr.mxu0 %v88_v56 }
0x1525   :  { %10138 = vmatpush3.msra.mxu0 %v88_v56  ;;  %v3278_v56 = vsel %vm3277_vm5, 0.0, %v11122_v39 }
0x1526   :  { %10153 = vmatprep.subr.mxu0 %v11112_v13 }
0x1528   :  { %2077 = vadd.xlane.f32.xlu0 %v2076_v52  ;;  %v2081_v59 = vpop.xlane.xlu1 %2080 }
0x1529   :  { %v2083_v60 = vmul.f32 0.03125, %v2081_v59  ;;  %v11969_v59 = vrot.slane %v3278_v56, %v3602_v54 }
0x152b   :  { %v2085_v62 = vadd.f32 1e-05, %v2083_v60 }
0x152d   :  { %10827 = vrsqrt.f32 %v2085_v62 }
0x153a   :  { %v10828_v12 = vpop.eup %10827 }
0x153b   :  { %v2089_v8 = vmul.f32 %v10828_v12, %v2073_v36  ;;  %v9238_v36 = vld [vmem:[%s13312_s8 + $0x14] ss:$0 sm:$0xff] }
0x153d   :  { %v2095_v23 = vmul.f32 %v9209_v15, %v2089_v8 }
0x153f   :  { %v2101_v57 = vadd.f32 %v9210_v10, %v2095_v23 }
0x15ad   :  { %v3255_v63 = vpop.xlane.xlu0 %3254 }
0x15ae   :  { %v3256_v44 = vmul.f32 0.03125, %v3255_v63 }
0x15b0   :  { %v3257_v0 = vsub.f32 %v3252_v47, %v3256_v44 }
0x15b1   :  { %v2078_v1 = vpop.xlane.xlu0 %2077 }
0x15b2   :  { %v2082_v5 = vmul.f32 0.03125, %v2078_v1  ;;  %v3258_v2 = vmul.f32 %v3257_v0, %v3257_v0 }
0x15b4   :  { %v2084_v9 = vadd.f32 1e-05, %v2082_v5  ;;  %v3259_v4 = vsel %vm497_vm9, %v3258_v2, 0.0 }
0x15b5   :  { %3260 = vadd.xlane.f32.xlu0 %v3259_v4 }
0x15b6   :  { %10829 = vrsqrt.f32 %v2084_v9 }
0x15c3   :  { %v10830_v11 = vpop.eup %10829 }
0x15c4   :  { %v2088_v20 = vmul.f32 %v10830_v11, %v2072_v50 }
0x15c6   :  { %v2094_v24 = vmul.f32 %v9209_v15, %v2088_v20 }
0x15c8   :  { %v2100_v28 = vadd.f32 %v9210_v10, %v2094_v24 }
0x15ca   :  { %10139 = vmatprep.mubr.msk.f32.mxu0 %vm497_vm9, %v2100_v28 }
0x15cb   :  { %10140 = vmatmul.mubr.msk.f32.vlgmr.msra.gmra.mxu0 %vm497_vm9, %v2101_v57 }
0x15cc   :  { %10157 = vmatprep.mubr.msk.f32.mxu0 %vm11119_vm13, %v11112_v13 }
0x163e   :  { %v3261_v29 = vpop.xlane.xlu0 %3260 }
0x163f   :  { %v3262_v30 = vmul.f32 0.03125, %v3261_v29 }
0x1641   :  { %v3263_v31 = vadd.f32 1e-05, %v3262_v30 }
0x1643   :  { %10831 = vrsqrt.f32 %v3263_v31 }
0x1650   :  { %v10832_v32 = vpop.eup %10831 }
0x1651   :  { %v3265_v34 = vmul.f32 %v10832_v32, %v3257_v0 }
0x1653   :  { %v3270_v38 = vmul.f32 %v9234_v33, %v3265_v34 }
0x1655   :  { %v11911_v25 = vadd.f32 %v9235_v37, %v3270_v38 }
0x1657   :  { %10129 = vmatmul.mubr.msk.f32.vlgmr.msra.gmra.mxu1 %vm497_vm9, %v11911_v25 }
0x1658   :  { %10143 = vmatpush3.msra.mxu1 %v95_v58  ;;  %10150 = vmatprep.mubr.msk.f32.mxu1 %vm497_vm9, %v2100_v28 }
0x1659   :  { %10144 = vmatprep.subr.mxu1 %v94_v14 }
0x165a   :  { %10145 = vmatpush3.msra.mxu1 %v94_v14 }
0x165b   :  { %10146 = vmatprep.subr.mxu1 %v93_v46 }
0x165c   :  { %10147 = vmatpush3.msra.mxu1 %v93_v46 }
0x165d   :  { %10148 = vmatprep.subr.mxu1 %v92_v27 }
0x165e   :  { %10149 = vmatpush3.msra.mxu1 %v92_v27 }
0x165f   :  { %10151 = vmatmul.mubr.msk.f32.vlgmr.msra.gmra.mxu1 %vm497_vm9, %v2101_v57  ;;  %10160 = vmatprep.subr.mxu1 %v11112_v13 }
0x1660   :  { %10164 = vmatprep.mubr.msk.f32.mxu1 %vm11119_vm13, %v11112_v13 }
0x168b   :  { %v10141_v40 = vpop.f32.mrf.mxu0 }
0x168c   :  { %v11932_v49 = vadd.f32 %v10141_v40, %v9238_v36 }
0x168d   :  { %v3432_v16 = vpop.f32.mrf.mxu0 }
0x168e   :  { %10154 = vmatpush3.xpose.msk.msra.mxu0 %vm873_vm11, %v11932_v49  ;;  %v11937_v41 = vadd.f32 %v9238_v36, %v3432_v16 }
0x168f   :  { %10155 = vmatprep.subr.mxu0 %v11112_v13 }
0x1692   :  { %10156 = vmatpush3.xpose.msk.msra.mxu0 %vm873_vm11, %v11937_v41 }
0x1693   :  { %10174 = vmatprep.subr.mxu0 %v11112_v13 }
0x1717   :  { %v3352_v35 = vpop.f32.mrf.mxu1 }
0x1718   :  { %v11945_v50 = vadd.f32 %v9236_v45, %v3352_v35 }
0x1719   :  { %v10130_v21 = vpop.f32.mrf.mxu1 }
0x171a   :  { %10158 = vmatmul.mubr.msk.f32.vlgmr.msra.gmra.mxu0 %vm873_vm11, %v11945_v50 }
0x171b   :  { %10178 = vmatprep.mubr.msk.f32.mxu0 %vm11119_vm13, %v11112_v13 }
0x171f   :  { %v10152_v47 = vpop.f32.mrf.mxu1 }
0x1720   :  { %v11954_v48 = vadd.f32 %v10152_v47, %v9241_v43 }
0x1721   :  { %v3511_v51 = vpop.f32.mrf.mxu1 }
0x1722   :  { %v11956_v52 = vadd.f32 %v9241_v43, %v3511_v51  ;;  %10161 = vmatpush3.msra.mxu1 %v11954_v48 }
0x1723   :  { %10162 = vmatprep.subr.mxu1 %v11112_v13 }
0x1724   :  { %10163 = vmatpush3.msra.mxu1 %v11956_v52 }
0x1725   :  { %10167 = vmatprep.subr.mxu1 %v11112_v13 }
0x17da   :  { %v3595_v60 = vpop.f32.mrf.mxu0 }
0x17db   :  { %v3599_v62 = vmul.f32 0.35355338, %v3595_v60 }
0x17dc   :  { %v10159_v63 = vpop.f32.mrf.mxu0 }
0x17dd   :  { %v3604_v44 = vadd.f32 %v11969_v59, %v3599_v62 }
0x17df   :  { %v3605_v0 = vsel %vm286_vm2, %v3604_v44, -inf }
0x17e0   :  { %3606 = vmax.xlane.f32.xlu1 %v3605_v0 }
0x17f1   :  { %3693 = vrot.lane.b32.xlu1 %v11932_v49, %s11113_s16 }
0x17f5   :  { %3689 = vrot.lane.b32.xlu1 %v11945_v50, %s11113_s16 }
0x1869   :  { %v3607_v1 = vpop.xlane.xlu1 %3606 }
0x186a   :  { %v3608_v5 = vsub.f32 %v3604_v44, %v3607_v1 }
0x186c   :  { %v3609_v2 = vmul.f32 1.442695, %v3608_v5 }
0x186d   :  { %v3694_v11 = vpop.permute.xlu1 %3693 }
0x186e   :  { %10833 = vpow2.f32 %v3609_v2 }
0x1871   :  { %v3690_v19 = vpop.permute.xlu1 %3689 }
0x187b   :  { %v10834_v9 = vpop.eup %10833 }
0x187c   :  { %v3611_v4 = vsel %vm286_vm2, %v10834_v9, 0.0 }
0x187d   :  { %3612 = vadd.xlane.f32.xlu0 %v3611_v4 }
0x1893   :  { %3691 = vrot.lane.b32.xlu0 %v11937_v41, %s11113_s16 }
0x1906   :  { %v3613_v12 = vpop.xlane.xlu0 %3612 }
0x1907   :  { %10835 = vrcp.f32 %v3613_v12 }
0x190a   :  { %v3692_v18 = vpop.permute.xlu0 %3691 }
0x1914   :  { %v10836_v8 = vpop.eup %10835 }
0x1915   :  { %v3615_v15 = vmul.f32 %v10836_v8, %v10834_v9 }
0x1917   :  { %10165 = vmatmul.mubr.msk.f32.vlgmr.msra.gmra.mxu1 %vm286_vm2, %v3615_v15 }
0x1918   :  { %10168 = vmatpush3.xpose.msk.msra.mxu1 %vm873_vm11, %v3694_v11  ;;  %10171 = vmatprep.mubr.msk.f32.mxu1 %vm11119_vm13, %v11112_v13 }
0x1919   :  { %10169 = vmatprep.subr.mxu1 %v11112_v13 }
0x191c   :  { %10170 = vmatpush3.xpose.msk.msra.mxu1 %vm873_vm11, %v3692_v18 }
0x191d   :  { %10188 = vmatprep.subr.mxu1 %v11112_v13 }
0x191f   :  { %10172 = vmatmul.mubr.msk.f32.vlgmr.msra.gmra.mxu1 %vm873_vm11, %v3690_v19 }
0x1920   :  { %10192 = vmatprep.mubr.msk.f32.mxu1 %vm11119_vm13, %v11112_v13 }
0x19d7   :  { %v11990_v20 = vpop.f32.mrf.mxu1 }
0x19d9   :  { %v10166_v23 = vpop.f32.mrf.mxu1 }
0x19df   :  { %v3767_v3 = vpop.f32.mrf.mxu1 }
0x19e0   :  { %v3771_v10 = vmul.f32 0.35355338, %v3767_v3 }
0x19e1   :  { %v10173_v24 = vpop.f32.mrf.mxu1 }
0x19e2   :  { %v3772_v26 = vadd.f32 %v3771_v10, %v11969_v59 }
0x19e4   :  { %v3773_v28 = vsel %vm286_vm2, %v3772_v26, -inf }
0x19e5   :  { %3774 = vmax.xlane.f32.xlu1 %v3773_v28  ;;  %v98_v28 = vld [vmem:[%s13311_s6 + $0x210] sm:$0xff] }
0x19f6   :  { %3786 = vrot.lane.b32.xlu1 %v11956_v52, %s11113_s16 }
0x19fa   :  { %3869 = vrot.lane.b32.xlu1 %v11932_v49, %s11114_s19 }
0x19fe   :  { %3865 = vrot.lane.b32.xlu1 %v11945_v50, %s11114_s19 }
0x1a02   :  { %3960 = vrot.lane.b32.xlu1 %v11956_v52, %s11114_s19 }
0x1a6e   :  { %v3775_v58 = vpop.xlane.xlu1 %3774 }
0x1a6f   :  { %v3776_v57 = vsub.f32 %v3772_v26, %v3775_v58  ;;  %v97_v58 = vld [vmem:[%s13311_s6 + $0x208] sm:$0xff] }
0x1a71   :  { %v3777_v29 = vmul.f32 1.442695, %v3776_v57  ;;  %v96_v57 = vld [vmem:[%s13311_s6 + $0x200] sm:$0xff] }
0x1a72   :  { %v3787_v34 = vpop.permute.xlu1 %3786 }
0x1a73   :  { %10837 = vpow2.f32 %v3777_v29 }
0x1a76   :  { %v3870_v14 = vpop.permute.xlu1 %3869 }
0x1a7a   :  { %v3866_v27 = vpop.permute.xlu1 %3865 }
0x1a7e   :  { %v3961_v60 = vpop.permute.xlu1 %3960 }
0x1a80   :  { %v10838_v30 = vpop.eup %10837 }
0x1a81   :  { %v3779_v31 = vsel %vm286_vm2, %v10838_v30, 0.0 }
0x1a82   :  { %3780 = vadd.xlane.f32.xlu0 %v3779_v31 }
0x1a98   :  { %3788 = vrot.lane.b32.xlu0 %v11954_v48, %s11113_s16 }
0x1a9c   :  { %3867 = vrot.lane.b32.xlu0 %v11937_v41, %s11114_s19 }
0x1b0b   :  { %v3781_v32 = vpop.xlane.xlu0 %3780 }
0x1b0c   :  { %10839 = vrcp.f32 %v3781_v32 }
0x1b0f   :  { %v3789_v33 = vpop.permute.xlu0 %3788 }
0x1b10   :  { %10175 = vmatpush3.msra.mxu0 %v3789_v33 }
0x1b11   :  { %10176 = vmatprep.subr.mxu0 %v11112_v13 }
0x1b12   :  { %10177 = vmatpush3.msra.mxu0 %v3787_v34 }
0x1b13   :  { %10181 = vmatprep.subr.mxu0 %v11112_v13  ;;  %v3868_v46 = vpop.permute.xlu0 %3867 }
0x1b19   :  { %v10840_v37 = vpop.eup %10839 }
0x1b1a   :  { %v3783_v38 = vmul.f32 %v10840_v37, %v10838_v30 }
0x1b1c   :  { %10179 = vmatmul.mubr.msk.f32.vlgmr.msra.gmra.mxu0 %vm286_vm2, %v3783_v38 }
0x1b1d   :  { %10182 = vmatpush3.xpose.msk.msra.mxu0 %vm873_vm11, %v3870_v14  ;;  %10185 = vmatprep.mubr.msk.f32.mxu0 %vm11119_vm13, %v11112_v13  ;;  %v9260_v14 = vld [vmem:[%s13312_s8 + $0x16] ss:$0 sm:$0xff] }
0x1b1e   :  { %10183 = vmatprep.subr.mxu0 %v11112_v13 }
0x1b21   :  { %10184 = vmatpush3.xpose.msk.msra.mxu0 %vm873_vm11, %v3868_v46 }
0x1b22   :  { %10202 = vmatprep.subr.mxu0 %v11112_v13 }
0x1b24   :  { %10186 = vmatmul.mubr.msk.f32.vlgmr.msra.gmra.mxu0 %vm873_vm11, %v3866_v27 }
0x1b25   :  { %10206 = vmatprep.mubr.msk.f32.mxu0 %vm11119_vm13, %v11112_v13 }
0x1bdc   :  { %v3861_v36 = vpop.f32.mrf.mxu0 }
0x1bde   :  { %v10180_v40 = vpop.f32.mrf.mxu0 }
0x1be4   :  { %v3943_v16 = vpop.f32.mrf.mxu0 }
0x1be5   :  { %v3947_v45 = vmul.f32 0.35355338, %v3943_v16  ;;  %v12088_v16 = vld [vmem:[%s13309_s1 + $0x18] sm:$0xff] }
0x1be6   :  { %v10187_v35 = vpop.f32.mrf.mxu0  ;;  %vm4861_vm6 = vcmp.ge.s32.totalorder %v12088_v16, 2  ;;  %vm4855_vm1 = vcmp.eq.s32.totalorder %v12088_v16, 0 }
0x1be7   :  { %v3948_v21 = vadd.f32 %v3947_v45, %v11969_v59  ;;  %v4752_v45 = vld [vmem:[%s13308_s0 + $0x10] sm:$0xff]  ;;  %v9292_v35 = vsel %vm4861_vm6, 1.0, %v11112_v13 }
0x1be9   :  { %v3949_v43 = vsel %vm286_vm2, %v3948_v21, -inf }
0x1bea   :  { %3950 = vmax.xlane.f32.xlu0 %v3949_v43 }
0x1c00   :  { %3962 = vrot.lane.b32.xlu0 %v11954_v48, %s11114_s19 }
0x1c04   :  { %4043 = vrot.lane.b32.xlu0 %v11932_v49, %s11115_s20 }
0x1c08   :  { %4039 = vrot.lane.b32.xlu0 %v11945_v50, %s11115_s20 }
0x1c73   :  { %v3951_v47 = vpop.xlane.xlu0 %3950 }
0x1c74   :  { %v3952_v51 = vsub.f32 %v3948_v21, %v3951_v47 }
0x1c76   :  { %v3953_v53 = vmul.f32 1.442695, %v3952_v51 }
0x1c77   :  { %v3963_v56 = vpop.permute.xlu0 %3962 }
0x1c78   :  { %10841 = vpow2.f32 %v3953_v53  ;;  %10189 = vmatpush3.msra.mxu1 %v3963_v56  ;;  %v4753_v56 = vld [vmem:[%s13308_s0 + $0x18] sm:$0xff] }
0x1c79   :  { %10190 = vmatprep.subr.mxu1 %v11112_v13 }
0x1c7a   :  { %10191 = vmatpush3.msra.mxu1 %v3961_v60 }
0x1c7b   :  { %10195 = vmatprep.subr.mxu1 %v11112_v13  ;;  %v4044_v0 = vpop.permute.xlu0 %4043 }
0x1c85   :  { %v10842_v62 = vpop.eup %10841 }
0x1c86   :  { %v3955_v63 = vsel %vm286_vm2, %v10842_v62, 0.0 }
0x1c87   :  { %3956 = vadd.xlane.f32.xlu1 %v3955_v63  ;;  %v118_v63 = vld [vmem:[%s13314_s7 + $0x30] sm:$0xff] }
0x1c98   :  { %4041 = vrot.lane.b32.xlu1 %v11937_v41, %s11115_s20  ;;  %v4040_v41 = vpop.permute.xlu0 %4039 }
0x1d10   :  { %v3957_v49 = vpop.xlane.xlu1 %3956 }
0x1d11   :  { %10843 = vrcp.f32 %v3957_v49  ;;  %v117_v49 = vld [vmem:[%s13314_s7 + $0x28] sm:$0xff] }
0x1d14   :  { %v4042_v1 = vpop.permute.xlu1 %4041 }
0x1d1e   :  { %v10844_v50 = vpop.eup %10843 }
0x1d1f   :  { %v3959_v44 = vmul.f32 %v10844_v50, %v10842_v62  ;;  %v119_v62 = vld [vmem:[%s13314_s7 + $0x38] sm:$0xff]  ;;  %v116_v50 = vld [vmem:[%s13314_s7 + $0x20] sm:$0xff] }
0x1d21   :  { %10193 = vmatmul.mubr.msk.f32.vlgmr.msra.gmra.mxu1 %vm286_vm2, %v3959_v44  ;;  %v107_v44 = vld [vmem:[%s13311_s6 + $0x258] sm:$0xff] }
0x1d22   :  { %10196 = vmatpush3.xpose.msk.msra.mxu1 %vm873_vm11, %v4044_v0  ;;  %10199 = vmatprep.mubr.msk.f32.mxu1 %vm11119_vm13, %v11112_v13  ;;  %v106_v0 = vld [vmem:[%s13311_s6 + $0x250] sm:$0xff] }
0x1d23   :  { %10197 = vmatprep.subr.mxu1 %v11112_v13 }
0x1d26   :  { %10198 = vmatpush3.xpose.msk.msra.mxu1 %vm873_vm11, %v4042_v1  ;;  %v105_v1 = vld [vmem:[%s13311_s6 + $0x248] sm:$0xff] }
0x1d27   :  { %10220 = vmatprep.subr.mxu1 %v11112_v13 }
0x1d29   :  { %10200 = vmatmul.mubr.msk.f32.vlgmr.msra.gmra.mxu1 %vm873_vm11, %v4040_v41  ;;  %v104_v41 = vld [vmem:[%s13311_s6 + $0x240] sm:$0xff] }
0x1d2a   :  { %10228 = vmatprep.mubr.msk.f32.mxu1 %vm11119_vm13, %v11112_v13  ;;  %10221 = vmatpush3.msra.mxu1 %v119_v62 }
0x1d2b   :  { %10222 = vmatprep.subr.mxu1 %v11112_v13 }
0x1d2c   :  { %10223 = vmatpush3.msra.mxu1 %v118_v63 }
0x1d2d   :  { %10224 = vmatprep.subr.mxu1 %v11112_v13 }
0x1d2e   :  { %10225 = vmatpush3.msra.mxu1 %v117_v49 }
0x1d2f   :  { %10226 = vmatprep.subr.mxu1 %v11112_v13 }
0x1d30   :  { %10227 = vmatpush3.msra.mxu1 %v116_v50 }
0x1d31   :  { %10250 = vmatprep.subr.mxu1 %v11112_v13 }
0x1de1   :  { %v4035_v5 = vpop.f32.mrf.mxu1 }
0x1de3   :  { %v10194_v2 = vpop.f32.mrf.mxu1 }
0x1de4   :  { %v102_v2 = vld [vmem:[%s13311_s6 + $0x230] sm:$0xff] }
0x1de9   :  { %v4117_v9 = vpop.f32.mrf.mxu1 }
0x1dea   :  { %v4121_v4 = vmul.f32 0.35355338, %v4117_v9 }
0x1deb   :  { %v10201_v12 = vpop.f32.mrf.mxu1 }
0x1dec   :  { %v4122_v8 = vadd.f32 %v4121_v4, %v11969_v59 }
0x1dee   :  { %v4123_v15 = vsel %vm286_vm2, %v4122_v8, -inf }
0x1def   :  { %4124 = vmax.xlane.f32.xlu1 %v4123_v15  ;;  %v9262_v15 = vld [vmem:[%s13312_s8 + $0x17] ss:$0 sm:$0xff] }
0x1e00   :  { %4134 = vrot.lane.b32.xlu1 %v11956_v52, %s11115_s20 }
0x1e04   :  { %4214 = vrot.lane.b32.xlu1 %v3861_v36, %s11116_s21 }
0x1e78   :  { %v4125_v11 = vpop.xlane.xlu1 %4124 }
0x1e79   :  { %v4126_v18 = vsub.f32 %v4122_v8, %v4125_v11 }
0x1e7b   :  { %v4127_v19 = vmul.f32 1.442695, %v4126_v18  ;;  %v9263_v18 = vld [vmem:[%s13312_s8 + $0x18] ss:$0 sm:$0xff] }
0x1e7c   :  { %v4135_v52 = vpop.permute.xlu1 %4134 }
0x1e7d   :  { %10845 = vpow2.f32 %v4127_v19 }
0x1e80   :  { %v4215_v31 = vpop.permute.xlu1 %4214 }
0x1e81   :  { %v4225_v33 = vsel %vm873_vm11, %v11990_v20, %v4215_v31  ;;  %v12199_v31 = vld [vmem:[%s13311_s6 + $0x20] sm:$0xff] }
0x1e8a   :  { %v10846_v23 = vpop.eup %10845 }
0x1e8b   :  { %v4129_v3 = vsel %vm286_vm2, %v10846_v23, 0.0 }
0x1e8c   :  { %4130 = vadd.xlane.f32.xlu0 %v4129_v3  ;;  %v101_v3 = vld [vmem:[%s13311_s6 + $0x228] sm:$0xff] }
0x1ea2   :  { %4136 = vrot.lane.b32.xlu0 %v11954_v48, %s11115_s20  ;;  %v99_v48 = vld [vmem:[%s13311_s6 + $0x218] sm:$0xff] }
0x1ea6   :  { %4218 = vrot.lane.b32.xlu0 %v4035_v5, %s11117_s22  ;;  %v103_v5 = vld [vmem:[%s13311_s6 + $0x238] sm:$0xff] }
0x1f15   :  { %v4131_v59 = vpop.xlane.xlu0 %4130 }
0x1f16   :  { %10847 = vrcp.f32 %v4131_v59  ;;  %v100_v59 = vld [vmem:[%s13311_s6 + $0x220] sm:$0xff] }
0x1f19   :  { %v4137_v10 = vpop.permute.xlu0 %4136 }
0x1f1a   :  { %10203 = vmatpush3.msra.mxu0 %v4137_v10  ;;  %v12171_v10 = vld [vmem:[%s13311_s6 + $0x38] sm:$0xff] }
0x1f1b   :  { %10204 = vmatprep.subr.mxu0 %v11112_v13 }
0x1f1c   :  { %10205 = vmatpush3.msra.mxu0 %v4135_v52  ;;  %v9264_v52 = vld [vmem:[%s13312_s8 + $0x19] ss:$0 sm:$0xff] }
0x1f1d   :  { %10209 = vmatprep.subr.mxu0 %v11112_v13  ;;  %v4219_v32 = vpop.permute.xlu0 %4218 }
0x1f1e   :  { %v4226_v34 = vsel %vm286_vm2, %v4225_v33, %v4219_v32  ;;  %v12206_v32 = vld [vmem:[%s13311_s6 + $0x18] sm:$0xff] }
0x1f23   :  { %v10848_v24 = vpop.eup %10847 }
0x1f24   :  { %v4133_v26 = vmul.f32 %v10848_v24, %v10846_v23 }
0x1f26   :  { %10207 = vmatmul.mubr.msk.f32.vlgmr.msra.gmra.mxu0 %vm286_vm2, %v4133_v26 }
0x1f27   :  { %10217 = vmatprep.mubr.msk.f32.mxu0 %vm11119_vm13, %v11112_v13  ;;  %10210 = vmatpush3.msra.mxu0 %v99_v48 }
0x1f28   :  { %10211 = vmatprep.subr.mxu0 %v11112_v13 }
0x1f29   :  { %10212 = vmatpush3.msra.mxu0 %v98_v28 }
0x1f2a   :  { %10213 = vmatprep.subr.mxu0 %v11112_v13 }
0x1f2b   :  { %10214 = vmatpush3.msra.mxu0 %v97_v58 }
0x1f2c   :  { %10215 = vmatprep.subr.mxu0 %v11112_v13 }
0x1f2d   :  { %10216 = vmatpush3.msra.mxu0 %v96_v57 }
0x1f2e   :  { %10231 = vmatprep.subr.mxu0 %v11112_v13 }
0x1fe6   :  { %v4209_v29 = vpop.f32.mrf.mxu0 }
0x1fe7   :  { %4222 = vrot.lane.b32.xlu1 %v4209_v29, %s11118_s10  ;;  %v12185_v29 = vld [vmem:[%s13311_s6 + $0x30] sm:$0xff] }
0x1fe8   :  { %v10208_v30 = vpop.f32.mrf.mxu0 }
0x1fe9   :  { %v12192_v30 = vld [vmem:[%s13311_s6 + $0x28] sm:$0xff] }
0x2059   :  { %v4223_v37 = vpop.permute.xlu1 %4222 }
0x205a   :  { %v4227_v38 = vsel %vm1710_vm12, %v4226_v34, %v4223_v37  ;;  %v12213_v34 = vld [vmem:[%s13311_s6 + $0x10] sm:$0xff]  ;;  %v12221_v37 = vld [vmem:[%s13311_s6 + $0x8] sm:$0xff] }
0x205b   :  { %10218 = vmatmul.mubr.msk.f32.vlgmr.msra.gmra.mxu0 %vm497_vm9, %v4227_v38  ;;  %v12228_v38 = vld [vmem:[%s13311_s6] sm:$0xff] }
0x205c   :  { %10247 = vmatprep.mubr.msk.f32.mxu0 %vm11119_vm13, %v11112_v13  ;;  %10232 = vmatpush3.msra.mxu0 %v107_v44  ;;  %v10982_v44 = vld [vmem:[%s13311_s6 + $0x58] sm:$0xff] }
0x205d   :  { %10233 = vmatprep.subr.mxu0 %v11112_v13 }
0x205e   :  { %10234 = vmatpush3.msra.mxu0 %v106_v0 }
0x205f   :  { %10235 = vmatprep.subr.mxu0 %v11112_v13 }
0x2060   :  { %10236 = vmatpush3.msra.mxu0 %v105_v1  ;;  %v10983_v1 = vld [vmem:[%s13311_s6 + $0x50] sm:$0xff] }
0x2061   :  { %10237 = vmatprep.subr.mxu0 %v11112_v13 }
0x2062   :  { %10238 = vmatpush3.msra.mxu0 %v104_v41  ;;  %v10985_v41 = vld [vmem:[%s13311_s6 + $0x40] sm:$0xff] }
0x2063   :  { %10239 = vmatprep.subr.mxu0 %v11112_v13 }
0x2064   :  { %10240 = vmatpush3.msra.mxu0 %v103_v5 }
0x2065   :  { %10241 = vmatprep.subr.mxu0 %v11112_v13 }
0x2066   :  { %10242 = vmatpush3.msra.mxu0 %v102_v2  ;;  %v10986_v2 = vld [vmem:[%s13311_s6 + $0x98] sm:$0xff] }
0x2067   :  { %10243 = vmatprep.subr.mxu0 %v11112_v13 }
0x2068   :  { %10244 = vmatpush3.msra.mxu0 %v101_v3  ;;  %v110_v3 = vld [vmem:[%s13311_s6 + $0x270] sm:$0xff] }
0x2069   :  { %10245 = vmatprep.subr.mxu0 %v11112_v13 }
0x206a   :  { %10246 = vmatpush3.msra.mxu0 %v100_v59  ;;  %v109_v59 = vld [vmem:[%s13311_s6 + $0x268] sm:$0xff] }
0x206b   :  { %10280 = vmatprep.subr.mxu0 %v12171_v10 }
0x211b   :  { %v4301_v46 = vpop.f32.mrf.mxu0 }
0x211c   :  { %v4302_v27 = vadd.f32 %v9260_v14, %v4301_v46  ;;  %v9283_v46 = vld [vmem:[%s13310_s2 + $0x10] sm:$0xff] }
0x211d   :  { %v10219_v36 = vpop.f32.mrf.mxu0 }
0x211e   :  { %v4305_v40 = vadd.f32 %v4302_v27, %v11911_v25  ;;  %v12100_v25 = vld [vmem:[%s13309_s1 + $0x10] sm:$0xff]  ;;  %v12237_v27 = vcvt.s32.f32 %v9283_v46  ;;  %v9266_v36 = vld [vmem:[%s13312_s8 + $0x1a] ss:$0 sm:$0xff] }
0x211f   :  { %vm4860_vm7 = vcmp.ge.s32.totalorder %v12100_v25, 2  ;;  %vm4854_vm0 = vcmp.eq.s32.totalorder %v12100_v25, 0 }
0x2120   :  { %v4306_v20 = vsel %vm497_vm9, %v4305_v40, 0.0  ;;  %v9291_v60 = vsel %vm4860_vm7, 1.0, %v11112_v13 }
0x2121   :  { %4307 = vadd.xlane.f32.xlu0 %v4306_v20 }
0x2137   :  { %4762 = vperm.xlu0 %10745, %v4752_v45  }
0x213b   :  { %4873 = vperm.xlu0 %10745, %v9292_v35  }
0x213f   :  { %5077 = vperm.xlu0 %10745, %v12100_v25  }
0x21aa   :  { %v4308_v21 = vpop.xlane.xlu0 %4307 }
0x21ab   :  { %v4309_v43 = vmul.f32 0.03125, %v4308_v21 }
0x21ad   :  { %v4310_v47 = vsub.f32 %v4305_v40, %v4309_v43 }
0x21af   :  { %v4311_v51 = vmul.f32 %v4310_v47, %v4310_v47 }
0x21b1   :  { %v4312_v53 = vsel %vm497_vm9, %v4311_v51, 0.0  ;;  %v9284_v51 = vld [vmem:[%s13310_s2 + $0x18] sm:$0xff] }
0x21b2   :  { %4313 = vadd.xlane.f32.xlu1 %v4312_v53  ;;  %v4763_v24 = vpop.permute.xlu0 %4762  ;;  %v12254_v63 = vcvt.s32.f32 %v9284_v51 }
0x21b3   :  { %vm4767_vm8 = vcmp.eq.s32.totalorder %v11251_v22, %v4763_v24 }
0x21b4   :  { %v9285_v57 = vsel %vm4767_vm8, 1.0, %v11112_v13  ;;  %vm4715_vm8 = vcmask 6144  }
0x21b6   :  { %v4874_v43 = vpop.permute.xlu0 %4873 }
0x21ba   :  { %v5078_v49 = vpop.permute.xlu0 %5077 }
0x21bb   :  { %vm5082_vm14 = vcmp.eq.s32.totalorder %v11251_v22, %v5078_v49 }
0x21bc   :  { %v9299_v50 = vsel %vm5082_vm14, 1.0, %v11112_v13  ;;  %vm9133_vm14 = vcmask 16384  }
0x21c3   :  { %4765 = vperm.xlu1 %10746, %v4753_v56  }
0x21c7   :  { %4868 = vperm.xlu1 %10746, %v9291_v60  }
0x21cb   :  { %5080 = vperm.xlu1 %10746, %v12088_v16  }
0x223b   :  { %v4314_v9 = vpop.xlane.xlu1 %4313 }
0x223c   :  { %v4315_v4 = vmul.f32 0.03125, %v4314_v9  ;;  %v10987_v9 = vld [vmem:[%s13311_s6 + $0x90] sm:$0xff] }
0x223e   :  { %v4316_v12 = vadd.f32 1e-05, %v4315_v4  ;;  %v10988_v4 = vld [vmem:[%s13311_s6 + $0x88] sm:$0xff] }
0x223f   :  { %v4766_v33 = vpop.permute.xlu1 %4765 }
0x2240   :  { %10849 = vrsqrt.f32 %v4316_v12  ;;  %vm4768_vm10 = vcmp.eq.s32.totalorder %v11251_v22, %v4766_v33  ;;  %v10989_v12 = vld [vmem:[%s13311_s6 + $0x80] sm:$0xff] }
0x2241   :  { %v9286_v14 = vsel %vm4768_vm10, 1.0, %v11112_v13  ;;  %vm9131_vm10 = vcmask 15360  }
0x2243   :  { %v4869_v56 = vpop.permute.xlu1 %4868 }
0x2247   :  { %v5081_v0 = vpop.permute.xlu1 %5080 }
0x2248   :  { %vm5083_vm15 = vcmp.eq.s32.totalorder %v11251_v22, %v5081_v0 }
0x2249   :  { %v9300_v5 = vsel %vm5083_vm15, 1.0, %v11112_v13 }
0x224d   :  { %v10850_v8 = vpop.eup %10849 }
0x224e   :  { %v4318_v11 = vmul.f32 %v10850_v8, %v4310_v47 }
0x2250   :  { %v4323_v19 = vmul.f32 %v9262_v15, %v4318_v11 }
0x2252   :  { %v4328_v23 = vadd.f32 %v9263_v18, %v4323_v19 }
0x2254   :  { %10229 = vmatmul.mubr.msk.f32.vlgmr.msra.gmra.mxu1 %vm497_vm9, %v4328_v23 }
0x2255   :  { %10258 = vmatprep.mubr.msk.f32.mxu1 %vm11119_vm13, %v11112_v13 }
0x2314   :  { %v4402_v26 = vpop.f32.mrf.mxu1 }
0x2315   :  { %v4403_v48 = vadd.f32 %v9264_v52, %v4402_v26  ;;  %v108_v52 = vld [vmem:[%s13311_s6 + $0x260] sm:$0xff] }
0x2316   :  { %v10230_v28 = vpop.f32.mrf.mxu1 }
0x2317   :  { %v4406_v58 = vmax.f32 %v4403_v48, 0.0  ;;  %v9289_v48 = vsel %vm4854_vm0, 1.0, %v11112_v13 }
0x2319   :  { %10248 = vmatmul.mubr.msk.f32.vlgmr.msra.gmra.mxu0 %vm180_vm3, %v4406_v58  ;;  %v9290_v58 = vsel %vm4855_vm1, 1.0, %v11112_v13 }
0x231a   :  { %10281 = vmatpush3.msra.mxu0 %v12171_v10  ;;  %10296 = vmatprep.mubr.msk.f32.mxu0 %vm180_vm3, %v9285_v57  ;;  %v10752_v46 = vpack.i.bf16 %v9290_v58, %v9289_v48 }
0x231b   :  { %10282 = vmatprep.subr.mxu0 %v12185_v29 }
0x231c   :  { %10283 = vmatpush3.msra.mxu0 %v12185_v29 }
0x231d   :  { %10284 = vmatprep.subr.mxu0 %v12192_v30 }
0x231e   :  { %10285 = vmatpush3.msra.mxu0 %v12192_v30 }
0x231f   :  { %10286 = vmatprep.subr.mxu0 %v12199_v31 }
0x2320   :  { %10287 = vmatpush3.msra.mxu0 %v12199_v31 }
0x2321   :  { %10288 = vmatprep.subr.mxu0 %v12206_v32 }
0x2322   :  { %10289 = vmatpush3.msra.mxu0 %v12206_v32 }
0x2323   :  { %10290 = vmatprep.subr.mxu0 %v12213_v34 }
0x2324   :  { %10291 = vmatpush3.msra.mxu0 %v12213_v34 }
0x2325   :  { %10292 = vmatprep.subr.mxu0 %v12221_v37 }
0x2326   :  { %10293 = vmatpush3.msra.mxu0 %v12221_v37 }
0x2327   :  { %10294 = vmatprep.subr.mxu0 %v12228_v38 }
0x2328   :  { %10295 = vmatpush3.msra.mxu0 %v12228_v38 }
0x2329   :  { %10297 = vmatmul.mubr.msk.f32.vlgmr.msra.gmra.mxu0 %vm180_vm3, %v9286_v14 }
0x232a   :  { %10303 = vmatprep.mubr.msk.f32.mxu0 %vm286_vm2, %v12237_v27 }
0x23d9   :  { %v4480_v40 = vpop.f32.mrf.mxu0 }
0x23da   :  { %v4481_v20 = vadd.f32 %v9266_v36, %v4480_v40  ;;  %v4959_v36 = vsub.f32 1.0, %v9289_v48  ;;  %v4960_v40 = vsub.f32 1.0, %v9290_v58 }
0x23db   :  { %v10249_v45 = vpop.f32.mrf.mxu0 }
0x23dc   :  { %v4484_v35 = vadd.f32 %v4481_v20, %v4328_v23  ;;  %v111_v23 = vld [vmem:[%s13311_s6 + $0x278] sm:$0xff] }
0x23dd   :  { %10251 = vmatpush3.msra.mxu1 %v111_v23 }
0x23de   :  { %v4485_v21 = vsel %vm497_vm9, %v4484_v35, 0.0  ;;  %10252 = vmatprep.subr.mxu1 %v11112_v13 }
0x23df   :  { %4486 = vadd.xlane.f32.xlu0 %v4485_v21  ;;  %10253 = vmatpush3.msra.mxu1 %v110_v3 }
0x23e0   :  { %10254 = vmatprep.subr.mxu1 %v11112_v13 }
0x23e1   :  { %10255 = vmatpush3.msra.mxu1 %v109_v59 }
0x23e2   :  { %10256 = vmatprep.subr.mxu1 %v11112_v13 }
0x23e3   :  { %10257 = vmatpush3.msra.mxu1 %v108_v52 }
0x23e4   :  { %10261 = vmatprep.subr.mxu1 %v11112_v13 }
0x23e9   :  { %v12245_v47 = vpop.f32.mrf.mxu0 }
0x23ea   :  { %v4877_v53 = vmul.f32 %v12245_v47, %v4874_v43  ;;  %v9269_v43 = vld [vmem:[%s13312_s8 + $0x1c] ss:$0 sm:$0xff] }
0x23eb   :  { %v12251_v60 = vpop.f32.mrf.mxu0 }
0x23ec   :  { %v4876_v62 = vmul.f32 %v4869_v56, %v12251_v60  ;;  %10299 = vmatprep.subr.mxu0 %v4877_v53 }
0x23ed   :  { %10300 = vmatpush3.msra.mxu0 %v4877_v53 }
0x23ee   :  { %10301 = vmatprep.subr.mxu0 %v4876_v62 }
0x23ef   :  { %10302 = vmatpush3.msra.mxu0 %v4876_v62 }
0x23f0   :  { %10304 = vmatmul.mubr.msk.f32.vlgmr.msra.gmra.mxu0 %vm286_vm2, %v12254_v63  ;;  %10306 = vmatprep.subr.msk.mxu0 %vm4861_vm6, %v11111_v6 }
0x23f1   :  { %10307 = vmatpush3.msk.msra.mxu0 %vm4861_vm6, %v11111_v6  ;;  %10310 = vmatprep.mubr.msk.f32.mxu0 %vm286_vm2, %v12237_v27 }
0x23f2   :  { %10308 = vmatprep.subr.msk.mxu0 %vm4860_vm7, %v11111_v6 }
0x23f3   :  { %10309 = vmatpush3.msk.msra.mxu0 %vm4860_vm7, %v11111_v6  ;;  %v10984_v6 = vld [vmem:[%s13311_s6 + $0x48] sm:$0xff] }
0x23f4   :  { %10311 = vmatmul.mubr.msk.f32.vlgmr.msra.gmra.mxu0 %vm286_vm2, %v12254_v63  ;;  %10313 = vmatprep.subr.mxu0 %v10982_v44 }
0x23f5   :  { %10314 = vmatpush3.msra.mxu0 %v10982_v44  ;;  %10321 = vmatprep.mubr.msk.f32.mxu0 %vm497_vm9, %v9299_v50 }
0x23f6   :  { %10315 = vmatprep.subr.mxu0 %v10983_v1 }
0x23f7   :  { %10316 = vmatpush3.msra.mxu0 %v10983_v1 }
0x23f8   :  { %10317 = vmatprep.subr.mxu0 %v10984_v6 }
0x23f9   :  { %10318 = vmatpush3.msra.mxu0 %v10984_v6 }
0x23fa   :  { %10319 = vmatprep.subr.mxu0 %v10985_v41 }
0x23fb   :  { %10320 = vmatpush3.msra.mxu0 %v10985_v41 }
0x23fc   :  { %10322 = vmatmul.mubr.msk.f32.vlgmr.msra.gmra.mxu0 %vm497_vm9, %v9300_v5  ;;  %10335 = vmatprep.subr.mxu0 %v10986_v2 }
0x23fd   :  { %10336 = vmatpush3.msra.mxu0 %v10986_v2 }
0x23fe   :  { %10337 = vmatprep.subr.mxu0 %v10987_v9 }
0x23ff   :  { %10338 = vmatpush3.msra.mxu0 %v10987_v9 }
0x2400   :  { %10339 = vmatprep.subr.mxu0 %v10988_v4 }
0x2401   :  { %10340 = vmatpush3.msra.mxu0 %v10988_v4 }
0x2402   :  { %10341 = vmatprep.subr.mxu0 %v10989_v12 }
0x2403   :  { %10342 = vmatpush3.msra.mxu0 %v10989_v12  ;;  %v12365_v12 = vld [vmem:[%s13312_s8] ss:$0 sm:$0xff] }
0x2468   :  { %v4487_v8 = vpop.xlane.xlu0 %4486 }
0x2469   :  { %v4488_v15 = vmul.f32 0.03125, %v4487_v8 }
0x246b   :  { %v4489_v11 = vsub.f32 %v4484_v35, %v4488_v15  ;;  %v9268_v35 = vld [vmem:[%s13312_s8 + $0x1b] ss:$0 sm:$0xff] }
0x246d   :  { %v4490_v18 = vmul.f32 %v4489_v11, %v4489_v11 }
0x246f   :  { %v4491_v19 = vsel %vm497_vm9, %v4490_v18, 0.0 }
0x2470   :  { %4492 = vadd.xlane.f32.xlu1 %v4491_v19 }
0x24b0   :  { %v10305_v24 = vpop.f32.mrf.mxu0 }
0x24b2   :  { %v4950_v26 = vpop.f32.mrf.mxu0 }
0x24b4   :  { %v10312_v28 = vpop.f32.mrf.mxu0 }
0x24b5   :  { %v5045_v57 = vadd.f32 1e-10, %v10312_v28 }
0x24b6   :  { %v5039_v33 = vpop.f32.mrf.mxu0 }
0x24b7   :  { %v5040_v14 = vadd.f32 1e-10, %v5039_v33  ;;  %5055 = vperm.xlu1 %10746, %v5045_v57  }
0x24b9   :  { %5050 = vperm.xlu0 %10745, %v5040_v14  }
0x24bb   :  { %10753 = vperm.xlu1 %10746, %v10752_v46  }
0x24bc   :  { %v10323_v1 = vpop.f32.mrf.mxu0 }
0x24bd   :  { %4963 = vperm.xlu0 %10745, %v4959_v36   ;;  %v10992_v36 = vld [vmem:[%s13311_s6 + $0x70] sm:$0xff] }
0x24be   :  { %v5160_v4 = vpop.f32.mrf.mxu0 }
0x24c1   :  { %4968 = vperm.xlu0 %10745, %v4960_v40   ;;  %v10993_v40 = vld [vmem:[%s13311_s6 + $0x68] sm:$0xff] }
0x24f9   :  { %v4493_v25 = vpop.xlane.xlu1 %4492 }
0x24fa   :  { %v4494_v20 = vmul.f32 0.03125, %v4493_v25  ;;  %v10994_v25 = vld [vmem:[%s13311_s6 + $0x60] sm:$0xff] }
0x24fc   :  { %v4495_v16 = vadd.f32 1e-05, %v4494_v20  ;;  %v10995_v20 = vld [vmem:[%s13311_s6 + $0xb8] sm:$0xff] }
0x24fe   :  { %10851 = vrsqrt.f32 %v4495_v16 }
0x250b   :  { %v10852_v45 = vpop.eup %10851 }
0x250c   :  { %v4497_v21 = vmul.f32 %v10852_v45, %v4489_v11 }
0x250e   :  { %v4502_v51 = vmul.f32 %v9268_v35, %v4497_v21 }
0x2510   :  { %v4507_v53 = vadd.f32 %v9269_v43, %v4502_v51 }
0x2512   :  { %10259 = vmatmul.mubr.msk.f32.vlgmr.msra.gmra.mxu1 %vm497_vm9, %v4507_v53 }
0x2513   :  { %10262 = vmatpush3.xpose.msk.msra.mxu1 %vm497_vm9, %v12171_v10  ;;  %10277 = vmatprep.mubr.msk.f32.mxu1 %vm11119_vm13, %v11112_v13  ;;  %v10990_v10 = vld [vmem:[%s13311_s6 + $0x78] sm:$0xff] }
0x2514   :  { %10263 = vmatprep.subr.mxu1 %v11112_v13 }
0x2517   :  { %10264 = vmatpush3.xpose.msk.msra.mxu1 %vm497_vm9, %v12185_v29 }
0x2518   :  { %10265 = vmatprep.subr.mxu1 %v11112_v13 }
0x251b   :  { %10266 = vmatpush3.xpose.msk.msra.mxu1 %vm497_vm9, %v12192_v30 }
0x251c   :  { %10267 = vmatprep.subr.mxu1 %v11112_v13 }
0x251f   :  { %10268 = vmatpush3.xpose.msk.msra.mxu1 %vm497_vm9, %v12199_v31 }
0x2520   :  { %10269 = vmatprep.subr.mxu1 %v11112_v13 }
0x2523   :  { %10270 = vmatpush3.xpose.msk.msra.mxu1 %vm497_vm9, %v12206_v32 }
0x2524   :  { %10271 = vmatprep.subr.mxu1 %v11112_v13 }
0x2527   :  { %10272 = vmatpush3.xpose.msk.msra.mxu1 %vm497_vm9, %v12213_v34 }
0x2528   :  { %10273 = vmatprep.subr.mxu1 %v11112_v13 }
0x252b   :  { %10274 = vmatpush3.xpose.msk.msra.mxu1 %vm497_vm9, %v12221_v37 }
0x252c   :  { %10275 = vmatprep.subr.mxu1 %v11112_v13 }
0x252f   :  { %10276 = vmatpush3.xpose.msk.msra.mxu1 %vm497_vm9, %v12228_v38 }
0x2530   :  { %10324 = vmatprep.subr.mxu1 %v10990_v10 }
0x2532   :  { %v5056_v29 = vpop.permute.xlu1 %5055 }
0x2533   :  { %10853 = vrcp.f32 %v5056_v29 }
0x2534   :  { %v5051_v30 = vpop.permute.xlu0 %5050 }
0x2535   :  { %10855 = vrcp.f32 %v5051_v30 }
0x2536   :  { %v10754_v32 = vpop.permute.xlu1 %10753 }
0x2537   :  { %v10756_v37 = vunpack.i.h.bf16 %v10754_v32  ;;  %v10755_v44 = vunpack.i.l.bf16 %v10754_v32 }
0x2538   :  { %v4964_v31 = vpop.permute.xlu0 %4963 }
0x2539   :  { %v4971_v41 = vmul.f32 %v4964_v31, %v12251_v60  ;;  %v9270_v60 = vld [vmem:[%s13312_s8 + $0x1d] ss:$0 sm:$0xff]  ;;  %v12392_v31 = vld [vmem:[%s13312_s8 + $0x1] ss:$0 sm:$0xff] }
0x253c   :  { %v4969_v56 = vpop.permute.xlu0 %4968 }
0x253d   :  { %v4972_v38 = vmul.f32 %v12245_v47, %v4969_v56  ;;  %v12399_v56 = vld [vmem:[%s13312_s8 + $0x2] ss:$0 sm:$0xff] }
0x2540   :  { %v10854_v34 = vpop.eup %10853 }
0x2541   :  { %v5061_v62 = vmul.f32 %v10854_v34, %v10305_v24 }
0x2542   :  { %v10856_v49 = vpop.eup %10855 }
0x2543   :  { %v5073_v50 = vmul.f32 %v10756_v37, %v5061_v62  ;;  %v5059_v0 = vmul.f32 %v10856_v49, %v4950_v26  ;;  %v10998_v49 = vld [vmem:[%s13311_s6 + $0xb0] sm:$0xff] }
0x2545   :  { %v5072_v6 = vmul.f32 %v10755_v44, %v5059_v0  ;;  %v5075_v5 = vadd.f32 %v5073_v50, %v4972_v38  ;;  %v10999_v50 = vld [vmem:[%s13311_s6 + $0xa8] sm:$0xff]  ;;  %v11000_v44 = vld [vmem:[%s13311_s6 + $0xa0] sm:$0xff] }
0x2547   :  { %v5074_v2 = vadd.f32 %v5072_v6, %v4971_v41  ;;  %v5170_v9 = vadd.f32 %v10323_v1, %v5075_v5  ;;  %v11001_v41 = vld [vmem:[%s13312_s8 + $0x4] ss:$0 sm:$0xff] }
0x2549   :  { %v5172_v8 = vadd.f32 %v12365_v12, %v5170_v9  ;;  %v5169_v15 = vadd.f32 %v5160_v4, %v5074_v2  ;;  %v11002_v4 = vld [vmem:[%s13312_s8 + $0x3] ss:$0 sm:$0xff] }
0x254b   :  { %v5176_v11 = vsel %vm497_vm9, %v5172_v8, 0.0  ;;  %v5171_v47 = vadd.f32 %v12365_v12, %v5169_v15 }
0x254c   :  { %5177 = vadd.xlane.f32.xlu0 %v5176_v11 }
0x254d   :  { %v5173_v18 = vsel %vm497_vm9, %v5171_v47, 0.0 }
0x254e   :  { %5174 = vadd.xlane.f32.xlu1 %v5173_v18  ;;  %v11003_v18 = vld [vmem:[%s13312_s8 + $0x5] ss:$0 sm:$0xff] }
0x25d2   :  { %v4581_v19 = vpop.f32.mrf.mxu1 }
0x25d3   :  { %v4582_v23 = vadd.f32 %v9270_v60, %v4581_v19 }
0x25d4   :  { %v10260_v3 = vpop.f32.mrf.mxu1 }
0x25d5   :  { %10857 = vtanh.f32 %v4582_v23  ;;  %v5178_v59 = vpop.xlane.xlu0 %5177  ;;  %v5204_v3 = vsub.f32 1.0, %v12254_v63 }
0x25d6   :  { %v5180_v52 = vmul.f32 0.03125, %v5178_v59  ;;  %v5203_v59 = vsub.f32 1.0, %v12237_v27 }
0x25d7   :  { %v5175_v24 = vpop.xlane.xlu1 %5174 }
0x25d8   :  { %v5182_v26 = vsub.f32 %v5172_v8, %v5180_v52  ;;  %v5179_v48 = vmul.f32 0.03125, %v5175_v24  ;;  %v12469_v52 = vmul.f32 -10000.0, %v5204_v3 }
0x25da   :  { %v5181_v28 = vsub.f32 %v5171_v47, %v5179_v48  ;;  %v5184_v58 = vmul.f32 %v5182_v26, %v5182_v26  ;;  %v12471_v48 = vmul.f32 -10000.0, %v5203_v59 }
0x25dc   :  { %v5188_v57 = vsel %vm497_vm9, %v5184_v58, 0.0  ;;  %v5183_v33 = vmul.f32 %v5181_v28, %v5181_v28 }
0x25dd   :  { %5189 = vadd.xlane.f32.xlu1 %v5188_v57 }
0x25de   :  { %v5185_v14 = vsel %vm497_vm9, %v5183_v33, 0.0 }
0x25df   :  { %5186 = vadd.xlane.f32.xlu0 %v5185_v14 }
0x25e2   :  { %v10858_v46 = vpop.eup %10857 }
0x25e3   :  { %10278 = vmatmul.mubr.msk.f32.vlgmr.msra.gmra.mxu1 %vm497_vm9, %v10858_v46 }
0x25e4   :  { %10325 = vmatpush3.msra.mxu1 %v10990_v10 }
0x25e5   :  { %10326 = vmatprep.subr.mxu1 %v10992_v36 }
0x25e6   :  { %10327 = vmatpush3.msra.mxu1 %v10992_v36 }
0x25e7   :  { %10328 = vmatprep.subr.mxu1 %v10993_v40 }
0x25e8   :  { %10329 = vmatpush3.msra.mxu1 %v10993_v40 }
0x25e9   :  { %10330 = vmatprep.subr.mxu1 %v10994_v25 }
0x25ea   :  { %10331 = vmatpush3.msra.mxu1 %v10994_v25 }
0x25eb   :  { %10346 = vmatprep.subr.mxu1 %v10995_v20 }
0x2666   :  { %v5190_v16 = vpop.xlane.xlu1 %5189 }
0x2667   :  { %v5192_v45 = vmul.f32 0.03125, %v5190_v16 }
0x2668   :  { %v5187_v35 = vpop.xlane.xlu0 %5186 }
0x2669   :  { %v5194_v21 = vadd.f32 1e-05, %v5192_v45  ;;  %v5191_v43 = vmul.f32 0.03125, %v5187_v35 }
0x266b   :  { %10859 = vrsqrt.f32 %v5194_v21  ;;  %v5193_v51 = vadd.f32 1e-05, %v5191_v43 }
0x266d   :  { %10861 = vrsqrt.f32 %v5193_v51 }
0x2678   :  { %v10860_v53 = vpop.eup %10859 }
0x2679   :  { %v5198_v10 = vmul.f32 %v10860_v53, %v5182_v26 }
0x267a   :  { %v10862_v29 = vpop.eup %10861 }
0x267b   :  { %v5197_v30 = vmul.f32 %v10862_v29, %v5181_v28  ;;  %v5200_v32 = vmul.f32 %v12392_v31, %v5198_v10 }
0x267d   :  { %v5199_v34 = vmul.f32 %v12392_v31, %v5197_v30  ;;  %v12405_v37 = vadd.f32 %v12399_v56, %v5200_v32 }
0x267f   :  { %v12402_v62 = vadd.f32 %v12399_v56, %v5199_v34 }
0x2681   :  { %10332 = vmatprep.mubr.msk.f32.mxu1 %vm497_vm9, %v12402_v62  ;;  %10343 = vmatprep.mubr.msk.f32.mxu0 %vm497_vm9, %v12402_v62 }
0x2682   :  { %10333 = vmatmul.mubr.msk.f32.vlgmr.msra.gmra.mxu1 %vm497_vm9, %v12405_v37  ;;  %10344 = vmatmul.mubr.msk.f32.vlgmr.msra.gmra.mxu0 %vm497_vm9, %v12405_v37 }
0x2683   :  { %10347 = vmatpush3.msra.mxu1 %v10995_v20  ;;  %10354 = vmatprep.mubr.msk.f32.mxu1 %vm497_vm9, %v12402_v62 }
0x2684   :  { %10348 = vmatprep.subr.mxu1 %v10998_v49 }
0x2685   :  { %10349 = vmatpush3.msra.mxu1 %v10998_v49 }
0x2686   :  { %10350 = vmatprep.subr.mxu1 %v10999_v50 }
0x2687   :  { %10351 = vmatpush3.msra.mxu1 %v10999_v50 }
0x2688   :  { %10352 = vmatprep.subr.mxu1 %v11000_v44 }
0x2689   :  { %10353 = vmatpush3.msra.mxu1 %v11000_v44 }
0x268a   :  { %10355 = vmatmul.mubr.msk.f32.vlgmr.msra.gmra.mxu1 %vm497_vm9, %v12405_v37 }
0x26a3   :  { %v12428_v0 = vpop.f32.mrf.mxu1 }
0x26a5   :  { %v10279_v38 = vpop.f32.mrf.mxu1 }
0x2742   :  { %v10334_v1 = vpop.f32.mrf.mxu1  ;;  %v10345_v6 = vpop.f32.mrf.mxu0 }
0x2743   :  { %v12433_v5 = vadd.f32 %v11001_v41, %v10345_v6  ;;  %v12452_v47 = vadd.f32 %v11002_v4, %v10334_v1 }
0x2744   :  { %v5279_v2 = vpop.f32.mrf.mxu1  ;;  %v5354_v9 = vpop.f32.mrf.mxu0 }
0x2745   :  { %v12438_v8 = vadd.f32 %v11002_v4, %v5279_v2  ;;  %v12440_v15 = vadd.f32 %v11001_v41, %v5354_v9  ;;  %10357 = vmatprep.subr.msk.mxu0 %vm873_vm11, %v12433_v5 }
0x2746   :  { %10358 = vmatpush3.xpose.msk.msra.mxu0 %vm873_vm11, %v12433_v5 }
0x2747   :  { %10359 = vmatprep.subr.msk.mxu0 %vm873_vm11, %v12440_v15  ;;  %10361 = vmatprep.mubr.msk.f32.mxu0 %vm873_vm11, %v12438_v8 }
0x274a   :  { %v10356_v11 = vpop.f32.mrf.mxu1  ;;  %10360 = vmatpush3.xpose.msk.msra.mxu0 %vm873_vm11, %v12440_v15 }
0x274b   :  { %v12457_v60 = vadd.f32 %v11003_v18, %v10356_v11 }
0x274c   :  { %v5429_v19 = vpop.f32.mrf.mxu1 }
0x274d   :  { %v12459_v23 = vadd.f32 %v11003_v18, %v5429_v19  ;;  %10364 = vmatprep.subr.mxu1 %v12457_v60  ;;  %10362 = vmatmul.mubr.msk.f32.vlgmr.msra.gmra.mxu0 %vm873_vm11, %v12452_v47 }
0x274e   :  { %10365 = vmatpush3.msra.mxu1 %v12457_v60 }
0x274f   :  { %10366 = vmatprep.subr.mxu1 %v12459_v23 }
0x2750   :  { %10367 = vmatpush3.msra.mxu1 %v12459_v23 }
0x280d   :  { %v10363_v24 = vpop.f32.mrf.mxu0 }
0x280e   :  { %v5526_v26 = vmul.f32 0.35355338, %v10363_v24 }
0x280f   :  { %v5516_v28 = vpop.f32.mrf.mxu0 }
0x2810   :  { %v5528_v58 = vadd.f32 %v5526_v26, %v12469_v52  ;;  %v5525_v57 = vmul.f32 0.35355338, %v5516_v28 }
0x2812   :  { %v5527_v33 = vadd.f32 %v5525_v57, %v12471_v48  ;;  %v5532_v14 = vsel %vm286_vm2, %v5528_v58, -inf }
0x2813   :  { %5533 = vmax.xlane.f32.xlu1 %v5532_v14 }
0x2814   :  { %v5529_v46 = vsel %vm286_vm2, %v5527_v33, -inf }
0x2815   :  { %5530 = vmax.xlane.f32.xlu0 %v5529_v46 }
0x289c   :  { %v5534_v63 = vpop.xlane.xlu1 %5533 }
0x289d   :  { %v5536_v27 = vsub.f32 %v5528_v58, %v5534_v63 }
0x289e   :  { %v5531_v36 = vpop.xlane.xlu0 %5530 }
0x289f   :  { %v5539_v40 = vmul.f32 1.442695, %v5536_v27  ;;  %v5535_v25 = vsub.f32 %v5527_v33, %v5531_v36 }
0x28a1   :  { %10863 = vpow2.f32 %v5539_v40  ;;  %v5537_v20 = vmul.f32 1.442695, %v5535_v25 }
0x28a3   :  { %10865 = vpow2.f32 %v5537_v20 }
0x28ae   :  { %v10864_v16 = vpop.eup %10863 }
0x28af   :  { %v5544_v45 = vsel %vm286_vm2, %v10864_v16, 0.0 }
0x28b0   :  { %v10866_v35 = vpop.eup %10865  ;;  %5545 = vadd.xlane.f32.xlu1 %v5544_v45 }
0x28b1   :  { %v5541_v21 = vsel %vm286_vm2, %v10866_v35, 0.0 }
0x28b2   :  { %5542 = vadd.xlane.f32.xlu0 %v5541_v21 }
0x28c1   :  { %5636 = vrot.lane.b32.xlu1 %v12440_v15, %s11113_s16 }
0x28c5   :  { %5632 = vrot.lane.b32.xlu1 %v12438_v8, %s11113_s16 }
0x28c8   :  { %5638 = vrot.lane.b32.xlu0 %v12433_v5, %s11113_s16 }
0x28cc   :  { %5634 = vrot.lane.b32.xlu0 %v12452_v47, %s11113_s16 }
0x2939   :  { %v5546_v43 = vpop.xlane.xlu1 %5545 }
0x293a   :  { %10867 = vrcp.f32 %v5546_v43 }
0x293b   :  { %v5543_v51 = vpop.xlane.xlu0 %5542 }
0x293c   :  { %10869 = vrcp.f32 %v5543_v51 }
0x293d   :  { %v5637_v10 = vpop.permute.xlu1 %5636 }
0x293f   :  { %v5639_v53 = vpop.permute.xlu0 %5638 }
0x2940   :  { %10371 = vmatprep.subr.msk.mxu1 %vm873_vm11, %v5639_v53 }
0x2941   :  { %v5633_v49 = vpop.permute.xlu1 %5632 }
0x2943   :  { %v5635_v50 = vpop.permute.xlu0 %5634 }
0x2947   :  { %v10868_v29 = vpop.eup %10867 }
0x2948   :  { %v5550_v34 = vmul.f32 %v10868_v29, %v10864_v16 }
0x2949   :  { %v10870_v30 = vpop.eup %10869 }
0x294a   :  { %v5549_v32 = vmul.f32 %v10870_v30, %v10866_v35 }
0x294c   :  { %10368 = vmatprep.mubr.msk.f32.mxu1 %vm286_vm2, %v5549_v32 }
0x294d   :  { %10369 = vmatmul.mubr.msk.f32.vlgmr.msra.gmra.mxu1 %vm286_vm2, %v5550_v34 }
0x294e   :  { %10372 = vmatpush3.xpose.msk.msra.mxu1 %vm873_vm11, %v5639_v53  ;;  %10375 = vmatprep.mubr.msk.f32.mxu1 %vm873_vm11, %v5633_v49 }
0x294f   :  { %10373 = vmatprep.subr.msk.mxu1 %vm873_vm11, %v5637_v10 }
0x2952   :  { %10374 = vmatpush3.xpose.msk.msra.mxu1 %vm873_vm11, %v5637_v10 }
0x2955   :  { %10376 = vmatmul.mubr.msk.f32.vlgmr.msra.gmra.mxu1 %vm873_vm11, %v5635_v50 }
0x2a0d   :  { %v12495_v44 = vpop.f32.mrf.mxu1 }
0x2a0f   :  { %v12497_v38 = vpop.f32.mrf.mxu1 }
0x2a15   :  { %v10377_v1 = vpop.f32.mrf.mxu1 }
0x2a16   :  { %v5724_v6 = vmul.f32 0.35355338, %v10377_v1 }
0x2a17   :  { %v5714_v41 = vpop.f32.mrf.mxu1 }
0x2a18   :  { %v5726_v2 = vadd.f32 %v5724_v6, %v12469_v52  ;;  %v5723_v9 = vmul.f32 0.35355338, %v5714_v41 }
0x2a1a   :  { %v5725_v4 = vadd.f32 %v5723_v9, %v12471_v48  ;;  %v5730_v11 = vsel %vm286_vm2, %v5726_v2, -inf }
0x2a1b   :  { %5731 = vmax.xlane.f32.xlu0 %v5730_v11 }
0x2a1c   :  { %v5727_v18 = vsel %vm286_vm2, %v5725_v4, -inf }
0x2a1d   :  { %5728 = vmax.xlane.f32.xlu1 %v5727_v18 }
0x2aa4   :  { %v5732_v19 = vpop.xlane.xlu0 %5731 }
0x2aa5   :  { %v5734_v3 = vsub.f32 %v5726_v2, %v5732_v19 }
0x2aa6   :  { %v5729_v59 = vpop.xlane.xlu1 %5728 }
0x2aa7   :  { %v5737_v24 = vmul.f32 1.442695, %v5734_v3  ;;  %v5733_v26 = vsub.f32 %v5725_v4, %v5729_v59 }
0x2aa9   :  { %10871 = vpow2.f32 %v5737_v24  ;;  %v5735_v28 = vmul.f32 1.442695, %v5733_v26 }
0x2aab   :  { %10873 = vpow2.f32 %v5735_v28 }
0x2ab6   :  { %v10872_v58 = vpop.eup %10871 }
0x2ab7   :  { %v5742_v57 = vsel %vm286_vm2, %v10872_v58, 0.0 }
0x2ab8   :  { %v10874_v33 = vpop.eup %10873  ;;  %5743 = vadd.xlane.f32.xlu1 %v5742_v57 }
0x2ab9   :  { %v5739_v14 = vsel %vm286_vm2, %v10874_v33, 0.0 }
0x2aba   :  { %5740 = vadd.xlane.f32.xlu0 %v5739_v14 }
0x2ac9   :  { %5751 = vrot.lane.b32.xlu1 %v12459_v23, %s11113_s16 }
0x2acd   :  { %5844 = vrot.lane.b32.xlu1 %v12433_v5, %s11114_s19 }
0x2ad0   :  { %5753 = vrot.lane.b32.xlu0 %v12457_v60, %s11113_s16 }
0x2ad1   :  { %5838 = vrot.lane.b32.xlu1 %v12438_v8, %s11114_s19 }
0x2ad4   :  { %5842 = vrot.lane.b32.xlu0 %v12440_v15, %s11114_s19 }
0x2ad8   :  { %5840 = vrot.lane.b32.xlu0 %v12452_v47, %s11114_s19 }
0x2b41   :  { %v5744_v46 = vpop.xlane.xlu1 %5743 }
0x2b42   :  { %10875 = vrcp.f32 %v5744_v46  ;;  %v11004_v46 = vld [vmem:[%s13314_s7 + $0x18] sm:$0xff] }
0x2b43   :  { %v5741_v63 = vpop.xlane.xlu0 %5740 }
0x2b44   :  { %10877 = vrcp.f32 %v5741_v63 }
0x2b45   :  { %v5752_v27 = vpop.permute.xlu1 %5751 }
0x2b47   :  { %v5754_v36 = vpop.permute.xlu0 %5753 }
0x2b48   :  { %10378 = vmatprep.subr.mxu0 %v5754_v36 }
0x2b49   :  { %10379 = vmatpush3.msra.mxu0 %v5754_v36  ;;  %v5845_v40 = vpop.permute.xlu1 %5844  ;;  %v11006_v36 = vld [vmem:[%s13314_s7 + $0x8] sm:$0xff] }
0x2b4a   :  { %10380 = vmatprep.subr.mxu0 %v5752_v27 }
0x2b4b   :  { %10381 = vmatpush3.msra.mxu0 %v5752_v27  ;;  %v5843_v21 = vpop.permute.xlu0 %5842  ;;  %v11005_v27 = vld [vmem:[%s13314_s7 + $0x10] sm:$0xff] }
0x2b4c   :  { %10385 = vmatprep.subr.msk.mxu0 %vm873_vm11, %v5845_v40 }
0x2b4d   :  { %v5839_v35 = vpop.permute.xlu1 %5838 }
0x2b4f   :  { %v10876_v25 = vpop.eup %10875  ;;  %v5841_v43 = vpop.permute.xlu0 %5840 }
0x2b50   :  { %v5748_v45 = vmul.f32 %v10876_v25, %v10872_v58 }
0x2b51   :  { %v10878_v20 = vpop.eup %10877 }
0x2b52   :  { %v5747_v16 = vmul.f32 %v10878_v20, %v10874_v33 }
0x2b54   :  { %10382 = vmatprep.mubr.msk.f32.mxu0 %vm286_vm2, %v5747_v16 }
0x2b55   :  { %10383 = vmatmul.mubr.msk.f32.vlgmr.msra.gmra.mxu0 %vm286_vm2, %v5748_v45 }
0x2b56   :  { %10386 = vmatpush3.xpose.msk.msra.mxu0 %vm873_vm11, %v5845_v40  ;;  %10389 = vmatprep.mubr.msk.f32.mxu0 %vm873_vm11, %v5839_v35  ;;  %v11007_v40 = vld [vmem:[%s13314_s7] sm:$0xff] }
0x2b57   :  { %10387 = vmatprep.subr.msk.mxu0 %vm873_vm11, %v5843_v21 }
0x2b5a   :  { %10388 = vmatpush3.xpose.msk.msra.mxu0 %vm873_vm11, %v5843_v21 }
0x2b5d   :  { %10390 = vmatmul.mubr.msk.f32.vlgmr.msra.gmra.mxu0 %vm873_vm11, %v5841_v43 }
0x2c15   :  { %v12525_v51 = vpop.f32.mrf.mxu0 }
0x2c17   :  { %v12527_v53 = vpop.f32.mrf.mxu0 }
0x2c1d   :  { %v10391_v10 = vpop.f32.mrf.mxu0 }
0x2c1e   :  { %v5930_v29 = vmul.f32 0.35355338, %v10391_v10 }
0x2c1f   :  { %v5920_v30 = vpop.f32.mrf.mxu0 }
0x2c20   :  { %v5932_v32 = vadd.f32 %v5930_v29, %v12469_v52  ;;  %v5929_v34 = vmul.f32 0.35355338, %v5920_v30 }
0x2c22   :  { %v5931_v49 = vadd.f32 %v5929_v34, %v12471_v48  ;;  %v5936_v50 = vsel %vm286_vm2, %v5932_v32, -inf }
0x2c23   :  { %5937 = vmax.xlane.f32.xlu0 %v5936_v50 }
0x2c24   :  { %v5933_v1 = vsel %vm286_vm2, %v5931_v49, -inf }
0x2c25   :  { %5934 = vmax.xlane.f32.xlu1 %v5933_v1 }
0x2cac   :  { %v5938_v6 = vpop.xlane.xlu0 %5937 }
0x2cad   :  { %v5940_v41 = vsub.f32 %v5932_v32, %v5938_v6 }
0x2cae   :  { %v5935_v2 = vpop.xlane.xlu1 %5934 }
0x2caf   :  { %v5943_v9 = vmul.f32 1.442695, %v5940_v41  ;;  %v5939_v4 = vsub.f32 %v5931_v49, %v5935_v2 }
0x2cb1   :  { %10879 = vpow2.f32 %v5943_v9  ;;  %v5941_v11 = vmul.f32 1.442695, %v5939_v4 }
0x2cb3   :  { %10881 = vpow2.f32 %v5941_v11 }
0x2cbe   :  { %v10880_v18 = vpop.eup %10879 }
0x2cbf   :  { %v5948_v19 = vsel %vm286_vm2, %v10880_v18, 0.0 }
0x2cc0   :  { %v10882_v3 = vpop.eup %10881  ;;  %5949 = vadd.xlane.f32.xlu1 %v5948_v19 }
0x2cc1   :  { %v5945_v59 = vsel %vm286_vm2, %v10882_v3, 0.0 }
0x2cc2   :  { %5946 = vadd.xlane.f32.xlu0 %v5945_v59  ;;  %v11010_v59 = vld [vmem:[%s13311_s6 + $0xc8] sm:$0xff] }
0x2cd1   :  { %5955 = vrot.lane.b32.xlu1 %v12459_v23, %s11114_s19 }
0x2cd5   :  { %6048 = vrot.lane.b32.xlu1 %v12433_v5, %s11115_s20 }
0x2cd8   :  { %5957 = vrot.lane.b32.xlu0 %v12457_v60, %s11114_s19 }
0x2cd9   :  { %6042 = vrot.lane.b32.xlu1 %v12438_v8, %s11115_s20 }
0x2cdc   :  { %6046 = vrot.lane.b32.xlu0 %v12440_v15, %s11115_s20 }
0x2ce0   :  { %6044 = vrot.lane.b32.xlu0 %v12452_v47, %s11115_s20 }
0x2d49   :  { %v5950_v24 = vpop.xlane.xlu1 %5949 }
0x2d4a   :  { %10883 = vrcp.f32 %v5950_v24  ;;  %v11011_v24 = vld [vmem:[%s13311_s6 + $0xc0] sm:$0xff] }
0x2d4b   :  { %v5947_v26 = vpop.xlane.xlu0 %5946 }
0x2d4c   :  { %10885 = vrcp.f32 %v5947_v26  ;;  %v11012_v26 = vld [vmem:[%s13311_s6 + $0x118] sm:$0xff] }
0x2d4d   :  { %v5956_v28 = vpop.permute.xlu1 %5955 }
0x2d4f   :  { %v5958_v58 = vpop.permute.xlu0 %5957 }
0x2d50   :  { %10392 = vmatprep.subr.mxu1 %v5958_v58 }
0x2d51   :  { %10393 = vmatpush3.msra.mxu1 %v5958_v58  ;;  %v6049_v5 = vpop.permute.xlu1 %6048 }
0x2d52   :  { %10394 = vmatprep.subr.mxu1 %v5956_v28 }
0x2d53   :  { %10395 = vmatpush3.msra.mxu1 %v5956_v28  ;;  %v6047_v14 = vpop.permute.xlu0 %6046 }
0x2d54   :  { %10399 = vmatprep.subr.msk.mxu1 %vm873_vm11, %v6049_v5 }
0x2d55   :  { %v6043_v47 = vpop.permute.xlu1 %6042 }
0x2d57   :  { %v10884_v8 = vpop.eup %10883  ;;  %v6045_v63 = vpop.permute.xlu0 %6044 }
0x2d58   :  { %v5954_v15 = vmul.f32 %v10884_v8, %v10880_v18 }
0x2d59   :  { %v10886_v57 = vpop.eup %10885 }
0x2d5a   :  { %v5953_v33 = vmul.f32 %v10886_v57, %v10882_v3  ;;  %v11009_v3 = vld [vmem:[%s13311_s6 + $0xd0] sm:$0xff] }
0x2d5c   :  { %10396 = vmatprep.mubr.msk.f32.mxu1 %vm286_vm2, %v5953_v33 }
0x2d5d   :  { %10397 = vmatmul.mubr.msk.f32.vlgmr.msra.gmra.mxu1 %vm286_vm2, %v5954_v15 }
0x2d5e   :  { %10400 = vmatpush3.xpose.msk.msra.mxu1 %vm873_vm11, %v6049_v5  ;;  %10403 = vmatprep.mubr.msk.f32.mxu1 %vm873_vm11, %v6043_v47 }
0x2d5f   :  { %10401 = vmatprep.subr.msk.mxu1 %vm873_vm11, %v6047_v14 }
0x2d62   :  { %10402 = vmatpush3.xpose.msk.msra.mxu1 %vm873_vm11, %v6047_v14 }
0x2d63   :  { %10424 = vmatprep.subr.mxu1 %v11004_v46 }
0x2d65   :  { %10404 = vmatmul.mubr.msk.f32.vlgmr.msra.gmra.mxu1 %vm873_vm11, %v6045_v63 }
0x2d66   :  { %10425 = vmatpush3.msra.mxu1 %v11004_v46 }
0x2d67   :  { %10426 = vmatprep.subr.mxu1 %v11005_v27 }
0x2d68   :  { %10427 = vmatpush3.msra.mxu1 %v11005_v27 }
0x2d69   :  { %10428 = vmatprep.subr.mxu1 %v11006_v36 }
0x2d6a   :  { %10429 = vmatpush3.msra.mxu1 %v11006_v36 }
0x2d6b   :  { %10430 = vmatprep.subr.mxu1 %v11007_v40 }
0x2d6c   :  { %10431 = vmatpush3.msra.mxu1 %v11007_v40 }
0x2d6d   :  { %10454 = vmatprep.subr.mxu1 %v11112_v13 }
0x2e1d   :  { %v10398_v25 = vpop.f32.mrf.mxu1 }
0x2e1f   :  { %v6033_v20 = vpop.f32.mrf.mxu1 }
0x2e25   :  { %v10405_v16 = vpop.f32.mrf.mxu1 }
0x2e26   :  { %v6134_v45 = vmul.f32 0.35355338, %v10405_v16  ;;  %v11017_v16 = vld [vmem:[%s13311_s6 + $0xf0] sm:$0xff] }
0x2e27   :  { %v6124_v35 = vpop.f32.mrf.mxu1 }
0x2e28   :  { %v6136_v21 = vadd.f32 %v6134_v45, %v12469_v52  ;;  %v6133_v43 = vmul.f32 0.35355338, %v6124_v35  ;;  %v11018_v45 = vld [vmem:[%s13311_s6 + $0xe8] sm:$0xff]  ;;  %v11019_v35 = vld [vmem:[%s13311_s6 + $0xe0] sm:$0xff] }
0x2e2a   :  { %v6135_v10 = vadd.f32 %v6133_v43, %v12471_v48  ;;  %v6140_v29 = vsel %vm286_vm2, %v6136_v21, -inf  ;;  %v11020_v43 = vld [vmem:[%s13312_s8 + $0x6] ss:$0 sm:$0xff] }
0x2e2b   :  { %6141 = vmax.xlane.f32.xlu0 %v6140_v29 }
0x2e2c   :  { %v6137_v30 = vsel %vm286_vm2, %v6135_v10, -inf }
0x2e2d   :  { %6138 = vmax.xlane.f32.xlu1 %v6137_v30 }
0x2eb4   :  { %v6142_v32 = vpop.xlane.xlu0 %6141 }
0x2eb5   :  { %v6144_v34 = vsub.f32 %v6136_v21, %v6142_v32 }
0x2eb6   :  { %v6139_v49 = vpop.xlane.xlu1 %6138 }
0x2eb7   :  { %v6147_v50 = vmul.f32 1.442695, %v6144_v34  ;;  %v6143_v1 = vsub.f32 %v6135_v10, %v6139_v49 }
0x2eb9   :  { %10887 = vpow2.f32 %v6147_v50  ;;  %v6145_v6 = vmul.f32 1.442695, %v6143_v1 }
0x2ebb   :  { %10889 = vpow2.f32 %v6145_v6 }
0x2ec6   :  { %v10888_v41 = vpop.eup %10887 }
0x2ec7   :  { %v6152_v52 = vsel %vm286_vm2, %v10888_v41, 0.0 }
0x2ec8   :  { %v10890_v2 = vpop.eup %10889  ;;  %6153 = vadd.xlane.f32.xlu1 %v6152_v52 }
0x2ec9   :  { %v6149_v48 = vsel %vm286_vm2, %v10890_v2, 0.0 }
0x2eca   :  { %6150 = vadd.xlane.f32.xlu0 %v6149_v48 }
0x2ed9   :  { %6159 = vrot.lane.b32.xlu1 %v12459_v23, %s11115_s20 }
0x2edd   :  { %6248 = vrot.lane.b32.xlu1 %v12527_v53, %s11116_s21 }
0x2ee0   :  { %6161 = vrot.lane.b32.xlu0 %v12457_v60, %s11115_s20  ;;  %v11008_v60 = vld [vmem:[%s13311_s6 + $0xd8] sm:$0xff] }
0x2ee1   :  { %6256 = vrot.lane.b32.xlu1 %v6033_v20, %s11117_s22  ;;  %v11016_v20 = vld [vmem:[%s13311_s6 + $0xf8] sm:$0xff] }
0x2ee4   :  { %6250 = vrot.lane.b32.xlu0 %v12525_v51, %s11116_s21 }
0x2ee8   :  { %6258 = vrot.lane.b32.xlu0 %v10398_v25, %s11117_s22  ;;  %v11015_v25 = vld [vmem:[%s13311_s6 + $0x100] sm:$0xff] }
0x2f51   :  { %v6154_v9 = vpop.xlane.xlu1 %6153 }
0x2f52   :  { %10891 = vrcp.f32 %v6154_v9 }
0x2f53   :  { %v6151_v4 = vpop.xlane.xlu0 %6150 }
0x2f54   :  { %10893 = vrcp.f32 %v6151_v4 }
0x2f55   :  { %v6160_v23 = vpop.permute.xlu1 %6159 }
0x2f57   :  { %v6162_v11 = vpop.permute.xlu0 %6161 }
0x2f58   :  { %10406 = vmatprep.subr.mxu0 %v6162_v11 }
0x2f59   :  { %10407 = vmatpush3.msra.mxu0 %v6162_v11  ;;  %v6249_v8 = vpop.permute.xlu1 %6248 }
0x2f5a   :  { %10408 = vmatprep.subr.mxu0 %v6160_v23  ;;  %v6270_v15 = vsel %vm873_vm11, %v12497_v38, %v6249_v8  ;;  %v11013_v38 = vld [vmem:[%s13311_s6 + $0x110] sm:$0xff]  ;;  %v11022_v8 = vld [vmem:[%s13312_s8 + $0x8] ss:$0 sm:$0xff] }
0x2f5b   :  { %10409 = vmatpush3.msra.mxu0 %v6160_v23  ;;  %v6251_v5 = vpop.permute.xlu0 %6250 }
0x2f5c   :  { %10413 = vmatprep.subr.mxu0 %v11008_v60  ;;  %v6271_v14 = vsel %vm873_vm11, %v12495_v44, %v6251_v5  ;;  %v11014_v44 = vld [vmem:[%s13311_s6 + $0x108] sm:$0xff] }
0x2f5d   :  { %v6257_v33 = vpop.permute.xlu1 %6256 }
0x2f5e   :  { %v6272_v46 = vsel %vm286_vm2, %v6270_v15, %v6257_v33  ;;  %v11023_v15 = vld [vmem:[%s13311_s6 + $0x38] sm:$0xff] }
0x2f5f   :  { %v10892_v53 = vpop.eup %10891  ;;  %v6259_v57 = vpop.permute.xlu0 %6258 }
0x2f60   :  { %v6158_v19 = vmul.f32 %v10892_v53, %v10888_v41  ;;  %v6273_v27 = vsel %vm286_vm2, %v6271_v14, %v6259_v57  ;;  %v11025_v14 = vld [vmem:[%s13311_s6 + $0x28] sm:$0xff] }
0x2f61   :  { %v10894_v18 = vpop.eup %10893 }
0x2f62   :  { %v6157_v51 = vmul.f32 %v10894_v18, %v10890_v2 }
0x2f64   :  { %10410 = vmatprep.mubr.msk.f32.mxu0 %vm286_vm2, %v6157_v51 }
0x2f65   :  { %10411 = vmatmul.mubr.msk.f32.vlgmr.msra.gmra.mxu0 %vm286_vm2, %v6158_v19 }
0x2f66   :  { %10414 = vmatpush3.msra.mxu0 %v11008_v60 }
0x2f67   :  { %10415 = vmatprep.subr.mxu0 %v11009_v3 }
0x2f68   :  { %10416 = vmatpush3.msra.mxu0 %v11009_v3 }
0x2f69   :  { %10417 = vmatprep.subr.mxu0 %v11010_v59 }
0x2f6a   :  { %10418 = vmatpush3.msra.mxu0 %v11010_v59 }
0x2f6b   :  { %10419 = vmatprep.subr.mxu0 %v11011_v24 }
0x2f6c   :  { %10420 = vmatpush3.msra.mxu0 %v11011_v24 }
0x2f6d   :  { %10435 = vmatprep.subr.mxu0 %v11012_v26 }
0x3025   :  { %v10412_v28 = vpop.f32.mrf.mxu0 }
0x3026   :  { %6266 = vrot.lane.b32.xlu0 %v10412_v28, %s11118_s10  ;;  %v11021_v28 = vld [vmem:[%s13312_s8 + $0x7] ss:$0 sm:$0xff] }
0x3027   :  { %v6237_v58 = vpop.f32.mrf.mxu0 }
0x3028   :  { %6264 = vrot.lane.b32.xlu1 %v6237_v58, %s11118_s10 }
0x3098   :  { %v6267_v47 = vpop.permute.xlu0 %6266 }
0x3099   :  { %v6275_v40 = vsel %vm1710_vm12, %v6273_v27, %v6267_v47  ;;  %v11024_v47 = vld [vmem:[%s13311_s6 + $0x30] sm:$0xff]  ;;  %v11027_v27 = vld [vmem:[%s13311_s6 + $0x18] sm:$0xff] }
0x309a   :  { %v6265_v63 = vpop.permute.xlu1 %6264 }
0x309b   :  { %v6274_v36 = vsel %vm1710_vm12, %v6272_v46, %v6265_v63  ;;  %v11026_v46 = vld [vmem:[%s13311_s6 + $0x20] sm:$0xff] }
0x309c   :  { %10421 = vmatprep.mubr.msk.f32.mxu0 %vm497_vm9, %v6274_v36  ;;  %v11028_v36 = vld [vmem:[%s13311_s6 + $0x10] sm:$0xff] }
0x309d   :  { %10422 = vmatmul.mubr.msk.f32.vlgmr.msra.gmra.mxu0 %vm497_vm9, %v6275_v40  ;;  %v11029_v40 = vld [vmem:[%s13311_s6 + $0x8] sm:$0xff] }
0x309e   :  { %10436 = vmatpush3.msra.mxu0 %v11012_v26 }
0x309f   :  { %10437 = vmatprep.subr.mxu0 %v11013_v38 }
0x30a0   :  { %10438 = vmatpush3.msra.mxu0 %v11013_v38 }
0x30a1   :  { %10439 = vmatprep.subr.mxu0 %v11014_v44 }
0x30a2   :  { %10440 = vmatpush3.msra.mxu0 %v11014_v44  ;;  %v11030_v44 = vld [vmem:[%s13311_s6] sm:$0xff] }
0x30a3   :  { %10441 = vmatprep.subr.mxu0 %v11015_v25 }
0x30a4   :  { %10442 = vmatpush3.msra.mxu0 %v11015_v25  ;;  %v11032_v25 = vld [vmem:[%s13311_s6 + $0x150] sm:$0xff] }
0x30a5   :  { %10443 = vmatprep.subr.mxu0 %v11016_v20 }
0x30a6   :  { %10444 = vmatpush3.msra.mxu0 %v11016_v20  ;;  %v11033_v20 = vld [vmem:[%s13311_s6 + $0x148] sm:$0xff] }
0x30a7   :  { %10445 = vmatprep.subr.mxu0 %v11017_v16 }
0x30a8   :  { %10446 = vmatpush3.msra.mxu0 %v11017_v16  ;;  %v11034_v16 = vld [vmem:[%s13311_s6 + $0x140] sm:$0xff] }
0x30a9   :  { %10447 = vmatprep.subr.mxu0 %v11018_v45 }
0x30aa   :  { %10448 = vmatpush3.msra.mxu0 %v11018_v45 }
0x30ab   :  { %10449 = vmatprep.subr.mxu0 %v11019_v35 }
0x30ac   :  { %10450 = vmatpush3.msra.mxu0 %v11019_v35  ;;  %v11035_v35 = vld [vmem:[%s13312_s8 + $0x9] ss:$0 sm:$0xff] }
0x30ad   :  { %10473 = vmatprep.subr.mxu0 %v11112_v13 }
0x315d   :  { %v10423_v21 = vpop.f32.mrf.mxu0 }
0x315e   :  { %v6354_v10 = vadd.f32 %v11020_v43, %v10423_v21 }
0x315f   :  { %v6348_v29 = vpop.f32.mrf.mxu0 }
0x3160   :  { %v6358_v30 = vadd.f32 %v6354_v10, %v12405_v37  ;;  %v6349_v32 = vadd.f32 %v11020_v43, %v6348_v29 }
0x3162   :  { %v6357_v34 = vadd.f32 %v6349_v32, %v12402_v62  ;;  %v6362_v49 = vsel %vm497_vm9, %v6358_v30, 0.0  ;;  %v6637_v62 = vld [vmem:[%s13313_s4 + $0x8] sm:$0xff] }
0x3163   :  { %6363 = vadd.xlane.f32.xlu0 %v6362_v49 }
0x3164   :  { %v6359_v50 = vsel %vm497_vm9, %v6357_v34, 0.0 }
0x3165   :  { %6360 = vadd.xlane.f32.xlu1 %v6359_v50 }
0x31ec   :  { %v6364_v1 = vpop.xlane.xlu0 %6363 }
0x31ed   :  { %v6366_v6 = vmul.f32 0.03125, %v6364_v1 }
0x31ee   :  { %v6361_v41 = vpop.xlane.xlu1 %6360 }
0x31ef   :  { %v6368_v52 = vsub.f32 %v6358_v30, %v6366_v6  ;;  %v6365_v2 = vmul.f32 0.03125, %v6361_v41 }
0x31f1   :  { %v6367_v48 = vsub.f32 %v6357_v34, %v6365_v2  ;;  %v6370_v9 = vmul.f32 %v6368_v52, %v6368_v52 }
0x31f3   :  { %v6374_v4 = vsel %vm497_vm9, %v6370_v9, 0.0  ;;  %v6369_v11 = vmul.f32 %v6367_v48, %v6367_v48 }
0x31f4   :  { %6375 = vadd.xlane.f32.xlu1 %v6374_v4 }
0x31f5   :  { %v6371_v37 = vsel %vm497_vm9, %v6369_v11, 0.0 }
0x31f6   :  { %6372 = vadd.xlane.f32.xlu0 %v6371_v37 }
0x320c   :  { %6639 = vperm.xlu0 %10745, %v6637_v62  }
0x327d   :  { %v6376_v23 = vpop.xlane.xlu1 %6375 }
0x327e   :  { %v6378_v60 = vmul.f32 0.03125, %v6376_v23 }
0x327f   :  { %v6373_v53 = vpop.xlane.xlu0 %6372 }
0x3280   :  { %v6380_v18 = vadd.f32 1e-05, %v6378_v60  ;;  %v6377_v51 = vmul.f32 0.03125, %v6373_v53 }
0x3282   :  { %10895 = vrsqrt.f32 %v6380_v18  ;;  %v6379_v19 = vadd.f32 1e-05, %v6377_v51 }
0x3284   :  { %10897 = vrsqrt.f32 %v6379_v19 }
0x3287   :  { %v6640_v63 = vpop.permute.xlu0 %6639 }
0x3288   :  { %vm6641_vm4 = vcmp.eq.s32.totalorder %v11251_v22, %v6640_v63  ;;  %v11031_v22 = vld [vmem:[%s13311_s6 + $0x158] sm:$0xff] }
0x3289   :  { %v12693_v38 = vsel %vm6641_vm4, 1.0, %v11112_v13 }
0x328f   :  { %v10896_v3 = vpop.eup %10895 }
0x3290   :  { %v6384_v59 = vmul.f32 %v10896_v3, %v6368_v52 }
0x3291   :  { %v10898_v24 = vpop.eup %10897 }
0x3292   :  { %v6383_v26 = vmul.f32 %v10898_v24, %v6367_v48  ;;  %v6386_v58 = vmul.f32 %v11021_v28, %v6384_v59 }
0x3294   :  { %v6385_v5 = vmul.f32 %v11021_v28, %v6383_v26  ;;  %v12655_v33 = vadd.f32 %v11022_v8, %v6386_v58 }
0x3296   :  { %v12653_v57 = vadd.f32 %v11022_v8, %v6385_v5 }
0x3298   :  { %10432 = vmatprep.mubr.msk.f32.mxu1 %vm497_vm9, %v12653_v57 }
0x3299   :  { %10433 = vmatmul.mubr.msk.f32.vlgmr.msra.gmra.mxu1 %vm497_vm9, %v12655_v33 }
0x329a   :  { %10455 = vmatpush3.msra.mxu1 %v11023_v15  ;;  %10470 = vmatprep.mubr.msk.f32.mxu1 %vm11119_vm13, %v11112_v13 }
0x329b   :  { %10456 = vmatprep.subr.mxu1 %v11112_v13 }
0x329c   :  { %10457 = vmatpush3.msra.mxu1 %v11024_v47 }
0x329d   :  { %10458 = vmatprep.subr.mxu1 %v11112_v13 }
0x329e   :  { %10459 = vmatpush3.msra.mxu1 %v11025_v14 }
0x329f   :  { %10460 = vmatprep.subr.mxu1 %v11112_v13 }
0x32a0   :  { %10461 = vmatpush3.msra.mxu1 %v11026_v46 }
0x32a1   :  { %10462 = vmatprep.subr.mxu1 %v11112_v13 }
0x32a2   :  { %10463 = vmatpush3.msra.mxu1 %v11027_v27 }
0x32a3   :  { %10464 = vmatprep.subr.mxu1 %v11112_v13 }
0x32a4   :  { %10465 = vmatpush3.msra.mxu1 %v11028_v36 }
0x32a5   :  { %10466 = vmatprep.subr.mxu1 %v11112_v13 }
0x32a6   :  { %10467 = vmatpush3.msra.mxu1 %v11029_v40 }
0x32a7   :  { %10468 = vmatprep.subr.mxu1 %v11112_v13 }
0x32a8   :  { %10469 = vmatpush3.msra.mxu1 %v11030_v44 }
0x32a9   :  { %10471 = vmatmul.mubr.msk.f32.vlgmr.msra.gmra.mxu1 %vm180_vm3, %v12693_v38  ;;  %10484 = vmatprep.subr.mxu1 %v11112_v13 }
0x32aa   :  { %10485 = vmatpush3.msra.mxu1 %v11031_v22  ;;  %10492 = vmatprep.mubr.msk.f32.mxu1 %vm11119_vm13, %v11112_v13 }
0x32ab   :  { %10486 = vmatprep.subr.mxu1 %v11112_v13 }
0x32ac   :  { %10487 = vmatpush3.msra.mxu1 %v11032_v25 }
0x32ad   :  { %10488 = vmatprep.subr.mxu1 %v11112_v13 }
0x32ae   :  { %10489 = vmatpush3.msra.mxu1 %v11033_v20 }
0x32af   :  { %10490 = vmatprep.subr.mxu1 %v11112_v13 }
0x32b0   :  { %10491 = vmatpush3.msra.mxu1 %v11034_v16 }
0x32b1   :  { %10506 = vmatprep.subr.mxu1 %v11112_v13 }
0x3359   :  { %v10434_v45 = vpop.f32.mrf.mxu1 }
0x335a   :  { %v6467_v21 = vadd.f32 %v11035_v35, %v10434_v45 }
0x335b   :  { %v6461_v43 = vpop.f32.mrf.mxu1 }
0x335c   :  { %v6471_v10 = vmul.f32 0.70710677, %v6467_v21  ;;  %v6462_v29 = vadd.f32 %v11035_v35, %v6461_v43 }
0x335e   :  { %v6477_v30 = vand.u32 2147483647, %v6471_v10  ;;  %v6470_v32 = vmul.f32 0.70710677, %v6462_v29  ;;  %vm6473_vm5 = vcmp.ge.f32.partialorder %v6471_v10, 0.0  ;;  %v11036_v10 = vld [vmem:[%s13311_s6 + $0x138] sm:$0xff] }
0x335f   :  { %v6475_v25 = vsel %vm6473_vm5, 1.0, %v11120_v61 }
0x3360   :  { %v6479_v34 = vmul.f32 0.3275911, %v6477_v30  ;;  %v6476_v49 = vand.u32 2147483647, %v6470_v32  ;;  %v6505_v52 = vsub.f32 0.0, %v6477_v30  ;;  %vm6472_vm6 = vcmp.ge.f32.partialorder %v6470_v32, 0.0 }
0x3361   :  { %v6474_v35 = vsel %vm6472_vm6, 1.0, %v11120_v61  ;;  %v11037_v61 = vld [vmem:[%s13311_s6 + $0x130] sm:$0xff] }
0x3362   :  { %v6481_v50 = vadd.f32 1.0, %v6479_v34  ;;  %v6478_v1 = vmul.f32 0.3275911, %v6476_v49  ;;  %v6504_v4 = vsub.f32 0.0, %v6476_v49  ;;  %v6507_v11 = vmul.f32 %v6505_v52, %v6477_v30 }
0x3363   :  { %v6518_v34 = vmul.f32 0.5, %v6462_v29  ;;  %v11039_v29 = vld [vmem:[%s13311_s6 + $0x120] sm:$0xff] }
0x3364   :  { %10899 = vrcp.f32 %v6481_v50  ;;  %v6480_v6 = vadd.f32 1.0, %v6478_v1  ;;  %v6506_v23 = vmul.f32 %v6504_v4, %v6476_v49  ;;  %v6510_v53 = vmul.f32 1.442695, %v6507_v11 }
0x3365   :  { %v6519_v50 = vmul.f32 0.5, %v6467_v21  ;;  %v11038_v21 = vld [vmem:[%s13311_s6 + $0x128] sm:$0xff] }
0x3366   :  { %10901 = vrcp.f32 %v6480_v6  ;;  %v6508_v3 = vmul.f32 1.442695, %v6506_v23 }
0x3367   :  { %10903 = vpow2.f32 %v6510_v53 }
0x3368   :  { %10905 = vpow2.f32 %v6508_v3 }
0x3369   :  { %v6713_v41 = vpop.f32.mrf.mxu1 }
0x336a   :  { %v6714_v2 = vadd.f32 %v6713_v41, %v11662_v17 }
0x336b   :  { %v10472_v48 = vpop.f32.mrf.mxu1 }
0x336c   :  { %v12724_v9 = vadd.f32 %v12365_v12, %v6714_v2 }
0x336e   :  { %v6718_v37 = vsel %vm497_vm9, %v12724_v9, 0.0 }
0x336f   :  { %6719 = vadd.xlane.f32.xlu1 %v6718_v37 }
0x3371   :  { %v10900_v62 = vpop.eup %10899 }
0x3372   :  { %v6487_v60 = vmul.f32 1.0614054, %v10900_v62 }
0x3373   :  { %v10902_v18 = vpop.eup %10901 }
0x3374   :  { %v9338_v51 = vadd.f32 -1.4531521, %v6487_v60  ;;  %v6486_v19 = vmul.f32 1.0614054, %v10902_v18  ;;  %v10904_v63 = vpop.eup %10903 }
0x3375   :  { %v10906_v44 = vpop.eup %10905 }
0x3376   :  { %v6491_v59 = vmul.f32 %v10900_v62, %v9338_v51  ;;  %v9337_v17 = vadd.f32 -1.4531521, %v6486_v19 }
0x3378   :  { %v6493_v24 = vadd.f32 1.4214138, %v6491_v59  ;;  %v6490_v12 = vmul.f32 %v10902_v18, %v9337_v17  ;;  %v11044_v17 = vld [vmem:[%s13312_s8 + $0xd] ss:$0 sm:$0xff] }
0x337a   :  { %v6495_v26 = vmul.f32 %v10900_v62, %v6493_v24  ;;  %v6492_v28 = vadd.f32 1.4214138, %v6490_v12  ;;  %v11045_v12 = vld [vmem:[%s13312_s8 + $0xe] ss:$0 sm:$0xff] }
0x337c   :  { %v9340_v58 = vadd.f32 -0.28449672, %v6495_v26  ;;  %v6494_v5 = vmul.f32 %v10902_v18, %v6492_v28 }
0x337e   :  { %v6499_v8 = vmul.f32 %v10900_v62, %v9340_v58  ;;  %v9339_v15 = vadd.f32 -0.28449672, %v6494_v5 }
0x3380   :  { %v6501_v47 = vadd.f32 0.2548296, %v6499_v8  ;;  %v6498_v14 = vmul.f32 %v10902_v18, %v9339_v15  ;;  %v11046_v8 = vld [vmem:[%s13312_s8 + $0xf] ss:$0 sm:$0xff] }
0x3382   :  { %v6503_v46 = vmul.f32 %v10900_v62, %v6501_v47  ;;  %v6500_v27 = vadd.f32 0.2548296, %v6498_v14 }
0x3384   :  { %v6513_v36 = vmul.f32 %v10904_v63, %v6503_v46  ;;  %v6502_v40 = vmul.f32 %v10902_v18, %v6500_v27  ;;  %v11043_v18 = vld [vmem:[%s13311_s6 + $0x160] sm:$0xff] }
0x3386   :  { %v6515_v22 = vsub.f32 1.0, %v6513_v36  ;;  %v6512_v20 = vmul.f32 %v10906_v44, %v6502_v40  ;;  %v11047_v44 = vld [vmem:[%s13311_s6 + $0x198] sm:$0xff] }
0x3388   :  { %v6517_v16 = vmul.f32 %v6515_v22, %v6475_v25  ;;  %v6514_v45 = vsub.f32 1.0, %v6512_v20  ;;  %v11048_v22 = vld [vmem:[%s13311_s6 + $0x190] sm:$0xff]  ;;  %v11049_v25 = vld [vmem:[%s13311_s6 + $0x188] sm:$0xff]  ;;  %v11050_v20 = vld [vmem:[%s13311_s6 + $0x180] sm:$0xff] }
0x338a   :  { %v6516_v43 = vmul.f32 %v6514_v45, %v6474_v35  ;;  %v6521_v30 = vadd.f32 1.0, %v6517_v16  ;;  %v12845_v16 = vld [vmem:[%s13311_s6 + $0x1d8] sm:$0xff] }
0x338c   :  { %v6520_v49 = vadd.f32 1.0, %v6516_v43  ;;  %v6523_v6 = vmul.f32 %v6521_v30, %v6519_v50 }
0x338e   :  { %v6522_v1 = vmul.f32 %v6520_v49, %v6518_v34 }
0x3390   :  { %10451 = vmatprep.mubr.msk.f32.mxu0 %vm180_vm3, %v6522_v1 }
0x3391   :  { %10452 = vmatmul.mubr.msk.f32.vlgmr.msra.gmra.mxu0 %vm180_vm3, %v6523_v6 }
0x3392   :  { %10474 = vmatpush3.msra.mxu0 %v11036_v10  ;;  %10481 = vmatprep.mubr.msk.f32.mxu0 %vm11119_vm13, %v11112_v13 }
0x3393   :  { %10475 = vmatprep.subr.mxu0 %v11112_v13 }
0x3394   :  { %10476 = vmatpush3.msra.mxu0 %v11037_v61 }
0x3395   :  { %10477 = vmatprep.subr.mxu0 %v11112_v13 }
0x3396   :  { %10478 = vmatpush3.msra.mxu0 %v11038_v21 }
0x3397   :  { %10479 = vmatprep.subr.mxu0 %v11112_v13 }
0x3398   :  { %10480 = vmatpush3.msra.mxu0 %v11039_v29 }
0x3399   :  { %10495 = vmatprep.subr.mxu0 %v11112_v13 }
0x33f8   :  { %v6720_v32 = vpop.xlane.xlu1 %6719 }
0x33f9   :  { %v6721_v41 = vmul.f32 0.03125, %v6720_v32 }
0x33fb   :  { %v6722_v52 = vsub.f32 %v12724_v9, %v6721_v41  ;;  %v11040_v9 = vld [vmem:[%s13311_s6 + $0x178] sm:$0xff] }
0x33fd   :  { %v6723_v2 = vmul.f32 %v6722_v52, %v6722_v52 }
0x33ff   :  { %v6724_v48 = vsel %vm497_vm9, %v6723_v2, 0.0 }
0x3400   :  { %6725 = vadd.xlane.f32.xlu1 %v6724_v48 }
0x3451   :  { %v12784_v51 = vpop.f32.mrf.mxu0 }
0x3453   :  { %v12786_v19 = vpop.f32.mrf.mxu0 }
0x3489   :  { %v6726_v4 = vpop.xlane.xlu1 %6725 }
0x348a   :  { %v6727_v11 = vmul.f32 0.03125, %v6726_v4 }
0x348c   :  { %v6728_v37 = vadd.f32 1e-05, %v6727_v11 }
0x348e   :  { %10907 = vrsqrt.f32 %v6728_v37 }
0x349b   :  { %v10908_v62 = vpop.eup %10907 }
0x349c   :  { %v6730_v23 = vmul.f32 %v10908_v62, %v6722_v52 }
0x349e   :  { %v6731_v60 = vmul.f32 %v12392_v31, %v6730_v23  ;;  %v11041_v31 = vld [vmem:[%s13311_s6 + $0x170] sm:$0xff] }
0x34a0   :  { %v12754_v53 = vadd.f32 %v12399_v56, %v6731_v60  ;;  %v11042_v56 = vld [vmem:[%s13311_s6 + $0x168] sm:$0xff] }
0x34a2   :  { %10482 = vmatmul.mubr.msk.f32.vlgmr.msra.gmra.mxu0 %vm497_vm9, %v12754_v53  ;;  %10493 = vmatmul.mubr.msk.f32.vlgmr.msra.gmra.mxu1 %vm497_vm9, %v12754_v53 }
0x34a3   :  { %10496 = vmatpush3.msra.mxu0 %v11040_v9  ;;  %10503 = vmatprep.mubr.msk.f32.mxu0 %vm11119_vm13, %v11112_v13 }
0x34a4   :  { %10497 = vmatprep.subr.mxu0 %v11112_v13  ;;  %10508 = vmatprep.mubr.msk.f32.mxu1 %vm11119_vm13, %v11112_v13 }
0x34a5   :  { %10498 = vmatpush3.msra.mxu0 %v11041_v31 }
0x34a6   :  { %10499 = vmatprep.subr.mxu0 %v11112_v13 }
0x34a7   :  { %10500 = vmatpush3.msra.mxu0 %v11042_v56 }
0x34a8   :  { %10501 = vmatprep.subr.mxu0 %v11112_v13 }
0x34a9   :  { %10502 = vmatpush3.msra.mxu0 %v11043_v18 }
0x34aa   :  { %10504 = vmatmul.mubr.msk.f32.vlgmr.msra.gmra.mxu0 %vm497_vm9, %v12754_v53  ;;  %10516 = vmatprep.subr.mxu0 %v11112_v13 }
0x34ab   :  { %10518 = vmatprep.mubr.msk.f32.mxu0 %vm11119_vm13, %v11112_v13 }
0x3562   :  { %v6802_v3 = vpop.f32.mrf.mxu0  ;;  %v6872_v59 = vpop.f32.mrf.mxu1 }
0x3563   :  { %v6803_v24 = vadd.f32 %v11044_v17, %v6802_v3  ;;  %v6873_v26 = vadd.f32 %v11045_v12, %v6872_v59 }
0x3564   :  { %v10483_v28 = vpop.f32.mrf.mxu0  ;;  %v10494_v58 = vpop.f32.mrf.mxu1 }
0x3565   :  { %7110 = vrot.lane.b32.xlu1 %v6873_v26, %s11113_s16  ;;  %10507 = vmatpush3.xpose.msk.msra.mxu1 %vm873_vm11, %v6873_v26 }
0x3566   :  { %7108 = vrot.lane.b32.xlu0 %v6803_v24, %s11113_s16  ;;  %10511 = vmatprep.subr.mxu1 %v11112_v13 }
0x3568   :  { %10509 = vmatmul.mubr.msk.f32.vlgmr.msra.gmra.mxu1 %vm873_vm11, %v6803_v24 }
0x3569   :  { %7276 = vrot.lane.b32.xlu1 %v6803_v24, %s11114_s19  ;;  %10513 = vmatprep.mubr.msk.f32.mxu1 %vm11119_vm13, %v11112_v13 }
0x356a   :  { %7278 = vrot.lane.b32.xlu0 %v6873_v26, %s11114_s19  ;;  %v6942_v5 = vpop.f32.mrf.mxu0 }
0x356b   :  { %v12806_v15 = vadd.f32 %v11046_v8, %v6942_v5 }
0x356c   :  { %v10505_v47 = vpop.f32.mrf.mxu0 }
0x356d   :  { %10512 = vmatpush3.msra.mxu1 %v12806_v15  ;;  %7443 = vrot.lane.b32.xlu1 %v6803_v24, %s11115_s20 }
0x356e   :  { %7445 = vrot.lane.b32.xlu0 %v6873_v26, %s11115_s20  ;;  %10521 = vmatprep.subr.mxu1 %v11112_v13 }
0x35d7   :  { %v7111_v14 = vpop.permute.xlu1 %7110 }
0x35d8   :  { %v7109_v46 = vpop.permute.xlu0 %7108  ;;  %10517 = vmatpush3.xpose.msk.msra.mxu0 %vm873_vm11, %v7111_v14 }
0x35d9   :  { %10526 = vmatprep.subr.mxu0 %v11112_v13 }
0x35db   :  { %10519 = vmatmul.mubr.msk.f32.vlgmr.msra.gmra.mxu0 %vm873_vm11, %v7109_v46  ;;  %v7277_v27 = vpop.permute.xlu1 %7276 }
0x35dc   :  { %v7279_v63 = vpop.permute.xlu0 %7278  ;;  %10528 = vmatprep.mubr.msk.f32.mxu0 %vm11119_vm13, %v11112_v13 }
0x35dd   :  { %10527 = vmatpush3.xpose.msk.msra.mxu0 %vm873_vm11, %v7279_v63 }
0x35de   :  { %10536 = vmatprep.subr.mxu0 %v11112_v13 }
0x35df   :  { %v7444_v40 = vpop.permute.xlu1 %7443 }
0x35e0   :  { %10529 = vmatmul.mubr.msk.f32.vlgmr.msra.gmra.mxu0 %vm873_vm11, %v7277_v27  ;;  %v7446_v36 = vpop.permute.xlu0 %7445 }
0x35e1   :  { %10537 = vmatpush3.xpose.msk.msra.mxu0 %vm873_vm11, %v7446_v36  ;;  %10538 = vmatprep.mubr.msk.f32.mxu0 %vm11119_vm13, %v11112_v13 }
0x35e2   :  { %10546 = vmatprep.subr.mxu0 %v11112_v13 }
0x35e4   :  { %10539 = vmatmul.mubr.msk.f32.vlgmr.msra.gmra.mxu0 %vm873_vm11, %v7444_v40 }
0x35e5   :  { %10547 = vmatpush3.msra.mxu0 %v11047_v44  ;;  %10554 = vmatprep.mubr.msk.f32.mxu0 %vm11119_vm13, %v11112_v13 }
0x35e6   :  { %10548 = vmatprep.subr.mxu0 %v11112_v13 }
0x35e7   :  { %10549 = vmatpush3.msra.mxu0 %v11048_v22 }
0x35e8   :  { %10550 = vmatprep.subr.mxu0 %v11112_v13 }
0x35e9   :  { %10551 = vmatpush3.msra.mxu0 %v11049_v25 }
0x35ea   :  { %10552 = vmatprep.subr.mxu0 %v11112_v13 }
0x35eb   :  { %10553 = vmatpush3.msra.mxu0 %v11050_v20 }
0x35ec   :  { %10568 = vmatprep.subr.mxu0 %v12845_v16 }
0x3628   :  { %v7018_v45 = vpop.f32.mrf.mxu1 }
0x3629   :  { %v7022_v35 = vmul.f32 0.35355338, %v7018_v45 }
0x362a   :  { %v10510_v43 = vpop.f32.mrf.mxu1 }
0x362b   :  { %v7023_v30 = vadd.f32 %v7022_v35, %v11790_v7 }
0x362d   :  { %v7024_v34 = vsel %vm873_vm11, %v7023_v30, -inf }
0x362e   :  { %7025 = vmax.xlane.f32.xlu0 %v7024_v34  ;;  %v11052_v34 = vld [vmem:[%s13311_s6 + $0x1b8] sm:$0xff] }
0x369b   :  { %v7182_v49 = vpop.f32.mrf.mxu0 }
0x369c   :  { %v7186_v50 = vmul.f32 0.35355338, %v7182_v49  ;;  %v11053_v49 = vld [vmem:[%s13311_s6 + $0x1b0] sm:$0xff] }
0x369d   :  { %v10520_v1 = vpop.f32.mrf.mxu0 }
0x369e   :  { %v7187_v6 = vadd.f32 %v7186_v50, %v11790_v7  ;;  %v11054_v50 = vld [vmem:[%s13311_s6 + $0x1a8] sm:$0xff]  ;;  %v11055_v1 = vld [vmem:[%s13311_s6 + $0x1a0] sm:$0xff] }
0x36a0   :  { %v7350_v10 = vpop.f32.mrf.mxu0  ;;  %v7188_v61 = vsel %vm873_vm11, %v7187_v6, -inf }
0x36a1   :  { %v7354_v21 = vmul.f32 0.35355338, %v7350_v10  ;;  %7189 = vmax.xlane.f32.xlu1 %v7188_v61 }
0x36a2   :  { %v10530_v29 = vpop.f32.mrf.mxu0 }
0x36a3   :  { %v7355_v32 = vadd.f32 %v7354_v21, %v11790_v7 }
0x36a4   :  { %v7517_v41 = vpop.f32.mrf.mxu0 }
0x36a5   :  { %v7521_v52 = vmul.f32 0.35355338, %v7517_v41  ;;  %v7356_v2 = vsel %vm873_vm11, %v7355_v32, -inf }
0x36a6   :  { %7357 = vmax.xlane.f32.xlu0 %v7356_v2  ;;  %v10540_v48 = vpop.f32.mrf.mxu0 }
0x36a7   :  { %v7522_v4 = vadd.f32 %v7521_v52, %v11790_v7  ;;  %v11057_v48 = vld [vmem:[%s13312_s8 + $0xa] ss:$0 sm:$0xff] }
0x36a9   :  { %v7523_v11 = vsel %vm873_vm11, %v7522_v4, -inf }
0x36aa   :  { %7524 = vmax.xlane.f32.xlu0 %v7523_v11 }
0x36b2   :  { %7200 = vrot.lane.b32.xlu1 %v12806_v15, %s11113_s16 }
0x36b7   :  { %v7026_v37 = vpop.xlane.xlu0 %7025 }
0x36b8   :  { %v7027_v62 = vsub.f32 %v7023_v30, %v7026_v37 }
0x36ba   :  { %v7028_v23 = vmul.f32 1.442695, %v7027_v62  ;;  %v6602_v62 = vadd.f32 %v11057_v48, %v12784_v51  ;;  %v11060_v51 = vld [vmem:[%s13311_s6 + $0x1c0] sm:$0xff] }
0x36bc   :  { %10909 = vpow2.f32 %v7028_v23  ;;  %v6606_v23 = vadd.f32 %v6602_v62, %v12655_v33  ;;  %v11059_v33 = vld [vmem:[%s13311_s6 + $0x1c8] sm:$0xff]  ;;  %v11065_v62 = vld [vmem:[%s13312_s8 + $0x12] ss:$0 sm:$0xff] }
0x36c9   :  { %v10910_v60 = vpop.eup %10909 }
0x36ca   :  { %v7030_v9 = vsel %vm873_vm11, %v10910_v60, 0.0 }
0x36d6   :  { %7031 = vadd.xlane.f32.xlu1 %v7030_v9 }
0x372a   :  { %v7190_v31 = vpop.xlane.xlu1 %7189 }
0x372b   :  { %v7191_v56 = vsub.f32 %v7187_v6, %v7190_v31  ;;  %v12899_v6 = vld [vmem:[%s13311_s6 + $0x1f8] sm:$0xff] }
0x372d   :  { %v7192_v18 = vmul.f32 1.442695, %v7191_v56 }
0x372e   :  { %v7201_v14 = vpop.permute.xlu1 %7200 }
0x372f   :  { %10911 = vpow2.f32 %v7192_v18  ;;  %v7358_v3 = vpop.xlane.xlu0 %7357 }
0x3730   :  { %v7359_v7 = vsub.f32 %v7355_v32, %v7358_v3 }
0x3732   :  { %v7360_v59 = vmul.f32 1.442695, %v7359_v7 }
0x3733   :  { %v7525_v17 = vpop.xlane.xlu0 %7524 }
0x3734   :  { %10913 = vpow2.f32 %v7360_v59  ;;  %v7526_v24 = vsub.f32 %v7522_v4, %v7525_v17  ;;  %v6597_v4 = vadd.f32 %v11057_v48, %v12786_v19 }
0x3736   :  { %v7527_v12 = vmul.f32 1.442695, %v7526_v24  ;;  %v6605_v11 = vadd.f32 %v6597_v4, %v12653_v57  ;;  %v11058_v57 = vld [vmem:[%s13311_s6 + $0x1d0] sm:$0xff] }
0x3738   :  { %10915 = vpow2.f32 %v7527_v12  ;;  %v6607_v37 = vsel %vm497_vm9, %v6605_v11, 0.0 }
0x373c   :  { %v10912_v26 = vpop.eup %10911 }
0x373d   :  { %v7194_v28 = vsel %vm873_vm11, %v10912_v26, 0.0 }
0x373e   :  { %7195 = vadd.xlane.f32.xlu0 %v7194_v28 }
0x3741   :  { %v10914_v58 = vpop.eup %10913 }
0x3742   :  { %v7362_v5 = vsel %vm873_vm11, %v10914_v58, 0.0 }
0x3743   :  { %7363 = vadd.xlane.f32.xlu1 %v7362_v5  ;;  %v11061_v5 = vld [vmem:[%s13312_s8 + $0x10] ss:$0 sm:$0xff] }
0x3745   :  { %v10916_v8 = vpop.eup %10915 }
0x3746   :  { %v7529_v47 = vsel %vm873_vm11, %v10916_v8, 0.0 }
0x3747   :  { %7530 = vadd.xlane.f32.xlu0 %v7529_v47 }
0x3754   :  { %7534 = vrot.lane.b32.xlu1 %v12806_v15, %s11115_s20 }
0x375d   :  { %7367 = vrot.lane.b32.xlu0 %v12806_v15, %s11114_s19 }
0x375f   :  { %v7032_v46 = vpop.xlane.xlu1 %7031 }
0x3760   :  { %10917 = vrcp.f32 %v7032_v46 }
0x376d   :  { %v10918_v63 = vpop.eup %10917 }
0x376e   :  { %v7034_v27 = vmul.f32 %v10918_v63, %v10910_v60  ;;  %v6610_v60 = vsel %vm497_vm9, %v6606_v23, 0.0 }
0x3770   :  { %10514 = vmatmul.mubr.msk.f32.vlgmr.msra.gmra.mxu1 %vm873_vm11, %v7034_v27 }
0x3771   :  { %10522 = vmatpush3.msra.mxu1 %v7201_v14  ;;  %10523 = vmatprep.mubr.msk.f32.mxu1 %vm11119_vm13, %v11112_v13 }
0x3772   :  { %10531 = vmatprep.subr.mxu1 %v11112_v13 }
0x37c7   :  { %v7196_v36 = vpop.xlane.xlu0 %7195 }
0x37c8   :  { %10919 = vrcp.f32 %v7196_v36 }
0x37cc   :  { %v7364_v40 = vpop.xlane.xlu1 %7363 }
0x37cd   :  { %10921 = vrcp.f32 %v7364_v40 }
0x37d0   :  { %v7531_v44 = vpop.xlane.xlu0 %7530  ;;  %v7535_v35 = vpop.permute.xlu1 %7534 }
0x37d1   :  { %10923 = vrcp.f32 %v7531_v44 }
0x37d4   :  { %v7368_v25 = vpop.permute.xlu0 %7367 }
0x37d5   :  { %v10920_v22 = vpop.eup %10919 }
0x37d6   :  { %v7198_v15 = vmul.f32 %v10920_v22, %v10912_v26 }
0x37d8   :  { %10524 = vmatmul.mubr.msk.f32.vlgmr.msra.gmra.mxu1 %vm873_vm11, %v7198_v15 }
0x37d9   :  { %10532 = vmatpush3.msra.mxu1 %v7368_v25  ;;  %10533 = vmatprep.mubr.msk.f32.mxu1 %vm11119_vm13, %v11112_v13 }
0x37da   :  { %v10922_v20 = vpop.eup %10921  ;;  %10541 = vmatprep.subr.mxu1 %v11112_v13 }
0x37db   :  { %v7366_v45 = vmul.f32 %v10922_v20, %v10914_v58 }
0x37dd   :  { %10534 = vmatmul.mubr.msk.f32.vlgmr.msra.gmra.mxu1 %vm873_vm11, %v7366_v45 }
0x37de   :  { %v10924_v43 = vpop.eup %10923  ;;  %10542 = vmatpush3.msra.mxu1 %v7535_v35  ;;  %10543 = vmatprep.mubr.msk.f32.mxu1 %vm11119_vm13, %v11112_v13 }
0x37df   :  { %v7533_v30 = vmul.f32 %v10924_v43, %v10916_v8  ;;  %10557 = vmatprep.subr.mxu1 %v11112_v13 }
0x37e1   :  { %10544 = vmatmul.mubr.msk.f32.vlgmr.msra.gmra.mxu1 %vm873_vm11, %v7533_v30 }
0x37e2   :  { %10558 = vmatpush3.msra.mxu1 %v11052_v34  ;;  %10565 = vmatprep.mubr.msk.f32.mxu1 %vm11119_vm13, %v11112_v13 }
0x37e3   :  { %10559 = vmatprep.subr.mxu1 %v11112_v13 }
0x37e4   :  { %10560 = vmatpush3.msra.mxu1 %v11053_v49 }
0x37e5   :  { %10561 = vmatprep.subr.mxu1 %v11112_v13 }
0x37e6   :  { %10562 = vmatpush3.msra.mxu1 %v11054_v50 }
0x37e7   :  { %10563 = vmatprep.subr.mxu1 %v11112_v13 }
0x37e8   :  { %10564 = vmatpush3.msra.mxu1 %v11055_v1  ;;  %v11062_v1 = vld [vmem:[%s13312_s8 + $0xb] ss:$0 sm:$0xff] }
0x37e9   :  { %10579 = vmatprep.subr.mxu1 %v12899_v6 }
0x3830   :  { %v7104_v10 = vpop.f32.mrf.mxu1 }
0x3832   :  { %v10515_v61 = vpop.f32.mrf.mxu1 }
0x3898   :  { %v7272_v21 = vpop.f32.mrf.mxu1 }
0x3899   :  { %7611 = vrot.lane.b32.xlu1 %v7272_v21, %s11116_s21  ;;  %v11063_v21 = vld [vmem:[%s13312_s8 + $0xc] ss:$0 sm:$0xff] }
0x389a   :  { %v10525_v29 = vpop.f32.mrf.mxu1 }
0x389d   :  { %v7439_v32 = vpop.f32.mrf.mxu1 }
0x389e   :  { %7615 = vrot.lane.b32.xlu0 %v7439_v32, %s11117_s22 }
0x389f   :  { %v10535_v41 = vpop.f32.mrf.mxu1 }
0x38a1   :  { %v7606_v52 = vpop.f32.mrf.mxu1 }
0x38a2   :  { %7619 = vrot.lane.b32.xlu1 %v7606_v52, %s11118_s10 }
0x38a3   :  { %v10545_v2 = vpop.f32.mrf.mxu1 }
0x38bd   :  { %6608 = vadd.xlane.f32.xlu0 %v6607_v37 }
0x38c6   :  { %6611 = vadd.xlane.f32.xlu1 %v6610_v60  ;;  %v11066_v60 = vld [vmem:[%s13311_s6 + $0x1f0] sm:$0xff] }
0x390b   :  { %v7612_v9 = vpop.permute.xlu1 %7611 }
0x390c   :  { %v7622_v56 = vsel %vm873_vm11, %v7104_v10, %v7612_v9  ;;  %v11067_v9 = vld [vmem:[%s13311_s6 + $0x1e8] sm:$0xff] }
0x3910   :  { %v7616_v31 = vpop.permute.xlu0 %7615 }
0x3911   :  { %v7623_v18 = vsel %vm286_vm2, %v7622_v56, %v7616_v31  ;;  %v11068_v31 = vld [vmem:[%s13311_s6 + $0x1e0] sm:$0xff]  ;;  %v11069_v56 = vld [vmem:[%s13312_s8 + $0x14] ss:$0 sm:$0xff] }
0x3914   :  { %v7620_v3 = vpop.permute.xlu1 %7619 }
0x3915   :  { %v7624_v19 = vsel %vm1710_vm12, %v7623_v18, %v7620_v3 }
0x3916   :  { %10555 = vmatmul.mubr.msk.f32.vlgmr.msra.gmra.mxu0 %vm497_vm9, %v7624_v19 }
0x3917   :  { %10569 = vmatpush3.msra.mxu0 %v12845_v16 }
0x3918   :  { %10570 = vmatprep.subr.mxu0 %v11058_v57 }
0x3919   :  { %10571 = vmatpush3.msra.mxu0 %v11058_v57 }
0x391a   :  { %10572 = vmatprep.subr.mxu0 %v11059_v33 }
0x391b   :  { %10573 = vmatpush3.msra.mxu0 %v11059_v33  ;;  %v11070_v33 = vld [vmem:[%s13312_s8 + $0x13] ss:$0 sm:$0xff] }
0x391c   :  { %10574 = vmatprep.subr.mxu0 %v11060_v51 }
0x391d   :  { %10575 = vmatpush3.msra.mxu0 %v11060_v51 }
0x391e   :  { %10590 = vmatprep.subr.mxu0 %v11112_v13 }
0x3946   :  { %v6609_v12 = vpop.xlane.xlu0 %6608 }
0x3947   :  { %v6613_v26 = vmul.f32 0.03125, %v6609_v12 }
0x3949   :  { %v6615_v58 = vsub.f32 %v6605_v11, %v6613_v26  ;;  %v11064_v11 = vld [vmem:[%s13312_s8 + $0x11] ss:$0 sm:$0xff]  ;;  %v7714_v26 = vld [vmem:[%s13315_s3 + $0x1] sm:$0x1] }
0x394a   :  { %vm7715_vm7 = vcmp.gt.s32.totalorder %v7714_v26, 0 }
0x394b   :  { %v6617_v63 = vmul.f32 %v6615_v58, %v6615_v58 }
0x394d   :  { %v6619_v27 = vsel %vm497_vm9, %v6617_v63, 0.0 }
0x394f   :  { %v6612_v16 = vpop.xlane.xlu1 %6611 }
0x3950   :  { %v6614_v7 = vmul.f32 0.03125, %v6612_v16 }
0x3952   :  { %v6616_v59 = vsub.f32 %v6606_v23, %v6614_v7 }
0x3954   :  { %v6618_v17 = vmul.f32 %v6616_v59, %v6616_v59 }
0x3956   :  { %v6622_v24 = vsel %vm497_vm9, %v6618_v17, 0.0 }
0x3957   :  { %6623 = vadd.xlane.f32.xlu1 %v6622_v24 }
0x39d6   :  { %v7694_v28 = vpop.f32.mrf.mxu0 }
0x39d7   :  { %v7695_v8 = vadd.f32 %v11061_v5, %v7694_v28  ;;  %v7716_v28 = vsel %vm7715_vm7, 0.0, %v11122_v39 }
0x39d8   :  { %v10556_v47 = vpop.f32.mrf.mxu0 }
0x39d9   :  { %v7698_v14 = vadd.f32 %v7695_v8, %v12754_v53 }
0x39db   :  { %v7699_v46 = vsel %vm497_vm9, %v7698_v14, 0.0 }
0x39dc   :  { %7700 = vadd.xlane.f32.xlu0 %v7699_v46 }
0x39e0   :  { %6620 = vadd.xlane.f32.xlu0 %v6619_v27  ;;  %v6624_v36 = vpop.xlane.xlu1 %6623 }
0x39e1   :  { %v6626_v40 = vmul.f32 0.03125, %v6624_v36 }
0x39e3   :  { %v6628_v44 = vadd.f32 1e-05, %v6626_v40 }
0x39e5   :  { %10925 = vrsqrt.f32 %v6628_v44 }
0x39f2   :  { %v10926_v30 = vpop.eup %10925 }
0x39f3   :  { %v6632_v34 = vmul.f32 %v10926_v30, %v6616_v59  ;;  %v11071_v59 = vld [vmem:[%s13312_s8 + $0x15] ss:$0 sm:$0xff] }
0x39f5   :  { %v6634_v10 = vmul.f32 %v11062_v1, %v6632_v34 }
0x39f7   :  { %v6636_v32 = vadd.f32 %v11063_v21, %v6634_v10 }
0x3a65   :  { %v7701_v22 = vpop.xlane.xlu0 %7700 }
0x3a66   :  { %v7702_v15 = vmul.f32 0.03125, %v7701_v22 }
0x3a68   :  { %v7703_v25 = vsub.f32 %v7698_v14, %v7702_v15 }
0x3a69   :  { %v6621_v20 = vpop.xlane.xlu0 %6620 }
0x3a6a   :  { %v6625_v45 = vmul.f32 0.03125, %v6621_v20  ;;  %v7704_v35 = vmul.f32 %v7703_v25, %v7703_v25 }
0x3a6c   :  { %v6627_v43 = vadd.f32 1e-05, %v6625_v45  ;;  %v7705_v53 = vsel %vm497_vm9, %v7704_v35, 0.0 }
0x3a6d   :  { %7706 = vadd.xlane.f32.xlu0 %v7705_v53 }
0x3a6e   :  { %10927 = vrsqrt.f32 %v6627_v43 }
0x3a7b   :  { %v10928_v49 = vpop.eup %10927 }
0x3a7c   :  { %v6631_v50 = vmul.f32 %v10928_v49, %v6615_v58  ;;  %v13011_v58 = vrot.slane %v7716_v28, %v3602_v54 }
0x3a7e   :  { %v6633_v61 = vmul.f32 %v11062_v1, %v6631_v50 }
0x3a80   :  { %v6635_v29 = vadd.f32 %v11063_v21, %v6633_v61 }
0x3a82   :  { %10576 = vmatprep.mubr.msk.f32.mxu0 %vm497_vm9, %v6635_v29 }
0x3a83   :  { %10577 = vmatmul.mubr.msk.f32.vlgmr.msra.gmra.mxu0 %vm497_vm9, %v6636_v32 }
0x3a84   :  { %10594 = vmatprep.mubr.msk.f32.mxu0 %vm11119_vm13, %v11112_v13 }
0x3af6   :  { %v7707_v41 = vpop.xlane.xlu0 %7706 }
0x3af7   :  { %v7708_v52 = vmul.f32 0.03125, %v7707_v41 }
0x3af9   :  { %v7709_v2 = vadd.f32 1e-05, %v7708_v52 }
0x3afb   :  { %10929 = vrsqrt.f32 %v7709_v2 }
0x3b08   :  { %v10930_v48 = vpop.eup %10929 }
0x3b09   :  { %v7711_v4 = vmul.f32 %v10930_v48, %v7703_v25 }
0x3b0b   :  { %v7712_v37 = vmul.f32 %v11064_v11, %v7711_v4 }
0x3b0d   :  { %v12953_v23 = vadd.f32 %v11065_v62, %v7712_v37 }
0x3b0f   :  { %10566 = vmatmul.mubr.msk.f32.vlgmr.msra.gmra.mxu1 %vm497_vm9, %v12953_v23 }
0x3b10   :  { %10580 = vmatpush3.msra.mxu1 %v12899_v6  ;;  %10587 = vmatprep.mubr.msk.f32.mxu1 %vm497_vm9, %v6635_v29 }
0x3b11   :  { %10581 = vmatprep.subr.mxu1 %v11066_v60 }
0x3b12   :  { %10582 = vmatpush3.msra.mxu1 %v11066_v60 }
0x3b13   :  { %10583 = vmatprep.subr.mxu1 %v11067_v9 }
0x3b14   :  { %10584 = vmatpush3.msra.mxu1 %v11067_v9 }
0x3b15   :  { %10585 = vmatprep.subr.mxu1 %v11068_v31 }
0x3b16   :  { %10586 = vmatpush3.msra.mxu1 %v11068_v31 }
0x3b17   :  { %10588 = vmatmul.mubr.msk.f32.vlgmr.msra.gmra.mxu1 %vm497_vm9, %v6636_v32  ;;  %10597 = vmatprep.subr.mxu1 %v11112_v13 }
0x3b18   :  { %10601 = vmatprep.mubr.msk.f32.mxu1 %vm11119_vm13, %v11112_v13 }
0x3b43   :  { %v10578_v6 = vpop.f32.mrf.mxu0 }
0x3b44   :  { %v12975_v18 = vadd.f32 %v11069_v56, %v10578_v6 }
0x3b45   :  { %v7862_v3 = vpop.f32.mrf.mxu0 }
0x3b46   :  { %10591 = vmatpush3.xpose.msk.msra.mxu0 %vm873_vm11, %v12975_v18  ;;  %v12980_v19 = vadd.f32 %v11069_v56, %v7862_v3 }
0x3b47   :  { %10592 = vmatprep.subr.mxu0 %v11112_v13 }
0x3b4a   :  { %10593 = vmatpush3.xpose.msk.msra.mxu0 %vm873_vm11, %v12980_v19 }
0x3b4b   :  { %10611 = vmatprep.subr.mxu0 %v11112_v13 }
0x3bcf   :  { %v7786_v57 = vpop.f32.mrf.mxu1 }
0x3bd0   :  { %v12988_v51 = vadd.f32 %v11070_v33, %v7786_v57 }
0x3bd1   :  { %v10567_v16 = vpop.f32.mrf.mxu1 }
0x3bd2   :  { %10595 = vmatmul.mubr.msk.f32.vlgmr.msra.gmra.mxu0 %vm873_vm11, %v12988_v51 }
0x3bd3   :  { %10615 = vmatprep.mubr.msk.f32.mxu0 %vm11119_vm13, %v11112_v13 }
0x3bd7   :  { %v10589_v7 = vpop.f32.mrf.mxu1 }
0x3bd8   :  { %v12997_v17 = vadd.f32 %v11071_v59, %v10589_v7 }
0x3bd9   :  { %v7937_v24 = vpop.f32.mrf.mxu1 }
0x3bda   :  { %v12999_v12 = vadd.f32 %v11071_v59, %v7937_v24  ;;  %10598 = vmatpush3.msra.mxu1 %v12997_v17 }
0x3bdb   :  { %10599 = vmatprep.subr.mxu1 %v11112_v13 }
0x3bdc   :  { %10600 = vmatpush3.msra.mxu1 %v12999_v12 }
0x3bdd   :  { %10604 = vmatprep.subr.mxu1 %v11112_v13 }
0x3c92   :  { %v8021_v5 = vpop.f32.mrf.mxu0 }
0x3c93   :  { %v8025_v8 = vmul.f32 0.35355338, %v8021_v5  ;;  %v11072_v5 = vld [vmem:[%s13314_s7 + $0x38] sm:$0xff] }
0x3c94   :  { %v10596_v47 = vpop.f32.mrf.mxu0 }
0x3c95   :  { %v8030_v14 = vadd.f32 %v13011_v58, %v8025_v8  ;;  %v11073_v8 = vld [vmem:[%s13314_s7 + $0x30] sm:$0xff]  ;;  %v11074_v47 = vld [vmem:[%s13314_s7 + $0x28] sm:$0xff] }
0x3c97   :  { %v8031_v46 = vsel %vm286_vm2, %v8030_v14, -inf }
0x3c98   :  { %8032 = vmax.xlane.f32.xlu1 %v8031_v46 }
0x3ca9   :  { %8119 = vrot.lane.b32.xlu1 %v12975_v18, %s11113_s16 }
0x3cad   :  { %8115 = vrot.lane.b32.xlu1 %v12988_v51, %s11113_s16 }
0x3d21   :  { %v8033_v63 = vpop.xlane.xlu1 %8032 }
0x3d22   :  { %v8034_v39 = vsub.f32 %v8030_v14, %v8033_v63  ;;  %v11075_v14 = vld [vmem:[%s13314_s7 + $0x20] sm:$0xff] }
0x3d24   :  { %v8035_v27 = vmul.f32 1.442695, %v8034_v39 }
0x3d25   :  { %v8120_v22 = vpop.permute.xlu1 %8119 }
0x3d26   :  { %10931 = vpow2.f32 %v8035_v27 }
0x3d29   :  { %v8116_v25 = vpop.permute.xlu1 %8115 }
0x3d33   :  { %v10932_v42 = vpop.eup %10931 }
0x3d34   :  { %v8037_v54 = vsel %vm286_vm2, %v10932_v42, 0.0 }
0x3d35   :  { %8038 = vadd.xlane.f32.xlu0 %v8037_v54 }
0x3d4b   :  { %8117 = vrot.lane.b32.xlu0 %v12980_v19, %s11113_s16 }
0x3dbe   :  { %v8039_v36 = vpop.xlane.xlu0 %8038 }
0x3dbf   :  { %10933 = vrcp.f32 %v8039_v36 }
0x3dc2   :  { %v8118_v15 = vpop.permute.xlu0 %8117 }
0x3dcc   :  { %v10934_v40 = vpop.eup %10933 }
0x3dcd   :  { %v8041_v44 = vmul.f32 %v10934_v40, %v10932_v42 }
0x3dcf   :  { %10602 = vmatmul.mubr.msk.f32.vlgmr.msra.gmra.mxu1 %vm286_vm2, %v8041_v44 }
0x3dd0   :  { %10605 = vmatpush3.xpose.msk.msra.mxu1 %vm873_vm11, %v8120_v22  ;;  %10608 = vmatprep.mubr.msk.f32.mxu1 %vm11119_vm13, %v11112_v13 }
0x3dd1   :  { %10606 = vmatprep.subr.mxu1 %v11112_v13 }
0x3dd4   :  { %10607 = vmatpush3.xpose.msk.msra.mxu1 %vm873_vm11, %v8118_v15 }
0x3dd5   :  { %10625 = vmatprep.subr.mxu1 %v11112_v13 }
0x3dd7   :  { %10609 = vmatmul.mubr.msk.f32.vlgmr.msra.gmra.mxu1 %vm873_vm11, %v8116_v25 }
0x3dd8   :  { %10629 = vmatprep.mubr.msk.f32.mxu1 %vm11119_vm13, %v11112_v13 }
0x3e8f   :  { %v13032_v20 = vpop.f32.mrf.mxu1 }
0x3e91   :  { %v10603_v45 = vpop.f32.mrf.mxu1 }
0x3e97   :  { %v8193_v35 = vpop.f32.mrf.mxu1 }
0x3e98   :  { %v8197_v43 = vmul.f32 0.35355338, %v8193_v35 }
0x3e99   :  { %v10610_v53 = vpop.f32.mrf.mxu1 }
0x3e9a   :  { %v8198_v30 = vadd.f32 %v8197_v43, %v13011_v58  ;;  %v11077_v53 = vld [vmem:[%s13311_s6 + $0x210] sm:$0xff] }
0x3e9c   :  { %v8199_v34 = vsel %vm286_vm2, %v8198_v30, -inf }
0x3e9d   :  { %8200 = vmax.xlane.f32.xlu1 %v8199_v34  ;;  %v11079_v34 = vld [vmem:[%s13311_s6 + $0x200] sm:$0xff] }
0x3eae   :  { %8212 = vrot.lane.b32.xlu1 %v12999_v12, %s11113_s16 }
0x3eb2   :  { %8295 = vrot.lane.b32.xlu1 %v12975_v18, %s11114_s19 }
0x3eb6   :  { %8291 = vrot.lane.b32.xlu1 %v12988_v51, %s11114_s19 }
0x3eba   :  { %8386 = vrot.lane.b32.xlu1 %v12999_v12, %s11114_s19 }
0x3f26   :  { %v8201_v49 = vpop.xlane.xlu1 %8200 }
0x3f27   :  { %v8202_v50 = vsub.f32 %v8198_v30, %v8201_v49  ;;  %v11078_v30 = vld [vmem:[%s13311_s6 + $0x208] sm:$0xff] }
0x3f29   :  { %v8203_v1 = vmul.f32 1.442695, %v8202_v50 }
0x3f2a   :  { %v8213_v32 = vpop.permute.xlu1 %8212 }
0x3f2b   :  { %10935 = vpow2.f32 %v8203_v1 }
0x3f2e   :  { %v8296_v2 = vpop.permute.xlu1 %8295 }
0x3f32   :  { %v8292_v4 = vpop.permute.xlu1 %8291 }
0x3f36   :  { %v8387_v16 = vpop.permute.xlu1 %8386 }
0x3f38   :  { %v10936_v10 = vpop.eup %10935 }
0x3f39   :  { %v8205_v61 = vsel %vm286_vm2, %v10936_v10, 0.0 }
0x3f3a   :  { %8206 = vadd.xlane.f32.xlu0 %v8205_v61 }
0x3f50   :  { %8214 = vrot.lane.b32.xlu0 %v12997_v17, %s11113_s16 }
0x3f54   :  { %8293 = vrot.lane.b32.xlu0 %v12980_v19, %s11114_s19 }
0x3fc3   :  { %v8207_v21 = vpop.xlane.xlu0 %8206 }
0x3fc4   :  { %10937 = vrcp.f32 %v8207_v21 }
0x3fc7   :  { %v8215_v29 = vpop.permute.xlu0 %8214 }
0x3fc8   :  { %10612 = vmatpush3.msra.mxu0 %v8215_v29 }
0x3fc9   :  { %10613 = vmatprep.subr.mxu0 %v11112_v13 }
0x3fca   :  { %10614 = vmatpush3.msra.mxu0 %v8213_v32 }
0x3fcb   :  { %10618 = vmatprep.subr.mxu0 %v11112_v13  ;;  %v8294_v48 = vpop.permute.xlu0 %8293 }
0x3fd1   :  { %v10938_v41 = vpop.eup %10937 }
0x3fd2   :  { %v8209_v52 = vmul.f32 %v10938_v41, %v10936_v10  ;;  %v11080_v41 = vld [vmem:[%s13311_s6 + $0x258] sm:$0xff] }
0x3fd4   :  { %10616 = vmatmul.mubr.msk.f32.vlgmr.msra.gmra.mxu0 %vm286_vm2, %v8209_v52  ;;  %v11082_v52 = vld [vmem:[%s13311_s6 + $0x248] sm:$0xff] }
0x3fd5   :  { %10619 = vmatpush3.xpose.msk.msra.mxu0 %vm873_vm11, %v8296_v2  ;;  %10622 = vmatprep.mubr.msk.f32.mxu0 %vm11119_vm13, %v11112_v13  ;;  %v11083_v2 = vld [vmem:[%s13311_s6 + $0x240] sm:$0xff] }
0x3fd6   :  { %10620 = vmatprep.subr.mxu0 %v11112_v13 }
0x3fd9   :  { %10621 = vmatpush3.xpose.msk.msra.mxu0 %vm873_vm11, %v8294_v48  ;;  %v11084_v48 = vld [vmem:[%s13311_s6 + $0x238] sm:$0xff] }
0x3fda   :  { %10639 = vmatprep.subr.mxu0 %v11112_v13 }
0x3fdc   :  { %10623 = vmatmul.mubr.msk.f32.vlgmr.msra.gmra.mxu0 %vm873_vm11, %v8292_v4  ;;  %v11085_v4 = vld [vmem:[%s13311_s6 + $0x230] sm:$0xff] }
0x3fdd   :  { %10643 = vmatprep.mubr.msk.f32.mxu0 %vm11119_vm13, %v11112_v13 }
0x4094   :  { %v8287_v11 = vpop.f32.mrf.mxu0 }
0x4096   :  { %v10617_v37 = vpop.f32.mrf.mxu0 }
0x4097   :  { %v11087_v37 = vld [vmem:[%s13311_s6 + $0x220] sm:$0xff] }
0x409c   :  { %v8369_v62 = vpop.f32.mrf.mxu0 }
0x409d   :  { %v8373_v60 = vmul.f32 0.35355338, %v8369_v62 }
0x409e   :  { %v10624_v9 = vpop.f32.mrf.mxu0 }
0x409f   :  { %v8374_v31 = vadd.f32 %v8373_v60, %v13011_v58  ;;  %v11088_v60 = vld [vmem:[%s13312_s8 + $0x16] ss:$0 sm:$0xff] }
0x40a1   :  { %v8375_v6 = vsel %vm286_vm2, %v8374_v31, -inf }
0x40a2   :  { %8376 = vmax.xlane.f32.xlu0 %v8375_v6 }
0x40b8   :  { %8388 = vrot.lane.b32.xlu0 %v12997_v17, %s11114_s19 }
0x40bc   :  { %8469 = vrot.lane.b32.xlu0 %v12975_v18, %s11115_s20 }
0x40c0   :  { %8465 = vrot.lane.b32.xlu0 %v12988_v51, %s11115_s20 }
0x412b   :  { %v8377_v56 = vpop.xlane.xlu0 %8376 }
0x412c   :  { %v8378_v3 = vsub.f32 %v8374_v31, %v8377_v56 }
0x412e   :  { %v8379_v57 = vmul.f32 1.442695, %v8378_v3 }
0x412f   :  { %v8389_v33 = vpop.permute.xlu0 %8388 }
0x4130   :  { %10939 = vpow2.f32 %v8379_v57  ;;  %10626 = vmatpush3.msra.mxu1 %v8389_v33 }
0x4131   :  { %10627 = vmatprep.subr.mxu1 %v11112_v13 }
0x4132   :  { %10628 = vmatpush3.msra.mxu1 %v8387_v16 }
0x4133   :  { %10632 = vmatprep.subr.mxu1 %v11112_v13  ;;  %v8470_v26 = vpop.permute.xlu0 %8469 }
0x413d   :  { %v10940_v7 = vpop.eup %10939 }
0x413e   :  { %v8381_v59 = vsel %vm286_vm2, %v10940_v7, 0.0 }
0x413f   :  { %8382 = vadd.xlane.f32.xlu1 %v8381_v59 }
0x4150   :  { %8467 = vrot.lane.b32.xlu1 %v12980_v19, %s11115_s20  ;;  %v8466_v19 = vpop.permute.xlu0 %8465 }
0x41c8   :  { %v8383_v18 = vpop.xlane.xlu1 %8382 }
0x41c9   :  { %10941 = vrcp.f32 %v8383_v18 }
0x41cc   :  { %v8468_v28 = vpop.permute.xlu1 %8467 }
0x41d6   :  { %v10942_v51 = vpop.eup %10941 }
0x41d7   :  { %v8385_v24 = vmul.f32 %v10942_v51, %v10940_v7 }
0x41d9   :  { %10630 = vmatmul.mubr.msk.f32.vlgmr.msra.gmra.mxu1 %vm286_vm2, %v8385_v24 }
0x41da   :  { %10633 = vmatpush3.xpose.msk.msra.mxu1 %vm873_vm11, %v8470_v26  ;;  %10636 = vmatprep.mubr.msk.f32.mxu1 %vm11119_vm13, %v11112_v13 }
0x41db   :  { %10634 = vmatprep.subr.mxu1 %v11112_v13 }
0x41de   :  { %10635 = vmatpush3.xpose.msk.msra.mxu1 %vm873_vm11, %v8468_v28 }
0x41df   :  { %10657 = vmatprep.subr.mxu1 %v11112_v13 }
0x41e1   :  { %10637 = vmatmul.mubr.msk.f32.vlgmr.msra.gmra.mxu1 %vm873_vm11, %v8466_v19 }
0x41e2   :  { %10658 = vmatpush3.msra.mxu1 %v11072_v5  ;;  %10665 = vmatprep.mubr.msk.f32.mxu1 %vm11119_vm13, %v11112_v13 }
0x41e3   :  { %10659 = vmatprep.subr.mxu1 %v11112_v13 }
0x41e4   :  { %10660 = vmatpush3.msra.mxu1 %v11073_v8  ;;  %v4700_v8 = vrot.slane %v11621_v55, 1  ;;  %v11091_v55 = vld [vmem:[%s13311_s6 + $0x278] sm:$0xff] }
0x41e5   :  { %10661 = vmatprep.subr.mxu1 %v11112_v13 }
0x41e6   :  { %10662 = vmatpush3.msra.mxu1 %v11074_v47  ;;  %v11089_v47 = vld [vmem:[%s13312_s8 + $0x17] ss:$0 sm:$0xff] }
0x41e7   :  { %10663 = vmatprep.subr.mxu1 %v11112_v13 }
0x41e8   :  { %10664 = vmatpush3.msra.mxu1 %v11075_v14 }
0x41e9   :  { %10687 = vmatprep.subr.mxu1 %v11112_v13 }
0x4299   :  { %v8461_v46 = vpop.f32.mrf.mxu1 }
0x429b   :  { %v10631_v63 = vpop.f32.mrf.mxu1 }
0x429c   :  { %v4702_v63 = vmul.f32 %v4700_v8, %v12428_v0  ;;  %v11103_v8 = vld [vmem:[%s13311_s6 + $0x20] sm:$0xff] }
0x42a1   :  { %v8543_v39 = vpop.f32.mrf.mxu1 }
0x42a2   :  { %v8547_v27 = vmul.f32 0.35355338, %v8543_v39 }
0x42a3   :  { %v10638_v42 = vpop.f32.mrf.mxu1 }
0x42a4   :  { %v8548_v54 = vadd.f32 %v8547_v27, %v13011_v58  ;;  %v11090_v27 = vld [vmem:[%s13312_s8 + $0x18] ss:$0 sm:$0xff] }
0x42a6   :  { %v8549_v36 = vsel %vm286_vm2, %v8548_v54, -inf }
0x42a7   :  { %8550 = vmax.xlane.f32.xlu1 %v8549_v36  ;;  %v11093_v36 = vld [vmem:[%s13311_s6 + $0x268] sm:$0xff] }
0x42b8   :  { %8560 = vrot.lane.b32.xlu1 %v12999_v12, %s11115_s20 }
0x42bc   :  { %8640 = vrot.lane.b32.xlu1 %v8287_v11, %s11116_s21  ;;  %v11086_v11 = vld [vmem:[%s13311_s6 + $0x228] sm:$0xff] }
0x4330   :  { %v8551_v40 = vpop.xlane.xlu1 %8550 }
0x4331   :  { %v8552_v44 = vsub.f32 %v8548_v54, %v8551_v40  ;;  %v11092_v54 = vld [vmem:[%s13311_s6 + $0x270] sm:$0xff]  ;;  %v11094_v40 = vld [vmem:[%s13311_s6 + $0x260] sm:$0xff] }
0x4333   :  { %v8553_v22 = vmul.f32 1.442695, %v8552_v44 }
0x4334   :  { %v8561_v12 = vpop.permute.xlu1 %8560 }
0x4335   :  { %10943 = vpow2.f32 %v8553_v22  ;;  %v4683_v22 = vld [vmem:[%s13316_s5] sm:$0xff] }
0x4338   :  { %v8641_v1 = vpop.permute.xlu1 %8640 }
0x4339   :  { %v8651_v61 = vsel %vm873_vm11, %v13032_v20, %v8641_v1  ;;  %v11081_v20 = vld [vmem:[%s13311_s6 + $0x250] sm:$0xff]  ;;  %vm4684_vm11 = vcmp.ne.s32.totalorder %v4683_v22, 0  ;;  %v11096_v1 = vld [vmem:[%s13312_s8 + $0x19] ss:$0 sm:$0xff] }
0x4342   :  { %v10944_v15 = vpop.eup %10943 }
0x4343   :  { %v8555_v25 = vsel %vm286_vm2, %v10944_v15, 0.0 }
0x4344   :  { %8556 = vadd.xlane.f32.xlu0 %v8555_v25  ;;  %v13214_v25 = vsel %vm4684_vm11, 1.0, %v11112_v13 }
0x435a   :  { %8562 = vrot.lane.b32.xlu0 %v12997_v17, %s11115_s20  ;;  %v11076_v17 = vld [vmem:[%s13311_s6 + $0x218] sm:$0xff] }
0x435e   :  { %8644 = vrot.lane.b32.xlu0 %v8461_v46, %s11117_s22 }
0x43cd   :  { %v8557_v58 = vpop.xlane.xlu0 %8556 }
0x43ce   :  { %10945 = vrcp.f32 %v8557_v58 }
0x43d1   :  { %v8563_v45 = vpop.permute.xlu0 %8562 }
0x43d2   :  { %10640 = vmatpush3.msra.mxu0 %v8563_v45 }
0x43d3   :  { %10641 = vmatprep.subr.mxu0 %v11112_v13 }
0x43d4   :  { %10642 = vmatpush3.msra.mxu0 %v8561_v12 }
0x43d5   :  { %10646 = vmatprep.subr.mxu0 %v11112_v13  ;;  %v8645_v10 = vpop.permute.xlu0 %8644 }
0x43d6   :  { %v8652_v21 = vsel %vm286_vm2, %v8651_v61, %v8645_v10 }
0x43db   :  { %v10946_v35 = vpop.eup %10945 }
0x43dc   :  { %v8559_v43 = vmul.f32 %v10946_v35, %v10944_v15  ;;  %v11095_v15 = vld [vmem:[%s13313_s4] sm:$0xff] }
0x43de   :  { %10644 = vmatmul.mubr.msk.f32.vlgmr.msra.gmra.mxu0 %vm286_vm2, %v8559_v43  ;;  %vm4687_vm2 = vcmask 522240  }
0x43df   :  { %10647 = vmatpush3.msra.mxu0 %v11076_v17  ;;  %10654 = vmatprep.mubr.msk.f32.mxu0 %vm11119_vm13, %v11112_v13  ;;  %v4688_v59 = vsel %vm4687_vm2, %v12428_v0, -inf }
0x43e0   :  { %10648 = vmatprep.subr.mxu0 %v11112_v13 }
0x43e1   :  { %10649 = vmatpush3.msra.mxu0 %v11077_v53 }
0x43e2   :  { %10650 = vmatprep.subr.mxu0 %v11112_v13 }
0x43e3   :  { %10651 = vmatpush3.msra.mxu0 %v11078_v30 }
0x43e4   :  { %10652 = vmatprep.subr.mxu0 %v11112_v13 }
0x43e5   :  { %10653 = vmatpush3.msra.mxu0 %v11079_v34 }
0x43e6   :  { %10668 = vmatprep.subr.mxu0 %v11112_v13 }
0x449e   :  { %v8635_v49 = vpop.f32.mrf.mxu0 }
0x449f   :  { %8648 = vrot.lane.b32.xlu1 %v8635_v49, %s11118_s10 }
0x44a0   :  { %v10645_v50 = vpop.f32.mrf.mxu0 }
0x4511   :  { %v8649_v29 = vpop.permute.xlu1 %8648 }
0x4512   :  { %v8653_v32 = vsel %vm1710_vm12, %v8652_v21, %v8649_v29  ;;  %vm4706_vm12 = vcmp.ne.s32.totalorder %v11095_v15, 4294967295 }
0x4513   :  { %10655 = vmatmul.mubr.msk.f32.vlgmr.msra.gmra.mxu0 %vm497_vm9, %v8653_v32  ;;  %v9282_v58 = vsel %vm4706_vm12, 1.0, %v11112_v13 }
0x4514   :  { %10669 = vmatpush3.msra.mxu0 %v11080_v41  ;;  %10684 = vmatprep.mubr.msk.f32.mxu0 %vm11119_vm13, %v11112_v13  ;;  %v13218_v45 = vmul.f32 %v9282_v58, %v13214_v25  ;;  %v9069_v58 = vrot.slane %v12693_v38, 1  ;;  %v4739_v38 = vrot.slane %v13214_v25, 1 }
0x4515   :  { %10670 = vmatprep.subr.mxu0 %v11112_v13 }
0x4516   :  { %10671 = vmatpush3.msra.mxu0 %v11081_v20  ;;  %v4712_v17 = vrot.slane %v13218_v45, 1 }
0x4517   :  { %10672 = vmatprep.subr.mxu0 %v11112_v13 }
0x4518   :  { %10673 = vmatpush3.msra.mxu0 %v11082_v52 }
0x4519   :  { %10674 = vmatprep.subr.mxu0 %v11112_v13 }
0x451a   :  { %10675 = vmatpush3.msra.mxu0 %v11083_v2 }
0x451b   :  { %10676 = vmatprep.subr.mxu0 %v11112_v13 }
0x451c   :  { %10677 = vmatpush3.msra.mxu0 %v11084_v48 }
0x451d   :  { %10678 = vmatprep.subr.mxu0 %v11112_v13 }
0x451e   :  { %10679 = vmatpush3.msra.mxu0 %v11085_v4 }
0x451f   :  { %10680 = vmatprep.subr.mxu0 %v11112_v13 }
0x4520   :  { %10681 = vmatpush3.msra.mxu0 %v11086_v11  ;;  %v11097_v11 = vld [vmem:[%s13312_s8 + $0x1a] ss:$0 sm:$0xff] }
0x4521   :  { %10682 = vmatprep.subr.mxu0 %v11112_v13 }
0x4522   :  { %10683 = vmatpush3.msra.mxu0 %v11087_v37 }
0x45d3   :  { %v8723_v62 = vpop.f32.mrf.mxu0 }
0x45d4   :  { %v8724_v9 = vadd.f32 %v11088_v60, %v8723_v62 }
0x45d5   :  { %v10656_v31 = vpop.f32.mrf.mxu0 }
0x45d6   :  { %v8727_v6 = vadd.f32 %v8724_v9, %v12953_v23 }
0x45d8   :  { %v8728_v56 = vsel %vm497_vm9, %v8727_v6, 0.0 }
0x45d9   :  { %8729 = vadd.xlane.f32.xlu0 %v8728_v56 }
0x4662   :  { %v8730_v3 = vpop.xlane.xlu0 %8729 }
0x4663   :  { %v8731_v57 = vmul.f32 0.03125, %v8730_v3 }
0x4665   :  { %v8732_v33 = vsub.f32 %v8727_v6, %v8731_v57 }
0x4667   :  { %v8733_v16 = vmul.f32 %v8732_v33, %v8732_v33 }
0x4669   :  { %v8734_v7 = vsel %vm497_vm9, %v8733_v16, 0.0 }
0x466a   :  { %8735 = vadd.xlane.f32.xlu1 %v8734_v7 }
0x466e   :  { %4689 = vmax.xlane.f32.xlu1 %v4688_v59 }
0x46f3   :  { %v8736_v18 = vpop.xlane.xlu1 %8735 }
0x46f4   :  { %v8737_v51 = vmul.f32 0.03125, %v8736_v18 }
0x46f6   :  { %v8738_v24 = vadd.f32 1e-05, %v8737_v51  ;;  %v11098_v51 = vld [vmem:[%s13312_s8 + $0x1b] ss:$0 sm:$0xff] }
0x46f7   :  { %v4690_v26 = vpop.xlane.xlu1 %4689 }
0x46f8   :  { %10947 = vrsqrt.f32 %v8738_v24  ;;  %v4691_v23 = vsub.f32 %v12428_v0, %v4690_v26  ;;  %v4703_v0 = vsel %vm4687_vm2, %v4702_v63, 0.0  ;;  %v11107_v63 = vld [vmem:[%s13311_s6] sm:$0xff] }
0x46fa   :  { %v4692_v28 = vmul.f32 1.442695, %v4691_v23 }
0x46fc   :  { %10949 = vpow2.f32 %v4692_v28  ;;  %v11100_v28 = vld [vmem:[%s13311_s6 + $0x38] sm:$0xff] }
0x4705   :  { %v10948_v19 = vpop.eup %10947 }
0x4706   :  { %v8740_v5 = vmul.f32 %v10948_v19, %v8732_v33  ;;  %v11101_v19 = vld [vmem:[%s13311_s6 + $0x30] sm:$0xff] }
0x4708   :  { %v8741_v14 = vmul.f32 %v11089_v47, %v8740_v5  ;;  %v11102_v5 = vld [vmem:[%s13311_s6 + $0x28] sm:$0xff]  ;;  %v11104_v47 = vld [vmem:[%s13311_s6 + $0x18] sm:$0xff] }
0x4709   :  { %v10950_v46 = vpop.eup %10949 }
0x470a   :  { %v4694_v39 = vsel %vm4687_vm2, %v10950_v46, 0.0  ;;  %v8742_v42 = vadd.f32 %v11090_v27, %v8741_v14  ;;  %v11105_v14 = vld [vmem:[%s13311_s6 + $0x10] sm:$0xff]  ;;  %v11106_v46 = vld [vmem:[%s13311_s6 + $0x8] sm:$0xff]  ;;  %v11108_v27 = vld [vmem:[%s13312_s8 + $0x1d] ss:$0 sm:$0xff] }
0x470b   :  { %4695 = vadd.xlane.f32.xlu1 %v4694_v39 }
0x470c   :  { %10666 = vmatmul.mubr.msk.f32.vlgmr.msra.gmra.mxu1 %vm497_vm9, %v8742_v42 }
0x470d   :  { %10688 = vmatpush3.msra.mxu1 %v11091_v55  ;;  %10695 = vmatprep.mubr.msk.f32.mxu1 %vm11119_vm13, %v11112_v13 }
0x470e   :  { %10689 = vmatprep.subr.mxu1 %v11112_v13 }
0x470f   :  { %4704 = vadd.xlane.f32.xlu1 %v4703_v0  ;;  %10690 = vmatpush3.msra.mxu1 %v11092_v54 }
0x4710   :  { %10691 = vmatprep.subr.mxu1 %v11112_v13 }
0x4711   :  { %10692 = vmatpush3.msra.mxu1 %v11093_v36 }
0x4712   :  { %10693 = vmatprep.subr.mxu1 %v11112_v13 }
0x4713   :  { %10694 = vmatpush3.msra.mxu1 %v11094_v40 }
0x4714   :  { %10698 = vmatprep.subr.mxu1 %v11112_v13 }
0x4794   :  { %v4696_v44 = vpop.xlane.xlu1 %4695 }
0x4795   :  { %10951 = vlog2.f32 %v4696_v44 }
0x4798   :  { %v4705_v53 = vpop.xlane.xlu1 %4704 }
0x47a2   :  { %v10952_v12 = vpop.eup %10951 }
0x47a3   :  { %v4698_v35 = vmul.f32 0.6931472, %v10952_v12 }
0x47a5   :  { %v4699_v43 = vadd.f32 %v4698_v35, %v4690_v26  ;;  %v11099_v26 = vld [vmem:[%s13312_s8 + $0x1c] ss:$0 sm:$0xff] }
0x47a7   :  { %v4710_v30 = vsub.f32 %v4699_v43, %v4705_v53 }
0x47a9   :  { %v4714_v34 = vmul.f32 %v4712_v17, %v4710_v30  ;;  %v11109_v30 = vld [vmem:[%s13313_s4 + $0x8] sm:$0xff] }
0x47ab   :  { %v4716_v49 = vsel %vm4715_vm8, %v4714_v34, 0.0 }
0x47ac   :  { %4717 = vadd.xlane.f32.xlu1 %v4716_v49  ;;  %v9053_v49 = vld [vmem:[%s13316_s5 + $0x8] sm:$0xff] }
0x47cc   :  { %v8812_v50 = vpop.f32.mrf.mxu1 }
0x47cd   :  { %v8813_v10 = vadd.f32 %v11096_v1, %v8812_v50 }
0x47ce   :  { %v10667_v61 = vpop.f32.mrf.mxu1 }
0x47cf   :  { %v8816_v21 = vmax.f32 %v8813_v10, 0.0  ;;  %v4741_v10 = vsel %vm4715_vm8, %v4739_v38, 0.0  ;;  %v4727_v61 = vsel %vm4715_vm8, %v4712_v17, 0.0 }
0x47d0   :  { %4742 = vadd.xlane.f32.xlu1 %v4741_v10 }
0x47d1   :  { %10685 = vmatmul.mubr.msk.f32.vlgmr.msra.gmra.mxu0 %vm180_vm3, %v8816_v21  ;;  %vm9075_vm3 = vcmp.ne.s32.totalorder %v11109_v30, 4294967295 }
0x47d2   :  { %v9396_v34 = vsel %vm9075_vm3, 1.0, %v11112_v13 }
0x4835   :  { %v4718_v29 = vpop.xlane.xlu1 %4717 }
0x4836   :  { %v4719_v32 = vrot.slane %v4718_v29, 4 }
0x4838   :  { %v4720_v41 = vadd.f32 %v4719_v32, %v4718_v29 }
0x483a   :  { %v4721_v20 = vrot.slane %v4720_v41, 2 }
0x483c   :  { %v4722_v52 = vadd.f32 %v4721_v20, %v4720_v41 }
0x483e   :  { %v4723_v2 = vrot.slane %v4722_v52, 1 }
0x4840   :  { %v4724_v48 = vadd.f32 %v4723_v2, %v4722_v52 }
0x4842   :  { %10717 = vpush %v4724_v48 }
0x4859   :  { %v4743_v45 = vpop.xlane.xlu1 %4742 }
0x485a   :  { %v4744_v17 = vrot.slane %v4743_v45, 4 }
0x4873   :  { %s10718_s4 = spop %10717 }
0x4891   :  { %v8886_v4 = vpop.f32.mrf.mxu0 }
0x4892   :  { %v8887_v37 = vadd.f32 %v11097_v11, %v8886_v4 }
0x4893   :  { %v10686_v62 = vpop.f32.mrf.mxu0 }
0x4894   :  { %v8890_v60 = vadd.f32 %v8887_v37, %v8742_v42 }
0x4896   :  { %v8891_v9 = vsel %vm497_vm9, %v8890_v60, 0.0 }
0x4897   :  { %8892 = vadd.xlane.f32.xlu0 %v8891_v9 }
0x4920   :  { %v8893_v31 = vpop.xlane.xlu0 %8892 }
0x4921   :  { %v8894_v6 = vmul.f32 0.03125, %v8893_v31 }
0x4923   :  { %v8895_v56 = vsub.f32 %v8890_v60, %v8894_v6  ;;  %v4745_v60 = vadd.f32 %v4744_v17, %v4743_v45 }
0x4925   :  { %v8896_v3 = vmul.f32 %v8895_v56, %v8895_v56  ;;  %v4746_v31 = vrot.slane %v4745_v60, 2 }
0x4927   :  { %v8897_v57 = vsel %vm497_vm9, %v8896_v3, 0.0  ;;  %v4747_v3 = vadd.f32 %v4746_v31, %v4745_v60 }
0x4928   :  { %8898 = vadd.xlane.f32.xlu0 %v8897_v57 }
0x49b1   :  { %v8899_v33 = vpop.xlane.xlu0 %8898 }
0x49b2   :  { %v8900_v16 = vmul.f32 0.03125, %v8899_v33  ;;  %v4748_v33 = vrot.slane %v4747_v3, 1 }
0x49b4   :  { %v8901_v7 = vadd.f32 1e-05, %v8900_v16 }
0x49b6   :  { %10953 = vrsqrt.f32 %v8901_v7  ;;  %v4749_v7 = vadd.f32 %v4748_v33, %v4747_v3 }
0x49c3   :  { %v10954_v59 = vpop.eup %10953 }
0x49c4   :  { %v8903_v18 = vmul.f32 %v10954_v59, %v8895_v56 }
0x49c6   :  { %v8904_v24 = vmul.f32 %v11098_v51, %v8903_v18 }
0x49c8   :  { %v8905_v23 = vadd.f32 %v11099_v26, %v8904_v24 }
0x49ca   :  { %10696 = vmatmul.mubr.msk.f32.vlgmr.msra.gmra.mxu1 %vm497_vm9, %v8905_v23 }
0x49cb   :  { %10699 = vmatpush3.xpose.msk.msra.mxu1 %vm497_vm9, %v11100_v28  ;;  %10714 = vmatprep.mubr.msk.f32.mxu1 %vm11119_vm13, %v11112_v13  ;;  %vm9129_vm13 = vcmask 7168  }
0x49cc   :  { %10700 = vmatprep.subr.mxu1 %v11112_v13 }
0x49cf   :  { %10701 = vmatpush3.xpose.msk.msra.mxu1 %vm497_vm9, %v11101_v19 }
0x49d0   :  { %10702 = vmatprep.subr.mxu1 %v11112_v13 }
0x49d3   :  { %10703 = vmatpush3.xpose.msk.msra.mxu1 %vm497_vm9, %v11102_v5 }
0x49d4   :  { %10704 = vmatprep.subr.mxu1 %v11112_v13 }
0x49d7   :  { %10705 = vmatpush3.xpose.msk.msra.mxu1 %vm497_vm9, %v11103_v8 }
0x49d8   :  { %10706 = vmatprep.subr.mxu1 %v11112_v13 }
0x49db   :  { %10707 = vmatpush3.xpose.msk.msra.mxu1 %vm497_vm9, %v11104_v47 }
0x49dc   :  { %10708 = vmatprep.subr.mxu1 %v11112_v13 }
0x49df   :  { %10709 = vmatpush3.xpose.msk.msra.mxu1 %vm497_vm9, %v11105_v14 }
0x49e0   :  { %10710 = vmatprep.subr.mxu1 %v11112_v13 }
0x49e3   :  { %10711 = vmatpush3.xpose.msk.msra.mxu1 %vm497_vm9, %v11106_v46 }
0x49e4   :  { %10712 = vmatprep.subr.mxu1 %v11112_v13 }
0x49e7   :  { %10713 = vmatpush3.xpose.msk.msra.mxu1 %vm497_vm9, %v11107_v63 }
0x4a8a   :  { %v8975_v39 = vpop.f32.mrf.mxu1 }
0x4a8b   :  { %v8976_v42 = vadd.f32 %v11108_v27, %v8975_v39 }
0x4a8c   :  { %v10697_v55 = vpop.f32.mrf.mxu1 }
0x4a8d   :  { %10955 = vtanh.f32 %v8976_v42 }
0x4a9a   :  { %v10956_v0 = vpop.eup %10955 }
0x4a9b   :  { %10715 = vmatmul.mubr.msk.f32.vlgmr.msra.gmra.mxu1 %vm497_vm9, %v10956_v0  ;;  %vm9054_vm9 = vcmp.ne.s32.totalorder %v9053_v49, 0 }
0x4a9c   :  { %v9395_v50 = vsel %vm9054_vm9, 1.0, %v11112_v13 }
0x4a9d   :  { %v9078_v1 = vmul.f32 %v9396_v34, %v9395_v50  ;;  %v9107_v48 = vrot.slane %v9395_v50, 1 }
0x4a9f   :  { %v9081_v21 = vrot.slane %v9078_v1, 1  ;;  %v9109_v62 = vsel %vm4715_vm8, %v9107_v48, 0.0 }
0x4aa1   :  { %v9095_v29 = vsel %vm4715_vm8, %v9081_v21, 0.0 }
0x4aa2   :  { %9096 = vadd.xlane.f32.xlu1 %v9095_v29 }
0x4b2b   :  { %v9097_v59 = vpop.xlane.xlu1 %9096 }
0x4b2c   :  { %v9098_v18 = vrot.slane %v9097_v59, 4 }
0x4b2e   :  { %v9099_v51 = vadd.f32 %v9098_v18, %v9097_v59 }
0x4b30   :  { %v9100_v24 = vrot.slane %v9099_v51, 2 }
0x4b32   :  { %v9101_v19 = vadd.f32 %v9100_v24, %v9099_v51 }
0x4b34   :  { %v9102_v63 = vrot.slane %v9101_v19, 1 }
0x4b36   :  { %v9103_v0 = vadd.f32 %v9102_v63, %v9101_v19 }
0x4b5b   :  { %v9049_v54 = vpop.f32.mrf.mxu1 }
0x4b5c   :  { %v9057_v36 = vsel %vm4687_vm2, %v9049_v54, -inf  ;;  %v9071_v35 = vmul.f32 %v9069_v58, %v9049_v54 }
0x4b5d   :  { %9058 = vmax.xlane.f32.xlu0 %v9057_v36  ;;  %v10716_v40 = vpop.f32.mrf.mxu1 }
0x4b5e   :  { %v9072_v53 = vsel %vm4687_vm2, %v9071_v35, 0.0 }
0x4be6   :  { %v9059_v44 = vpop.xlane.xlu0 %9058 }
0x4be7   :  { %v9060_v22 = vsub.f32 %v9049_v54, %v9059_v44 }
0x4be9   :  { %v9061_v15 = vmul.f32 1.442695, %v9060_v22 }
0x4beb   :  { %10957 = vpow2.f32 %v9061_v15 }
0x4bf8   :  { %v10958_v12 = vpop.eup %10957 }
0x4bf9   :  { %v9063_v43 = vsel %vm4687_vm2, %v10958_v12, 0.0 }
0x4bfa   :  { %9064 = vadd.xlane.f32.xlu0 %v9063_v43 }
0x4bfe   :  { %9073 = vadd.xlane.f32.xlu0 %v9072_v53 }
0x4c02   :  { %4728 = vadd.xlane.f32.xlu0 %v4727_v61 }
0x4c83   :  { %v9065_v32 = vpop.xlane.xlu0 %9064 }
0x4c84   :  { %10959 = vlog2.f32 %v9065_v32 }
0x4c87   :  { %v9074_v52 = vpop.xlane.xlu0 %9073 }
0x4c8b   :  { %v4729_v11 = vpop.xlane.xlu0 %4728 }
0x4c8c   :  { %v4730_v37 = vrot.slane %v4729_v11, 4 }
0x4c8e   :  { %v4731_v9 = vadd.f32 %v4730_v37, %v4729_v11 }
0x4c90   :  { %v4732_v6 = vrot.slane %v4731_v9, 2 }
0x4c91   :  { %v10960_v41 = vpop.eup %10959 }
0x4c92   :  { %v9067_v20 = vmul.f32 0.6931472, %v10960_v41  ;;  %v4733_v56 = vadd.f32 %v4732_v6, %v4731_v9 }
0x4c94   :  { %v9068_v25 = vadd.f32 %v9067_v20, %v9059_v44  ;;  %v4734_v57 = vrot.slane %v4733_v56, 1 }
0x4c96   :  { %v9079_v13 = vsub.f32 %v9068_v25, %v9074_v52  ;;  %v4735_v16 = vadd.f32 %v4734_v57, %v4733_v56 }
0x4c98   :  { %v9083_v2 = vmul.f32 %v9081_v21, %v9079_v13  ;;  %10719 = vpush %v4735_v16 }
0x4c99   :  { %10721 = vpush %v4749_v7 }
0x4c9a   :  { %v9084_v4 = vsel %vm4715_vm8, %v9083_v2, 0.0 }
0x4c9b   :  { %9085 = vadd.xlane.f32.xlu0 %v9084_v4 }
0x4c9f   :  { %9110 = vadd.xlane.f32.xlu0 %v9109_v62 }
0x4cc9   :  { %s10720_s5 = spop %10719 }
0x4cca   :  { %s10722_s3 = spop %10721 }
0x4d24   :  { %v9086_v26 = vpop.xlane.xlu0 %9085 }
0x4d25   :  { %v9087_v23 = vrot.slane %v9086_v26, 4 }
0x4d27   :  { %v9088_v28 = vadd.f32 %v9087_v23, %v9086_v26 }
0x4d28   :  { %v9111_v5 = vpop.xlane.xlu0 %9110 }
0x4d29   :  { %v9089_v8 = vrot.slane %v9088_v28, 2  ;;  %v9112_v47 = vrot.slane %v9111_v5, 4 }
0x4d2b   :  { %v9113_v14 = vadd.f32 %v9112_v47, %v9111_v5  ;;  %v9090_v46 = vadd.f32 %v9089_v8, %v9088_v28 }
0x4d2d   :  { %v9114_v39 = vrot.slane %v9113_v14, 2  ;;  %v9091_v27 = vrot.slane %v9090_v46, 1 }
0x4d2f   :  { %v9115_v42 = vadd.f32 %v9114_v39, %v9113_v14  ;;  %v9092_v55 = vadd.f32 %v9091_v27, %v9090_v46 }
0x4d31   :  { %10723 = vpush %v9092_v55  ;;  %v9116_v54 = vrot.slane %v9115_v42, 1 }
0x4d32   :  { %10725 = vpush %v9103_v0 }
0x4d33   :  { %v9117_v36 = vadd.f32 %v9116_v54, %v9115_v42 }
0x4d35   :  { %10727 = vpush %v9117_v36 }
0x4d62   :  { %s10724_s16 = spop %10723 }
0x4d63   :  { %s10726_s19 = spop %10725  ;;  %s9094_s0 = sadd.f32 %s10724_s16, %s10718_s4 }
0x4d64   :  { %s9105_s2 = sadd.f32 %s10726_s19, %s10720_s5 }
0x4d66   :  { %s9120_s23 = smax.f32 %s11123_s18, %s9105_s2  ;;  %s10728_s24 = spop %10727 }
0x4d67   :  { %v9121_v40 = vstv %s9120_s23  ;;  %s9119_s21 = sadd.f32 %s10728_s24, %s10722_s3 }
0x4d68   :  { %10961 = vrcp.f32 %v9121_v40 }
0x4d69   :  { %v9128_v58 = vstv %s9119_s21 }
0x4d75   :  { %v10962_v44 = vpop.eup %10961 }
0x4d76   :  { %10729 = vpush %v10962_v44 }
0x4da7   :  { %s10730_s7 = spop %10729 }
0x4da8   :  { %s9124_s20 = smul.f32 %s10730_s7, %s9094_s0 }
0x4daa   :  { %s9126_s22 = smul.f32 %s9124_s20, %s9119_s21  ;;  %v9125_v22 = vstv %s9124_s20 }
0x4dac   :  { %v9127_v15 = vstv %s9126_s22 }
0x4dad   :  { %v9130_v12 = vsel %vm9129_vm13, %v9125_v22, %v9127_v15 }
0x4dae   :  { %v9132_v35 = vsel %vm9131_vm10, %v9130_v12, %v9128_v58 }
0x4daf   :  { %9134 = vst.msk [vmem:[%s13317_s9] sm:$0x1] %vm9133_vm14, %v9132_v35 }

</bundles_post_ra>
